<compile_context>
chip_gen: v5e
topology: v5e:2x2
jax: 0.10.0
libtpu: 0.0.40
codegen_flags: <defaults>
</compile_context>

<pallas_src>
import functools
import math

import jax
import jax.numpy as jnp
from jax.experimental import pallas as pl
from jax.experimental.pallas import tpu as pltpu


_INV_SQRT_2 = 1.0 / math.sqrt(2.0)


# ----------------------------------------------------------------------------
# Small in-kernel helpers
# ----------------------------------------------------------------------------

def _erf_approx(x):
    # Abramowitz & Stegun 7.1.26 rational approximation (max abs err ~1.5e-7),
    # uses only VPU/EUP-supported ops (erf has no direct Mosaic primitive).
    a1, a2, a3, a4, a5 = (0.254829592, -0.284496736, 1.421413741,
                          -1.453152027, 1.061405429)
    p = 0.3275911
    s = jnp.where(x >= 0.0, 1.0, -1.0)
    ax = jnp.abs(x)
    t = 1.0 / (1.0 + p * ax)
    poly = ((((a5 * t + a4) * t + a3) * t + a2) * t + a1) * t
    return s * (1.0 - poly * jnp.exp(-ax * ax))


def _layernorm_channels(x, w, b):
    # WithBias LayerNorm over the channel (sublane) axis; eps=1e-5, biased variance.
    mu = jnp.mean(x, axis=0, keepdims=True)
    xc = x - mu
    var = jnp.mean(xc * xc, axis=0, keepdims=True)
    return xc * jax.lax.rsqrt(var + 1e-5) * w + b


def _spatial_indices(L, W):
    # (1, L) int32 row / column indices of the flattened (H, W) spatial axis.
    l_idx = jax.lax.broadcasted_iota(jnp.int32, (1, L), 1)
    if W & (W - 1) == 0:                       # power-of-two fast path (no vector div)
        h_idx = l_idx >> (W.bit_length() - 1)
        w_idx = l_idx & (W - 1)
    else:
        h_idx = l_idx // W
        w_idx = l_idx - h_idx * W
    return h_idx, w_idx


def _make_border_masks(H, W, L):
    # Hoisted once per kernel: the 8 off-centre (di, dj) validity masks of the 3x3
    # stencil, built from six 1-D row/col comparisons (iota -> compare -> AND).
    h_idx, w_idx = _spatial_indices(L, W)
    row_ok = {d: (h_idx + d >= 0) & (h_idx + d < H) for d in (-1, 0, 1)}
    col_ok = {d: (w_idx + d >= 0) & (w_idx + d < W) for d in (-1, 0, 1)}
    return {(di, dj): row_ok[di] & col_ok[dj]
            for di in (-1, 0, 1) for dj in (-1, 0, 1) if (di, dj) != (0, 0)}


def _probe_roll_semantics():
    # One-time defensive check of pltpu.roll's rotation direction (expected to match
    # np.roll: out[i] = x[(i - shift) % n]) so the depthwise-conv neighbour shifts are
    # provably correct regardless of backend convention.
    def k(x_ref, o_ref):
        o_ref[...] = pltpu.roll(x_ref[...], shift=1, axis=1)

    try:
        x = jnp.arange(128, dtype=jnp.float32).reshape(1, 128)
        y = pl.pallas_call(
            k, out_shape=jax.ShapeDtypeStruct((1, 128), jnp.float32))(x)
        return bool(jax.device_get(y)[0, 0] == 127.0)
    except Exception:  # pragma: no cover — fall back to documented np.roll behaviour
        return True


_ROLL_LIKE_NUMPY = _probe_roll_semantics()


def _dwconv3x3_flat(x, w9, masks, W, L):
    # Depthwise 3x3 (stride 1, zero padding 1) on a (C, L=H*W) activation held in VMEM.
    # Neighbours are fetched with lane rotations (XLU) on the flattened spatial axis;
    # borders are zeroed with the precomputed masks, so no padded copy is materialised.
    #   x:  (C, L) float32,  w9: (C, 9) per-channel taps laid out ki*3 + kj.
    acc = x * w9[:, 4:5]                       # centre tap (di=dj=0): no roll, no mask
    for ki in range(3):
        for kj in range(3):
            di, dj = ki - 1, kj - 1
            if di == 0 and dj == 0:
                continue
            s = di * W + dj                    # flat offset of neighbour (h+di, w+dj)
            # want nbr[:, l] == x[:, l + s]; wrapped lanes are masked out below.
            amt = ((-s) % L) if _ROLL_LIKE_NUMPY else (s % L)
            nbr = pltpu.roll(x, shift=amt, axis=1)
            nbr = jnp.where(masks[(di, dj)], nbr, 0.0)
            t = ki * 3 + kj
            acc = acc + nbr * w9[:, t:t + 1]
    return acc


# ----------------------------------------------------------------------------
# Fused Pallas kernels (one residual branch each)
# ----------------------------------------------------------------------------

def _attn_block_kernel(temp_ref, x_ref, lnw_ref, lnb_ref, wqkv_ref, wdw_ref,
                       wproj_ref, o_ref, *, H, W, num_heads):
    C, L = x_ref.shape
    hc = C // num_heads
    x = x_ref[...].astype(jnp.float32)

    # LayerNorm1 over channels.
    y = _layernorm_channels(x, lnw_ref[...], lnb_ref[...])

    # qkv 1x1 conv == channel matmul: (3C, C) @ (C, L) -> (3C, L), stays in VMEM.
    qkv = jnp.dot(wqkv_ref[...], y, preferred_element_type=jnp.float32)

    # Depthwise 3x3 over all 3C channels.
    masks = _make_border_masks(H, W, L)
    qkv = _dwconv3x3_flat(qkv, wdw_ref[...], masks, W, L)

    # Channel ("transposed") attention — all heads handled in this single invocation;
    # q/k/v are sublane-aligned slices of the packed qkv activation (no HBM split).
    outs = []
    for h in range(num_heads):
        r = h * hc
        qh = qkv[r:r + hc, :]
        kh = qkv[C + r:C + r + hc, :]
        vh = qkv[2 * C + r:2 * C + r + hc, :]
        # F.normalize(dim=-1): x / max(||x||_2, 1e-12)
        qn = qh / jnp.maximum(
            jnp.sqrt(jnp.sum(qh * qh, axis=-1, keepdims=True)), 1e-12)
        kn = kh / jnp.maximum(
            jnp.sqrt(jnp.sum(kh * kh, axis=-1, keepdims=True)), 1e-12)
        attn = jnp.dot(qn, kn.T, preferred_element_type=jnp.float32) * temp_ref[h]
        attn = attn - jnp.max(attn, axis=-1, keepdims=True)
        e = jnp.exp(attn)
        p = e / jnp.sum(e, axis=-1, keepdims=True)
        outs.append(jnp.dot(p, vh, preferred_element_type=jnp.float32))
    attn_out = jnp.concatenate(outs, axis=0) if num_heads > 1 else outs[0]

    # Output projection + residual add, fused into the same kernel.
    proj = jnp.dot(wproj_ref[...], attn_out, preferred_element_type=jnp.float32)
    o_ref[...] = (x + proj).astype(o_ref.dtype)


def _ffn_block_kernel(x_ref, lnw_ref, lnb_ref, w1_ref, w2_ref, dw1_ref, dw2_ref,
                      wout_ref, o_ref, *, H, W):
    C, L = x_ref.shape
    x = x_ref[...].astype(jnp.float32)

    # LayerNorm2 over channels.
    y = _layernorm_channels(x, lnw_ref[...], lnb_ref[...])

    masks = _make_border_masks(H, W, L)
    # project_in / dwconv weights arrive pre-split by output-channel halves (x1 | x2 of
    # the gate), so no activation chunk/slice is ever materialised in HBM or VMEM.
    x1 = jnp.dot(w1_ref[...], y, preferred_element_type=jnp.float32)
    x1 = _dwconv3x3_flat(x1, dw1_ref[...], masks, W, L)
    x2 = jnp.dot(w2_ref[...], y, preferred_element_type=jnp.float32)
    x2 = _dwconv3x3_flat(x2, dw2_ref[...], masks, W, L)

    # Exact (erf) GELU gate, as torch.nn.functional.gelu's default.
    g = 0.5 * x1 * (1.0 + _erf_approx(x1 * _INV_SQRT_2)) * x2

    # project_out + residual add, fused.
    out = jnp.dot(wout_ref[...], g, preferred_element_type=jnp.float32)
    o_ref[...] = (x + out).astype(o_ref.dtype)


# ----------------------------------------------------------------------------
# pallas_call wrappers
# ----------------------------------------------------------------------------

def attn_block(x_bcl, temp, ln_w, ln_b, w_qkv, w_dw, w_proj, *, H, W, num_heads):
    B, C, L = x_bcl.shape
    kernel = functools.partial(_attn_block_kernel, H=H, W=W, num_heads=num_heads)
    return pl.pallas_call(
        kernel,
        out_shape=jax.ShapeDtypeStruct((B, C, L), x_bcl.dtype),
        grid=(B,),
        in_specs=[
            pl.BlockSpec(memory_space=pltpu.MemorySpace.SMEM),   # temperature (heads,)
            pl.BlockSpec((None, C, L), lambda b: (b, 0, 0)),     # x (one image)
            pl.BlockSpec((C, 1), lambda b: (0, 0)),              # ln1 weight
            pl.BlockSpec((C, 1), lambda b: (0, 0)),              # ln1 bias
            pl.BlockSpec((3 * C, C), lambda b: (0, 0)),          # qkv 1x1 weight
            pl.BlockSpec((3 * C, 9), lambda b: (0, 0)),          # qkv dw 3x3 weight
            pl.BlockSpec((C, C), lambda b: (0, 0)),              # project_out weight
        ],
        out_specs=pl.BlockSpec((None, C, L), lambda b: (b, 0, 0)),
        compiler_params=pltpu.CompilerParams(dimension_semantics=("parallel",)),
    )(temp, x_bcl, ln_w, ln_b, w_qkv, w_dw, w_proj)


def ffn_block(x_bcl, ln_w, ln_b, w_in1, w_in2, dw1, dw2, w_out, *, H, W):
    B, C, L = x_bcl.shape
    hidden = w_in1.shape[0]
    kernel = functools.partial(_ffn_block_kernel, H=H, W=W)
    return pl.pallas_call(
        kernel,
        out_shape=jax.ShapeDtypeStruct((B, C, L), x_bcl.dtype),
        grid=(B,),
        in_specs=[
            pl.BlockSpec((None, C, L), lambda b: (b, 0, 0)),     # x (one image)
            pl.BlockSpec((C, 1), lambda b: (0, 0)),              # ln2 weight
            pl.BlockSpec((C, 1), lambda b: (0, 0)),              # ln2 bias
            pl.BlockSpec((hidden, C), lambda b: (0, 0)),         # project_in (x1 half)
            pl.BlockSpec((hidden, C), lambda b: (0, 0)),         # project_in (x2 half)
            pl.BlockSpec((hidden, 9), lambda b: (0, 0)),         # dwconv (x1 half)
            pl.BlockSpec((hidden, 9), lambda b: (0, 0)),         # dwconv (x2 half)
            pl.BlockSpec((C, hidden), lambda b: (0, 0)),         # project_out weight
        ],
        out_specs=pl.BlockSpec((None, C, L), lambda b: (b, 0, 0)),
        compiler_params=pltpu.CompilerParams(dimension_semantics=("parallel",)),
    )(x_bcl, ln_w, ln_b, w_in1, w_in2, dw1, dw2, w_out)


# ----------------------------------------------------------------------------
# MSCAN forward: NCHW in, NCHW out, no transposes — only free reshapes.
# ----------------------------------------------------------------------------

def mscan_forward(x_nchw, params, *, num_heads, hidden):
    B, C, H, W = x_nchw.shape
    L = H * W
    x = x_nchw.reshape(B, C, L)  # channels on sublanes, H*W (lane-dense) on lanes

    # ---- x = x + attn(norm1(x)) : one fused kernel ----
    x = attn_block(
        x, params["temp"],
        params["ln1_w"].reshape(C, 1), params["ln1_b"].reshape(C, 1),
        params["qkv_w"], params["qkv_dw_w"].reshape(3 * C, 9), params["proj_w"],
        H=H, W=W, num_heads=num_heads)

    # ---- x = x + ffn(norm2(x)) : one fused kernel ----
    # Weight-only prep (a few KB): split project_in / its dwconv by output-channel
    # halves so the gate needs no activation chunking anywhere.
    w_in = params["ffn_in_w"]
    dw = params["ffn_dw_w"].reshape(2 * hidden, 9)
    x = ffn_block(
        x, params["ln2_w"].reshape(C, 1), params["ln2_b"].reshape(C, 1),
        w_in[:hidden], w_in[hidden:], dw[:hidden], dw[hidden:],
        params["ffn_out_w"],
        H=H, W=W)

    return x.reshape(B, C, H, W)


# ----------------------------------------------------------------------------
# Deterministic parameter init + driver
# ----------------------------------------------------------------------------

def init_params(key, dim, num_heads, ffn_expansion_factor=2.66):
    hidden = int(dim * ffn_expansion_factor)
    ks = jax.random.split(key, 6)
    p = {
        # LayerNorms (WithBias): weight=1, bias=0 (matches nn module init)
        "ln1_w": jnp.ones((dim,), jnp.float32),
        "ln1_b": jnp.zeros((dim,), jnp.float32),
        "ln2_w": jnp.ones((dim,), jnp.float32),
        "ln2_b": jnp.zeros((dim,), jnp.float32),
        # Attention (bias=False); 1x1 conv weights stored (Cout, Cin), dw as (C, 3, 3)
        "qkv_w": 0.1 * jax.random.normal(ks[0], (3 * dim, dim), jnp.float32),
        "qkv_dw_w": 0.1 * jax.random.normal(ks[1], (3 * dim, 3, 3), jnp.float32),
        "proj_w": 0.1 * jax.random.normal(ks[2], (dim, dim), jnp.float32),
        "temp": jnp.ones((num_heads,), jnp.float32),
        # FeedForward
        "ffn_in_w": 0.1 * jax.random.normal(ks[3], (2 * hidden, dim), jnp.float32),
        "ffn_dw_w": 0.1 * jax.random.normal(ks[4], (2 * hidden, 3, 3), jnp.float32),
        "ffn_out_w": 0.1 * jax.random.normal(ks[5], (dim, hidden), jnp.float32),
    }
    return p, hidden


if __name__ == "__main__":
    dim, num_heads = 16, 2
    B, H, W = 2, 16, 16

    key = jax.random.PRNGKey(0)
    kx, kp = jax.random.split(key)
    x = jax.random.normal(kx, (B, dim, H, W), jnp.float32)   # NCHW like PyTorch
    params, hidden = init_params(kp, dim, num_heads)

    fwd = jax.jit(functools.partial(mscan_forward, num_heads=num_heads, hidden=hidden))
    out = fwd(x, params)
    jax.block_until_ready(out)
    assert out.shape == x.shape and out.dtype == x.dtype
    print("KERNEL_OK")
</pallas_src>

<mosaic_0001>
module attributes {stable_mosaic.version = 11 : i64} {
  func.func @k(%arg0: memref<1x128xf32, #tpu.memory_space<vmem>>, %arg1: memref<1x128xf32, #tpu.memory_space<vmem>>) attributes {dimension_semantics = [], scalar_prefetch = 0 : i64, scratch_operands = 0 : i64, tpu.core_type = #tpu.core_type<tc>} {
    %c0 = arith.constant 0 : index
    %c0_0 = arith.constant 0 : index
    %0 = vector.load %arg0[%c0, %c0_0] : memref<1x128xf32, #tpu.memory_space<vmem>>, vector<1x128xf32>
    %c1_i32 = arith.constant 1 : i32
    %1 = tpu.dynamic_rotate %0 by %c1_i32 dim 1 : vector<1x128xf32>, i32 -> vector<1x128xf32>
    %c0_1 = arith.constant 0 : index
    %c0_2 = arith.constant 0 : index
    %2 = vector.load %arg1[%c0_1, %c0_2] : memref<1x128xf32, #tpu.memory_space<vmem>>, vector<1x128xf32>
    tpu.vector_store %arg1[%c0_1, %c0_2], %1 {strides = array<i32>} : memref<1x128xf32, #tpu.memory_space<vmem>>, vector<1x128xf32>,
    return
  }
}

module attributes {stable_mosaic.version = 11 : i64} {
  func.func @_ffn_block_kernel(%arg0: i32, %arg1: memref<1x16x256xf32, #tpu.memory_space<vmem>>, %arg2: memref<16x1xf32, #tpu.memory_space<vmem>>, %arg3: memref<16x1xf32, #tpu.memory_space<vmem>>, %arg4: memref<42x16xf32, #tpu.memory_space<vmem>>, %arg5: memref<42x16xf32, #tpu.memory_space<vmem>>, %arg6: memref<42x9xf32, #tpu.memory_space<vmem>>, %arg7: memref<42x9xf32, #tpu.memory_space<vmem>>, %arg8: memref<16x42xf32, #tpu.memory_space<vmem>>, %arg9: memref<1x16x256xf32, #tpu.memory_space<vmem>>) attributes {dimension_semantics = [#tpu.dimension_semantics<parallel>], iteration_bounds = array<i64: 2>, scalar_prefetch = 0 : i64, scratch_operands = 0 : i64, tpu.core_type = #tpu.core_type<tc>, window_params = [{transform_indices = @transform_0, window_bounds = array<i64: 1, 16, 256>}, {pipeline_mode = #tpu.pipeline_mode<synchronous>, transform_indices = @transform_1, window_bounds = array<i64: 16, 1>}, {pipeline_mode = #tpu.pipeline_mode<synchronous>, transform_indices = @transform_2, window_bounds = array<i64: 16, 1>}, {pipeline_mode = #tpu.pipeline_mode<synchronous>, transform_indices = @transform_3, window_bounds = array<i64: 42, 16>}, {pipeline_mode = #tpu.pipeline_mode<synchronous>, transform_indices = @transform_4, window_bounds = array<i64: 42, 16>}, {pipeline_mode = #tpu.pipeline_mode<synchronous>, transform_indices = @transform_5, window_bounds = array<i64: 42, 9>}, {pipeline_mode = #tpu.pipeline_mode<synchronous>, transform_indices = @transform_6, window_bounds = array<i64: 42, 9>}, {pipeline_mode = #tpu.pipeline_mode<synchronous>, transform_indices = @transform_7, window_bounds = array<i64: 16, 42>}, {transform_indices = @transform_8, window_bounds = array<i64: 1, 16, 256>}]} {
    %c0 = arith.constant 0 : index
    %c0_0 = arith.constant 0 : index
    %c0_1 = arith.constant 0 : index
    %0 = vector.load %arg1[%c0, %c0_0, %c0_1] : memref<1x16x256xf32, #tpu.memory_space<vmem>>, vector<1x16x256xf32>
    %1 = vector.shape_cast %0 : vector<1x16x256xf32> to vector<16x256xf32>
    %c0_2 = arith.constant 0 : index
    %c0_3 = arith.constant 0 : index
    %2 = vector.load %arg2[%c0_2, %c0_3] : memref<16x1xf32, #tpu.memory_space<vmem>>, vector<16x1xf32>
    %c0_4 = arith.constant 0 : index
    %c0_5 = arith.constant 0 : index
    %3 = vector.load %arg3[%c0_4, %c0_5] : memref<16x1xf32, #tpu.memory_space<vmem>>, vector<16x1xf32>
    %cst = arith.constant dense<0.000000e+00> : vector<256xf32>
    %4 = vector.multi_reduction <add>, %1, %cst [0] : vector<16x256xf32> to vector<256xf32>
    %5 = vector.shape_cast %4 : vector<256xf32> to vector<1x256xf32>
    %cst_6 = arith.constant 1.600000e+01 : f32
    %6 = vector.broadcast %cst_6 : f32 to vector<1x256xf32>
    %7 = arith.divf %5, %6 : vector<1x256xf32>
    %8 = vector.broadcast %7 : vector<1x256xf32> to vector<16x256xf32>
    %9 = arith.subf %1, %8 : vector<16x256xf32>
    %10 = arith.mulf %9, %9 : vector<16x256xf32>
    %cst_7 = arith.constant dense<0.000000e+00> : vector<256xf32>
    %11 = vector.multi_reduction <add>, %10, %cst_7 [0] : vector<16x256xf32> to vector<256xf32>
    %12 = vector.shape_cast %11 : vector<256xf32> to vector<1x256xf32>
    %cst_8 = arith.constant 1.600000e+01 : f32
    %13 = vector.broadcast %cst_8 : f32 to vector<1x256xf32>
    %14 = arith.divf %12, %13 : vector<1x256xf32>
    %cst_9 = arith.constant 9.99999974E-6 : f32
    %15 = vector.broadcast %cst_9 : f32 to vector<1x256xf32>
    %16 = arith.addf %14, %15 : vector<1x256xf32>
    %17 = math.rsqrt %16 : vector<1x256xf32>
    %18 = vector.broadcast %17 : vector<1x256xf32> to vector<16x256xf32>
    %19 = arith.mulf %9, %18 : vector<16x256xf32>
    %20 = vector.broadcast %2 : vector<16x1xf32> to vector<16x256xf32>
    %21 = arith.mulf %19, %20 : vector<16x256xf32>
    %22 = vector.broadcast %3 : vector<16x1xf32> to vector<16x256xf32>
    %23 = arith.addf %21, %22 : vector<16x256xf32>
    %24 = tpu.iota {dimensions = array<i32: 1>} : vector<1x256xi32>
    %c4_i32 = arith.constant 4 : i32
    %25 = vector.broadcast %c4_i32 : i32 to vector<1x256xi32>
    %26 = arith.shrsi %24, %25 : vector<1x256xi32>
    %c15_i32 = arith.constant 15 : i32
    %27 = vector.broadcast %c15_i32 : i32 to vector<1x256xi32>
    %28 = arith.andi %24, %27 : vector<1x256xi32>
    %c-1_i32 = arith.constant -1 : i32
    %29 = vector.broadcast %c-1_i32 : i32 to vector<1x256xi32>
    %30 = arith.addi %26, %29 : vector<1x256xi32>
    %c0_i32 = arith.constant 0 : i32
    %31 = vector.broadcast %c0_i32 : i32 to vector<1x256xi32>
    %32 = arith.cmpi sge, %30, %31 : vector<1x256xi32>
    %c-1_i32_10 = arith.constant -1 : i32
    %33 = vector.broadcast %c-1_i32_10 : i32 to vector<1x256xi32>
    %34 = arith.addi %26, %33 : vector<1x256xi32>
    %c16_i32 = arith.constant 16 : i32
    %35 = vector.broadcast %c16_i32 : i32 to vector<1x256xi32>
    %36 = arith.cmpi slt, %34, %35 : vector<1x256xi32>
    %37 = arith.andi %32, %36 : vector<1x256xi1>
    %c0_i32_11 = arith.constant 0 : i32
    %38 = vector.broadcast %c0_i32_11 : i32 to vector<1x256xi32>
    %39 = arith.addi %26, %38 : vector<1x256xi32>
    %c0_i32_12 = arith.constant 0 : i32
    %40 = vector.broadcast %c0_i32_12 : i32 to vector<1x256xi32>
    %41 = arith.cmpi sge, %39, %40 : vector<1x256xi32>
    %c0_i32_13 = arith.constant 0 : i32
    %42 = vector.broadcast %c0_i32_13 : i32 to vector<1x256xi32>
    %43 = arith.addi %26, %42 : vector<1x256xi32>
    %c16_i32_14 = arith.constant 16 : i32
    %44 = vector.broadcast %c16_i32_14 : i32 to vector<1x256xi32>
    %45 = arith.cmpi slt, %43, %44 : vector<1x256xi32>
    %46 = arith.andi %41, %45 : vector<1x256xi1>
    %c1_i32 = arith.constant 1 : i32
    %47 = vector.broadcast %c1_i32 : i32 to vector<1x256xi32>
    %48 = arith.addi %26, %47 : vector<1x256xi32>
    %c0_i32_15 = arith.constant 0 : i32
    %49 = vector.broadcast %c0_i32_15 : i32 to vector<1x256xi32>
    %50 = arith.cmpi sge, %48, %49 : vector<1x256xi32>
    %c1_i32_16 = arith.constant 1 : i32
    %51 = vector.broadcast %c1_i32_16 : i32 to vector<1x256xi32>
    %52 = arith.addi %26, %51 : vector<1x256xi32>
    %c16_i32_17 = arith.constant 16 : i32
    %53 = vector.broadcast %c16_i32_17 : i32 to vector<1x256xi32>
    %54 = arith.cmpi slt, %52, %53 : vector<1x256xi32>
    %55 = arith.andi %50, %54 : vector<1x256xi1>
    %c-1_i32_18 = arith.constant -1 : i32
    %56 = vector.broadcast %c-1_i32_18 : i32 to vector<1x256xi32>
    %57 = arith.addi %28, %56 : vector<1x256xi32>
    %c0_i32_19 = arith.constant 0 : i32
    %58 = vector.broadcast %c0_i32_19 : i32 to vector<1x256xi32>
    %59 = arith.cmpi sge, %57, %58 : vector<1x256xi32>
    %c-1_i32_20 = arith.constant -1 : i32
    %60 = vector.broadcast %c-1_i32_20 : i32 to vector<1x256xi32>
    %61 = arith.addi %28, %60 : vector<1x256xi32>
    %c16_i32_21 = arith.constant 16 : i32
    %62 = vector.broadcast %c16_i32_21 : i32 to vector<1x256xi32>
    %63 = arith.cmpi slt, %61, %62 : vector<1x256xi32>
    %64 = arith.andi %59, %63 : vector<1x256xi1>
    %c0_i32_22 = arith.constant 0 : i32
    %65 = vector.broadcast %c0_i32_22 : i32 to vector<1x256xi32>
    %66 = arith.addi %28, %65 : vector<1x256xi32>
    %c0_i32_23 = arith.constant 0 : i32
    %67 = vector.broadcast %c0_i32_23 : i32 to vector<1x256xi32>
    %68 = arith.cmpi sge, %66, %67 : vector<1x256xi32>
    %c0_i32_24 = arith.constant 0 : i32
    %69 = vector.broadcast %c0_i32_24 : i32 to vector<1x256xi32>
    %70 = arith.addi %28, %69 : vector<1x256xi32>
    %c16_i32_25 = arith.constant 16 : i32
    %71 = vector.broadcast %c16_i32_25 : i32 to vector<1x256xi32>
    %72 = arith.cmpi slt, %70, %71 : vector<1x256xi32>
    %73 = arith.andi %68, %72 : vector<1x256xi1>
    %c1_i32_26 = arith.constant 1 : i32
    %74 = vector.broadcast %c1_i32_26 : i32 to vector<1x256xi32>
    %75 = arith.addi %28, %74 : vector<1x256xi32>
    %c0_i32_27 = arith.constant 0 : i32
    %76 = vector.broadcast %c0_i32_27 : i32 to vector<1x256xi32>
    %77 = arith.cmpi sge, %75, %76 : vector<1x256xi32>
    %c1_i32_28 = arith.constant 1 : i32
    %78 = vector.broadcast %c1_i32_28 : i32 to vector<1x256xi32>
    %79 = arith.addi %28, %78 : vector<1x256xi32>
    %c16_i32_29 = arith.constant 16 : i32
    %80 = vector.broadcast %c16_i32_29 : i32 to vector<1x256xi32>
    %81 = arith.cmpi slt, %79, %80 : vector<1x256xi32>
    %82 = arith.andi %77, %81 : vector<1x256xi1>
    %83 = arith.andi %37, %64 : vector<1x256xi1>
    %84 = arith.andi %37, %73 : vector<1x256xi1>
    %85 = arith.andi %37, %82 : vector<1x256xi1>
    %86 = arith.andi %46, %64 : vector<1x256xi1>
    %87 = arith.andi %46, %82 : vector<1x256xi1>
    %88 = arith.andi %55, %64 : vector<1x256xi1>
    %89 = arith.andi %55, %73 : vector<1x256xi1>
    %90 = arith.andi %55, %82 : vector<1x256xi1>
    %c0_30 = arith.constant 0 : index
    %c0_31 = arith.constant 0 : index
    %91 = vector.load %arg4[%c0_30, %c0_31] : memref<42x16xf32, #tpu.memory_space<vmem>>, vector<42x16xf32>
    %cst_32 = arith.constant dense<0.000000e+00> : vector<42x256xf32>
    %92 = tpu.matmul %91, %23, %cst_32 {dimension_numbers = #tpu.dot_dimension_numbers<[1], [0], [0], [1], [0, 0, 1, 1], [], []>} : vector<42x16xf32>, vector<16x256xf32>, vector<42x256xf32> -> vector<42x256xf32>
    %c0_33 = arith.constant 0 : index
    %c0_34 = arith.constant 0 : index
    %93 = vector.load %arg6[%c0_33, %c0_34] : memref<42x9xf32, #tpu.memory_space<vmem>>, vector<42x9xf32>
    %94 = vector.extract_strided_slice %93 {offsets = [0, 4], sizes = [42, 1], strides = [1, 1]} : vector<42x9xf32> to vector<42x1xf32>
    %95 = vector.broadcast %94 : vector<42x1xf32> to vector<42x256xf32>
    %96 = arith.mulf %92, %95 : vector<42x256xf32>
    %c17_i32 = arith.constant 17 : i32
    %97 = tpu.dynamic_rotate %92 by %c17_i32 dim 1 : vector<42x256xf32>, i32 -> vector<42x256xf32>
    %cst_35 = arith.constant 0.000000e+00 : f32
    %98 = vector.shape_cast %83 : vector<1x256xi1> to vector<1x256xi1>
    %99 = vector.broadcast %98 : vector<1x256xi1> to vector<42x256xi1>
    %100 = vector.broadcast %cst_35 : f32 to vector<42x256xf32>
    %101 = arith.select %99, %97, %100 : vector<42x256xi1>, vector<42x256xf32>
    %102 = vector.extract_strided_slice %93 {offsets = [0, 0], sizes = [42, 1], strides = [1, 1]} : vector<42x9xf32> to vector<42x1xf32>
    %103 = vector.broadcast %102 : vector<42x1xf32> to vector<42x256xf32>
    %104 = arith.mulf %101, %103 : vector<42x256xf32>
    %105 = arith.addf %96, %104 : vector<42x256xf32>
    %c16_i32_36 = arith.constant 16 : i32
    %106 = tpu.dynamic_rotate %92 by %c16_i32_36 dim 1 : vector<42x256xf32>, i32 -> vector<42x256xf32>
    %cst_37 = arith.constant 0.000000e+00 : f32
    %107 = vector.shape_cast %84 : vector<1x256xi1> to vector<1x256xi1>
    %108 = vector.broadcast %107 : vector<1x256xi1> to vector<42x256xi1>
    %109 = vector.broadcast %cst_37 : f32 to vector<42x256xf32>
    %110 = arith.select %108, %106, %109 : vector<42x256xi1>, vector<42x256xf32>
    %111 = vector.extract_strided_slice %93 {offsets = [0, 1], sizes = [42, 1], strides = [1, 1]} : vector<42x9xf32> to vector<42x1xf32>
    %112 = vector.broadcast %111 : vector<42x1xf32> to vector<42x256xf32>
    %113 = arith.mulf %110, %112 : vector<42x256xf32>
    %114 = arith.addf %105, %113 : vector<42x256xf32>
    %c15_i32_38 = arith.constant 15 : i32
    %115 = tpu.dynamic_rotate %92 by %c15_i32_38 dim 1 : vector<42x256xf32>, i32 -> vector<42x256xf32>
    %cst_39 = arith.constant 0.000000e+00 : f32
    %116 = vector.shape_cast %85 : vector<1x256xi1> to vector<1x256xi1>
    %117 = vector.broadcast %116 : vector<1x256xi1> to vector<42x256xi1>
    %118 = vector.broadcast %cst_39 : f32 to vector<42x256xf32>
    %119 = arith.select %117, %115, %118 : vector<42x256xi1>, vector<42x256xf32>
    %120 = vector.extract_strided_slice %93 {offsets = [0, 2], sizes = [42, 1], strides = [1, 1]} : vector<42x9xf32> to vector<42x1xf32>
    %121 = vector.broadcast %120 : vector<42x1xf32> to vector<42x256xf32>
    %122 = arith.mulf %119, %121 : vector<42x256xf32>
    %123 = arith.addf %114, %122 : vector<42x256xf32>
    %c1_i32_40 = arith.constant 1 : i32
    %124 = tpu.dynamic_rotate %92 by %c1_i32_40 dim 1 : vector<42x256xf32>, i32 -> vector<42x256xf32>
    %cst_41 = arith.constant 0.000000e+00 : f32
    %125 = vector.shape_cast %86 : vector<1x256xi1> to vector<1x256xi1>
    %126 = vector.broadcast %125 : vector<1x256xi1> to vector<42x256xi1>
    %127 = vector.broadcast %cst_41 : f32 to vector<42x256xf32>
    %128 = arith.select %126, %124, %127 : vector<42x256xi1>, vector<42x256xf32>
    %129 = vector.extract_strided_slice %93 {offsets = [0, 3], sizes = [42, 1], strides = [1, 1]} : vector<42x9xf32> to vector<42x1xf32>
    %130 = vector.broadcast %129 : vector<42x1xf32> to vector<42x256xf32>
    %131 = arith.mulf %128, %130 : vector<42x256xf32>
    %132 = arith.addf %123, %131 : vector<42x256xf32>
    %c255_i32 = arith.constant 255 : i32
    %133 = tpu.dynamic_rotate %92 by %c255_i32 dim 1 : vector<42x256xf32>, i32 -> vector<42x256xf32>
    %cst_42 = arith.constant 0.000000e+00 : f32
    %134 = vector.shape_cast %87 : vector<1x256xi1> to vector<1x256xi1>
    %135 = vector.broadcast %134 : vector<1x256xi1> to vector<42x256xi1>
    %136 = vector.broadcast %cst_42 : f32 to vector<42x256xf32>
    %137 = arith.select %135, %133, %136 : vector<42x256xi1>, vector<42x256xf32>
    %138 = vector.extract_strided_slice %93 {offsets = [0, 5], sizes = [42, 1], strides = [1, 1]} : vector<42x9xf32> to vector<42x1xf32>
    %139 = vector.broadcast %138 : vector<42x1xf32> to vector<42x256xf32>
    %140 = arith.mulf %137, %139 : vector<42x256xf32>
    %141 = arith.addf %132, %140 : vector<42x256xf32>
    %c241_i32 = arith.constant 241 : i32
    %142 = tpu.dynamic_rotate %92 by %c241_i32 dim 1 : vector<42x256xf32>, i32 -> vector<42x256xf32>
    %cst_43 = arith.constant 0.000000e+00 : f32
    %143 = vector.shape_cast %88 : vector<1x256xi1> to vector<1x256xi1>
    %144 = vector.broadcast %143 : vector<1x256xi1> to vector<42x256xi1>
    %145 = vector.broadcast %cst_43 : f32 to vector<42x256xf32>
    %146 = arith.select %144, %142, %145 : vector<42x256xi1>, vector<42x256xf32>
    %147 = vector.extract_strided_slice %93 {offsets = [0, 6], sizes = [42, 1], strides = [1, 1]} : vector<42x9xf32> to vector<42x1xf32>
    %148 = vector.broadcast %147 : vector<42x1xf32> to vector<42x256xf32>
    %149 = arith.mulf %146, %148 : vector<42x256xf32>
    %150 = arith.addf %141, %149 : vector<42x256xf32>
    %c240_i32 = arith.constant 240 : i32
    %151 = tpu.dynamic_rotate %92 by %c240_i32 dim 1 : vector<42x256xf32>, i32 -> vector<42x256xf32>
    %cst_44 = arith.constant 0.000000e+00 : f32
    %152 = vector.shape_cast %89 : vector<1x256xi1> to vector<1x256xi1>
    %153 = vector.broadcast %152 : vector<1x256xi1> to vector<42x256xi1>
    %154 = vector.broadcast %cst_44 : f32 to vector<42x256xf32>
    %155 = arith.select %153, %151, %154 : vector<42x256xi1>, vector<42x256xf32>
    %156 = vector.extract_strided_slice %93 {offsets = [0, 7], sizes = [42, 1], strides = [1, 1]} : vector<42x9xf32> to vector<42x1xf32>
    %157 = vector.broadcast %156 : vector<42x1xf32> to vector<42x256xf32>
    %158 = arith.mulf %155, %157 : vector<42x256xf32>
    %159 = arith.addf %150, %158 : vector<42x256xf32>
    %c239_i32 = arith.constant 239 : i32
    %160 = tpu.dynamic_rotate %92 by %c239_i32 dim 1 : vector<42x256xf32>, i32 -> vector<42x256xf32>
    %cst_45 = arith.constant 0.000000e+00 : f32
    %161 = vector.shape_cast %90 : vector<1x256xi1> to vector<1x256xi1>
    %162 = vector.broadcast %161 : vector<1x256xi1> to vector<42x256xi1>
    %163 = vector.broadcast %cst_45 : f32 to vector<42x256xf32>
    %164 = arith.select %162, %160, %163 : vector<42x256xi1>, vector<42x256xf32>
    %165 = vector.extract_strided_slice %93 {offsets = [0, 8], sizes = [42, 1], strides = [1, 1]} : vector<42x9xf32> to vector<42x1xf32>
    %166 = vector.broadcast %165 : vector<42x1xf32> to vector<42x256xf32>
    %167 = arith.mulf %164, %166 : vector<42x256xf32>
    %168 = arith.addf %159, %167 : vector<42x256xf32>
    %c0_46 = arith.constant 0 : index
    %c0_47 = arith.constant 0 : index
    %169 = vector.load %arg5[%c0_46, %c0_47] : memref<42x16xf32, #tpu.memory_space<vmem>>, vector<42x16xf32>
    %cst_48 = arith.constant dense<0.000000e+00> : vector<42x256xf32>
    %170 = tpu.matmul %169, %23, %cst_48 {dimension_numbers = #tpu.dot_dimension_numbers<[1], [0], [0], [1], [0, 0, 1, 1], [], []>} : vector<42x16xf32>, vector<16x256xf32>, vector<42x256xf32> -> vector<42x256xf32>
    %c0_49 = arith.constant 0 : index
    %c0_50 = arith.constant 0 : index
    %171 = vector.load %arg7[%c0_49, %c0_50] : memref<42x9xf32, #tpu.memory_space<vmem>>, vector<42x9xf32>
    %172 = vector.extract_strided_slice %171 {offsets = [0, 4], sizes = [42, 1], strides = [1, 1]} : vector<42x9xf32> to vector<42x1xf32>
    %173 = vector.broadcast %172 : vector<42x1xf32> to vector<42x256xf32>
    %174 = arith.mulf %170, %173 : vector<42x256xf32>
    %c17_i32_51 = arith.constant 17 : i32
    %175 = tpu.dynamic_rotate %170 by %c17_i32_51 dim 1 : vector<42x256xf32>, i32 -> vector<42x256xf32>
    %cst_52 = arith.constant 0.000000e+00 : f32
    %176 = vector.shape_cast %83 : vector<1x256xi1> to vector<1x256xi1>
    %177 = vector.broadcast %176 : vector<1x256xi1> to vector<42x256xi1>
    %178 = vector.broadcast %cst_52 : f32 to vector<42x256xf32>
    %179 = arith.select %177, %175, %178 : vector<42x256xi1>, vector<42x256xf32>
    %180 = vector.extract_strided_slice %171 {offsets = [0, 0], sizes = [42, 1], strides = [1, 1]} : vector<42x9xf32> to vector<42x1xf32>
    %181 = vector.broadcast %180 : vector<42x1xf32> to vector<42x256xf32>
    %182 = arith.mulf %179, %181 : vector<42x256xf32>
    %183 = arith.addf %174, %182 : vector<42x256xf32>
    %c16_i32_53 = arith.constant 16 : i32
    %184 = tpu.dynamic_rotate %170 by %c16_i32_53 dim 1 : vector<42x256xf32>, i32 -> vector<42x256xf32>
    %cst_54 = arith.constant 0.000000e+00 : f32
    %185 = vector.shape_cast %84 : vector<1x256xi1> to vector<1x256xi1>
    %186 = vector.broadcast %185 : vector<1x256xi1> to vector<42x256xi1>
    %187 = vector.broadcast %cst_54 : f32 to vector<42x256xf32>
    %188 = arith.select %186, %184, %187 : vector<42x256xi1>, vector<42x256xf32>
    %189 = vector.extract_strided_slice %171 {offsets = [0, 1], sizes = [42, 1], strides = [1, 1]} : vector<42x9xf32> to vector<42x1xf32>
    %190 = vector.broadcast %189 : vector<42x1xf32> to vector<42x256xf32>
    %191 = arith.mulf %188, %190 : vector<42x256xf32>
    %192 = arith.addf %183, %191 : vector<42x256xf32>
    %c15_i32_55 = arith.constant 15 : i32
    %193 = tpu.dynamic_rotate %170 by %c15_i32_55 dim 1 : vector<42x256xf32>, i32 -> vector<42x256xf32>
    %cst_56 = arith.constant 0.000000e+00 : f32
    %194 = vector.shape_cast %85 : vector<1x256xi1> to vector<1x256xi1>
    %195 = vector.broadcast %194 : vector<1x256xi1> to vector<42x256xi1>
    %196 = vector.broadcast %cst_56 : f32 to vector<42x256xf32>
    %197 = arith.select %195, %193, %196 : vector<42x256xi1>, vector<42x256xf32>
    %198 = vector.extract_strided_slice %171 {offsets = [0, 2], sizes = [42, 1], strides = [1, 1]} : vector<42x9xf32> to vector<42x1xf32>
    %199 = vector.broadcast %198 : vector<42x1xf32> to vector<42x256xf32>
    %200 = arith.mulf %197, %199 : vector<42x256xf32>
    %201 = arith.addf %192, %200 : vector<42x256xf32>
    %c1_i32_57 = arith.constant 1 : i32
    %202 = tpu.dynamic_rotate %170 by %c1_i32_57 dim 1 : vector<42x256xf32>, i32 -> vector<42x256xf32>
    %cst_58 = arith.constant 0.000000e+00 : f32
    %203 = vector.shape_cast %86 : vector<1x256xi1> to vector<1x256xi1>
    %204 = vector.broadcast %203 : vector<1x256xi1> to vector<42x256xi1>
    %205 = vector.broadcast %cst_58 : f32 to vector<42x256xf32>
    %206 = arith.select %204, %202, %205 : vector<42x256xi1>, vector<42x256xf32>
    %207 = vector.extract_strided_slice %171 {offsets = [0, 3], sizes = [42, 1], strides = [1, 1]} : vector<42x9xf32> to vector<42x1xf32>
    %208 = vector.broadcast %207 : vector<42x1xf32> to vector<42x256xf32>
    %209 = arith.mulf %206, %208 : vector<42x256xf32>
    %210 = arith.addf %201, %209 : vector<42x256xf32>
    %c255_i32_59 = arith.constant 255 : i32
    %211 = tpu.dynamic_rotate %170 by %c255_i32_59 dim 1 : vector<42x256xf32>, i32 -> vector<42x256xf32>
    %cst_60 = arith.constant 0.000000e+00 : f32
    %212 = vector.shape_cast %87 : vector<1x256xi1> to vector<1x256xi1>
    %213 = vector.broadcast %212 : vector<1x256xi1> to vector<42x256xi1>
    %214 = vector.broadcast %cst_60 : f32 to vector<42x256xf32>
    %215 = arith.select %213, %211, %214 : vector<42x256xi1>, vector<42x256xf32>
    %216 = vector.extract_strided_slice %171 {offsets = [0, 5], sizes = [42, 1], strides = [1, 1]} : vector<42x9xf32> to vector<42x1xf32>
    %217 = vector.broadcast %216 : vector<42x1xf32> to vector<42x256xf32>
    %218 = arith.mulf %215, %217 : vector<42x256xf32>
    %219 = arith.addf %210, %218 : vector<42x256xf32>
    %c241_i32_61 = arith.constant 241 : i32
    %220 = tpu.dynamic_rotate %170 by %c241_i32_61 dim 1 : vector<42x256xf32>, i32 -> vector<42x256xf32>
    %cst_62 = arith.constant 0.000000e+00 : f32
    %221 = vector.shape_cast %88 : vector<1x256xi1> to vector<1x256xi1>
    %222 = vector.broadcast %221 : vector<1x256xi1> to vector<42x256xi1>
    %223 = vector.broadcast %cst_62 : f32 to vector<42x256xf32>
    %224 = arith.select %222, %220, %223 : vector<42x256xi1>, vector<42x256xf32>
    %225 = vector.extract_strided_slice %171 {offsets = [0, 6], sizes = [42, 1], strides = [1, 1]} : vector<42x9xf32> to vector<42x1xf32>
    %226 = vector.broadcast %225 : vector<42x1xf32> to vector<42x256xf32>
    %227 = arith.mulf %224, %226 : vector<42x256xf32>
    %228 = arith.addf %219, %227 : vector<42x256xf32>
    %c240_i32_63 = arith.constant 240 : i32
    %229 = tpu.dynamic_rotate %170 by %c240_i32_63 dim 1 : vector<42x256xf32>, i32 -> vector<42x256xf32>
    %cst_64 = arith.constant 0.000000e+00 : f32
    %230 = vector.shape_cast %89 : vector<1x256xi1> to vector<1x256xi1>
    %231 = vector.broadcast %230 : vector<1x256xi1> to vector<42x256xi1>
    %232 = vector.broadcast %cst_64 : f32 to vector<42x256xf32>
    %233 = arith.select %231, %229, %232 : vector<42x256xi1>, vector<42x256xf32>
    %234 = vector.extract_strided_slice %171 {offsets = [0, 7], sizes = [42, 1], strides = [1, 1]} : vector<42x9xf32> to vector<42x1xf32>
    %235 = vector.broadcast %234 : vector<42x1xf32> to vector<42x256xf32>
    %236 = arith.mulf %233, %235 : vector<42x256xf32>
    %237 = arith.addf %228, %236 : vector<42x256xf32>
    %c239_i32_65 = arith.constant 239 : i32
    %238 = tpu.dynamic_rotate %170 by %c239_i32_65 dim 1 : vector<42x256xf32>, i32 -> vector<42x256xf32>
    %cst_66 = arith.constant 0.000000e+00 : f32
    %239 = vector.shape_cast %90 : vector<1x256xi1> to vector<1x256xi1>
    %240 = vector.broadcast %239 : vector<1x256xi1> to vector<42x256xi1>
    %241 = vector.broadcast %cst_66 : f32 to vector<42x256xf32>
    %242 = arith.select %240, %238, %241 : vector<42x256xi1>, vector<42x256xf32>
    %243 = vector.extract_strided_slice %171 {offsets = [0, 8], sizes = [42, 1], strides = [1, 1]} : vector<42x9xf32> to vector<42x1xf32>
    %244 = vector.broadcast %243 : vector<42x1xf32> to vector<42x256xf32>
    %245 = arith.mulf %242, %244 : vector<42x256xf32>
    %246 = arith.addf %237, %245 : vector<42x256xf32>
    %cst_67 = arith.constant 5.000000e-01 : f32
    %247 = vector.broadcast %cst_67 : f32 to vector<42x256xf32>
    %248 = arith.mulf %247, %168 : vector<42x256xf32>
    %cst_68 = arith.constant 0.707106769 : f32
    %249 = vector.broadcast %cst_68 : f32 to vector<42x256xf32>
    %250 = arith.mulf %168, %249 : vector<42x256xf32>
    %cst_69 = arith.constant 0.000000e+00 : f32
    %251 = vector.broadcast %cst_69 : f32 to vector<42x256xf32>
    %252 = arith.cmpf oge, %250, %251 : vector<42x256xf32>
    %cst_70 = arith.constant 1.000000e+00 : f32
    %cst_71 = arith.constant -1.000000e+00 : f32
    %253 = vector.broadcast %cst_70 : f32 to vector<42x256xf32>
    %254 = vector.broadcast %cst_71 : f32 to vector<42x256xf32>
    %255 = arith.select %252, %253, %254 : vector<42x256xi1>, vector<42x256xf32>
    %256 = math.absf %250 : vector<42x256xf32>
    %cst_72 = arith.constant 0.327591091 : f32
    %257 = vector.broadcast %cst_72 : f32 to vector<42x256xf32>
    %258 = arith.mulf %257, %256 : vector<42x256xf32>
    %cst_73 = arith.constant 1.000000e+00 : f32
    %259 = vector.broadcast %cst_73 : f32 to vector<42x256xf32>
    %260 = arith.addf %259, %258 : vector<42x256xf32>
    %cst_74 = arith.constant 1.000000e+00 : f32
    %261 = vector.broadcast %cst_74 : f32 to vector<42x256xf32>
    %262 = arith.divf %261, %260 : vector<42x256xf32>
    %cst_75 = arith.constant 1.06140542 : f32
    %263 = vector.broadcast %cst_75 : f32 to vector<42x256xf32>
    %264 = arith.mulf %263, %262 : vector<42x256xf32>
    %cst_76 = arith.constant -1.45315206 : f32
    %265 = vector.broadcast %cst_76 : f32 to vector<42x256xf32>
    %266 = arith.addf %264, %265 : vector<42x256xf32>
    %267 = arith.mulf %266, %262 : vector<42x256xf32>
    %cst_77 = arith.constant 1.42141378 : f32
    %268 = vector.broadcast %cst_77 : f32 to vector<42x256xf32>
    %269 = arith.addf %267, %268 : vector<42x256xf32>
    %270 = arith.mulf %269, %262 : vector<42x256xf32>
    %cst_78 = arith.constant -0.284496725 : f32
    %271 = vector.broadcast %cst_78 : f32 to vector<42x256xf32>
    %272 = arith.addf %270, %271 : vector<42x256xf32>
    %273 = arith.mulf %272, %262 : vector<42x256xf32>
    %cst_79 = arith.constant 0.254829586 : f32
    %274 = vector.broadcast %cst_79 : f32 to vector<42x256xf32>
    %275 = arith.addf %273, %274 : vector<42x256xf32>
    %276 = arith.mulf %275, %262 : vector<42x256xf32>
    %cst_80 = arith.constant 0.000000e+00 : f32
    %277 = vector.broadcast %cst_80 : f32 to vector<42x256xf32>
    %278 = arith.subf %277, %256 : vector<42x256xf32>
    %279 = arith.mulf %278, %256 : vector<42x256xf32>
    %280 = math.exp %279 : vector<42x256xf32>
    %281 = arith.mulf %276, %280 : vector<42x256xf32>
    %cst_81 = arith.constant 1.000000e+00 : f32
    %282 = vector.broadcast %cst_81 : f32 to vector<42x256xf32>
    %283 = arith.subf %282, %281 : vector<42x256xf32>
    %284 = arith.mulf %255, %283 : vector<42x256xf32>
    %cst_82 = arith.constant 1.000000e+00 : f32
    %285 = vector.broadcast %cst_82 : f32 to vector<42x256xf32>
    %286 = arith.addf %285, %284 : vector<42x256xf32>
    %287 = arith.mulf %248, %286 : vector<42x256xf32>
    %288 = arith.mulf %287, %246 : vector<42x256xf32>
    %c0_83 = arith.constant 0 : index
    %c0_84 = arith.constant 0 : index
    %289 = vector.load %arg8[%c0_83, %c0_84] : memref<16x42xf32, #tpu.memory_space<vmem>>, vector<16x42xf32>
    %cst_85 = arith.constant dense<0.000000e+00> : vector<16x256xf32>
    %290 = tpu.matmul %289, %288, %cst_85 {dimension_numbers = #tpu.dot_dimension_numbers<[1], [0], [0], [1], [0, 0, 1, 1], [], []>} : vector<16x42xf32>, vector<42x256xf32>, vector<16x256xf32> -> vector<16x256xf32>
    %291 = arith.addf %1, %290 : vector<16x256xf32>
    %c0_86 = arith.constant 0 : index
    %c0_87 = arith.constant 0 : index
    %c0_88 = arith.constant 0 : index
    %292 = vector.load %arg9[%c0_86, %c0_87, %c0_88] : memref<1x16x256xf32, #tpu.memory_space<vmem>>, vector<1x16x256xf32>
    %293 = vector.shape_cast %292 : vector<1x16x256xf32> to vector<16x256xf32>
    %294 = vector.shape_cast %291 : vector<16x256xf32> to vector<1x16x256xf32>
    tpu.vector_store %arg9[%c0_86, %c0_87, %c0_88], %294 {strides = array<i32>} : memref<1x16x256xf32, #tpu.memory_space<vmem>>, vector<1x16x256xf32>,
    return
  }
  func.func @transform_0(%arg0: i32) -> (i32, i32, i32) {
    %c0_i32 = arith.constant 0 : i32
    %c0_i32_0 = arith.constant 0 : i32
    %c0_i32_1 = arith.constant 0 : i32
    return %arg0, %c0_i32, %c0_i32_0 : i32, i32, i32
  }
  func.func @transform_1(%arg0: i32) -> (i32, i32) {
    %c0_i32 = arith.constant 0 : i32
    %c0_i32_0 = arith.constant 0 : i32
    %c0_i32_1 = arith.constant 0 : i32
    return %c0_i32, %c0_i32_0 : i32, i32
  }
  func.func @transform_2(%arg0: i32) -> (i32, i32) {
    %c0_i32 = arith.constant 0 : i32
    %c0_i32_0 = arith.constant 0 : i32
    %c0_i32_1 = arith.constant 0 : i32
    return %c0_i32, %c0_i32_0 : i32, i32
  }
  func.func @transform_3(%arg0: i32) -> (i32, i32) {
    %c0_i32 = arith.constant 0 : i32
    %c0_i32_0 = arith.constant 0 : i32
    %c0_i32_1 = arith.constant 0 : i32
    return %c0_i32, %c0_i32_0 : i32, i32
  }
  func.func @transform_4(%arg0: i32) -> (i32, i32) {
    %c0_i32 = arith.constant 0 : i32
    %c0_i32_0 = arith.constant 0 : i32
    %c0_i32_1 = arith.constant 0 : i32
    return %c0_i32, %c0_i32_0 : i32, i32
  }
  func.func @transform_5(%arg0: i32) -> (i32, i32) {
    %c0_i32 = arith.constant 0 : i32
    %c0_i32_0 = arith.constant 0 : i32
    %c0_i32_1 = arith.constant 0 : i32
    return %c0_i32, %c0_i32_0 : i32, i32
  }
  func.func @transform_6(%arg0: i32) -> (i32, i32) {
    %c0_i32 = arith.constant 0 : i32
    %c0_i32_0 = arith.constant 0 : i32
    %c0_i32_1 = arith.constant 0 : i32
    return %c0_i32, %c0_i32_0 : i32, i32
  }
  func.func @transform_7(%arg0: i32) -> (i32, i32) {
    %c0_i32 = arith.constant 0 : i32
    %c0_i32_0 = arith.constant 0 : i32
    %c0_i32_1 = arith.constant 0 : i32
    return %c0_i32, %c0_i32_0 : i32, i32
  }
  func.func @transform_8(%arg0: i32) -> (i32, i32, i32) {
    %c0_i32 = arith.constant 0 : i32
    %c0_i32_0 = arith.constant 0 : i32
    %c0_i32_1 = arith.constant 0 : i32
    return %arg0, %c0_i32, %c0_i32_0 : i32, i32, i32
  }
}

module attributes {stable_mosaic.version = 11 : i64} {
  func.func @_attn_block_kernel(%arg0: i32, %arg1: memref<2xf32, #tpu.memory_space<smem>>, %arg2: memref<1x16x256xf32, #tpu.memory_space<vmem>>, %arg3: memref<16x1xf32, #tpu.memory_space<vmem>>, %arg4: memref<16x1xf32, #tpu.memory_space<vmem>>, %arg5: memref<48x16xf32, #tpu.memory_space<vmem>>, %arg6: memref<48x9xf32, #tpu.memory_space<vmem>>, %arg7: memref<16x16xf32, #tpu.memory_space<vmem>>, %arg8: memref<1x16x256xf32, #tpu.memory_space<vmem>>) attributes {dimension_semantics = [#tpu.dimension_semantics<parallel>], iteration_bounds = array<i64: 2>, scalar_prefetch = 0 : i64, scratch_operands = 0 : i64, tpu.core_type = #tpu.core_type<tc>, window_params = [{transform_indices = @transform_0, window_bounds = array<i64: 2>}, {transform_indices = @transform_1, window_bounds = array<i64: 1, 16, 256>}, {pipeline_mode = #tpu.pipeline_mode<synchronous>, transform_indices = @transform_2, window_bounds = array<i64: 16, 1>}, {pipeline_mode = #tpu.pipeline_mode<synchronous>, transform_indices = @transform_3, window_bounds = array<i64: 16, 1>}, {pipeline_mode = #tpu.pipeline_mode<synchronous>, transform_indices = @transform_4, window_bounds = array<i64: 48, 16>}, {pipeline_mode = #tpu.pipeline_mode<synchronous>, transform_indices = @transform_5, window_bounds = array<i64: 48, 9>}, {pipeline_mode = #tpu.pipeline_mode<synchronous>, transform_indices = @transform_6, window_bounds = array<i64: 16, 16>}, {transform_indices = @transform_7, window_bounds = array<i64: 1, 16, 256>}]} {
    %c0 = arith.constant 0 : index
    %c0_0 = arith.constant 0 : index
    %c0_1 = arith.constant 0 : index
    %0 = vector.load %arg2[%c0, %c0_0, %c0_1] : memref<1x16x256xf32, #tpu.memory_space<vmem>>, vector<1x16x256xf32>
    %1 = vector.shape_cast %0 : vector<1x16x256xf32> to vector<16x256xf32>
    %c0_2 = arith.constant 0 : index
    %c0_3 = arith.constant 0 : index
    %2 = vector.load %arg3[%c0_2, %c0_3] : memref<16x1xf32, #tpu.memory_space<vmem>>, vector<16x1xf32>
    %c0_4 = arith.constant 0 : index
    %c0_5 = arith.constant 0 : index
    %3 = vector.load %arg4[%c0_4, %c0_5] : memref<16x1xf32, #tpu.memory_space<vmem>>, vector<16x1xf32>
    %cst = arith.constant dense<0.000000e+00> : vector<256xf32>
    %4 = vector.multi_reduction <add>, %1, %cst [0] : vector<16x256xf32> to vector<256xf32>
    %5 = vector.shape_cast %4 : vector<256xf32> to vector<1x256xf32>
    %cst_6 = arith.constant 1.600000e+01 : f32
    %6 = vector.broadcast %cst_6 : f32 to vector<1x256xf32>
    %7 = arith.divf %5, %6 : vector<1x256xf32>
    %8 = vector.broadcast %7 : vector<1x256xf32> to vector<16x256xf32>
    %9 = arith.subf %1, %8 : vector<16x256xf32>
    %10 = arith.mulf %9, %9 : vector<16x256xf32>
    %cst_7 = arith.constant dense<0.000000e+00> : vector<256xf32>
    %11 = vector.multi_reduction <add>, %10, %cst_7 [0] : vector<16x256xf32> to vector<256xf32>
    %12 = vector.shape_cast %11 : vector<256xf32> to vector<1x256xf32>
    %cst_8 = arith.constant 1.600000e+01 : f32
    %13 = vector.broadcast %cst_8 : f32 to vector<1x256xf32>
    %14 = arith.divf %12, %13 : vector<1x256xf32>
    %cst_9 = arith.constant 9.99999974E-6 : f32
    %15 = vector.broadcast %cst_9 : f32 to vector<1x256xf32>
    %16 = arith.addf %14, %15 : vector<1x256xf32>
    %17 = math.rsqrt %16 : vector<1x256xf32>
    %18 = vector.broadcast %17 : vector<1x256xf32> to vector<16x256xf32>
    %19 = arith.mulf %9, %18 : vector<16x256xf32>
    %20 = vector.broadcast %2 : vector<16x1xf32> to vector<16x256xf32>
    %21 = arith.mulf %19, %20 : vector<16x256xf32>
    %22 = vector.broadcast %3 : vector<16x1xf32> to vector<16x256xf32>
    %23 = arith.addf %21, %22 : vector<16x256xf32>
    %c0_10 = arith.constant 0 : index
    %c0_11 = arith.constant 0 : index
    %24 = vector.load %arg5[%c0_10, %c0_11] : memref<48x16xf32, #tpu.memory_space<vmem>>, vector<48x16xf32>
    %cst_12 = arith.constant dense<0.000000e+00> : vector<48x256xf32>
    %25 = tpu.matmul %24, %23, %cst_12 {dimension_numbers = #tpu.dot_dimension_numbers<[1], [0], [0], [1], [0, 0, 1, 1], [], []>} : vector<48x16xf32>, vector<16x256xf32>, vector<48x256xf32> -> vector<48x256xf32>
    %26 = tpu.iota {dimensions = array<i32: 1>} : vector<1x256xi32>
    %c4_i32 = arith.constant 4 : i32
    %27 = vector.broadcast %c4_i32 : i32 to vector<1x256xi32>
    %28 = arith.shrsi %26, %27 : vector<1x256xi32>
    %c15_i32 = arith.constant 15 : i32
    %29 = vector.broadcast %c15_i32 : i32 to vector<1x256xi32>
    %30 = arith.andi %26, %29 : vector<1x256xi32>
    %c-1_i32 = arith.constant -1 : i32
    %31 = vector.broadcast %c-1_i32 : i32 to vector<1x256xi32>
    %32 = arith.addi %28, %31 : vector<1x256xi32>
    %c0_i32 = arith.constant 0 : i32
    %33 = vector.broadcast %c0_i32 : i32 to vector<1x256xi32>
    %34 = arith.cmpi sge, %32, %33 : vector<1x256xi32>
    %c-1_i32_13 = arith.constant -1 : i32
    %35 = vector.broadcast %c-1_i32_13 : i32 to vector<1x256xi32>
    %36 = arith.addi %28, %35 : vector<1x256xi32>
    %c16_i32 = arith.constant 16 : i32
    %37 = vector.broadcast %c16_i32 : i32 to vector<1x256xi32>
    %38 = arith.cmpi slt, %36, %37 : vector<1x256xi32>
    %39 = arith.andi %34, %38 : vector<1x256xi1>
    %c0_i32_14 = arith.constant 0 : i32
    %40 = vector.broadcast %c0_i32_14 : i32 to vector<1x256xi32>
    %41 = arith.addi %28, %40 : vector<1x256xi32>
    %c0_i32_15 = arith.constant 0 : i32
    %42 = vector.broadcast %c0_i32_15 : i32 to vector<1x256xi32>
    %43 = arith.cmpi sge, %41, %42 : vector<1x256xi32>
    %c0_i32_16 = arith.constant 0 : i32
    %44 = vector.broadcast %c0_i32_16 : i32 to vector<1x256xi32>
    %45 = arith.addi %28, %44 : vector<1x256xi32>
    %c16_i32_17 = arith.constant 16 : i32
    %46 = vector.broadcast %c16_i32_17 : i32 to vector<1x256xi32>
    %47 = arith.cmpi slt, %45, %46 : vector<1x256xi32>
    %48 = arith.andi %43, %47 : vector<1x256xi1>
    %c1_i32 = arith.constant 1 : i32
    %49 = vector.broadcast %c1_i32 : i32 to vector<1x256xi32>
    %50 = arith.addi %28, %49 : vector<1x256xi32>
    %c0_i32_18 = arith.constant 0 : i32
    %51 = vector.broadcast %c0_i32_18 : i32 to vector<1x256xi32>
    %52 = arith.cmpi sge, %50, %51 : vector<1x256xi32>
    %c1_i32_19 = arith.constant 1 : i32
    %53 = vector.broadcast %c1_i32_19 : i32 to vector<1x256xi32>
    %54 = arith.addi %28, %53 : vector<1x256xi32>
    %c16_i32_20 = arith.constant 16 : i32
    %55 = vector.broadcast %c16_i32_20 : i32 to vector<1x256xi32>
    %56 = arith.cmpi slt, %54, %55 : vector<1x256xi32>
    %57 = arith.andi %52, %56 : vector<1x256xi1>
    %c-1_i32_21 = arith.constant -1 : i32
    %58 = vector.broadcast %c-1_i32_21 : i32 to vector<1x256xi32>
    %59 = arith.addi %30, %58 : vector<1x256xi32>
    %c0_i32_22 = arith.constant 0 : i32
    %60 = vector.broadcast %c0_i32_22 : i32 to vector<1x256xi32>
    %61 = arith.cmpi sge, %59, %60 : vector<1x256xi32>
    %c-1_i32_23 = arith.constant -1 : i32
    %62 = vector.broadcast %c-1_i32_23 : i32 to vector<1x256xi32>
    %63 = arith.addi %30, %62 : vector<1x256xi32>
    %c16_i32_24 = arith.constant 16 : i32
    %64 = vector.broadcast %c16_i32_24 : i32 to vector<1x256xi32>
    %65 = arith.cmpi slt, %63, %64 : vector<1x256xi32>
    %66 = arith.andi %61, %65 : vector<1x256xi1>
    %c0_i32_25 = arith.constant 0 : i32
    %67 = vector.broadcast %c0_i32_25 : i32 to vector<1x256xi32>
    %68 = arith.addi %30, %67 : vector<1x256xi32>
    %c0_i32_26 = arith.constant 0 : i32
    %69 = vector.broadcast %c0_i32_26 : i32 to vector<1x256xi32>
    %70 = arith.cmpi sge, %68, %69 : vector<1x256xi32>
    %c0_i32_27 = arith.constant 0 : i32
    %71 = vector.broadcast %c0_i32_27 : i32 to vector<1x256xi32>
    %72 = arith.addi %30, %71 : vector<1x256xi32>
    %c16_i32_28 = arith.constant 16 : i32
    %73 = vector.broadcast %c16_i32_28 : i32 to vector<1x256xi32>
    %74 = arith.cmpi slt, %72, %73 : vector<1x256xi32>
    %75 = arith.andi %70, %74 : vector<1x256xi1>
    %c1_i32_29 = arith.constant 1 : i32
    %76 = vector.broadcast %c1_i32_29 : i32 to vector<1x256xi32>
    %77 = arith.addi %30, %76 : vector<1x256xi32>
    %c0_i32_30 = arith.constant 0 : i32
    %78 = vector.broadcast %c0_i32_30 : i32 to vector<1x256xi32>
    %79 = arith.cmpi sge, %77, %78 : vector<1x256xi32>
    %c1_i32_31 = arith.constant 1 : i32
    %80 = vector.broadcast %c1_i32_31 : i32 to vector<1x256xi32>
    %81 = arith.addi %30, %80 : vector<1x256xi32>
    %c16_i32_32 = arith.constant 16 : i32
    %82 = vector.broadcast %c16_i32_32 : i32 to vector<1x256xi32>
    %83 = arith.cmpi slt, %81, %82 : vector<1x256xi32>
    %84 = arith.andi %79, %83 : vector<1x256xi1>
    %85 = arith.andi %39, %66 : vector<1x256xi1>
    %86 = arith.andi %39, %75 : vector<1x256xi1>
    %87 = arith.andi %39, %84 : vector<1x256xi1>
    %88 = arith.andi %48, %66 : vector<1x256xi1>
    %89 = arith.andi %48, %84 : vector<1x256xi1>
    %90 = arith.andi %57, %66 : vector<1x256xi1>
    %91 = arith.andi %57, %75 : vector<1x256xi1>
    %92 = arith.andi %57, %84 : vector<1x256xi1>
    %c0_33 = arith.constant 0 : index
    %c0_34 = arith.constant 0 : index
    %93 = vector.load %arg6[%c0_33, %c0_34] : memref<48x9xf32, #tpu.memory_space<vmem>>, vector<48x9xf32>
    %94 = vector.extract_strided_slice %93 {offsets = [0, 4], sizes = [48, 1], strides = [1, 1]} : vector<48x9xf32> to vector<48x1xf32>
    %95 = vector.broadcast %94 : vector<48x1xf32> to vector<48x256xf32>
    %96 = arith.mulf %25, %95 : vector<48x256xf32>
    %c17_i32 = arith.constant 17 : i32
    %97 = tpu.dynamic_rotate %25 by %c17_i32 dim 1 : vector<48x256xf32>, i32 -> vector<48x256xf32>
    %cst_35 = arith.constant 0.000000e+00 : f32
    %98 = vector.shape_cast %85 : vector<1x256xi1> to vector<1x256xi1>
    %99 = vector.broadcast %98 : vector<1x256xi1> to vector<48x256xi1>
    %100 = vector.broadcast %cst_35 : f32 to vector<48x256xf32>
    %101 = arith.select %99, %97, %100 : vector<48x256xi1>, vector<48x256xf32>
    %102 = vector.extract_strided_slice %93 {offsets = [0, 0], sizes = [48, 1], strides = [1, 1]} : vector<48x9xf32> to vector<48x1xf32>
    %103 = vector.broadcast %102 : vector<48x1xf32> to vector<48x256xf32>
    %104 = arith.mulf %101, %103 : vector<48x256xf32>
    %105 = arith.addf %96, %104 : vector<48x256xf32>
    %c16_i32_36 = arith.constant 16 : i32
    %106 = tpu.dynamic_rotate %25 by %c16_i32_36 dim 1 : vector<48x256xf32>, i32 -> vector<48x256xf32>
    %cst_37 = arith.constant 0.000000e+00 : f32
    %107 = vector.shape_cast %86 : vector<1x256xi1> to vector<1x256xi1>
    %108 = vector.broadcast %107 : vector<1x256xi1> to vector<48x256xi1>
    %109 = vector.broadcast %cst_37 : f32 to vector<48x256xf32>
    %110 = arith.select %108, %106, %109 : vector<48x256xi1>, vector<48x256xf32>
    %111 = vector.extract_strided_slice %93 {offsets = [0, 1], sizes = [48, 1], strides = [1, 1]} : vector<48x9xf32> to vector<48x1xf32>
    %112 = vector.broadcast %111 : vector<48x1xf32> to vector<48x256xf32>
    %113 = arith.mulf %110, %112 : vector<48x256xf32>
    %114 = arith.addf %105, %113 : vector<48x256xf32>
    %c15_i32_38 = arith.constant 15 : i32
    %115 = tpu.dynamic_rotate %25 by %c15_i32_38 dim 1 : vector<48x256xf32>, i32 -> vector<48x256xf32>
    %cst_39 = arith.constant 0.000000e+00 : f32
    %116 = vector.shape_cast %87 : vector<1x256xi1> to vector<1x256xi1>
    %117 = vector.broadcast %116 : vector<1x256xi1> to vector<48x256xi1>
    %118 = vector.broadcast %cst_39 : f32 to vector<48x256xf32>
    %119 = arith.select %117, %115, %118 : vector<48x256xi1>, vector<48x256xf32>
    %120 = vector.extract_strided_slice %93 {offsets = [0, 2], sizes = [48, 1], strides = [1, 1]} : vector<48x9xf32> to vector<48x1xf32>
    %121 = vector.broadcast %120 : vector<48x1xf32> to vector<48x256xf32>
    %122 = arith.mulf %119, %121 : vector<48x256xf32>
    %123 = arith.addf %114, %122 : vector<48x256xf32>
    %c1_i32_40 = arith.constant 1 : i32
    %124 = tpu.dynamic_rotate %25 by %c1_i32_40 dim 1 : vector<48x256xf32>, i32 -> vector<48x256xf32>
    %cst_41 = arith.constant 0.000000e+00 : f32
    %125 = vector.shape_cast %88 : vector<1x256xi1> to vector<1x256xi1>
    %126 = vector.broadcast %125 : vector<1x256xi1> to vector<48x256xi1>
    %127 = vector.broadcast %cst_41 : f32 to vector<48x256xf32>
    %128 = arith.select %126, %124, %127 : vector<48x256xi1>, vector<48x256xf32>
    %129 = vector.extract_strided_slice %93 {offsets = [0, 3], sizes = [48, 1], strides = [1, 1]} : vector<48x9xf32> to vector<48x1xf32>
    %130 = vector.broadcast %129 : vector<48x1xf32> to vector<48x256xf32>
    %131 = arith.mulf %128, %130 : vector<48x256xf32>
    %132 = arith.addf %123, %131 : vector<48x256xf32>
    %c255_i32 = arith.constant 255 : i32
    %133 = tpu.dynamic_rotate %25 by %c255_i32 dim 1 : vector<48x256xf32>, i32 -> vector<48x256xf32>
    %cst_42 = arith.constant 0.000000e+00 : f32
    %134 = vector.shape_cast %89 : vector<1x256xi1> to vector<1x256xi1>
    %135 = vector.broadcast %134 : vector<1x256xi1> to vector<48x256xi1>
    %136 = vector.broadcast %cst_42 : f32 to vector<48x256xf32>
    %137 = arith.select %135, %133, %136 : vector<48x256xi1>, vector<48x256xf32>
    %138 = vector.extract_strided_slice %93 {offsets = [0, 5], sizes = [48, 1], strides = [1, 1]} : vector<48x9xf32> to vector<48x1xf32>
    %139 = vector.broadcast %138 : vector<48x1xf32> to vector<48x256xf32>
    %140 = arith.mulf %137, %139 : vector<48x256xf32>
    %141 = arith.addf %132, %140 : vector<48x256xf32>
    %c241_i32 = arith.constant 241 : i32
    %142 = tpu.dynamic_rotate %25 by %c241_i32 dim 1 : vector<48x256xf32>, i32 -> vector<48x256xf32>
    %cst_43 = arith.constant 0.000000e+00 : f32
    %143 = vector.shape_cast %90 : vector<1x256xi1> to vector<1x256xi1>
    %144 = vector.broadcast %143 : vector<1x256xi1> to vector<48x256xi1>
    %145 = vector.broadcast %cst_43 : f32 to vector<48x256xf32>
    %146 = arith.select %144, %142, %145 : vector<48x256xi1>, vector<48x256xf32>
    %147 = vector.extract_strided_slice %93 {offsets = [0, 6], sizes = [48, 1], strides = [1, 1]} : vector<48x9xf32> to vector<48x1xf32>
    %148 = vector.broadcast %147 : vector<48x1xf32> to vector<48x256xf32>
    %149 = arith.mulf %146, %148 : vector<48x256xf32>
    %150 = arith.addf %141, %149 : vector<48x256xf32>
    %c240_i32 = arith.constant 240 : i32
    %151 = tpu.dynamic_rotate %25 by %c240_i32 dim 1 : vector<48x256xf32>, i32 -> vector<48x256xf32>
    %cst_44 = arith.constant 0.000000e+00 : f32
    %152 = vector.shape_cast %91 : vector<1x256xi1> to vector<1x256xi1>
    %153 = vector.broadcast %152 : vector<1x256xi1> to vector<48x256xi1>
    %154 = vector.broadcast %cst_44 : f32 to vector<48x256xf32>
    %155 = arith.select %153, %151, %154 : vector<48x256xi1>, vector<48x256xf32>
    %156 = vector.extract_strided_slice %93 {offsets = [0, 7], sizes = [48, 1], strides = [1, 1]} : vector<48x9xf32> to vector<48x1xf32>
    %157 = vector.broadcast %156 : vector<48x1xf32> to vector<48x256xf32>
    %158 = arith.mulf %155, %157 : vector<48x256xf32>
    %159 = arith.addf %150, %158 : vector<48x256xf32>
    %c239_i32 = arith.constant 239 : i32
    %160 = tpu.dynamic_rotate %25 by %c239_i32 dim 1 : vector<48x256xf32>, i32 -> vector<48x256xf32>
    %cst_45 = arith.constant 0.000000e+00 : f32
    %161 = vector.shape_cast %92 : vector<1x256xi1> to vector<1x256xi1>
    %162 = vector.broadcast %161 : vector<1x256xi1> to vector<48x256xi1>
    %163 = vector.broadcast %cst_45 : f32 to vector<48x256xf32>
    %164 = arith.select %162, %160, %163 : vector<48x256xi1>, vector<48x256xf32>
    %165 = vector.extract_strided_slice %93 {offsets = [0, 8], sizes = [48, 1], strides = [1, 1]} : vector<48x9xf32> to vector<48x1xf32>
    %166 = vector.broadcast %165 : vector<48x1xf32> to vector<48x256xf32>
    %167 = arith.mulf %164, %166 : vector<48x256xf32>
    %168 = arith.addf %159, %167 : vector<48x256xf32>
    %169 = vector.extract_strided_slice %168 {offsets = [0, 0], sizes = [8, 256], strides = [1, 1]} : vector<48x256xf32> to vector<8x256xf32>
    %170 = vector.extract_strided_slice %168 {offsets = [16, 0], sizes = [8, 256], strides = [1, 1]} : vector<48x256xf32> to vector<8x256xf32>
    %171 = vector.extract_strided_slice %168 {offsets = [32, 0], sizes = [8, 256], strides = [1, 1]} : vector<48x256xf32> to vector<8x256xf32>
    %172 = arith.mulf %169, %169 : vector<8x256xf32>
    %cst_46 = arith.constant dense<0.000000e+00> : vector<8xf32>
    %173 = vector.multi_reduction <add>, %172, %cst_46 [1] : vector<8x256xf32> to vector<8xf32>
    %174 = vector.shape_cast %173 : vector<8xf32> to vector<8x1xf32>
    %175 = math.sqrt %174 : vector<8x1xf32>
    %cst_47 = arith.constant 9.99999996E-13 : f32
    %176 = vector.broadcast %cst_47 : f32 to vector<8x1xf32>
    %177 = arith.maximumf %175, %176 : vector<8x1xf32>
    %178 = vector.broadcast %177 : vector<8x1xf32> to vector<8x256xf32>
    %179 = arith.divf %169, %178 : vector<8x256xf32>
    %180 = arith.mulf %170, %170 : vector<8x256xf32>
    %cst_48 = arith.constant dense<0.000000e+00> : vector<8xf32>
    %181 = vector.multi_reduction <add>, %180, %cst_48 [1] : vector<8x256xf32> to vector<8xf32>
    %182 = vector.shape_cast %181 : vector<8xf32> to vector<8x1xf32>
    %183 = math.sqrt %182 : vector<8x1xf32>
    %cst_49 = arith.constant 9.99999996E-13 : f32
    %184 = vector.broadcast %cst_49 : f32 to vector<8x1xf32>
    %185 = arith.maximumf %183, %184 : vector<8x1xf32>
    %186 = vector.broadcast %185 : vector<8x1xf32> to vector<8x256xf32>
    %187 = arith.divf %170, %186 : vector<8x256xf32>
    %188 = tpu.transpose %187, [1, 0] : vector<8x256xf32> -> vector<256x8xf32>
    %cst_50 = arith.constant dense<0.000000e+00> : vector<8x8xf32>
    %189 = tpu.matmul %179, %188, %cst_50 {dimension_numbers = #tpu.dot_dimension_numbers<[1], [0], [0], [1], [0, 0, 1, 1], [], []>} : vector<8x256xf32>, vector<256x8xf32>, vector<8x8xf32> -> vector<8x8xf32>
    %c0_51 = arith.constant 0 : index
    %190 = memref.load %arg1[%c0_51] : memref<2xf32, #tpu.memory_space<smem>>
    %191 = vector.broadcast %190 : f32 to vector<8x8xf32>
    %192 = arith.mulf %189, %191 : vector<8x8xf32>
    %cst_52 = arith.constant dense<0xFF800000> : vector<8xf32>
    %193 = vector.multi_reduction <maximumf>, %192, %cst_52 [1] : vector<8x8xf32> to vector<8xf32>
    %194 = vector.shape_cast %193 : vector<8xf32> to vector<8x1xf32>
    %195 = vector.broadcast %194 : vector<8x1xf32> to vector<8x8xf32>
    %196 = arith.subf %192, %195 : vector<8x8xf32>
    %197 = math.exp %196 : vector<8x8xf32>
    %cst_53 = arith.constant dense<0.000000e+00> : vector<8xf32>
    %198 = vector.multi_reduction <add>, %197, %cst_53 [1] : vector<8x8xf32> to vector<8xf32>
    %199 = vector.shape_cast %198 : vector<8xf32> to vector<8x1xf32>
    %200 = vector.broadcast %199 : vector<8x1xf32> to vector<8x8xf32>
    %201 = arith.divf %197, %200 : vector<8x8xf32>
    %cst_54 = arith.constant dense<0.000000e+00> : vector<8x256xf32>
    %202 = tpu.matmul %201, %171, %cst_54 {dimension_numbers = #tpu.dot_dimension_numbers<[1], [0], [0], [1], [0, 0, 1, 1], [], []>} : vector<8x8xf32>, vector<8x256xf32>, vector<8x256xf32> -> vector<8x256xf32>
    %203 = vector.extract_strided_slice %168 {offsets = [8, 0], sizes = [8, 256], strides = [1, 1]} : vector<48x256xf32> to vector<8x256xf32>
    %204 = vector.extract_strided_slice %168 {offsets = [24, 0], sizes = [8, 256], strides = [1, 1]} : vector<48x256xf32> to vector<8x256xf32>
    %205 = vector.extract_strided_slice %168 {offsets = [40, 0], sizes = [8, 256], strides = [1, 1]} : vector<48x256xf32> to vector<8x256xf32>
    %206 = arith.mulf %203, %203 : vector<8x256xf32>
    %cst_55 = arith.constant dense<0.000000e+00> : vector<8xf32>
    %207 = vector.multi_reduction <add>, %206, %cst_55 [1] : vector<8x256xf32> to vector<8xf32>
    %208 = vector.shape_cast %207 : vector<8xf32> to vector<8x1xf32>
    %209 = math.sqrt %208 : vector<8x1xf32>
    %cst_56 = arith.constant 9.99999996E-13 : f32
    %210 = vector.broadcast %cst_56 : f32 to vector<8x1xf32>
    %211 = arith.maximumf %209, %210 : vector<8x1xf32>
    %212 = vector.broadcast %211 : vector<8x1xf32> to vector<8x256xf32>
    %213 = arith.divf %203, %212 : vector<8x256xf32>
    %214 = arith.mulf %204, %204 : vector<8x256xf32>
    %cst_57 = arith.constant dense<0.000000e+00> : vector<8xf32>
    %215 = vector.multi_reduction <add>, %214, %cst_57 [1] : vector<8x256xf32> to vector<8xf32>
    %216 = vector.shape_cast %215 : vector<8xf32> to vector<8x1xf32>
    %217 = math.sqrt %216 : vector<8x1xf32>
    %cst_58 = arith.constant 9.99999996E-13 : f32
    %218 = vector.broadcast %cst_58 : f32 to vector<8x1xf32>
    %219 = arith.maximumf %217, %218 : vector<8x1xf32>
    %220 = vector.broadcast %219 : vector<8x1xf32> to vector<8x256xf32>
    %221 = arith.divf %204, %220 : vector<8x256xf32>
    %222 = tpu.transpose %221, [1, 0] : vector<8x256xf32> -> vector<256x8xf32>
    %cst_59 = arith.constant dense<0.000000e+00> : vector<8x8xf32>
    %223 = tpu.matmul %213, %222, %cst_59 {dimension_numbers = #tpu.dot_dimension_numbers<[1], [0], [0], [1], [0, 0, 1, 1], [], []>} : vector<8x256xf32>, vector<256x8xf32>, vector<8x8xf32> -> vector<8x8xf32>
    %c1 = arith.constant 1 : index
    %224 = memref.load %arg1[%c1] : memref<2xf32, #tpu.memory_space<smem>>
    %225 = vector.broadcast %224 : f32 to vector<8x8xf32>
    %226 = arith.mulf %223, %225 : vector<8x8xf32>
    %cst_60 = arith.constant dense<0xFF800000> : vector<8xf32>
    %227 = vector.multi_reduction <maximumf>, %226, %cst_60 [1] : vector<8x8xf32> to vector<8xf32>
    %228 = vector.shape_cast %227 : vector<8xf32> to vector<8x1xf32>
    %229 = vector.broadcast %228 : vector<8x1xf32> to vector<8x8xf32>
    %230 = arith.subf %226, %229 : vector<8x8xf32>
    %231 = math.exp %230 : vector<8x8xf32>
    %cst_61 = arith.constant dense<0.000000e+00> : vector<8xf32>
    %232 = vector.multi_reduction <add>, %231, %cst_61 [1] : vector<8x8xf32> to vector<8xf32>
    %233 = vector.shape_cast %232 : vector<8xf32> to vector<8x1xf32>
    %234 = vector.broadcast %233 : vector<8x1xf32> to vector<8x8xf32>
    %235 = arith.divf %231, %234 : vector<8x8xf32>
    %cst_62 = arith.constant dense<0.000000e+00> : vector<8x256xf32>
    %236 = tpu.matmul %235, %205, %cst_62 {dimension_numbers = #tpu.dot_dimension_numbers<[1], [0], [0], [1], [0, 0, 1, 1], [], []>} : vector<8x8xf32>, vector<8x256xf32>, vector<8x256xf32> -> vector<8x256xf32>
    %237 = tpu.concatenate %202, %236 in 0 : vector<8x256xf32>, vector<8x256xf32> -> vector<16x256xf32>
    %c0_63 = arith.constant 0 : index
    %c0_64 = arith.constant 0 : index
    %238 = vector.load %arg7[%c0_63, %c0_64] : memref<16x16xf32, #tpu.memory_space<vmem>>, vector<16x16xf32>
    %cst_65 = arith.constant dense<0.000000e+00> : vector<16x256xf32>
    %239 = tpu.matmul %238, %237, %cst_65 {dimension_numbers = #tpu.dot_dimension_numbers<[1], [0], [0], [1], [0, 0, 1, 1], [], []>} : vector<16x16xf32>, vector<16x256xf32>, vector<16x256xf32> -> vector<16x256xf32>
    %240 = arith.addf %1, %239 : vector<16x256xf32>
    %c0_66 = arith.constant 0 : index
    %c0_67 = arith.constant 0 : index
    %c0_68 = arith.constant 0 : index
    %241 = vector.load %arg8[%c0_66, %c0_67, %c0_68] : memref<1x16x256xf32, #tpu.memory_space<vmem>>, vector<1x16x256xf32>
    %242 = vector.shape_cast %241 : vector<1x16x256xf32> to vector<16x256xf32>
    %243 = vector.shape_cast %240 : vector<16x256xf32> to vector<1x16x256xf32>
    tpu.vector_store %arg8[%c0_66, %c0_67, %c0_68], %243 {strides = array<i32>} : memref<1x16x256xf32, #tpu.memory_space<vmem>>, vector<1x16x256xf32>,
    return
  }
  func.func @transform_0(%arg0: i32) -> i32 {
    %c0_i32 = arith.constant 0 : i32
    %c0_i32_0 = arith.constant 0 : i32
    return %c0_i32 : i32
  }
  func.func @transform_1(%arg0: i32) -> (i32, i32, i32) {
    %c0_i32 = arith.constant 0 : i32
    %c0_i32_0 = arith.constant 0 : i32
    %c0_i32_1 = arith.constant 0 : i32
    return %arg0, %c0_i32, %c0_i32_0 : i32, i32, i32
  }
  func.func @transform_2(%arg0: i32) -> (i32, i32) {
    %c0_i32 = arith.constant 0 : i32
    %c0_i32_0 = arith.constant 0 : i32
    %c0_i32_1 = arith.constant 0 : i32
    return %c0_i32, %c0_i32_0 : i32, i32
  }
  func.func @transform_3(%arg0: i32) -> (i32, i32) {
    %c0_i32 = arith.constant 0 : i32
    %c0_i32_0 = arith.constant 0 : i32
    %c0_i32_1 = arith.constant 0 : i32
    return %c0_i32, %c0_i32_0 : i32, i32
  }
  func.func @transform_4(%arg0: i32) -> (i32, i32) {
    %c0_i32 = arith.constant 0 : i32
    %c0_i32_0 = arith.constant 0 : i32
    %c0_i32_1 = arith.constant 0 : i32
    return %c0_i32, %c0_i32_0 : i32, i32
  }
  func.func @transform_5(%arg0: i32) -> (i32, i32) {
    %c0_i32 = arith.constant 0 : i32
    %c0_i32_0 = arith.constant 0 : i32
    %c0_i32_1 = arith.constant 0 : i32
    return %c0_i32, %c0_i32_0 : i32, i32
  }
  func.func @transform_6(%arg0: i32) -> (i32, i32) {
    %c0_i32 = arith.constant 0 : i32
    %c0_i32_0 = arith.constant 0 : i32
    %c0_i32_1 = arith.constant 0 : i32
    return %c0_i32, %c0_i32_0 : i32, i32
  }
  func.func @transform_7(%arg0: i32) -> (i32, i32, i32) {
    %c0_i32 = arith.constant 0 : i32
    %c0_i32_0 = arith.constant 0 : i32
    %c0_i32_1 = arith.constant 0 : i32
    return %arg0, %c0_i32, %c0_i32_0 : i32, i32, i32
  }
}

</mosaic_0001>

<bundles_post_ra>
// kernel: tpu_custom_call.1
= control target key start
LH: loop header
LB: loop body
LE: loop exit
PB: predicated region body
PF: predicated region fallthrough
CT: control target
= control target key end

     0   :  { %6 = vsyncpa [#allocation3], 0  ;;  %s118_s0 = inlined_call_operand.hbm [shape: f32[1,128], index: 0, kind: input, shape index: {}]   ;;  %s119_s1 = inlined_call_operand.hbm [shape: f32[1,128], index: 1, kind: output, shape index: {}]  }
   0x1   :  { %7 = vsyncpa [#allocation4], 0  ;;  %s13_s8 = sshll.u32 %s118_s0, 4  ;;  %s99_s9 = smov [#allocation2]   ;;  %s14_s8 = int_to_ptr.hbm [resolvable:$true] %s13_s8 }
   0x2   :  { %s15_s10 = sshll.u32 %s99_s9, 4  ;;  %s16_s10 = int_to_ptr.vmem [resolvable:$true] %s15_s10 }
   0x3   :  { %18 = dma.hbm_to_vmem [thread:$0]  %s14_s8, 16, %s16_s10, [#allocation3]  }
   0x4   :  { %95 = dma.done.wait [#allocation3], 16  }
   0x5   :  { %96 = vsyncadd [#allocation3], 4294967280  ;;  %v23_v0 = vld [vmem:[#allocation2] sm:$0x1]  ;;  %s100_s11 = smov 1   ;;  %s101_s12 = smov [#allocation5]  }
   0x6   :  { %24 = vrot.lane.b32.xlu0 %v23_v0, %s100_s11  ;;  %s32_s13 = sshll.u32 %s101_s12, 4  ;;  %s34_s16 = sshll.u32 %s119_s1, 4  ;;  %s33_s13 = int_to_ptr.vmem [resolvable:$true] %s32_s13  ;;  %s35_s16 = int_to_ptr.hbm [resolvable:$true] %s34_s16 }
  0x78   :  { %v25_v1 = vpop.permute.xlu0 %24 }
  0x79   :  { %26 = vst [vmem:[#allocation5] sm:$0x1] %v25_v1 }
  0x7a   :  { %37 = dma.vmem_to_hbm [thread:$0]  %s33_s13, 16, %s35_s16, [#allocation4]  }
  0x7b   :  { %97 = dma.done.wait [#allocation4], 16  }
  0x7c   :  { %98 = vsyncadd [#allocation4], 4294967280 }
  0x7d   :  { %42 = vsyncpa [#allocation3], 1 }
  0x7e   :  { %43 = vsyncpa [#allocation4], 1 }

// kernel: mscan_forward.2
= control target key start
LH: loop header
LB: loop body
LE: loop exit
PB: predicated region body
PF: predicated region fallthrough
CT: control target
= control target key end

     0   :  { %12 = vsyncpa [#allocation3], 0  ;;  %s2154_s24 = smov 0   ;;  %s3478_s0 = inlined_call_operand.vmem [shape: f32[2], index: 0, kind: input, shape index: {}]   ;;  %s3479_s1 = inlined_call_operand.vmem [shape: f32[2,16,256], index: 1, kind: input, shape index: {}]   ;;  %s3480_s2 = inlined_call_operand.vmem [shape: f32[16,1], index: 2, kind: input, shape index: {}]   ;;  %s3481_s3 = inlined_call_operand.vmem [shape: f32[16,1], index: 3, kind: input, shape index: {}]   ;;  %s3482_s4 = inlined_call_operand.vmem [shape: f32[48,16], index: 4, kind: input, shape index: {}]   ;;  %s3483_s5 = inlined_call_operand.vmem [shape: f32[48,9], index: 5, kind: input, shape index: {}]   ;;  %s3484_s6 = inlined_call_operand.vmem [shape: f32[16,16], index: 6, kind: input, shape index: {}]   ;;  %s3485_s7 = inlined_call_operand.vmem [shape: f32[2,16,256], index: 7, kind: output, shape index: {}]  }
   0x1 LB: > { %s1906_s25 = sadd.s32 4294967295, %s2093_s24   ;;  %p1908_p0 = scmp.ge.s32.totalorder %s2093_s24, 1  ;;  %s2093_s24 = sphi %s2154_s24, %s18_s24  }
   0x2   : > { %p201_p1 = scmp.lt.s32.totalorder %s2093_s24, 3  ;;  %s213_s28 = sshll.u32 %s3478_s0, 4  ;;  %s214_s28 = int_to_ptr.vmem [resolvable:$true] %s213_s28 }
   0x3   : > { %p1950_p3 = scmp.eq.s32.totalorder %s1906_s25, 0  ;;  %s2095_s29 = smov [#allocation2]  }
   0x4   : > { %p202_p2 = pnand %p1908_p0, %p201_p1 }
   0x6   : > { %p1946_p4 = pneg %p202_p2  ;;  %249 = sbr.rel (%p202_p2) target bundleno = 1768 (0x6e8), region = 48 }
   0x8   : > { %p1947_p5 = pnand %p1950_p3, %p1946_p4 }
   0xa   : > { %1949 = dma.vmem_to_smem (!%p1947_p5), %s214_s28, 16, %s2095_s29, [#allocation3]  }
   0xb   : > { %2088 = dma.done.wait (%p1950_p3), [#allocation3], 16  }
   0xc   : > { %2090 = vsyncadd (%p1950_p3), [#allocation3], 4294967280 }
   0xd   : > { %256 = sfence }
   0xe   : > { %v300_v0 = vld [vmem:[%s3481_s3 + $0x8] sm:$0xff]  ;;  %v3501_v2 = vmov 0   ;;  %v299_v3 = vld [vmem:[%s3481_s3] sm:$0xff]  ;;  %p283_p6 = scmp.lt.s32.totalorder %s1906_s25, 1  ;;  %v2183_v5 = vld [vmem:[%s3483_s5 + $0x10] sm:$0xff]  ;;  %v2097_v6 = vmov 16.0  }
   0xf   : > { %v298_v1 = vld [vmem:[%s3480_s2 + $0x8] sm:$0xff]  ;;  %1980 = vset.pattern.permute.xlu1 %v3501_v2  ;;  %1979 = vset.pattern.permute.xlu0 %v3501_v2  ;;  %v297_v4 = vld [vmem:[%s3480_s2] sm:$0xff]  ;;  %2034 = vrcp.f32 %v2097_v6  ;;  %vm3486_vm7 = vcmask 130048   ;;  %s2105_s10 = smov 16   ;;  %s2106_s11 = smov 17  }
  0x10   : > { %395 = vperm.xlu1 %1980, %v300_v0   ;;  %381 = vperm.xlu0 %1979, %v298_v1   ;;  %s3737_s25 = smov (!%p283_p6, %s1906_s25), 1  ;;  %s2107_s12 = smov 15  }
  0x11   : > { %1984 = vset.pattern.permute.xlu2 %v3501_v2  ;;  %s1940_s17 = sshll.u32 %s3737_s25, 5  ;;  %s2109_s13 = smov 1  }
  0x12   : > { %s2194_s20 = scalar_lea.vmem %s3479_s1, %s1940_s17  ;;  %s2110_s14 = smov 127  }
  0x13   : > { %v293_v7 = vld [vmem:[%s2194_s20] sm:$0xff]  ;;  %v294_v8 = vld [vmem:[%s2194_s20 + $0x8] sm:$0xff]  ;;  %v295_v9 = vld [vmem:[%s2194_s20 + $0x10] sm:$0xff]  ;;  %s2111_s15 = smov 113   ;;  %s2112_s16 = smov 112  }
  0x14   : > { %v296_v10 = vld [vmem:[%s2194_s20 + $0x18] sm:$0xff]  ;;  %v301_v11 = vadd.f32 %v295_v9, %v293_v7  ;;  %s2113_s18 = smov 111   ;;  %s1528_s30 = sld [smem:[#allocation2]] }
  0x15   : > { %v308_v12 = vadd.f32 %v296_v10, %v294_v8  ;;  %v2035_v15 = vpop.eup %2034 }
  0x16   : > { %v302_v13 = vrot.slane %v301_v11, 4  ;;  %v316_v17 = vmul.f32 16.0, %v2035_v15  ;;  %vm320_vm0 = vweird.f32 %v2035_v15 }
  0x17   : > { %v309_v14 = vrot.slane %v308_v12, 4 }
  0x18   : > { %390 = vperm.xlu1 %1980, %v299_v3   ;;  %376 = vperm.xlu0 %1979, %v297_v4   ;;  %v303_v16 = vadd.f32 %v302_v13, %v301_v11  ;;  %v317_v20 = vsub.f32 1.0, %v316_v17  ;;  %v3525_v4 = vmov 1   ;;  %v3520_v11 = vmov 4  }
  0x19   : > { %v310_v18 = vadd.f32 %v309_v14, %v308_v12 }
  0x1a   : > { %v304_v19 = vrot.slane %v303_v16, 2  ;;  %v318_v23 = vmul.f32 %v2035_v15, %v317_v20 }
  0x1b   : > { %v311_v21 = vrot.slane %v310_v18, 2 }
  0x1c   : > { %v305_v22 = vadd.f32 %v304_v19, %v303_v16  ;;  %v319_v26 = vadd.f32 %v2035_v15, %v318_v23  ;;  %v3530_v16 = vmov 2  }
  0x1d   : > { %v312_v24 = vadd.f32 %v311_v21, %v310_v18 }
  0x1e   : > { %v306_v25 = vrot.slane %v305_v22, 1  ;;  %v321_v29 = vsel %vm320_vm0, %v2035_v15, %v319_v26 }
  0x1f   : > { %v313_v27 = vrot.slane %v312_v24, 1 }
  0x20   : > { %674 = vperm.xlu1 %1980, %v2183_v5   ;;  %v307_v28 = vadd.f32 %v306_v25, %v305_v22  ;;  %1981 = vset.pattern.permute.xlu0 %v3520_v11 }
  0x21   : > { %v314_v30 = vadd.f32 %v313_v27, %v312_v24  ;;  %582 = vperm.xlu0 %1981, %v2183_v5  }
  0x22   : > { %v322_v31 = vmul.f32 %v321_v29, %v307_v28 }
  0x23   : > { %v323_v32 = vmul.f32 %v321_v29, %v314_v30 }
  0x24   : > { %v2200_v33 = vsub.f32 %v293_v7, %v322_v31  ;;  %v326_v34 = vsub.f32 %v295_v9, %v322_v31  ;;  %v402_v31 = vld [vmem:[%s3482_s4] sm:$0xff] }
  0x25   : > { %v2202_v35 = vsub.f32 %v294_v8, %v323_v32  ;;  %v327_v36 = vsub.f32 %v296_v10, %v323_v32  ;;  %v2213_v10 = vld [vmem:[%s3483_s5] sm:$0xff]  ;;  %v3528_v32 = vmov 3  }
  0x26   : > { %v328_v37 = vmul.f32 %v2200_v33, %v2200_v33  ;;  %v330_v38 = vmul.f32 %v326_v34, %v326_v34  ;;  %666 = vperm.xlu2 %1984, %v2213_v10  }
  0x27   : > { %v329_v39 = vmul.f32 %v2202_v35, %v2202_v35  ;;  %v331_v40 = vmul.f32 %v327_v36, %v327_v36 }
  0x28   : > { %v332_v41 = vadd.f32 %v330_v38, %v328_v37  ;;  %1982 = vset.pattern.permute.xlu1 %v3525_v4  ;;  %v405_v37 = vld [vmem:[%s3482_s4 + $0x18] sm:$0xff]  ;;  %v3505_v38 = vmov 6  }
  0x29   : > { %v339_v42 = vadd.f32 %v331_v40, %v329_v39  ;;  %775 = vperm.xlu1 %1982, %v2183_v5  }
  0x2a   : > { %v333_v43 = vrot.slane %v332_v41, 4 }
  0x2b   : > { %v340_v44 = vrot.slane %v339_v42, 4 }
  0x2c   : > { %v334_v45 = vadd.f32 %v333_v43, %v332_v41  ;;  %v3503_v43 = vmov 8  }
  0x2d   : > { %v341_v46 = vadd.f32 %v340_v44, %v339_v42 }
  0x2e   : > { %v335_v47 = vrot.slane %v334_v45, 2  ;;  %1985 = vset.pattern.permute.xlu2 %v3530_v16 }
  0x2f   : > { %v342_v48 = vrot.slane %v341_v46, 2  ;;  %876 = vperm.xlu2 %1985, %v2183_v5  }
  0x30   : > { %v336_v49 = vadd.f32 %v335_v47, %v334_v45 }
  0x31   : > { %v343_v50 = vadd.f32 %v342_v48, %v341_v46  ;;  %1983 = vset.pattern.permute.xlu1 %v3520_v11 }
  0x32   : > { %v337_v51 = vrot.slane %v336_v49, 1  ;;  %572 = vperm.xlu1 %1983, %v2213_v10  }
  0x33   : > { %v344_v52 = vrot.slane %v343_v50, 1 }
  0x34   : > { %v338_v53 = vadd.f32 %v337_v51, %v336_v49 }
  0x35   : > { %v345_v54 = vadd.f32 %v344_v52, %v343_v50 }
  0x36   : > { %v346_v55 = vmul.f32 %v338_v53, %v321_v29 }
  0x37   : > { %v347_v56 = vmul.f32 %v345_v54, %v321_v29  ;;  %1986 = vset.pattern.permute.xlu2 %v3525_v4  ;;  %v497_v54 = vlaneseq }
  0x38   : > { %v348_v57 = vadd.f32 1e-05, %v346_v55  ;;  %767 = vperm.xlu2 %1986, %v2213_v10  }
  0x39   : > { %v349_v58 = vadd.f32 1e-05, %v347_v56  ;;  %v2359_v56 = vand.u32 127, %v497_v54 }
  0x3a   : > { %2036 = vrsqrt.f32 %v348_v57  ;;  %vm356_vm1 = vweird.f32 %v348_v57  ;;  %1997 = vset.pattern.permute.xlu1 %v3503_v43 }
  0x3b   : > { %2038 = vrsqrt.f32 %v349_v58  ;;  %vm366_vm3 = vweird.f32 %v349_v58  ;;  %vm3488_vm0 = vcmp.lt.s32.totalorder %v2359_v56, 17 }
  0x40   : > { %v2037_v59 = vpop.eup %2036  ;;  %1987 = vset.pattern.permute.xlu2 %v3528_v32 }
  0x41   : > { %v2039_v60 = vpop.eup %2038  ;;  %v351_v61 = vmul.f32 %v2037_v59, %v348_v57  ;;  %vm357_vm2 = vweird.f32 %v2037_v59  ;;  %977 = vperm.xlu2 %1987, %v2183_v5  }
  0x42   : > { %v361_v62 = vmul.f32 %v2039_v60, %v349_v58  ;;  %vm367_vm4 = vweird.f32 %v2039_v60  ;;  %vm358_vm5 = vmor %vm356_vm1, %vm357_vm2  ;;  %v499_v58 = vadd.s32 128, %v2359_v56 }
  0x43   : > { %v352_v63 = vmul.f32 %v2037_v59, %v351_v61  ;;  %vm368_vm6 = vmor %vm366_vm3, %vm367_vm4  ;;  %v2372_v61 = vshra.s32 %v2359_v56, 4  ;;  %vm3487_vm3 = vcmp.lt.s32.totalorder %v2359_v56, 16 }
  0x44   : > { %v362_v0 = vmul.f32 %v2039_v60, %v361_v62  ;;  %v503_v62 = vand.u32 15, %v499_v58 }
  0x45   : > { %v353_v1 = vmul.f32 0.5, %v352_v63 }
  0x46   : > { %v363_v3 = vmul.f32 0.5, %v362_v0 }
  0x47   : > { %v354_v6 = vsub.f32 1.5, %v353_v1  ;;  %v502_v1 = vand.u32 15, %v2359_v56 }
  0x48   : > { %v364_v7 = vsub.f32 1.5, %v363_v3  ;;  %v504_v3 = vadd.s32 4294967295, %v2372_v61 }
  0x49   : > { %v355_v8 = vmul.f32 %v2037_v59, %v354_v6  ;;  %1988 = vset.pattern.permute.xlu2 %v3530_v16 }
  0x4a   : > { %v365_v9 = vmul.f32 %v2039_v60, %v364_v7  ;;  %868 = vperm.xlu2 %1988, %v2213_v10   ;;  %vm506_vm10 = vcmp.ge.s32.totalorder %v504_v3, 0  ;;  %vm508_vm11 = vcmp.lt.s32.totalorder %v504_v3, 16 }
  0x4b   : > { %v359_v12 = vsel %vm358_vm5, %v2037_v59, %v355_v8  ;;  %v2385_v8 = vadd.s32 4294967295, %v503_v62  ;;  %vm2398_vm14 = vmand %vm506_vm10, %vm508_vm11  ;;  %vm512_vm10 = vcmp.ge.s32.totalorder %v2372_v61, 0  ;;  %vm514_vm11 = vcmp.lt.s32.totalorder %v2372_v61, 16 }
  0x4c   : > { %v369_v13 = vsel %vm368_vm6, %v2039_v60, %v365_v9  ;;  %v372_v14 = vmul.f32 %v359_v12, %v326_v34  ;;  %v370_v23 = vmul.f32 %v359_v12, %v2200_v33  ;;  %v403_v33 = vld [vmem:[%s3482_s4 + $0x8] sm:$0xff]  ;;  %v404_v34 = vld [vmem:[%s3482_s4 + $0x10] sm:$0xff]  ;;  %v2369_v60 = vshra.s32 %v499_v58, 4 }
  0x4d   : > { %v373_v15 = vmul.f32 %v369_v13, %v327_v36  ;;  %v371_v24 = vmul.f32 %v369_v13, %v2202_v35  ;;  %v3523_v35 = vmov 7   ;;  %v3507_v36 = vmov 5  }
  0x4e   : > { %1996 = vset.pattern.permute.xlu0 %v3523_v35  ;;  %v505_v0 = vadd.s32 4294967295, %v2369_v60  ;;  %v2387_v9 = vadd.s32 4294967295, %v502_v1  ;;  %vm3492_vm13 = vcmp.ge.s32.totalorder %v2385_v8, 0 }
  0x50   : > { %vm507_vm8 = vcmp.ge.s32.totalorder %v505_v0, 0  ;;  %vm509_vm9 = vcmp.lt.s32.totalorder %v505_v0, 16  ;;  %vm3493_vm15 = vcmp.ge.s32.totalorder %v2387_v9, 0 }
  0x51   : > { %vm2391_vm12 = vmand %vm507_vm8, %vm509_vm9  ;;  %vm3490_vm8 = vcmp.lt.s32.totalorder %v2359_v56, 15 }
  0x52   : > { %1989 = vset.pattern.permute.xlu2 %v3507_v36  ;;  %vm2409_vm1 = vmand %vm2391_vm12, %vm3492_vm13 }
  0x53   : > { %1078 = vperm.xlu2 %1989, %v2183_v5   ;;  %vm2417_vm2 = vmand %vm2398_vm14, %vm3493_vm15 }
  0x5b   : > { %1990 = vset.pattern.permute.xlu2 %v3528_v32 }
  0x5c   : > { %969 = vperm.xlu2 %1990, %v2213_v10  }
  0x64   : > { %1991 = vset.pattern.permute.xlu2 %v3505_v38 }
  0x65   : > { %1179 = vperm.xlu2 %1991, %v2183_v5  }
  0x6d   : > { %1992 = vset.pattern.permute.xlu2 %v3507_v36 }
  0x6e   : > { %1070 = vperm.xlu2 %1992, %v2213_v10  }
  0x76   : > { %1993 = vset.pattern.permute.xlu2 %v3523_v35 }
  0x77   : > { %1280 = vperm.xlu2 %1993, %v2183_v5  }
  0x7f   : > { %1994 = vset.pattern.permute.xlu2 %v3505_v38 }
  0x80   : > { %1171 = vperm.xlu2 %1994, %v2213_v10   ;;  %v2273_v41 = vpop.permute.xlu2 %666 }
  0x82   : > { %v396_v17 = vpop.permute.xlu1 %395  ;;  %v382_v18 = vpop.permute.xlu0 %381 }
  0x83   : > { %v386_v19 = vmul.f32 %v382_v18, %v372_v14  ;;  %v387_v20 = vmul.f32 %v382_v18, %v373_v15  ;;  %v3556_v15 = vmov 0 }
  0x84   : > { %v3557_v15 = vsel %vm2409_vm1, 4294967295, %v3556_v15 }
  0x85   : > { %v400_v21 = vadd.f32 %v396_v17, %v386_v19  ;;  %v401_v22 = vadd.f32 %v396_v17, %v387_v20  ;;  %v3558_v19 = vmov 0 }
  0x86   : > { %v3559_v19 = vsel %vm2417_vm2, 4294967295, %v3558_v19 }
  0x87   : > { %441 = vmatpush.msra.mxu0 %v400_v21  ;;  %476 = vmatpush.msra.mxu1 %v401_v22 }
  0x88   : > { %1995 = vset.pattern.permute.xlu2 %v3503_v43 }
  0x89   : > { %v2285_v45 = vpop.permute.xlu2 %876 }
  0x8a   : > { %v377_v25 = vpop.permute.xlu0 %376  ;;  %v391_v28 = vpop.permute.xlu1 %390 }
  0x8b   : > { %v384_v26 = vmul.f32 %v377_v25, %v370_v23  ;;  %v385_v27 = vmul.f32 %v377_v25, %v371_v24 }
  0x8d   : > { %v398_v29 = vadd.f32 %v391_v28, %v384_v26  ;;  %v399_v30 = vadd.f32 %v391_v28, %v385_v27 }
  0x8f   : > { %442 = vmatpush.msra.mxu0 %v398_v29  ;;  %477 = vmatpush.msra.mxu1 %v399_v30  ;;  %v2437_v29 = vadd.s32 1, %v502_v1 }
  0x90   : > { %1917 = vmatmul.msk.f32.vlgmr.msra.gmra.mxu0 %vm3486_vm7, %v402_v31  ;;  %1923 = vmatmul.msk.f32.vlgmr.msra.gmra.mxu1 %vm3486_vm7, %v402_v31 }
  0x91   : > { %vm3496_vm4 = vcmp.lt.s32.totalorder %v2437_v29, 16 }
  0x92   : > { %v2297_v48 = vpop.permute.xlu2 %767  ;;  %v2353_v55 = vpop.permute.xlu1 %674  ;;  %vm2464_vm6 = vmand %vm2398_vm14, %vm3496_vm4 }
  0x93   : > { %v2383_v7 = vpop.permute.xlu0 %582 }
  0x98   : > { %1918 = vmatmul.msk.f32.gmra.mxu0 %vm3486_vm7, %v403_v33  ;;  %1924 = vmatmul.msk.f32.gmra.mxu1 %vm3486_vm7, %v403_v33  ;;  %v2439_v33 = vadd.s32 1, %v503_v62 }
  0x9a   : > { %vm3489_vm5 = vcmp.lt.s32.totalorder %v2439_v33, 16 }
  0x9b   : > { %v2311_v49 = vpop.permute.xlu2 %977  ;;  %v2364_v59 = vpop.permute.xlu1 %775  ;;  %vm2473_vm9 = vmand %vm2391_vm12, %vm3489_vm5 }
  0xa0   : > { %1919 = vmatmul.msk.f32.gmra.mxu0 %vm3486_vm7, %v404_v34  ;;  %1925 = vmatmul.msk.f32.gmra.mxu1 %vm3486_vm7, %v404_v34 }
  0xa4   : > { %v2319_v50 = vpop.permute.xlu2 %868  ;;  %v573_v6 = vpop.permute.xlu1 %572 }
  0xa8   : > { %1920 = vmatmul.msk.f32.gmra.mxu0 %vm3486_vm7, %v405_v37  ;;  %1926 = vmatmul.msk.f32.gmra.mxu1 %vm3486_vm7, %v405_v37  ;;  %vm513_vm7 = vcmp.ge.s32.totalorder %v2369_v60, 0 }
  0xad   : > { %v2326_v51 = vpop.permute.xlu2 %1078 }
  0xb6   : > { %v2335_v52 = vpop.permute.xlu2 %969 }
 0x10d   : > { %v2263_v39 = vpop.f32.mrf.mxu0  ;;  %v2265_v40 = vpop.f32.mrf.mxu1 }
 0x10e   : > { %725 = vrot.lane.b32.xlu1 %v2265_v40, %s2105_s10  ;;  %624 = vrot.lane.b32.xlu0 %v2265_v40, %s2106_s11  ;;  %v601_v23 = vmul.f32 %v573_v6, %v2265_v40  ;;  %v600_v34 = vmul.f32 %v573_v6, %v2263_v39  ;;  %v3560_v6 = vmov 0 }
 0x10f   : > { %612 = vrot.lane.b32.xlu2 %v2263_v39, %s2106_s11  ;;  %v3561_v6 = vsel %vm2464_vm6, 4294967295, %v3560_v6 }
 0x110   : > { %3562 = vst [vmem:[#allocation5_spill] sm:$0xff] %v3561_v6 }
 0x115   : > { %v2275_v42 = vpop.f32.mrf.mxu0  ;;  %v2283_v44 = vpop.f32.mrf.mxu1 }
 0x116   : > { %826 = vrot.lane.b32.xlu1 %v2265_v40, %s2107_s12  ;;  %713 = vrot.lane.b32.xlu0 %v2263_v39, %s2105_s10 }
 0x11d   : > { %v2287_v46 = vpop.f32.mrf.mxu0  ;;  %v2295_v47 = vpop.f32.mrf.mxu1 }
 0x11e   : > { %927 = vrot.lane.b32.xlu1 %v2265_v40, %s2109_s13  ;;  %814 = vrot.lane.b32.xlu0 %v2263_v39, %s2107_s12 }
 0x11f   : > { %616 = vrot.lane.b32.xlu2 %v2287_v46, %s2106_s11 }
 0x125   : > { %v2389_v12 = vpop.f32.mrf.mxu0  ;;  %v2429_v25 = vpop.f32.mrf.mxu1 }
 0x126   : > { %1028 = vrot.lane.b32.xlu1 %v2265_v40, %s2110_s14  ;;  %915 = vrot.lane.b32.xlu0 %v2263_v39, %s2109_s13 }
 0x127   : > { %628 = vrot.lane.b32.xlu2 %v2295_v47, %s2106_s11 }
 0x12e   : > { %1129 = vrot.lane.b32.xlu1 %v2265_v40, %s2111_s15  ;;  %1016 = vrot.lane.b32.xlu0 %v2263_v39, %s2110_s14 }
 0x12f   : > { %717 = vrot.lane.b32.xlu2 %v2287_v46, %s2105_s10 }
 0x136   : > { %1230 = vrot.lane.b32.xlu1 %v2265_v40, %s2112_s16  ;;  %1117 = vrot.lane.b32.xlu0 %v2263_v39, %s2111_s15 }
 0x137   : > { %818 = vrot.lane.b32.xlu2 %v2287_v46, %s2107_s12 }
 0x13e   : > { %729 = vrot.lane.b32.xlu1 %v2295_v47, %s2105_s10  ;;  %1218 = vrot.lane.b32.xlu0 %v2263_v39, %s2112_s16 }
 0x13f   : > { %1381 = vperm.xlu2 %1995, %v2183_v5   ;;  %v2345_v5 = vpop.permute.xlu2 %1179 }
 0x146   : > { %931 = vrot.lane.b32.xlu1 %v2295_v47, %s2109_s13  ;;  %830 = vrot.lane.b32.xlu0 %v2295_v47, %s2107_s12 }
 0x147   : > { %1331 = vrot.lane.b32.xlu2 %v2265_v40, %s2113_s18  ;;  %v2351_v53 = vpop.permute.xlu2 %1070 }
 0x148   : > { %2002 = vset.pattern.permute.xlu2 %v3530_v16 }
 0x14e   : > { %1032 = vrot.lane.b32.xlu1 %v2295_v47, %s2110_s14  ;;  %919 = vrot.lane.b32.xlu0 %v2287_v46, %s2109_s13 }
 0x14f   : > { %v2361_v57 = vpop.permute.xlu2 %1280 }
 0x156   : > { %1133 = vrot.lane.b32.xlu1 %v2295_v47, %s2111_s15  ;;  %1020 = vrot.lane.b32.xlu0 %v2287_v46, %s2110_s14 }
 0x157   : > { %v2374_v63 = vpop.permute.xlu2 %1171 }
 0x15e   : > { %1234 = vrot.lane.b32.xlu1 %v2295_v47, %s2112_s16  ;;  %1121 = vrot.lane.b32.xlu0 %v2287_v46, %s2111_s15 }
 0x166   : > { %1319 = vrot.lane.b32.xlu1 %v2263_v39, %s2113_s18  ;;  %1222 = vrot.lane.b32.xlu0 %v2287_v46, %s2112_s16  ;;  %v2455_v39 = vld [vmem:[%s3483_s5 + $0x18] sm:$0xff] }
 0x169   : > { %v613_v14 = vpop.permute.xlu2 %612 }
 0x16e   : > { %1373 = vperm.xlu1 %1997, %v2213_v10   ;;  %1323 = vrot.lane.b32.xlu0 %v2287_v46, %s2113_s18 }
 0x176   : > { %1335 = vrot.lane.b32.xlu1 %v2295_v47, %s2113_s18  ;;  %1272 = vperm.xlu0 %1996, %v2213_v10   ;;  %v3552_v10 = vmov 0 }
 0x177   : > { %1998 = vset.pattern.permute.xlu1 %v3501_v2  ;;  %v3553_v10 = vsel %vm2391_vm12, 4294967295, %v3552_v10 }
 0x17e   : > { %618 = vrot.lane.b32.xlu1 %v2389_v12, %s2106_s11  ;;  %2000 = vset.pattern.permute.xlu0 %v3520_v11 }
 0x180   : > { %v726_v17 = vpop.permute.xlu1 %725  ;;  %v625_v18 = vpop.permute.xlu0 %624 }
 0x181   : > { %v637_v20 = vsel %vm3488_vm0, %v613_v14, %v625_v18  ;;  %v643_v21 = vsel %vm3488_vm0, %v625_v18, %v613_v14  ;;  %vm2491_vm0 = vmand %vm512_vm10, %vm514_vm11  ;;  %vm3491_vm10 = vcmp.lt.s32.totalorder %v2359_v56, 1  ;;  %vm3497_vm11 = vcmp.lt.s32.totalorder %v2359_v56, 127 }
 0x182   : > { %v654_v22 = vsel %vm2409_vm1, %v637_v20, 0.0  ;;  %v653_v26 = vsel %vm2417_vm2, %v643_v21, 0.0 }
 0x183   : > { %v690_v24 = vmul.f32 %v2273_v41, %v654_v22  ;;  %v689_v28 = vmul.f32 %v2273_v41, %v653_v26 }
 0x185   : > { %v702_v27 = vadd.f32 %v690_v24, %v601_v23  ;;  %v701_v58 = vadd.f32 %v689_v28, %v600_v34 }
 0x186   : > { %630 = vrot.lane.b32.xlu1 %v2429_v25, %s2106_s11 }
 0x188   : > { %v827_v30 = vpop.permute.xlu1 %826  ;;  %v714_v31 = vpop.permute.xlu0 %713 }
 0x189   : > { %v738_v37 = vsel %vm3487_vm3, %v714_v31, %v726_v17  ;;  %v744_v40 = vsel %vm3487_vm3, %v726_v17, %v714_v31  ;;  %vm515_vm3 = vcmp.lt.s32.totalorder %v2369_v60, 16  ;;  %v3570_v31 = vmov 0 }
 0x18a   : > { %v754_v54 = vsel %vm2398_vm14, %v744_v40, 0.0  ;;  %v755_v41 = vsel %vm2391_vm12, %v738_v37, 0.0  ;;  %vm2495_vm5 = vmand %vm513_vm7, %vm515_vm3 }
 0x18b   : > { %v790_v0 = vmul.f32 %v2297_v48, %v754_v54  ;;  %v791_v62 = vmul.f32 %v2297_v48, %v755_v41  ;;  %v3563_v48 = vmov 0  ;;  %vm2514_vm7 = vmand %vm2495_vm5, %vm3492_vm13 }
 0x18c   : > { %v3564_v48 = vsel %vm2473_vm9, 4294967295, %v3563_v48  ;;  %vm2537_vm3 = vmand %vm2491_vm0, %vm3496_vm4 }
 0x18d   : > { %v802_v1 = vadd.f32 %v790_v0, %v701_v58  ;;  %v803_v3 = vadd.f32 %v791_v62, %v702_v27  ;;  %3565 = vst [vmem:[#allocation6_spill] sm:$0xff] %v3564_v48  ;;  %v3580_v27 = vmov 0 }
 0x18e   : > { %678 = vperm.xlu1 %1998, %v2455_v39  }
 0x190   : > { %v928_v14 = vpop.permute.xlu1 %927  ;;  %v815_v17 = vpop.permute.xlu0 %814 }
 0x191   : > { %v839_v18 = vsel %vm3490_vm8, %v815_v17, %v827_v30  ;;  %v845_v20 = vsel %vm3490_vm8, %v827_v30, %v815_v17  ;;  %vm2505_vm8 = vmand %vm2491_vm0, %vm3493_vm15 }
 0x192   : > { %v855_v21 = vsel %vm2464_vm6, %v845_v20, 0.0  ;;  %v856_v22 = vsel %vm2473_vm9, %v839_v18, 0.0  ;;  %v3571_v31 = vsel %vm2505_vm8, 4294967295, %v3570_v31 }
 0x193   : > { %v891_v23 = vmul.f32 %v2319_v50, %v855_v21  ;;  %v892_v24 = vmul.f32 %v2319_v50, %v856_v22  ;;  %v3572_v50 = vmov 0 }
 0x194   : > { %v3573_v50 = vsel %vm2514_vm7, 4294967295, %v3572_v50 }
 0x195   : > { %v903_v28 = vadd.f32 %v891_v23, %v802_v1  ;;  %v904_v30 = vadd.f32 %v892_v24, %v803_v3  ;;  %3574 = vst [vmem:[#allocation7_spill] sm:$0xff] %v3573_v50  ;;  %v518_v1 = vadd.s32 1, %v2372_v61  ;;  %v519_v3 = vadd.s32 1, %v2369_v60 }
 0x196   : > { %719 = vrot.lane.b32.xlu1 %v2389_v12, %s2105_s10 }
 0x197   : > { %1999 = vset.pattern.permute.xlu1 %v3525_v4  ;;  %vm520_vm15 = vcmp.ge.s32.totalorder %v518_v1, 0  ;;  %vm521_vm0 = vcmp.ge.s32.totalorder %v519_v3, 0  ;;  %vm523_vm4 = vcmp.lt.s32.totalorder %v519_v3, 16 }
 0x198   : > { %v1029_v34 = vpop.permute.xlu1 %1028  ;;  %v916_v37 = vpop.permute.xlu0 %915 }
 0x199   : > { %v940_v40 = vsel %vm3491_vm10, %v916_v37, %v928_v14  ;;  %v946_v54 = vsel %vm3491_vm10, %v928_v14, %v916_v37  ;;  %vm3577_vm10 = vcmp.lt.s32.totalorder %v2439_v33, 16  ;;  %v3585_v37 = vmov 0 }
 0x19a   : > { %v956_v41 = vsel %vm2505_vm8, %v946_v54, 0.0  ;;  %v957_v58 = vsel %vm2514_vm7, %v940_v40, 0.0  ;;  %vm2546_vm13 = vmand %vm2495_vm5, %vm3577_vm10  ;;  %vm522_vm7 = vcmp.lt.s32.totalorder %v518_v1, 16 }
 0x19b   : > { %v992_v0 = vmul.f32 %v2335_v52, %v956_v41  ;;  %v993_v62 = vmul.f32 %v2335_v52, %v957_v58  ;;  %v3578_v52 = vmov 0  ;;  %vm2560_vm5 = vmand %vm520_vm15, %vm522_vm7  ;;  %vm3500_vm15 = vcmp.lt.s32.totalorder %v2359_v56, 113 }
 0x19c   : > { %v3579_v52 = vsel %vm2546_vm13, 4294967295, %v3578_v52  ;;  %v3581_v27 = vsel %vm2560_vm5, 4294967295, %v3580_v27  ;;  %vm2564_vm10 = vmand %vm521_vm0, %vm523_vm4  ;;  %vm3588_vm7 = vcmp.ge.s32.totalorder %v2385_v8, 0 }
 0x19d   : > { %v1004_v17 = vadd.f32 %v992_v0, %v903_v28  ;;  %v1005_v18 = vadd.f32 %v993_v62, %v904_v30  ;;  %v3582_v28 = vmov 0  ;;  %vm2582_vm4 = vmand %vm2564_vm10, %vm3588_vm7  ;;  %vm3594_vm7 = vcmp.lt.s32.totalorder %v2359_v56, 16 }
 0x19e   : > { %614 = vrot.lane.b32.xlu1 %v2275_v42, %s2106_s11  ;;  %v3583_v28 = vsel %vm2564_vm10, 4294967295, %v3582_v28 }
 0x1a0   : > { %v1130_v60 = vpop.permute.xlu1 %1129  ;;  %v1017_v61 = vpop.permute.xlu0 %1016 }
 0x1a1   : > { %v1041_v20 = vsel %vm3497_vm11, %v1017_v61, %v1029_v34  ;;  %v1047_v21 = vsel %vm3497_vm11, %v1029_v34, %v1017_v61  ;;  %vm3584_vm11 = vcmp.ge.s32.totalorder %v2387_v9, 0  ;;  %v2610_v61 = vld [vmem:[%s3483_s5 + $0x8] sm:$0xff] }
 0x1a2   : > { %v1057_v22 = vsel %vm2537_vm3, %v1041_v20, 0.0  ;;  %v1058_v23 = vsel %vm2546_vm13, %v1047_v21, 0.0  ;;  %vm2573_vm13 = vmand %vm2560_vm5, %vm3584_vm11  ;;  %vm3592_vm11 = vcmp.lt.s32.totalorder %v2359_v56, 17 }
 0x1a3   : > { %v1093_v24 = vmul.f32 %v2351_v53, %v1057_v22  ;;  %v1094_v26 = vmul.f32 %v2351_v53, %v1058_v23  ;;  %v3586_v37 = vsel %vm2573_vm13, 4294967295, %v3585_v37  ;;  %v3589_v53 = vmov 0  ;;  %vm3593_vm0 = vmmov %vm3592_vm11 }
 0x1a4   : > { %3587 = vst [vmem:[#allocation8_spill] sm:$0xff] %v3586_v37  ;;  %v3590_v53 = vsel %vm2582_vm4, 4294967295, %v3589_v53 }
 0x1a5   : > { %v1105_v30 = vadd.f32 %v1093_v24, %v1004_v17  ;;  %v1106_v34 = vadd.f32 %v1094_v26, %v1005_v18  ;;  %3591 = vst [vmem:[#allocation9_spill] sm:$0xff] %v3590_v53 }
 0x1a6   : > { %779 = vperm.xlu1 %1999, %v2455_v39  }
 0x1a8   : > { %v2586_v40 = vpop.permute.xlu1 %1230  ;;  %v1118_v54 = vpop.permute.xlu0 %1117 }
 0x1a9   : > { %v1142_v9 = vsel %vm3500_vm15, %v1118_v54, %v1130_v60  ;;  %v1148_v41 = vsel %vm3500_vm15, %v1130_v60, %v1118_v54  ;;  %v617_v60 = vpop.permute.xlu2 %616  ;;  %vm3595_vm15 = vmmov %vm3594_vm7 }
 0x1aa   : > { %v1158_v58 = vsel %vm2573_vm13, %v1142_v9, 0.0  ;;  %v1159_v8 = vsel %vm2582_vm4, %v1148_v41, 0.0 }
 0x1ab   : > { %v1194_v0 = vmul.f32 %v2374_v63, %v1158_v58  ;;  %v1195_v62 = vmul.f32 %v2374_v63, %v1159_v8 }
 0x1ad   : > { %v2598_v1 = vadd.f32 %v1194_v0, %v1105_v30  ;;  %v2600_v3 = vadd.f32 %v1195_v62, %v1106_v34 }
 0x1ae   : > { %820 = vrot.lane.b32.xlu1 %v2389_v12, %s2107_s12 }
 0x1af   : > { %2001 = vset.pattern.permute.xlu1 %v3501_v2 }
 0x1b0   : > { %v730_v17 = vpop.permute.xlu1 %729  ;;  %v2605_v18 = vpop.permute.xlu0 %1218 }
 0x1b1   : > { %v629_v21 = vpop.permute.xlu2 %628 }
 0x1b2   : > { %v645_v34 = vsel %vm3592_vm11, %v629_v21, %v617_v60  ;;  %v639_v58 = vsel %vm3593_vm0, %v617_v60, %v629_v21  ;;  %vm3596_vm11 = vcmp.lt.s32.totalorder %v2359_v56, 15 }
 0x1b3   : > { %v657_v8 = vsel %vm2417_vm2, %v645_v34, 0.0  ;;  %v658_v2 = vsel %vm2409_vm1, %v639_v58, 0.0  ;;  %vm3597_vm0 = vmmov %vm3596_vm11  ;;  %v605_v58 = vmul.f32 %v2383_v7, %v2295_v47 }
 0x1b6   : > { %670 = vperm.xlu1 %2001, %v2610_v61  }
 0x1b8   : > { %v932_v63 = vpop.permute.xlu1 %931  ;;  %v831_v20 = vpop.permute.xlu0 %830 }
 0x1b9   : > { %v718_v24 = vpop.permute.xlu2 %717 }
 0x1ba   : > { %v740_v0 = vsel %vm3594_vm7, %v718_v24, %v730_v17  ;;  %v746_v62 = vsel %vm3595_vm15, %v730_v17, %v718_v24  ;;  %v694_v17 = vmul.f32 %v2353_v55, %v658_v2  ;;  %v604_v24 = vmul.f32 %v2383_v7, %v2287_v46 }
 0x1bb   : > { %v758_v38 = vsel %vm2398_vm14, %v746_v62, 0.0  ;;  %v759_v60 = vsel %vm2391_vm12, %v740_v0, 0.0  ;;  %vm3598_vm15 = vcmp.lt.s32.totalorder %v2359_v56, 1  ;;  %vm3603_vm12 = vcmp.lt.s32.totalorder %v2359_v56, 113 }
 0x1bc   : > { %vm3599_vm7 = vmmov %vm3598_vm15 }
 0x1be   : > { %727 = vrot.lane.b32.xlu1 %v2283_v44, %s2105_s10 }
 0x1bf   : > { %2014 = vset.pattern.permute.xlu1 %v3503_v43  ;;  %v693_v43 = vmul.f32 %v2353_v55, %v657_v8 }
 0x1c0   : > { %v1033_v22 = vpop.permute.xlu1 %1032  ;;  %v920_v23 = vpop.permute.xlu0 %919 }
 0x1c1   : > { %v819_v54 = vpop.permute.xlu2 %818  ;;  %v942_v8 = vsel %vm3598_vm15, %v920_v23, %v932_v63  ;;  %v948_v0 = vsel %vm3599_vm7, %v932_v63, %v920_v23  ;;  %v705_v55 = vadd.f32 %v693_v43, %v604_v24  ;;  %v706_v23 = vadd.f32 %v694_v17, %v605_v58 }
 0x1c2   : > { %v841_v21 = vsel %vm3596_vm11, %v819_v54, %v831_v20  ;;  %v847_v34 = vsel %vm3597_vm0, %v831_v20, %v819_v54  ;;  %v794_v20 = vmul.f32 %v2364_v59, %v758_v38  ;;  %v795_v54 = vmul.f32 %v2364_v59, %v759_v60 }
 0x1c3   : > { %v859_v2 = vsel %vm2464_vm6, %v847_v34, 0.0  ;;  %v860_v46 = vsel %vm2473_vm9, %v841_v21, 0.0  ;;  %vm3600_vm11 = vcmp.lt.s32.totalorder %v2359_v56, 127  ;;  %vm3513_vm15 = vcmp.lt.s32.totalorder %v2359_v56, 112 }
 0x1c4   : > { %vm3601_vm0 = vmmov %vm3600_vm11  ;;  %v960_v38 = vsel %vm2505_vm8, %v948_v0, 0.0  ;;  %vm3602_vm7 = vnez %v3573_v50  ;;  %v895_v60 = vmul.f32 %v2285_v45, %v859_v2  ;;  %v896_v43 = vmul.f32 %v2285_v45, %v860_v46 }
 0x1c5   : > { %v961_v59 = vsel %vm3602_vm7, %v942_v8, 0.0  ;;  %v996_v58 = vmul.f32 %v2311_v49, %v960_v38 }
 0x1c6   : > { %933 = vrot.lane.b32.xlu1 %v2429_v25, %s2109_s13  ;;  %v997_v8 = vmul.f32 %v2311_v49, %v961_v59  ;;  %v1249_v59 = vsel %vm3513_vm15, %v2586_v40, %v2605_v18 }
 0x1c8   : > { %v1134_v26 = vpop.permute.xlu1 %1133  ;;  %v1021_v30 = vpop.permute.xlu0 %1020 }
 0x1c9   : > { %v2658_v47 = vpop.permute.xlu2 %1381  ;;  %v1043_v7 = vsel %vm3600_vm11, %v1021_v30, %v1033_v22  ;;  %v1049_v63 = vsel %vm3601_vm0, %v1033_v22, %v1021_v30  ;;  %vm3604_vm11 = vmmov %vm3603_vm12  ;;  %v806_v22 = vadd.f32 %v794_v20, %v705_v55  ;;  %v807_v30 = vadd.f32 %v795_v54, %v706_v23 }
 0x1ca   : > { %v1061_v17 = vsel %vm2537_vm3, %v1043_v7, 0.0  ;;  %vm3605_vm0 = vnez %v3579_v52 }
 0x1cb   : > { %v1062_v24 = vsel %vm3605_vm0, %v1049_v63, 0.0  ;;  %v907_v20 = vadd.f32 %v895_v60, %v806_v22  ;;  %v908_v54 = vadd.f32 %v896_v43, %v807_v30  ;;  %v1097_v2 = vmul.f32 %v2326_v51, %v1061_v17 }
 0x1cc   : > { %v1098_v49 = vmul.f32 %v2326_v51, %v1062_v24  ;;  %v1243_v51 = vsel %vm3513_vm15, %v2605_v18, %v2586_v40  ;;  %v1260_v24 = vsel %vm2564_vm10, %v1249_v59, 0.0 }
 0x1cd   : > { %v1008_v7 = vadd.f32 %v996_v58, %v907_v20  ;;  %v1009_v63 = vadd.f32 %v997_v8, %v908_v54  ;;  %v1259_v17 = vsel %vm2560_vm5, %v1243_v51, 0.0 }
 0x1ce   : > { %828 = vrot.lane.b32.xlu1 %v2283_v44, %s2107_s12 }
 0x1cf   : > { %v1109_v43 = vadd.f32 %v1097_v2, %v1008_v7 }
 0x1d0   : > { %v1235_v9 = vpop.permute.xlu1 %1234  ;;  %v1122_v41 = vpop.permute.xlu0 %1121 }
 0x1d1   : > { %v1144_v21 = vsel %vm3603_vm12, %v1122_v41, %v1134_v26  ;;  %v1150_v34 = vsel %vm3604_vm11, %v1134_v26, %v1122_v41  ;;  %v1332_v60 = vpop.permute.xlu2 %1331  ;;  %vm3606_vm11 = vcmp.lt.s32.totalorder %v2437_v29, 16 }
 0x1d2   : > { %v1162_v26 = vsel %vm2573_vm13, %v1144_v21, 0.0  ;;  %v1163_v41 = vsel %vm2582_vm4, %v1150_v34, 0.0  ;;  %v1110_v21 = vadd.f32 %v1098_v49, %v1009_v63  ;;  %vm2714_vm12 = vmand %vm2560_vm5, %vm3606_vm11  ;;  %vm3609_vm4 = vcmp.lt.s32.totalorder %v2359_v56, 111 }
 0x1d3   : > { %v1198_v23 = vmul.f32 %v2345_v5, %v1162_v26  ;;  %v1199_v38 = vmul.f32 %v2345_v5, %v1163_v41  ;;  %v3607_v5 = vmov 0  ;;  %vm3611_vm13 = vcmp.lt.s32.totalorder %v2439_v33, 16 }
 0x1d4   : > { %v3608_v5 = vsel %vm2714_vm12, 4294967295, %v3607_v5  ;;  %vm2726_vm0 = vmand %vm2564_vm10, %vm3611_vm13 }
 0x1d5   : > { %v1210_v29 = vadd.f32 %v1198_v23, %v1109_v43  ;;  %v1211_v18 = vadd.f32 %v1199_v38, %v1110_v21  ;;  %vm3614_vm13 = vmmov %vm3609_vm4 }
 0x1d6   : > { %1034 = vrot.lane.b32.xlu1 %v2429_v25, %s2110_s14 }
 0x1d8   : > { %v1320_v62 = vpop.permute.xlu1 %1319  ;;  %v1223_v36 = vpop.permute.xlu0 %1222 }
 0x1d9   : > { %v1245_v45 = vsel %vm3513_vm15, %v1223_v36, %v1235_v9  ;;  %v1251_v0 = vsel %vm3513_vm15, %v1235_v9, %v1223_v36  ;;  %v1344_v30 = vsel %vm3609_vm4, %v1320_v62, %v1332_v60  ;;  %vm3610_vm15 = vmmov %vm3609_vm4 }
 0x1da   : > { %v1263_v36 = vsel %vm2560_vm5, %v1245_v45, 0.0  ;;  %v1264_v9 = vsel %vm2564_vm10, %v1251_v0, 0.0  ;;  %v1350_v40 = vsel %vm3610_vm15, %v1332_v60, %v1320_v62  ;;  %v1360_v33 = vsel %vm2714_vm12, %v1344_v30, 0.0 }
 0x1db   : > { %v1299_v34 = vmul.f32 %v2361_v57, %v1263_v36  ;;  %v1300_v22 = vmul.f32 %v2361_v57, %v1264_v9  ;;  %v3612_v57 = vmov 0  ;;  %v1361_v8 = vsel %vm2726_vm0, %v1350_v40, 0.0 }
 0x1dc   : > { %v3613_v57 = vsel %vm2726_vm0, 4294967295, %v3612_v57  ;;  %vm3615_vm15 = vcmp.lt.s32.totalorder %v2359_v56, 17 }
 0x1dd   : > { %v1311_v62 = vadd.f32 %v1299_v34, %v1210_v29  ;;  %v1312_v58 = vadd.f32 %v1300_v22, %v1211_v18  ;;  %vm3616_vm11 = vmmov %vm3615_vm15 }
 0x1de   : > { %929 = vrot.lane.b32.xlu1 %v2283_v44, %s2109_s13 }
 0x1e0   : > { %v1374_v46 = vpop.permute.xlu1 %1373  ;;  %v1324_v55 = vpop.permute.xlu0 %1323 }
 0x1e1   : > { %v1396_v2 = vmul.f32 %v1374_v46, %v1360_v33  ;;  %v1397_v49 = vmul.f32 %v1374_v46, %v1361_v8 }
 0x1e6   : > { %1135 = vrot.lane.b32.xlu1 %v2429_v25, %s2111_s15 }
 0x1e8   : > { %v1336_v45 = vpop.permute.xlu1 %1335  ;;  %v1273_v0 = vpop.permute.xlu0 %1272 }
 0x1e9   : > { %v1346_v26 = vsel %vm3614_vm13, %v1324_v55, %v1336_v45  ;;  %v1352_v41 = vsel %vm3609_vm4, %v1336_v45, %v1324_v55  ;;  %v1295_v20 = vmul.f32 %v1273_v0, %v1259_v17  ;;  %v1296_v54 = vmul.f32 %v1273_v0, %v1260_v24 }
 0x1ea   : > { %v1364_v36 = vsel %vm2714_vm12, %v1346_v26, 0.0  ;;  %v1365_v9 = vsel %vm2726_vm0, %v1352_v41, 0.0  ;;  %vm3617_vm13 = vcmask 130048   ;;  %v3619_v45 = vmov 5  }
 0x1eb   : > { %v1400_v7 = vmul.f32 %v2658_v47, %v1364_v36  ;;  %v1401_v63 = vmul.f32 %v2658_v47, %v1365_v9  ;;  %v1307_v23 = vadd.f32 %v1295_v20, %v2598_v1  ;;  %v1308_v38 = vadd.f32 %v1296_v54, %v2600_v3  ;;  %vm3618_vm4 = vmmov %vm3617_vm13 }
 0x1ec   : > { %v3620_v41 = vmov 6   ;;  %vm3621_vm0 = vcmp.lt.s32.totalorder %v2359_v56, 17 }
 0x1ed   : > { %v2752_v51 = vadd.f32 %v1396_v2, %v1307_v23  ;;  %v2754_v55 = vadd.f32 %v1397_v49, %v1308_v38  ;;  %v2756_v59 = vadd.f32 %v1400_v7, %v1311_v62  ;;  %v2758_v46 = vadd.f32 %v1401_v63, %v1312_v58  ;;  %v406_v58 = vld [vmem:[%s3482_s4 + $0x20] sm:$0xff]  ;;  %vm3622_vm12 = vmmov %vm3621_vm0 }
 0x1ee   : > { %1030 = vrot.lane.b32.xlu1 %v2283_v44, %s2110_s14  ;;  %1921 = vmatmul.msk.f32.gmra.mxu0 %vm3617_vm13, %v406_v58 }
 0x1ef   : > { %v1420_v60 = vmul.f32 %v2752_v51, %v2752_v51  ;;  %v1421_v47 = vmul.f32 %v2754_v55, %v2754_v55  ;;  %v1454_v1 = vmul.f32 %v2756_v59, %v2756_v59  ;;  %v1455_v3 = vmul.f32 %v2758_v46, %v2758_v46  ;;  %1927 = vmatmul.msk.f32.gmra.mxu1 %vm3618_vm4, %v406_v58 }
 0x1f0   : > { %v619_v43 = vpop.permute.xlu1 %618 }
 0x1f1   : > { %v1422_v21 = vadd.f32 %v1421_v47, %v1420_v60  ;;  %v1456_v34 = vadd.f32 %v1455_v3, %v1454_v1 }
 0x1f3   : > { %1423 = vadd.xlane.f32.xlu0 %v1422_v21  ;;  %1457 = vadd.xlane.f32.xlu2 %v1456_v34 }
 0x1f6   : > { %1236 = vrot.lane.b32.xlu1 %v2429_v25, %s2112_s16 }
 0x1f8   : > { %v631_v22 = vpop.permute.xlu1 %630 }
 0x1f9   : > { %v640_v30 = vsel %vm3615_vm15, %v619_v43, %v631_v22  ;;  %v646_v40 = vsel %vm3616_vm11, %v631_v22, %v619_v43 }
 0x1fa   : > { %v659_v29 = vsel %vm2417_vm2, %v646_v40, 0.0  ;;  %v660_v18 = vsel %vm2409_vm1, %v640_v30, 0.0 }
 0x1fe   : > { %1131 = vrot.lane.b32.xlu1 %v2283_v44, %s2111_s15 }
 0x200   : > { %v679_v17 = vpop.permute.xlu1 %678 }
 0x201   : > { %v2782_v24 = vmul.f32 %v679_v17, %v659_v29  ;;  %v2784_v62 = vmul.f32 %v679_v17, %v660_v18 }
 0x206   : > { %1337 = vrot.lane.b32.xlu1 %v2429_v25, %s2113_s18 }
 0x207   : > { %626 = vrot.lane.b32.xlu0 %v2283_v44, %s2106_s11 }
 0x208   : > { %v2822_v33 = vpop.permute.xlu1 %719 }
 0x20b   : > { %731 = vrot.lane.b32.xlu2 %v2429_v25, %s2105_s10 }
 0x20e   : > { %1232 = vrot.lane.b32.xlu1 %v2283_v44, %s2112_s16 }
 0x20f   : > { %577 = vperm.xlu0 %2000, %v2610_v61  }
 0x210   : > { %v615_v8 = vpop.permute.xlu1 %614 }
 0x213   : > { %832 = vrot.lane.b32.xlu2 %v2429_v25, %s2107_s12 }
 0x216   : > { %1321 = vrot.lane.b32.xlu1 %v2275_v42, %s2113_s18 }
 0x217   : > { %921 = vrot.lane.b32.xlu0 %v2389_v12, %s2109_s13 }
 0x218   : > { %2013 = vset.pattern.permute.xlu0 %v3523_v35  ;;  %v2834_v0 = vpop.permute.xlu1 %779 }
 0x21b   : > { %715 = vrot.lane.b32.xlu2 %v2275_v42, %s2105_s10 }
 0x21e   : > { %1377 = vperm.xlu1 %2014, %v2610_v61  }
 0x21f   : > { %816 = vrot.lane.b32.xlu0 %v2275_v42, %s2107_s12 }
 0x220   : > { %v2840_v26 = vpop.permute.xlu1 %820 }
 0x223   : > { %880 = vperm.xlu2 %2002, %v2455_v39  }
 0x226   : > { %2015 = vset.pattern.permute.xlu1 %v3520_v11 }
 0x227   : > { %1022 = vrot.lane.b32.xlu0 %v2389_v12, %s2110_s14 }
 0x228   : > { %v671_v20 = vpop.permute.xlu1 %670 }
 0x22b   : > { %2003 = vset.pattern.permute.xlu2 %v3525_v4 }
 0x22c   : > { %771 = vperm.xlu2 %2003, %v2610_v61  }
 0x22f   : > { %917 = vrot.lane.b32.xlu0 %v2275_v42, %s2109_s13 }
 0x230   : > { %v2851_v49 = vpop.permute.xlu1 %727 }
 0x234   : > { %2004 = vset.pattern.permute.xlu2 %v3528_v32 }
 0x235   : > { %981 = vperm.xlu2 %2004, %v2455_v39  }
 0x237   : > { %1123 = vrot.lane.b32.xlu0 %v2389_v12, %s2111_s15 }
 0x238   : > { %v2858_v1 = vpop.permute.xlu1 %933 }
 0x23d   : > { %2005 = vset.pattern.permute.xlu2 %v3530_v16 }
 0x23e   : > { %872 = vperm.xlu2 %2005, %v2610_v61  }
 0x23f   : > { %1018 = vrot.lane.b32.xlu0 %v2275_v42, %s2110_s14 }
 0x246   : > { %2006 = vset.pattern.permute.xlu2 %v3619_v45 }
 0x247   : > { %1082 = vperm.xlu2 %2006, %v2455_v39   ;;  %1224 = vrot.lane.b32.xlu0 %v2389_v12, %s2112_s16 }
 0x24f   : > { %2007 = vset.pattern.permute.xlu2 %v3528_v32  ;;  %1119 = vrot.lane.b32.xlu0 %v2275_v42, %s2111_s15 }
 0x250   : > { %973 = vperm.xlu2 %2007, %v2610_v61  }
 0x257   : > { %1325 = vrot.lane.b32.xlu0 %v2389_v12, %s2113_s18 }
 0x258   : > { %2008 = vset.pattern.permute.xlu2 %v3620_v41 }
 0x259   : > { %1183 = vperm.xlu2 %2008, %v2455_v39  }
 0x25f   : > { %1220 = vrot.lane.b32.xlu0 %v2275_v42, %s2112_s16 }
 0x261   : > { %2009 = vset.pattern.permute.xlu2 %v3619_v45 }
 0x262   : > { %1074 = vperm.xlu2 %2009, %v2610_v61  }
 0x266   : > { %v1424_v54 = vpop.xlane.xlu0 %1423  ;;  %v1458_v2 = vpop.xlane.xlu2 %1457 }
 0x267   : > { %2040 = vrsqrt.f32 %v1424_v54  ;;  %1276 = vperm.xlu0 %2013, %v2610_v61   ;;  %vm1432_vm15 = vcmp.eq.f32.partialorder %v1424_v54, inf  ;;  %v1435_v29 = vand.u32 2147483648, %v1424_v54  ;;  %vm1434_vm11 = vcmp.eq.f32.partialorder %v1424_v54, 0.0 }
 0x268   : > { %2042 = vrsqrt.f32 %v1458_v2  ;;  %vm1466_vm13 = vcmp.eq.f32.partialorder %v1458_v2, inf  ;;  %vm1468_vm4 = vcmp.eq.f32.partialorder %v1458_v2, 0.0 }
 0x26a   : > { %2010 = vset.pattern.permute.xlu2 %v3523_v35 }
 0x26b   : > { %1284 = vperm.xlu2 %2010, %v2455_v39  }
 0x26d   : > { %v2041_v36 = vpop.eup %2040 }
 0x26e   : > { %v2043_v9 = vpop.eup %2042  ;;  %v1426_v7 = vmul.f32 %v2041_v36, %v1424_v54  ;;  %v2855_v63 = vpop.permute.xlu2 %731 }
 0x26f   : > { %v1460_v23 = vmul.f32 %v2043_v9, %v1458_v2  ;;  %2017 = vset.pattern.permute.xlu0 %v3525_v4 }
 0x270   : > { %v1427_v38 = vmul.f32 %v2041_v36, %v1426_v7  ;;  %v1469_v7 = vand.u32 2147483648, %v1458_v2 }
 0x271   : > { %v1461_v60 = vmul.f32 %v2043_v9, %v1460_v23 }
 0x272   : > { %v1428_v47 = vmul.f32 0.5, %v1427_v38 }
 0x273   : > { %v1462_v3 = vmul.f32 0.5, %v1461_v60  ;;  %2011 = vset.pattern.permute.xlu2 %v3620_v41 }
 0x274   : > { %v1429_v43 = vsub.f32 1.5, %v1428_v47  ;;  %1175 = vperm.xlu2 %2011, %v2610_v61  }
 0x275   : > { %v1463_v21 = vsub.f32 1.5, %v1462_v3  ;;  %v2867_v3 = vpop.permute.xlu1 %828 }
 0x276   : > { %v1430_v34 = vmul.f32 %v2041_v36, %v1429_v43  ;;  %v833_v22 = vpop.permute.xlu2 %832  ;;  %v3623_v36 = vmov 8  }
 0x277   : > { %v1464_v30 = vmul.f32 %v2043_v9, %v1463_v21 }
 0x278   : > { %v1431_v40 = vmul.f32 %v1430_v34, %v1424_v54 }
 0x279   : > { %v1465_v18 = vmul.f32 %v1464_v30, %v1458_v2  ;;  %v627_v17 = vpop.permute.xlu0 %626 }
 0x27a   : > { %v1433_v58 = vsel %vm1432_vm15, %v1424_v54, %v1431_v40  ;;  %v638_v60 = vsel %vm3621_vm0, %v615_v8, %v627_v17  ;;  %v644_v61 = vsel %vm3622_vm12, %v627_v17, %v615_v8  ;;  %vm3624_vm0 = vcmp.lt.s32.totalorder %v2359_v56, 15 }
 0x27b   : > { %v1436_v23 = vsel %vm1434_vm11, %v1435_v29, %v1433_v58  ;;  %v1467_v38 = vsel %vm1466_vm13, %v1458_v2, %v1465_v18  ;;  %v655_v2 = vsel %vm2417_vm2, %v644_v61, 0.0  ;;  %v656_v21 = vsel %vm2409_vm1, %v638_v60, 0.0  ;;  %vm3625_vm12 = vmmov %vm3624_vm0 }
 0x27c   : > { %2012 = vset.pattern.permute.xlu2 %v3623_v36  ;;  %v1470_v9 = vsel %vm1468_vm4, %v1469_v7, %v1467_v38  ;;  %v1437_v47 = vmax.f32 %v1436_v23, 1e-12  ;;  %v691_v8 = vmul.f32 %v671_v20, %v655_v2  ;;  %v692_v30 = vmul.f32 %v671_v20, %v656_v21 }
 0x27d   : > { %1385 = vperm.xlu2 %2012, %v2455_v39   ;;  %v1471_v54 = vmax.f32 %v1470_v9, 1e-12  ;;  %v842_v18 = vsel %vm3624_vm0, %v2840_v26, %v833_v22  ;;  %v848_v17 = vsel %vm3625_vm12, %v833_v22, %v2840_v26  ;;  %v3626_v2 = vmov 0   ;;  %v2889_v21 = vpop.permute.xlu1 %1034 }
 0x27e   : > { %v716_v43 = vpop.permute.xlu2 %715  ;;  %2044 = vrcp.f32 %v1437_v47  ;;  %v862_v61 = vsel %vm2473_vm9, %v842_v18, 0.0  ;;  %vm3627_vm11 = vcmp.lt.s32.totalorder %v2359_v56, 16  ;;  %vm1443_vm0 = vweird.f32 %v1437_v47 }
 0x27f   : > { %2046 = vrcp.f32 %v1471_v54  ;;  %v745_v18 = vsel %vm3627_vm11, %v2851_v49, %v716_v43  ;;  %v1481_v11 = vand.u32 2147483647, %v1471_v54  ;;  %vm3628_vm4 = vmmov %vm3627_vm11  ;;  %vm1477_vm12 = vweird.f32 %v1471_v54 }
 0x281   : > { %v578_v34 = vpop.permute.xlu0 %577  ;;  %vm1482_vm2 = vcmp.eq.f32.partialorder %v1481_v11, 8.507059e+37 }
 0x282   : > { %v602_v40 = vmul.f32 %v578_v34, %v2275_v42  ;;  %v603_v29 = vmul.f32 %v578_v34, %v2283_v44  ;;  %v861_v42 = vsel %vm2464_vm6, %v848_v17, 0.0 }
 0x284   : > { %v2045_v58 = vpop.eup %2044  ;;  %v703_v7 = vadd.f32 %v691_v8, %v602_v40  ;;  %v704_v23 = vadd.f32 %v692_v30, %v603_v29  ;;  %v1483_v30 = vand.u32 2147483648, %v1471_v54  ;;  %v1449_v29 = vand.u32 2147483648, %v1437_v47 }
 0x285   : > { %v2047_v38 = vpop.eup %2046  ;;  %1333 = vrot.lane.b32.xlu2 %v2283_v44, %s2113_s18  ;;  %v1439_v20 = vmul.f32 %v2045_v58, %v1437_v47  ;;  %vm1444_vm15 = vweird.f32 %v2045_v58 }
 0x286   : > { %v881_v60 = vpop.permute.xlu2 %880  ;;  %v1473_v9 = vmul.f32 %v2047_v38, %v1471_v54  ;;  %2016 = vset.pattern.permute.xlu2 %v3626_v2  ;;  %vm1478_vm13 = vweird.f32 %v2047_v38  ;;  %vm2901_vm1 = vmor %vm1443_vm0, %vm1444_vm15 }
 0x287   : > { %v2891_v26 = vmul.f32 %v881_v60, %v861_v42  ;;  %v2893_v22 = vmul.f32 %v881_v60, %v862_v61  ;;  %v1440_v34 = vsub.f32 1.0, %v1439_v20  ;;  %v739_v42 = vsel %vm3628_vm4, %v716_v43, %v2851_v49  ;;  %vm1479_vm11 = vmor %vm1477_vm12, %vm1478_vm13 }
 0x288   : > { %v1474_v8 = vsub.f32 1.0, %v1473_v9  ;;  %v1447_v20 = vand.u32 2147483647, %v1437_v47  ;;  %vm3631_vm4 = vnez %v3553_v10  ;;  %v1450_v47 = vor.u32 1.1754944e-38, %v1449_v29 }
 0x289   : > { %v922_v44 = vpop.permute.xlu0 %921  ;;  %v1441_v40 = vmul.f32 %v2045_v58, %v1440_v34  ;;  %v756_v34 = vsel %vm2398_vm14, %v745_v18, 0.0  ;;  %v757_v49 = vsel %vm3631_vm4, %v739_v42, 0.0  ;;  %vm3634_vm13 = vcmp.lt.s32.totalorder %v2359_v56, 15 }
 0x28a   : > { %v1475_v17 = vmul.f32 %v2047_v38, %v1474_v8  ;;  %v1484_v8 = vor.u32 1.1754944e-38, %v1483_v30  ;;  %vm1448_vm15 = vcmp.eq.f32.partialorder %v1447_v20, 8.507059e+37  ;;  %v2913_v30 = vpop.permute.xlu1 %929  ;;  %vm3635_vm0 = vmmov %vm3634_vm13  ;;  %vm3636_vm12 = vcmp.lt.s32.totalorder %v2359_v56, 127 }
 0x28b   : > { %v1442_v60 = vadd.f32 %v2045_v58, %v1441_v40 }
 0x28c   : > { %v1476_v61 = vadd.f32 %v2047_v38, %v1475_v17 }
 0x28d   : > { %v1446_v35 = vsel %vm2901_vm1, %v2045_v58, %v1442_v60  ;;  %vm3632_vm1 = vcmp.lt.s32.totalorder %v2359_v56, 1 }
 0x28e   : > { %v772_v4 = vpop.permute.xlu2 %771  ;;  %v1480_v43 = vsel %vm1479_vm11, %v2047_v38, %v1476_v61  ;;  %v1451_v16 = vsel %vm1448_vm15, %v1450_v47, %v1446_v35  ;;  %v943_v11 = vsel %vm3632_vm1, %v922_v44, %v2858_v1  ;;  %vm3637_vm11 = vmmov %vm3636_vm12  ;;  %vm3638_vm15 = vnez %v3579_v52 }
 0x28f   : > { %v792_v54 = vmul.f32 %v772_v4, %v756_v34  ;;  %v793_v40 = vmul.f32 %v772_v4, %v757_v49  ;;  %v1485_v17 = vsel %vm1482_vm2, %v1484_v8, %v1480_v43  ;;  %vm3633_vm2 = vmmov %vm3632_vm1  ;;  %vm3640_vm1 = vcmp.lt.s32.totalorder %v2359_v56, 113 }
 0x290   : > { %v1486_v32 = vmul.f32 %v1485_v17, %v2756_v59  ;;  %v1487_v18 = vmul.f32 %v1485_v17, %v2758_v46  ;;  %v949_v4 = vsel %vm3633_vm2, %v2858_v1, %v922_v44  ;;  %v1452_v59 = vmul.f32 %v1451_v16, %v2752_v51  ;;  %v2939_v1 = vpop.f32.mrf.mxu1  ;;  %vm3641_vm2 = vmmov %vm3640_vm1 }
 0x291   : > { %v804_v9 = vadd.f32 %v792_v54, %v703_v7  ;;  %v805_v58 = vadd.f32 %v793_v40, %v704_v23  ;;  %v817_v60 = vpop.permute.xlu0 %816  ;;  %v1453_v46 = vmul.f32 %v1451_v16, %v2754_v55  ;;  %v962_v7 = vsel %vm2505_vm8, %v949_v4, 0.0  ;;  %v2937_v55 = vpop.f32.mrf.mxu0  ;;  %632 = vrot.lane.b32.xlu0 %v2939_v1, %s2106_s11 }
 0x292   : > { %1503 = vmatpush.xpose.msra.mxu2 %v1486_v32  ;;  %1523 = vmatpush.xpose.msra.mxu3 %v1487_v18  ;;  %v963_v32 = vsel %vm3602_vm7, %v943_v11, 0.0  ;;  %v1136_v42 = vpop.permute.xlu1 %1135  ;;  %v840_v51 = vsel %vm3634_vm13, %v817_v60, %v2867_v3  ;;  %v846_v16 = vsel %vm3635_vm0, %v2867_v3, %v817_v60  ;;  %v2972_v11 = vld [vmem:[%s3483_s5 + $0x20] sm:$0xff]  ;;  %vm3642_vm13 = vnez %v3586_v37 }
 0x293   : > { %v857_v20 = vsel %vm2464_vm6, %v846_v16, 0.0  ;;  %v858_v61 = vsel %vm2473_vm9, %v840_v51, 0.0  ;;  %620 = vrot.lane.b32.xlu2 %v2937_v55, %s2106_s11  ;;  %vm3643_vm0 = vnez %v3590_v53  ;;  %vm3652_vm9 = vcmp.lt.s32.totalorder %v2359_v56, 127 }
 0x295   : > { %1504 = vmatmul.f32.vlgmr.msra.gmra.mxu2 %v1452_v59  ;;  %1524 = vmatmul.f32.vlgmr.msra.gmra.mxu3 %v1453_v46 }
 0x296   : > { %v982_v35 = vpop.permute.xlu2 %981 }
 0x297   : > { %v2927_v23 = vmul.f32 %v982_v35, %v962_v7  ;;  %v2929_v38 = vmul.f32 %v982_v35, %v963_v32  ;;  %v3639_v35 = vmov 2  }
 0x299   : > { %v1023_v29 = vpop.permute.xlu0 %1022  ;;  %721 = vrot.lane.b32.xlu0 %v2937_v55, %s2105_s10 }
 0x29a   : > { %v1044_v47 = vsel %vm3636_vm12, %v1023_v29, %v2889_v21  ;;  %v1050_v54 = vsel %vm3637_vm11, %v2889_v21, %v1023_v29  ;;  %v1031_v40 = vpop.permute.xlu1 %1030  ;;  %vm3645_vm12 = vcmp.lt.s32.totalorder %v2359_v56, 112 }
 0x29b   : > { %v1063_v18 = vsel %vm2537_vm3, %v1044_v47, 0.0  ;;  %682 = vperm.xlu2 %2016, %v2972_v11   ;;  %vm3646_vm11 = vmmov %vm3645_vm12 }
 0x29e   : > { %v873_v44 = vpop.permute.xlu2 %872 }
 0x29f   : > { %v893_v34 = vmul.f32 %v873_v44, %v857_v20  ;;  %v894_v8 = vmul.f32 %v873_v44, %v858_v61  ;;  %v3644_v61 = vmov 3  }
 0x2a1   : > { %v2949_v3 = vadd.f32 %v893_v34, %v804_v9  ;;  %v2951_v49 = vadd.f32 %v894_v8, %v805_v58  ;;  %v918_v43 = vpop.permute.xlu0 %917  ;;  %v1064_v9 = vsel %vm3638_vm15, %v1050_v54, 0.0  ;;  %783 = vperm.xlu0 %2017, %v2972_v11  }
 0x2a2   : > { %v1237_v59 = vpop.permute.xlu1 %1236 }
 0x2a3   : > { %733 = vrot.lane.b32.xlu2 %v2939_v1, %s2105_s10 }
 0x2a4   : > { %2018 = vset.pattern.permute.xlu2 %v3639_v35 }
 0x2a6   : > { %v1083_v17 = vpop.permute.xlu2 %1082 }
 0x2a7   : > { %v2965_v58 = vmul.f32 %v1083_v17, %v1063_v18  ;;  %v2967_v60 = vmul.f32 %v1083_v17, %v1064_v9 }
 0x2a9   : > { %v1124_v21 = vpop.permute.xlu0 %1123  ;;  %935 = vrot.lane.b32.xlu0 %v2939_v1, %s2109_s13 }
 0x2aa   : > { %v1145_v7 = vsel %vm3640_vm1, %v1124_v21, %v1136_v42  ;;  %v1151_v32 = vsel %vm3641_vm2, %v1136_v42, %v1124_v21  ;;  %2028 = vset.pattern.permute.xlu0 %v3644_v61  ;;  %v1132_v42 = vpop.permute.xlu1 %1131  ;;  %vm3648_vm1 = vcmp.lt.s32.totalorder %v2359_v56, 1 }
 0x2ab   : > { %v1164_v51 = vsel %vm3642_vm13, %v1145_v7, 0.0  ;;  %v1165_v16 = vsel %vm3643_vm0, %v1151_v32, 0.0  ;;  %822 = vrot.lane.b32.xlu2 %v2937_v55, %s2107_s12  ;;  %vm3649_vm2 = vmmov %vm3648_vm1 }
 0x2ae   : > { %v974_v4 = vpop.permute.xlu2 %973 }
 0x2b1   : > { %v1019_v46 = vpop.permute.xlu0 %1018 }
 0x2b2   : > { %v1338_v54 = vpop.permute.xlu1 %1337 }
 0x2b3   : > { %884 = vperm.xlu2 %2018, %v2972_v11  }
 0x2b6   : > { %v1184_v29 = vpop.permute.xlu2 %1183 }
 0x2b7   : > { %v2989_v44 = vmul.f32 %v1184_v29, %v1164_v51  ;;  %v2991_v20 = vmul.f32 %v1184_v29, %v1165_v16 }
 0x2b9   : > { %v1225_v34 = vpop.permute.xlu0 %1224 }
 0x2ba   : > { %v1246_v17 = vsel %vm3645_vm12, %v1225_v34, %v1237_v59  ;;  %v1252_v18 = vsel %vm3646_vm11, %v1237_v59, %v1225_v34  ;;  %v1233_v16 = vpop.permute.xlu1 %1232  ;;  %v941_v59 = vsel %vm3648_vm1, %v918_v43, %v2913_v30  ;;  %v947_v34 = vsel %vm3649_vm2, %v2913_v30, %v918_v43  ;;  %vm3653_vm1 = vmmov %vm3652_vm9 }
 0x2bb   : > { %v1265_v21 = vsel %vm2560_vm5, %v1246_v17, 0.0  ;;  %v1266_v7 = vsel %vm2564_vm10, %v1252_v18, 0.0  ;;  %2019 = vset.pattern.permute.xlu2 %v3644_v61  ;;  %vm3650_vm12 = vcmp.lt.s32.totalorder %v2359_v56, 111  ;;  %v958_v61 = vsel %vm2505_vm8, %v947_v34, 0.0 }
 0x2bc   : > { %vm3651_vm11 = vmmov %vm3650_vm12  ;;  %v994_v30 = vmul.f32 %v974_v4, %v958_v61  ;;  %vm3654_vm2 = vnez %v3608_v5 }
 0x2be   : > { %v1075_v8 = vpop.permute.xlu2 %1074 }
 0x2c1   : > { %v1120_v47 = vpop.permute.xlu0 %1119 }
 0x2c2   : > { %v1322_v48 = vpop.permute.xlu1 %1321 }
 0x2c6   : > { %v1285_v9 = vpop.permute.xlu2 %1284 }
 0x2c7   : > { %v3005_v32 = vmul.f32 %v1285_v9, %v1265_v21  ;;  %v3007_v29 = vmul.f32 %v1285_v9, %v1266_v7  ;;  %v959_v9 = vsel %vm3602_vm7, %v941_v59, 0.0  ;;  %v1042_v21 = vsel %vm3652_vm9, %v1019_v46, %v1031_v40 }
 0x2c8   : > { %v1048_v7 = vsel %vm3653_vm1, %v1031_v40, %v1019_v46  ;;  %v995_v43 = vmul.f32 %v974_v4, %v959_v9  ;;  %v1059_v40 = vsel %vm2537_vm3, %v1042_v21, 0.0  ;;  %vm3658_vm9 = vcmp.lt.s32.totalorder %v2359_v56, 112 }
 0x2c9   : > { %3647 = vst [vmem:[#allocation10_spill] sm:$0xff] %v3007_v29  ;;  %v1326_v51 = vpop.permute.xlu0 %1325  ;;  %v1060_v4 = vsel %vm3638_vm15, %v1048_v7, 0.0  ;;  %v1095_v46 = vmul.f32 %v1075_v8, %v1059_v40  ;;  %vm3659_vm1 = vmmov %vm3658_vm9 }
 0x2ca   : > { %v1347_v17 = vsel %vm3650_vm12, %v1326_v51, %v1338_v54  ;;  %v1353_v18 = vsel %vm3651_vm11, %v1338_v54, %v1326_v51  ;;  %vm3655_vm12 = vnez %v3613_v57  ;;  %vm3656_vm11 = vcmp.lt.s32.totalorder %v2359_v56, 113  ;;  %v1378_v53 = vpop.permute.xlu1 %1377  ;;  %v1777_v57 = vld [vmem:[%s3484_s6] sm:$0xff] }
 0x2cb   : > { %v1366_v29 = vsel %vm3654_vm2, %v1347_v17, 0.0  ;;  %v1367_v54 = vsel %vm3655_vm12, %v1353_v18, 0.0  ;;  %v1143_v51 = vsel %vm3656_vm11, %v1120_v47, %v1132_v42  ;;  %vm3657_vm7 = vmmov %vm3656_vm11  ;;  %v1096_v17 = vmul.f32 %v1075_v8, %v1060_v4 }
 0x2cc   : > { %v1149_v59 = vsel %vm3657_vm7, %v1132_v42, %v1120_v47  ;;  %v1160_v42 = vsel %vm3642_vm13, %v1143_v51, 0.0  ;;  %v1007_v9 = vadd.f32 %v995_v43, %v2951_v49  ;;  %vm3660_vm7 = vcmp.lt.s32.totalorder %v2359_v56, 111 }
 0x2cd   : > { %vm3661_vm11 = vmmov %vm3660_vm7 }
 0x2ce   : > { %v1176_v35 = vpop.permute.xlu2 %1175 }
 0x2cf   : > { %v1196_v21 = vmul.f32 %v1176_v35, %v1160_v42 }
 0x2d1   : > { %v1221_v2 = vpop.permute.xlu0 %1220 }
 0x2d2   : > { %v1244_v18 = vsel %vm3658_vm9, %v1221_v2, %v1233_v16  ;;  %v1250_v61 = vsel %vm3659_vm1, %v1233_v16, %v1221_v2  ;;  %v1108_v16 = vadd.f32 %v1096_v17, %v1007_v9  ;;  %vm3662_vm9 = vcmp.lt.s32.totalorder %v2359_v56, 17 }
 0x2d3   : > { %v1261_v8 = vsel %vm2560_vm5, %v1244_v18, 0.0  ;;  %vm3663_vm1 = vmmov %vm3662_vm9 }
 0x2d7   : > { %v1386_v6 = vpop.permute.xlu2 %1385 }
 0x2d8   : > { %v3036_v34 = vmul.f32 %v1386_v6, %v1366_v29  ;;  %v3038_v50 = vmul.f32 %v1386_v6, %v1367_v54  ;;  %v1161_v6 = vsel %vm3643_vm0, %v1149_v59, 0.0  ;;  %v1006_v29 = vadd.f32 %v994_v30, %v2949_v3 }
 0x2d9   : > { %v1277_v47 = vpop.permute.xlu0 %1276  ;;  %v1197_v7 = vmul.f32 %v1176_v35, %v1161_v6  ;;  %v1262_v54 = vsel %vm2564_vm10, %v1250_v61, 0.0 }
 0x2da   : > { %v1107_v2 = vadd.f32 %v1095_v46, %v1006_v29  ;;  %v1297_v40 = vmul.f32 %v1277_v47, %v1261_v8  ;;  %v1298_v51 = vmul.f32 %v1277_v47, %v1262_v54 }
 0x2db   : > { %v1209_v37 = vadd.f32 %v1197_v7, %v1108_v16 }
 0x2dc   : > { %v1208_v59 = vadd.f32 %v1196_v21, %v1107_v2  ;;  %v3666_v2 = vmov 1  }
 0x2dd   : > { %v1310_v46 = vadd.f32 %v1298_v51, %v1209_v37  ;;  %v1529_v51 = vstv %s1528_s30 }
 0x2de   : > { %v1309_v43 = vadd.f32 %v1297_v40, %v1208_v59 }
 0x2df   : > { %v1334_v4 = vpop.permute.xlu2 %1333 }
 0x2e0   : > { %v1345_v3 = vsel %vm3660_vm7, %v1322_v48, %v1334_v4  ;;  %v1351_v49 = vsel %vm3661_vm11, %v1334_v4, %v1322_v48  ;;  %vm3664_vm7 = vnez %v3559_v19  ;;  %vm3665_vm11 = vnez %v3557_v15 }
 0x2e1   : > { %v1362_v35 = vsel %vm3654_vm2, %v1345_v3, 0.0  ;;  %v1363_v30 = vsel %vm3655_vm12, %v1351_v49, 0.0  ;;  %v3667_v49 = vmov 7  }
 0x2e2   : > { %v1398_v17 = vmul.f32 %v1378_v53, %v1362_v35  ;;  %v1399_v18 = vmul.f32 %v1378_v53, %v1363_v30  ;;  %v3668_v35 = vmov 4   ;;  %v407_v30 = vld [vmem:[%s3482_s4 + $0x28] sm:$0xff] }
 0x2e4   : > { %v3066_v61 = vadd.f32 %v1398_v17, %v1309_v43  ;;  %v3068_v42 = vadd.f32 %v1399_v18, %v1310_v46 }
 0x2e6   : > { %v1599_v6 = vmul.f32 %v3066_v61, %v3066_v61  ;;  %v1600_v48 = vmul.f32 %v3068_v42, %v3068_v42 }
 0x2e8   : > { %v1601_v47 = vadd.f32 %v1600_v48, %v1599_v6 }
 0x2ea   : > { %1602 = vadd.xlane.f32.xlu1 %v1601_v47 }
 0x2ed   : > { %v621_v29 = vpop.permute.xlu2 %620 }
 0x2f5   : > { %v683_v21 = vpop.permute.xlu2 %682 }
 0x2fd   : > { %v734_v48 = vpop.permute.xlu2 %733 }
 0x303   : > { %587 = vperm.xlu1 %2015, %v2455_v39   ;;  %v633_v37 = vpop.permute.xlu0 %632 }
 0x304   : > { %v641_v53 = vsel %vm3662_vm9, %v621_v29, %v633_v37  ;;  %v647_v9 = vsel %vm3663_vm1, %v633_v37, %v621_v29  ;;  %vm3545_vm9 = vcmask 64512   ;;  %vm3669_vm1 = vcmask 130048  }
 0x305   : > { %v661_v7 = vsel %vm3664_vm7, %v647_v9, 0.0  ;;  %v662_v8 = vsel %vm3665_vm11, %v641_v53, 0.0  ;;  %1928 = vmatmul.msk.f32.gmra.mxu1 %vm3669_vm1, %v407_v30  ;;  %vm3671_vm11 = vcmp.lt.s32.totalorder %v2359_v56, 16 }
 0x306   : > { %v697_v39 = vmul.f32 %v683_v21, %v661_v7  ;;  %v698_v54 = vmul.f32 %v683_v21, %v662_v8  ;;  %v741_v46 = vsel %vm3671_vm11, %v2822_v33, %v2855_v63  ;;  %vm3672_vm7 = vmmov %vm3671_vm11 }
 0x307   : > { %v761_v6 = vsel %vm3631_vm4, %v741_v46, 0.0  ;;  %vm3673_vm11 = vmmov %vm3672_vm7 }
 0x308   : > { %v797_v9 = vmul.f32 %v2834_v0, %v761_v6 }
 0x30b   : > { %592 = vperm.xlu1 %2015, %v2972_v11   ;;  %v722_v17 = vpop.permute.xlu0 %721 }
 0x30c   : > { %v748_v7 = vsel %vm3673_vm11, %v734_v48, %v722_v17  ;;  %vm3680_vm11 = vcmask 64512  }
 0x313   : > { %834 = vrot.lane.b32.xlu1 %v2939_v1, %s2107_s12 }
 0x314   : > { %2026 = vset.pattern.permute.xlu1 %v3666_v2 }
 0x318   : > { %v1505_v16 = vpop.f32.mrf.mxu2  ;;  %v1525_v40 = vpop.f32.mrf.mxu3 }
 0x319   : > { %v1526_v4 = vadd.f32 %v1525_v40, %v1505_v16  ;;  %v784_v16 = vpop.permute.xlu0 %783 }
 0x31b   : > { %923 = vrot.lane.b32.xlu1 %v2937_v55, %s2109_s13  ;;  %v3089_v59 = vmul.f32 %v1529_v51, %v1526_v4 }
 0x31d   : > { %v1532_v3 = vsel %vm3545_vm9, %v3089_v59, -inf  ;;  %vm3670_vm9 = vmmov %vm3669_vm1 }
 0x31e   : > { %1533 = vmax.xlane.f32.xlu2 %v1532_v3  ;;  %1922 = vmatmul.msk.f32.gmra.mxu0 %vm3670_vm9, %v407_v30  ;;  %vm3675_vm9 = vcmp.lt.s32.totalorder %v2359_v56, 15 }
 0x31f   : > { %vm3676_vm1 = vmmov %vm3675_vm9 }
 0x323   : > { %1024 = vrot.lane.b32.xlu1 %v2937_v55, %s2110_s14 }
 0x32b   : > { %1125 = vrot.lane.b32.xlu1 %v2937_v55, %s2111_s15 }
 0x333   : > { %1226 = vrot.lane.b32.xlu1 %v2937_v55, %s2112_s16 }
 0x336   : > { %985 = vperm.xlu2 %2019, %v2972_v11  }
 0x33e   : > { %2020 = vset.pattern.permute.xlu2 %v3619_v45 }
 0x33f   : > { %1086 = vperm.xlu2 %2020, %v2972_v11  }
 0x347   : > { %2021 = vset.pattern.permute.xlu2 %v3620_v41 }
 0x348   : > { %1187 = vperm.xlu2 %2021, %v2972_v11  }
 0x350   : > { %2022 = vset.pattern.permute.xlu2 %v3667_v49 }
 0x351   : > { %1288 = vperm.xlu2 %2022, %v2972_v11  }
 0x359   : > { %2023 = vset.pattern.permute.xlu2 %v3623_v36 }
 0x35a   : > { %1389 = vperm.xlu2 %2023, %v2972_v11   ;;  %v747_v11 = vsel %vm3672_vm7, %v2855_v63, %v2822_v33  ;;  %v742_v63 = vsel %vm3672_vm7, %v722_v17, %v734_v48 }
 0x35b   : > { %v760_v18 = vsel %vm2398_vm14, %v747_v11, 0.0 }
 0x35c   : > { %v796_v53 = vmul.f32 %v2834_v0, %v760_v18 }
 0x35d   : > { %v3114_v43 = vpop.xlane.xlu1 %1602 }
 0x362   : > { %2024 = vset.pattern.permute.xlu2 %v3668_v35  ;;  %v823_v35 = vpop.permute.xlu2 %822 }
 0x375   : > { %v588_v47 = vpop.permute.xlu1 %587 }
 0x376   : > { %v606_v29 = vmul.f32 %v588_v47, %v2389_v12  ;;  %v607_v37 = vmul.f32 %v588_v47, %v2429_v25  ;;  %v762_v12 = vsel %vm2398_vm14, %v748_v7, 0.0  ;;  %v763_v25 = vsel %vm3631_vm4, %v742_v63, 0.0  ;;  %v3674_v47 = vld [vmem:[#allocation10_spill] sm:$0xff] }
 0x377   : > { %v798_v30 = vmul.f32 %v784_v16, %v762_v12  ;;  %v799_v46 = vmul.f32 %v784_v16, %v763_v25 }
 0x378   : > { %v707_v21 = vadd.f32 %v2782_v24, %v606_v29  ;;  %v708_v33 = vadd.f32 %v2784_v62, %v607_v37 }
 0x37a   : > { %v808_v8 = vadd.f32 %v796_v53, %v707_v21  ;;  %v809_v2 = vadd.f32 %v797_v9, %v708_v33 }
 0x37c   : > { %v909_v0 = vadd.f32 %v2891_v26, %v808_v8  ;;  %v910_v24 = vadd.f32 %v2893_v22, %v809_v2 }
 0x37d   : > { %v593_v62 = vpop.permute.xlu1 %592 }
 0x37e   : > { %v1010_v40 = vadd.f32 %v2927_v23, %v909_v0  ;;  %v1011_v51 = vadd.f32 %v2929_v38, %v910_v24  ;;  %v608_v4 = vmul.f32 %v593_v62, %v2937_v55  ;;  %v609_v3 = vmul.f32 %v593_v62, %v2939_v1 }
 0x380   : > { %v709_v11 = vadd.f32 %v697_v39, %v608_v4  ;;  %v710_v17 = vadd.f32 %v698_v54, %v609_v3  ;;  %v1111_v18 = vadd.f32 %v2965_v58, %v1010_v40  ;;  %v1112_v26 = vadd.f32 %v2967_v60, %v1011_v51  ;;  %v3201_v40 = vld [vmem:[%s3483_s5 + $0x28] sm:$0xff]  ;;  %v936_v51 = vpop.permute.xlu0 %935 }
 0x382   : > { %v810_v6 = vadd.f32 %v798_v30, %v709_v11  ;;  %v811_v22 = vadd.f32 %v799_v46, %v710_v17  ;;  %v1212_v48 = vadd.f32 %v2989_v44, %v1111_v18  ;;  %v1213_v23 = vadd.f32 %v2991_v20, %v1112_v26  ;;  %v885_v44 = vpop.permute.xlu2 %884 }
 0x384   : > { %v1313_v38 = vadd.f32 %v3005_v32, %v1212_v48  ;;  %v1314_v29 = vadd.f32 %v3674_v47, %v1213_v23  ;;  %v3678_v32 = vld [vmem:[#allocation6_spill] sm:$0xff] }
 0x385   : > { %v835_v37 = vpop.permute.xlu1 %834  ;;  %vm3679_vm7 = vnez %v3678_v32 }
 0x386   : > { %v843_v53 = vsel %vm3675_vm9, %v823_v35, %v835_v37  ;;  %v849_v39 = vsel %vm3676_vm1, %v835_v37, %v823_v35  ;;  %v3159_v58 = vadd.f32 %v3036_v34, %v1313_v38  ;;  %v3162_v60 = vadd.f32 %v3038_v50, %v1314_v29 }
 0x387   : > { %v863_v20 = vsel %vm2464_vm6, %v849_v39, 0.0  ;;  %v864_v9 = vsel %vm3679_vm7, %v843_v53, 0.0  ;;  %v3681_v35 = vmov 0   ;;  %vm1611_vm9 = vcmp.eq.f32.partialorder %v3114_v43, inf }
 0x388   : > { %v899_v21 = vmul.f32 %v885_v44, %v863_v20  ;;  %v900_v33 = vmul.f32 %v885_v44, %v864_v9  ;;  %v1633_v63 = vmul.f32 %v3159_v58, %v3159_v58  ;;  %v1634_v7 = vmul.f32 %v3162_v60, %v3162_v60 }
 0x389   : > { %v1614_v39 = vand.u32 2147483648, %v3114_v43  ;;  %vm1613_vm1 = vcmp.eq.f32.partialorder %v3114_v43, 0.0 }
 0x38a   : > { %v1635_v34 = vadd.f32 %v1634_v7, %v1633_v63  ;;  %v3172_v8 = vadd.f32 %v900_v33, %v811_v22  ;;  %v3174_v50 = vadd.f32 %v899_v21, %v810_v6  ;;  %v3682_v6 = vmov 2  }
 0x38c   : > { %1636 = vadd.xlane.f32.xlu0 %v1635_v34 }
 0x38d   : > { %v3194_v24 = vpop.permute.xlu1 %923 }
 0x391   : > { %v1534_v2 = vpop.xlane.xlu2 %1533 }
 0x392   : > { %v1535_v16 = vsub.f32 %v3089_v59, %v1534_v2  ;;  %v3192_v59 = vpop.f32.mrf.mxu1 }
 0x393   : > { %634 = vrot.lane.b32.xlu2 %v3192_v59, %s2106_s11 }
 0x394   : > { %v1536_v12 = vmul.f32 1.442695, %v1535_v16 }
 0x396   : > { %2048 = vpow2.f32 %v1536_v12 }
 0x397   : > { %2050 = vrsqrt.f32 %v3114_v43 }
 0x399   : > { %v986_v26 = vpop.permute.xlu2 %985 }
 0x39b   : > { %597 = vperm.xlu2 %2024, %v3201_v40   ;;  %v3212_v30 = vpop.f32.mrf.mxu0 }
 0x39c   : > { %v3177_v25 = vpop.eup %2048 }
 0x39d   : > { %v1538_v0 = vsel %vm3680_vm11, %v3177_v25, 0.0  ;;  %v2051_v62 = vpop.eup %2050 }
 0x39e   : > { %1539 = vadd.xlane.f32.xlu1 %v1538_v0 }
 0x3a0   : > { %1036 = vrot.lane.b32.xlu0 %v2939_v1, %s2110_s14 }
 0x3a1   : > { %v3226_v53 = vpop.permute.xlu2 %1086 }
 0x3a3   : > { %2025 = vset.pattern.permute.xlu2 %v3681_v35 }
 0x3a4   : > { %686 = vperm.xlu2 %2025, %v3201_v40  }
 0x3a8   : > { %1137 = vrot.lane.b32.xlu0 %v2939_v1, %s2111_s15 }
 0x3a9   : > { %v1188_v12 = vpop.permute.xlu2 %1187 }
 0x3ac   : > { %723 = vrot.lane.b32.xlu2 %v3212_v30, %s2105_s10 }
 0x3ad   : > { %2027 = vset.pattern.permute.xlu2 %v3682_v6 }
 0x3b0   : > { %1238 = vrot.lane.b32.xlu0 %v2939_v1, %s2112_s16 }
 0x3b4   : > { %735 = vrot.lane.b32.xlu2 %v3192_v59, %s2105_s10  ;;  %s1931_s10 = sld [smem:[#allocation2 + $0x1]] }
 0x3b7   : > { %1327 = vrot.lane.b32.xlu1 %v2937_v55, %s2113_s18  ;;  %v1605_v55 = vmul.f32 %v2051_v62, %v3114_v43 }
 0x3b8   : > { %1339 = vrot.lane.b32.xlu0 %v2939_v1, %s2113_s18  ;;  %v3206_v1 = vpop.permute.xlu1 %1024 }
 0x3b9   : > { %v1606_v4 = vmul.f32 %v2051_v62, %v1605_v55 }
 0x3bb   : > { %v1607_v3 = vmul.f32 0.5, %v1606_v4 }
 0x3bc   : > { %824 = vrot.lane.b32.xlu2 %v3212_v30, %s2107_s12 }
 0x3bd   : > { %v1608_v46 = vsub.f32 1.5, %v1607_v3 }
 0x3bf   : > { %787 = vperm.xlu1 %2026, %v3201_v40   ;;  %v1609_v18 = vmul.f32 %v2051_v62, %v1608_v46 }
 0x3c0   : > { %622 = vrot.lane.b32.xlu0 %v3212_v30, %s2106_s11  ;;  %v3216_v11 = vpop.permute.xlu1 %1125 }
 0x3c1   : > { %v1610_v48 = vmul.f32 %v1609_v18, %v3114_v43 }
 0x3c3   : > { %v1612_v29 = vsel %vm1611_vm9, %v3114_v43, %v1610_v48 }
 0x3c4   : > { %v1615_v20 = vsel %vm1613_vm1, %v1614_v39, %v1612_v29  ;;  %vm3683_vm1 = vcmp.lt.s32.totalorder %v2359_v56, 1  ;;  %888 = vperm.xlu2 %2027, %v3201_v40   ;;  %v1289_v29 = vpop.permute.xlu2 %1288 }
 0x3c5   : > { %v3233_v21 = vmax.f32 %v1615_v20, 1e-12  ;;  %v950_v55 = vsel %vm3683_vm1, %v936_v51, %v3194_v24 }
 0x3c7   : > { %937 = vrot.lane.b32.xlu1 %v3192_v59, %s2109_s13 }
 0x3c8   : > { %836 = vrot.lane.b32.xlu0 %v3192_v59, %s2107_s12  ;;  %v1227_v38 = vpop.permute.xlu1 %1226 }
 0x3cc   : > { %925 = vrot.lane.b32.xlu2 %v3212_v30, %s2109_s13 }
 0x3cd   : > { %2029 = vset.pattern.permute.xlu2 %v3619_v45 }
 0x3d0   : > { %989 = vperm.xlu0 %2028, %v3201_v40  }
 0x3d4   : > { %1026 = vrot.lane.b32.xlu2 %v3212_v30, %s2110_s14 }
 0x3d8   : > { %1139 = vrot.lane.b32.xlu0 %v3192_v59, %s2111_s15 }
 0x3d9   : > { %2033 = vset.pattern.permute.xlu0 %v3623_v36 }
 0x3dc   : > { %1090 = vperm.xlu2 %2029, %v3201_v40  }
 0x3e0   : > { %1240 = vrot.lane.b32.xlu0 %v3192_v59, %s2112_s16 }
 0x3e4   : > { %2030 = vset.pattern.permute.xlu2 %v3620_v41 }
 0x3e5   : > { %1191 = vperm.xlu2 %2030, %v3201_v40  }
 0x3ed   : > { %2031 = vset.pattern.permute.xlu2 %v3667_v49 }
 0x3ee   : > { %1292 = vperm.xlu2 %2031, %v3201_v40  }
 0x3f6   : > { %2032 = vset.pattern.permute.xlu2 %v3623_v36 }
 0x3f7   : > { %1393 = vperm.xlu2 %2032, %v3201_v40  }
 0x3ff   : > { %v1637_v17 = vpop.xlane.xlu0 %1636 }
 0x400   : > { %2052 = vrsqrt.f32 %v1637_v17  ;;  %vm1645_vm11 = vcmp.eq.f32.partialorder %v1637_v17, inf  ;;  %v1648_v7 = vand.u32 2147483648, %v1637_v17  ;;  %vm1647_vm9 = vcmp.eq.f32.partialorder %v1637_v17, 0.0 }
 0x406   : > { %v2053_v22 = vpop.eup %2052 }
 0x407   : > { %v1639_v23 = vmul.f32 %v2053_v22, %v1637_v17 }
 0x409   : > { %v1640_v47 = vmul.f32 %v2053_v22, %v1639_v23 }
 0x40b   : > { %v1641_v37 = vmul.f32 0.5, %v1640_v47 }
 0x40d   : > { %v1642_v44 = vsub.f32 1.5, %v1641_v37 }
 0x40f   : > { %v1643_v9 = vmul.f32 %v2053_v22, %v1642_v44 }
 0x411   : > { %v1644_v33 = vmul.f32 %v1643_v9, %v1637_v17  ;;  %v3235_v63 = vpop.xlane.xlu1 %1539 }
 0x412   : > { %2054 = vrcp.f32 %v3235_v63  ;;  %v1037_v34 = vpop.permute.xlu0 %1036 }
 0x413   : > { %v1646_v2 = vsel %vm1645_vm11, %v1637_v17, %v1644_v33  ;;  %2056 = vrcp.f32 %v3233_v21  ;;  %vm3684_vm11 = vmmov %vm3683_vm1  ;;  %v964_v17 = vsel %vm2505_vm8, %v950_v55, 0.0 }
 0x414   : > { %v1649_v16 = vsel %vm1647_vm9, %v1648_v7, %v1646_v2  ;;  %v944_v35 = vsel %vm3684_vm11, %v3194_v24, %v936_v51  ;;  %v1000_v6 = vmul.f32 %v986_v26, %v964_v17  ;;  %vm3685_vm9 = vcmp.lt.s32.totalorder %v2359_v56, 127  ;;  %v3686_v24 = vld [vmem:[#allocation7_spill] sm:$0xff]  ;;  %v3691_v2 = vld [vmem:[#allocation8_spill] sm:$0xff]  ;;  %v3694_v17 = vld [vmem:[#allocation9_spill] sm:$0xff] }
 0x415   : > { %v3241_v43 = vmax.f32 %v1649_v16, 1e-12  ;;  %v1045_v22 = vsel %vm3685_vm9, %v3206_v1, %v1037_v34  ;;  %vm3687_vm1 = vnez %v3686_v24  ;;  %vm3688_vm11 = vmmov %vm3685_vm9  ;;  %vm3689_vm9 = vcmp.lt.s32.totalorder %v2359_v56, 113 }
 0x416   : > { %v965_v51 = vsel %vm3687_vm1, %v944_v35, 0.0  ;;  %v1051_v47 = vsel %vm3688_vm11, %v1037_v34, %v3206_v1  ;;  %v1065_v9 = vsel %vm2537_vm3, %v1045_v22, 0.0  ;;  %vm3690_vm8 = vmmov %vm3689_vm9  ;;  %v1012_v7 = vadd.f32 %v1000_v6, %v3174_v50 }
 0x417   : > { %2058 = vrcp.f32 %v3241_v43  ;;  %v1001_v37 = vmul.f32 %v986_v26, %v965_v51  ;;  %v1066_v1 = vsel %vm3638_vm15, %v1051_v47, 0.0  ;;  %vm3692_vm11 = vcmp.lt.s32.totalorder %v2359_v56, 112 }
 0x418   : > { %v3247_v0 = vpop.eup %2054  ;;  %v1550_v50 = vand.u32 2147483647, %v3235_v63  ;;  %v1102_v22 = vmul.f32 %v3226_v53, %v1066_v1  ;;  %v1660_v51 = vand.u32 2147483647, %v3241_v43 }
 0x419   : > { %v1542_v62 = vmul.f32 %v3247_v0, %v3235_v63  ;;  %v3254_v3 = vpop.eup %2056 }
 0x41a   : > { %v1138_v4 = vpop.permute.xlu0 %1137  ;;  %v1618_v23 = vmul.f32 %v3254_v3, %v3233_v21 }
 0x41b   : > { %v1543_v18 = vsub.f32 1.0, %v1542_v62  ;;  %v1146_v39 = vsel %vm3689_vm9, %v3216_v11, %v1138_v4  ;;  %v1152_v33 = vsel %vm3690_vm8, %v1138_v4, %v3216_v11  ;;  %vm3693_vm9 = vmmov %vm3692_vm11  ;;  %v1013_v11 = vadd.f32 %v1001_v37, %v3172_v8 }
 0x41c   : > { %v1619_v34 = vsub.f32 1.0, %v1618_v23  ;;  %v1166_v16 = vsel %vm3642_vm13, %v1146_v39, 0.0  ;;  %v1101_v4 = vmul.f32 %v3226_v53, %v1065_v9  ;;  %vm1547_vm8 = vweird.f32 %v3247_v0 }
 0x41d   : > { %v3260_v46 = vpop.eup %2058  ;;  %v1544_v20 = vmul.f32 %v3247_v0, %v1543_v18  ;;  %v1167_v18 = vsel %vm3643_vm0, %v1152_v33, 0.0  ;;  %v1202_v8 = vmul.f32 %v1188_v12, %v1166_v16  ;;  %vm1656_vm13 = vweird.f32 %v3241_v43 }
 0x41e   : > { %v1652_v48 = vmul.f32 %v3260_v46, %v3241_v43  ;;  %v1203_v47 = vmul.f32 %v1188_v12, %v1167_v18  ;;  %v1113_v45 = vadd.f32 %v1101_v4, %v1012_v7  ;;  %v1662_v39 = vand.u32 2147483648, %v3241_v43 }
 0x41f   : > { %v1545_v6 = vadd.f32 %v3247_v0, %v1544_v20  ;;  %v1114_v20 = vadd.f32 %v1102_v22, %v1013_v11 }
 0x420   : > { %v1653_v44 = vsub.f32 1.0, %v1652_v48 }
 0x421   : > { %v1215_v43 = vadd.f32 %v1203_v47, %v1114_v20  ;;  %v1626_v47 = vand.u32 2147483647, %v3233_v21 }
 0x422   : > { %v1239_v26 = vpop.permute.xlu0 %1238  ;;  %v1654_v35 = vmul.f32 %v3260_v46, %v1653_v44  ;;  %v1620_v44 = vmul.f32 %v3254_v3, %v1619_v34 }
 0x423   : > { %v1247_v62 = vsel %vm3692_vm11, %v1227_v38, %v1239_v26  ;;  %v1253_v55 = vsel %vm3693_vm9, %v1239_v26, %v1227_v38  ;;  %v1552_v38 = vand.u32 2147483648, %v3235_v63  ;;  %vm1546_vm11 = vweird.f32 %v3235_v63  ;;  %v1390_v63 = vpop.permute.xlu2 %1389 }
 0x424   : > { %v1267_v48 = vsel %vm2560_vm5, %v1247_v62, 0.0  ;;  %v1268_v23 = vsel %vm2564_vm10, %v1253_v55, 0.0  ;;  %v1655_v37 = vadd.f32 %v3260_v46, %v1654_v35  ;;  %vm3317_vm0 = vmor %vm1546_vm11, %vm1547_vm8  ;;  %vm1551_vm9 = vcmp.eq.f32.partialorder %v1550_v50, 8.507059e+37 }
 0x425   : > { %v1303_v9 = vmul.f32 %v1289_v29, %v1267_v48  ;;  %v1304_v33 = vmul.f32 %v1289_v29, %v1268_v23  ;;  %v1549_v12 = vsel %vm3317_vm0, %v3247_v0, %v1545_v6  ;;  %v1553_v1 = vor.u32 1.1754944e-38, %v1552_v38 }
 0x426   : > { %v1214_v26 = vadd.f32 %v1202_v8, %v1113_v45  ;;  %vm3697_vm8 = vweird.f32 %v3260_v46  ;;  %vm1661_vm10 = vcmp.eq.f32.partialorder %v1660_v51, 8.507059e+37  ;;  %vm3700_vm5 = vcmp.lt.s32.totalorder %v2359_v56, 111 }
 0x427   : > { %vm3329_vm11 = vmor %vm1656_vm13, %vm3697_vm8  ;;  %v1554_v11 = vsel %vm1551_vm9, %v1553_v1, %v1549_v12  ;;  %v1663_v50 = vor.u32 1.1754944e-38, %v1662_v39  ;;  %v1316_v38 = vadd.f32 %v1304_v33, %v1215_v43  ;;  %v1621_v8 = vadd.f32 %v3254_v3, %v1620_v44 }
 0x428   : > { %vm3701_vm15 = vmmov %vm3700_vm5  ;;  %v1659_v0 = vsel %vm3329_vm11, %v3260_v46, %v1655_v37  ;;  %v1315_v6 = vadd.f32 %v1303_v9, %v1214_v26  ;;  %v1628_v23 = vand.u32 2147483648, %v3233_v21  ;;  %v1555_v51 = vmul.f32 %v3177_v25, %v1554_v11 }
 0x429   : > { %v1328_v16 = vpop.permute.xlu1 %1327  ;;  %v1664_v22 = vsel %vm1661_vm10, %v1663_v50, %v1659_v0  ;;  %vm3702_vm13 = vcmask 64512   ;;  %vm1627_vm9 = vcmp.eq.f32.partialorder %v1626_v47, 8.507059e+37  ;;  %vm3704_vm8 = vcmp.lt.s32.totalorder %v2359_v56, 16 }
 0x42a   : > { %v1340_v62 = vpop.permute.xlu0 %1339  ;;  %v1665_v37 = vmul.f32 %v1664_v22, %v3159_v58  ;;  %v1666_v53 = vmul.f32 %v1664_v22, %v3162_v60  ;;  %vm3703_vm0 = vmmov %vm3702_vm13  ;;  %v1629_v25 = vor.u32 1.1754944e-38, %v1628_v23  ;;  %v1708_v50 = vstv %s1931_s10 }
 0x42b   : > { %v1348_v29 = vsel %vm3700_vm5, %v1328_v16, %v1340_v62  ;;  %v1354_v34 = vsel %vm3701_vm15, %v1340_v62, %v1328_v16  ;;  %vm1623_vm5 = vweird.f32 %v3254_v3  ;;  %vm1622_vm15 = vweird.f32 %v3233_v21  ;;  %v635_v60 = vpop.permute.xlu2 %634  ;;  %vm3705_vm11 = vmmov %vm3704_vm8 }
 0x42c   : > { %v1368_v55 = vsel %vm3654_vm2, %v1348_v29, 0.0  ;;  %v1369_v35 = vsel %vm3655_vm12, %v1354_v34, 0.0  ;;  %vm1624_vm10 = vmor %vm1622_vm15, %vm1623_vm5  ;;  %vm3706_vm5 = vcmp.lt.s32.totalorder %v2359_v56, 17 }
 0x42d   : > { %v1404_v4 = vmul.f32 %v1390_v63, %v1368_v55  ;;  %v1405_v18 = vmul.f32 %v1390_v63, %v1369_v35  ;;  %v1625_v45 = vsel %vm1624_vm10, %v3254_v3, %v1621_v8  ;;  %vm3707_vm15 = vmmov %vm3706_vm5  ;;  %vm3708_vm10 = vnez %v3559_v19 }
 0x42e   : > { %v1630_v21 = vsel %vm1627_vm9, %v1629_v25, %v1625_v45 }
 0x42f   : > { %v1416_v46 = vadd.f32 %v1404_v4, %v1315_v6  ;;  %v1417_v48 = vadd.f32 %v1405_v18, %v1316_v38  ;;  %v1631_v39 = vmul.f32 %v1630_v21, %v3066_v61  ;;  %v1632_v58 = vmul.f32 %v1630_v21, %v3068_v42 }
 0x431   : > { %1574 = vmatpush.msrb.mxu2 %v1416_v46  ;;  %1594 = vmatpush.msrb.mxu3 %v1417_v48  ;;  %v788_v26 = vpop.permute.xlu1 %787 }
 0x432   : > { %1929 = vmatmul.msk.f32.vlgmr.msrb.gmra.mxu2 %vm3702_vm13, %v1555_v51  ;;  %1930 = vmatmul.msk.f32.vlgmr.msrb.gmra.mxu3 %vm3703_vm0, %v1555_v51  ;;  %v623_v9 = vpop.permute.xlu0 %622  ;;  %vm3709_vm13 = vnez %v3557_v15 }
 0x433   : > { %1682 = vmatpush.xpose.msra.mxu2 %v1665_v37  ;;  %1702 = vmatpush.xpose.msra.mxu3 %v1666_v53  ;;  %v598_v3 = vpop.permute.xlu2 %597  ;;  %v642_v63 = vsel %vm3706_vm5, %v623_v9, %v635_v60  ;;  %v648_v12 = vsel %vm3707_vm15, %v635_v60, %v623_v9  ;;  %vm3716_vm5 = vnez %v3571_v31  ;;  %vm3717_vm15 = vcmp.lt.s32.totalorder %v2359_v56, 127 }
 0x434   : > { %v610_v36 = vmul.f32 %v598_v3, %v3212_v30  ;;  %v611_v40 = vmul.f32 %v598_v3, %v3192_v59  ;;  %v663_v1 = vsel %vm3708_vm10, %v648_v12, 0.0  ;;  %v664_v13 = vsel %vm3709_vm13, %v642_v63, 0.0 }
 0x435   : > { %vm3721_vm13 = vnez %v3579_v52 }
 0x439   : > { %v938_v6 = vpop.permute.xlu1 %937 }
 0x43a   : > { %1683 = vmatmul.f32.vlgmr.msra.gmra.mxu2 %v1631_v39  ;;  %1703 = vmatmul.f32.vlgmr.msra.gmra.mxu3 %v1632_v58  ;;  %v837_v47 = vpop.permute.xlu0 %836 }
 0x43b   : > { %v687_v44 = vpop.permute.xlu2 %686 }
 0x43c   : > { %v699_v16 = vmul.f32 %v687_v44, %v663_v1  ;;  %v700_v10 = vmul.f32 %v687_v44, %v664_v13 }
 0x43e   : > { %v711_v43 = vadd.f32 %v699_v16, %v610_v36  ;;  %v712_v29 = vadd.f32 %v700_v10, %v611_v40 }
 0x442   : > { %v990_v53 = vpop.permute.xlu0 %989 }
 0x443   : > { %v724_v61 = vpop.permute.xlu2 %723 }
 0x44a   : > { %v1140_v45 = vpop.permute.xlu0 %1139 }
 0x44b   : > { %v736_v20 = vpop.permute.xlu2 %735 }
 0x44c   : > { %v743_v42 = vsel %vm3704_vm8, %v724_v61, %v736_v20  ;;  %v749_v41 = vsel %vm3705_vm11, %v736_v20, %v724_v61  ;;  %vm3714_vm8 = vcmp.lt.s32.totalorder %v2359_v56, 1 }
 0x44d   : > { %v764_v49 = vsel %vm2398_vm14, %v749_v41, 0.0  ;;  %v765_v33 = vsel %vm3631_vm4, %v743_v42, 0.0  ;;  %vm3710_vm14 = vmmov %vm3703_vm0 }
 0x44e   : > { %v800_v62 = vmul.f32 %v788_v26, %v764_v49  ;;  %v801_v7 = vmul.f32 %v788_v26, %v765_v33  ;;  %vm3711_vm4 = vmmov %vm3703_vm0  ;;  %vm3712_vm0 = vcmp.lt.s32.totalorder %v2359_v56, 15 }
 0x44f   : > { %vm3713_vm9 = vmmov %vm3712_vm0 }
 0x450   : > { %v812_v34 = vadd.f32 %v800_v62, %v711_v43  ;;  %v813_v0 = vadd.f32 %v801_v7, %v712_v29  ;;  %vm3715_vm11 = vmmov %vm3714_vm8 }
 0x452   : > { %v1241_v39 = vpop.permute.xlu0 %1240 }
 0x453   : > { %v825_v23 = vpop.permute.xlu2 %824 }
 0x454   : > { %v850_v60 = vsel %vm3712_vm0, %v837_v47, %v825_v23  ;;  %v844_v44 = vsel %vm3713_vm9, %v825_v23, %v837_v47  ;;  %vm3726_vm0 = vnez %v3581_v27  ;;  %vm3727_vm9 = vnez %v3583_v28 }
 0x455   : > { %v866_v20 = vsel %vm3679_vm7, %v844_v44, 0.0  ;;  %vm3719_vm7 = vcmp.lt.s32.totalorder %v2359_v56, 113 }
 0x456   : > { %vm3720_vm10 = vmmov %vm3719_vm7 }
 0x45b   : > { %v889_v51 = vpop.permute.xlu2 %888 }
 0x45c   : > { %v902_v33 = vmul.f32 %v889_v51, %v866_v20 }
 0x45e   : > { %v914_v62 = vadd.f32 %v902_v33, %v813_v0  ;;  %v2065_v33 = vld [vmem:[%s2194_s20 + $0x8] sm:$0xff] }
 0x463   : > { %v926_v37 = vpop.permute.xlu2 %925 }
 0x464   : > { %v951_v42 = vsel %vm3714_vm8, %v938_v6, %v926_v37  ;;  %v945_v9 = vsel %vm3715_vm11, %v926_v37, %v938_v6 }
 0x465   : > { %v966_v36 = vsel %vm3716_vm5, %v951_v42, 0.0  ;;  %v967_v12 = vsel %vm3687_vm1, %v945_v9, 0.0  ;;  %vm3723_vm1 = vnez %v3691_v2  ;;  %v2064_v9 = vld [vmem:[%s2194_s20] sm:$0xff] }
 0x466   : > { %v1002_v26 = vmul.f32 %v990_v53, %v966_v36  ;;  %v1003_v29 = vmul.f32 %v990_v53, %v967_v12  ;;  %v2067_v12 = vld [vmem:[%s2194_s20 + $0x18] sm:$0xff] }
 0x468   : > { %v1015_v2 = vadd.f32 %v1003_v29, %v914_v62 }
 0x4b5   : > { %v3384_v55 = vpop.f32.mrf.mxu2  ;;  %v3386_v35 = vpop.f32.mrf.mxu3 }
 0x4bd   : > { %v1684_v11 = vpop.f32.mrf.mxu2  ;;  %v1704_v19 = vpop.f32.mrf.mxu3 }
 0x4be   : > { %v1705_v4 = vadd.f32 %v1704_v19, %v1684_v11 }
 0x4c0   : > { %v1709_v15 = vmul.f32 %v1708_v50, %v1705_v4 }
 0x4c2   : > { %v1710_v18 = vsel %vm3710_vm14, %v1709_v15, -inf  ;;  %vm3722_vm14 = vcmp.lt.s32.totalorder %v2359_v56, 112 }
 0x4c3   : > { %1711 = vmax.xlane.f32.xlu1 %v1710_v18 }
 0x4dc   : > { %1038 = vrot.lane.b32.xlu1 %v3192_v59, %s2110_s14 }
 0x4e4   : > { %1127 = vrot.lane.b32.xlu1 %v3212_v30, %s2111_s15 }
 0x4ec   : > { %1228 = vrot.lane.b32.xlu1 %v3212_v30, %s2112_s16 }
 0x4f4   : > { %1329 = vrot.lane.b32.xlu1 %v3212_v30, %s2113_s18  ;;  %v1027_v30 = vpop.permute.xlu2 %1026 }
 0x4fc   : > { %v1091_v21 = vpop.permute.xlu2 %1090 }
 0x504   : > { %v1192_v61 = vpop.permute.xlu2 %1191 }
 0x50c   : > { %v1293_v43 = vpop.permute.xlu2 %1292 }
 0x536   : > { %v1712_v38 = vpop.xlane.xlu1 %1711 }
 0x537   : > { %v1713_v22 = vsub.f32 %v1709_v15, %v1712_v38 }
 0x539   : > { %v1714_v8 = vmul.f32 1.442695, %v1713_v22 }
 0x53b   : > { %2060 = vpow2.f32 %v1714_v8 }
 0x541   : > { %v3397_v46 = vpop.eup %2060 }
 0x542   : > { %v1716_v48 = vsel %vm3711_vm4, %v3397_v46, 0.0  ;;  %vm3724_vm4 = vmmov %vm3722_vm14 }
 0x543   : > { %1717 = vadd.xlane.f32.xlu0 %v1716_v48 }
 0x54e   : > { %v1039_v25 = vpop.permute.xlu1 %1038 }
 0x54f   : > { %v1046_v40 = vsel %vm3717_vm15, %v1027_v30, %v1039_v25 }
 0x550   : > { %v1067_v31 = vsel %vm2537_vm3, %v1046_v40, 0.0  ;;  %vm3725_vm3 = vnez %v3694_v17 }
 0x551   : > { %v1103_v19 = vmul.f32 %v1091_v21, %v1067_v31 }
 0x556   : > { %v1128_v58 = vpop.permute.xlu1 %1127 }
 0x557   : > { %1341 = vrot.lane.b32.xlu0 %v3192_v59, %s2113_s18  ;;  %v865_v59 = vsel %vm2464_vm6, %v850_v60, 0.0  ;;  %vm3718_vm6 = vmmov %vm3717_vm15  ;;  %v1147_v13 = vsel %vm3719_vm7, %v1128_v58, %v1140_v45  ;;  %v1153_v16 = vsel %vm3720_vm10, %v1140_v45, %v1128_v58  ;;  %vm3728_vm15 = vcmp.lt.s32.totalorder %v2359_v56, 111  ;;  %s292_s18 = scalar_lea.vmem %s3485_s7, %s1940_s17 }
 0x558   : > { %v901_v41 = vmul.f32 %v889_v51, %v865_v59  ;;  %v1052_v54 = vsel %vm3718_vm6, %v1039_v25, %v1027_v30  ;;  %v1169_v50 = vsel %vm3725_vm3, %v1153_v16, 0.0  ;;  %v1394_v30 = vpop.permute.xlu2 %1393  ;;  %vm3729_vm6 = vmmov %vm3728_vm15  ;;  %vm3730_vm10 = vcmask 64512  }
 0x559   : > { %v1068_v7 = vsel %vm3721_vm13, %v1052_v54, 0.0  ;;  %v1205_v38 = vmul.f32 %v1192_v61, %v1169_v50  ;;  %vm3731_vm13 = vmmov %vm3730_vm10 }
 0x55a   : > { %v913_v1 = vadd.f32 %v901_v41, %v812_v34  ;;  %v1168_v34 = vsel %vm3723_vm1, %v1147_v13, 0.0  ;;  %v1104_v4 = vmul.f32 %v1091_v21, %v1068_v7 }
 0x55b   : > { %v1204_v15 = vmul.f32 %v1192_v61, %v1168_v34 }
 0x55c   : > { %v1014_v0 = vadd.f32 %v1002_v26, %v913_v1  ;;  %v1116_v17 = vadd.f32 %v1104_v4, %v1015_v2 }
 0x55e   : > { %v1229_v32 = vpop.permute.xlu1 %1228  ;;  %v1115_v8 = vadd.f32 %v1103_v19, %v1014_v0  ;;  %v1217_v45 = vadd.f32 %v1205_v38, %v1116_v17 }
 0x55f   : > { %v1248_v24 = vsel %vm3722_vm14, %v1229_v32, %v1241_v39  ;;  %v1254_v14 = vsel %vm3724_vm4, %v1241_v39, %v1229_v32  ;;  %v2066_v32 = vld [vmem:[%s2194_s20 + $0x10] sm:$0xff] }
 0x560   : > { %v1269_v52 = vsel %vm3726_vm0, %v1248_v24, 0.0  ;;  %v1270_v18 = vsel %vm3727_vm9, %v1254_v14, 0.0  ;;  %v1216_v37 = vadd.f32 %v1204_v15, %v1115_v8 }
 0x561   : > { %v1305_v48 = vmul.f32 %v1293_v43, %v1269_v52  ;;  %v1306_v51 = vmul.f32 %v1293_v43, %v1270_v18 }
 0x563   : > { %v1317_v39 = vadd.f32 %v1305_v48, %v1216_v37 }
 0x566   : > { %v1330_v47 = vpop.permute.xlu1 %1329 }
 0x5b6   : > { %v1718_v3 = vpop.xlane.xlu0 %1717 }
 0x5b7   : > { %2062 = vrcp.f32 %v1718_v3  ;;  %v1730_v22 = vand.u32 2147483648, %v1718_v3  ;;  %vm1724_vm11 = vweird.f32 %v1718_v3  ;;  %v1728_v23 = vand.u32 2147483647, %v1718_v3 }
 0x5b9   : > { %v1731_v28 = vor.u32 1.1754944e-38, %v1730_v22  ;;  %vm1729_vm7 = vcmp.eq.f32.partialorder %v1728_v23, 8.507059e+37 }
 0x5bd   : > { %v2063_v49 = vpop.eup %2062 }
 0x5be   : > { %v1720_v63 = vmul.f32 %v2063_v49, %v1718_v3  ;;  %vm1725_vm8 = vweird.f32 %v2063_v49  ;;  %v1318_v3 = vadd.f32 %v1306_v51, %v1217_v45 }
 0x5bf   : > { %vm1726_vm5 = vmor %vm1724_vm11, %vm1725_vm8 }
 0x5c0   : > { %v1721_v10 = vsub.f32 1.0, %v1720_v63 }
 0x5c2   : > { %v1722_v11 = vmul.f32 %v2063_v49, %v1721_v10 }
 0x5c4   : > { %v1723_v6 = vadd.f32 %v2063_v49, %v1722_v11 }
 0x5c6   : > { %v1727_v27 = vsel %vm1726_vm5, %v2063_v49, %v1723_v6 }
 0x5c7   : > { %v1732_v44 = vsel %vm1729_vm7, %v1731_v28, %v1727_v27 }
 0x5c8   : > { %v1733_v41 = vmul.f32 %v3397_v46, %v1732_v44  ;;  %v1778_v46 = vld [vmem:[%s3484_s6 + $0x8] sm:$0xff] }
 0x5c9   : > { %v1342_v53 = vpop.permute.xlu0 %1341 }
 0x5ca   : > { %v1349_v25 = vsel %vm3728_vm15, %v1330_v47, %v1342_v53  ;;  %v1355_v21 = vsel %vm3729_vm6, %v1342_v53, %v1330_v47 }
 0x5cb   : > { %v1370_v58 = vsel %vm3654_vm2, %v1349_v25, 0.0  ;;  %v1371_v60 = vsel %vm3655_vm12, %v1355_v21, 0.0  ;;  %vm3732_vm2 = vcmask 130048  }
 0x5cc   : > { %v1406_v61 = vmul.f32 %v1394_v30, %v1370_v58  ;;  %v1407_v59 = vmul.f32 %v1394_v30, %v1371_v60  ;;  %vm3733_vm12 = vmmov %vm3732_vm2 }
 0x5cd   : > { %vm3734_vm14 = vmmov %vm3732_vm2 }
 0x5ce   : > { %v1418_v20 = vadd.f32 %v1406_v61, %v1317_v39  ;;  %v1419_v42 = vadd.f32 %v1407_v59, %v1318_v3  ;;  %vm3735_vm1 = vmmov %vm3732_vm2 }
 0x5d0   : > { %1752 = vmatpush.msrb.mxu2 %v1418_v20  ;;  %1772 = vmatpush.msrb.mxu3 %v1419_v42 }
 0x5d1   : > { %1932 = vmatmul.msk.f32.vlgmr.msrb.gmra.mxu2 %vm3730_vm10, %v1733_v41  ;;  %1933 = vmatmul.msk.f32.vlgmr.msrb.gmra.mxu3 %vm3731_vm13, %v1733_v41 }
 0x654   : > { %v1754_v56 = vpop.f32.mrf.mxu2  ;;  %v1774_v5 = vpop.f32.mrf.mxu3 }
 0x655   : > { %1799 = vmatpush.msra.mxu2 %v1754_v56  ;;  %1822 = vmatpush.msra.mxu3 %v1774_v5 }
 0x657   : > { %1800 = vmatpush.msra.mxu2 %v3384_v55  ;;  %1823 = vmatpush.msra.mxu3 %v3386_v35 }
 0x658   : > { %1934 = vmatmul.msk.f32.vlgmr.msra.gmra.mxu2 %vm3732_vm2, %v1777_v57  ;;  %1936 = vmatmul.msk.f32.vlgmr.msra.gmra.mxu3 %vm3733_vm12, %v1777_v57 }
 0x660   : > { %1935 = vmatmul.msk.f32.gmra.mxu2 %vm3734_vm14, %v1778_v46  ;;  %1937 = vmatmul.msk.f32.gmra.mxu3 %vm3735_vm1, %v1778_v46 }
 0x6db   : > { %v1802_v55 = vpop.f32.mrf.mxu2  ;;  %v1825_v35 = vpop.f32.mrf.mxu3 }
 0x6dc   : > { %v1831_v49 = vadd.f32 %v2064_v9, %v1802_v55  ;;  %v1832_v36 = vadd.f32 %v2065_v33, %v1825_v35 }
 0x6de   : > { %1835 = vst [vmem:[%s292_s18] sm:$0xff] %v1831_v49 }
 0x6df   : > { %1836 = vst [vmem:[%s292_s18 + $0x8] sm:$0xff] %v1832_v36 }
 0x6e3   : > { %v1805_v40 = vpop.f32.mrf.mxu2  ;;  %v1828_v54 = vpop.f32.mrf.mxu3 }
 0x6e4   : > { %v1833_v63 = vadd.f32 %v2066_v32, %v1805_v40  ;;  %v1834_v1 = vadd.f32 %v2067_v12, %v1828_v54 }
 0x6e6   : > { %1837 = vst [vmem:[%s292_s18 + $0x10] sm:$0xff] %v1833_v63 }
 0x6e7   : > { %1838 = vst [vmem:[%s292_s18 + $0x18] sm:$0xff] %v1834_v1 }
 0x6e8 PF: > { %s18_s24 = sadd.s32 1, %s2093_s24  }
 0x6e9   : > { %p15_p7 = scmp.ge.s32.totalorder %s18_s24, 4  }
 0x6eb   :  { %17 = sbr.rel (!%p15_p7) target bundleno = 1 (0x1), region = 83 }
 0x6f0   :  { %1860 = vsyncpa [#allocation3], 1 }
 0x6f1   :  { %1862 = vsyncpa [#allocation3 + $0x1], 1 }

// kernel: mscan_forward.3
= control target key start
LH: loop header
LB: loop body
LE: loop exit
PB: predicated region body
PF: predicated region fallthrough
CT: control target
= control target key end

     0   :  { %s3225_s27 = smov 0   ;;  %s7081_s0 = inlined_call_operand.vmem [shape: f32[2,16,256], index: 0, kind: input, shape index: {}]   ;;  %s7082_s1 = inlined_call_operand.vmem [shape: f32[16,1], index: 1, kind: input, shape index: {}]   ;;  %s7083_s2 = inlined_call_operand.vmem [shape: f32[16,1], index: 2, kind: input, shape index: {}]   ;;  %s7084_s3 = inlined_call_operand.vmem [shape: f32[42,16], index: 3, kind: input, shape index: {}]   ;;  %s7085_s4 = inlined_call_operand.vmem [shape: f32[42,16], index: 4, kind: input, shape index: {}]   ;;  %s7086_s5 = inlined_call_operand.vmem [shape: f32[42,9], index: 5, kind: input, shape index: {}]   ;;  %s7087_s6 = inlined_call_operand.vmem [shape: f32[42,9], index: 6, kind: input, shape index: {}]   ;;  %s7088_s7 = inlined_call_operand.vmem [shape: f32[16,42], index: 7, kind: input, shape index: {}]   ;;  %s7089_s8 = inlined_call_operand.vmem [shape: f32[2,16,256], index: 8, kind: output, shape index: {}]  }
   0x1 LB: > { %s2960_s28 = sadd.s32 4294967295, %s3159_s27   ;;  %p2964_p0 = scmp.ge.s32.totalorder %s3159_s27, 1  ;;  %s3159_s27 = sphi %s3225_s27, %s18_s27  }
   0x2   : > { %p262_p1 = scmp.lt.s32.totalorder %s3159_s27, 3 }
   0x4   : > { %p263_p2 = pnand %p2964_p0, %p262_p1 }
   0x6   : > { %266 = sbr.rel (%p263_p2) target bundleno = 1284 (0x504), region = 52 }
   0xb   : > { %v312_v0 = vld [vmem:[%s7083_s2] sm:$0xff]  ;;  %v7098_v2 = vmov 0   ;;  %v313_v3 = vld [vmem:[%s7083_s2 + $0x8] sm:$0xff]  ;;  %p296_p3 = scmp.lt.s32.totalorder %s2960_s28, 1  ;;  %v3162_v5 = vmov 16.0   ;;  %v7100_v62 = vmov 4  }
   0xc   : > { %v310_v1 = vld [vmem:[%s7082_s1] sm:$0xff]  ;;  %3035 = vset.pattern.permute.xlu1 %v7098_v2  ;;  %3034 = vset.pattern.permute.xlu0 %v7098_v2  ;;  %v311_v4 = vld [vmem:[%s7082_s1 + $0x8] sm:$0xff]  ;;  %3084 = vrcp.f32 %v3162_v5  ;;  %vm488_vm7 = vcmask 130048   ;;  %s3168_s25 = smov 15   ;;  %s3169_s26 = smov 16  }
   0xd   : > { %403 = vperm.xlu1 %3035, %v312_v0   ;;  %389 = vperm.xlu0 %3034, %v310_v1   ;;  %s8183_s28 = smov (!%p296_p3, %s2960_s28), 1  ;;  %v3282_v1 = vld [vmem:[%s7086_s5] sm:$0xff]  ;;  %s3170_s29 = smov 17  }
   0xe   : > { %s3001_s15 = sshll.u32 %s8183_s28, 5  ;;  %3036 = vset.pattern.permute.xlu2 %v7100_v62  ;;  %s3171_s30 = smov 113  }
   0xf   : > { %s3255_s18 = scalar_lea.vmem %s7081_s0, %s3001_s15  ;;  %585 = vperm.xlu2 %3036, %v3282_v1   ;;  %s3172_s9 = smov 127  }
  0x10   : > { %v306_v6 = vld [vmem:[%s3255_s18] sm:$0xff]  ;;  %v307_v7 = vld [vmem:[%s3255_s18 + $0x8] sm:$0xff]  ;;  %v308_v8 = vld [vmem:[%s3255_s18 + $0x10] sm:$0xff]  ;;  %s3173_s10 = smov 1   ;;  %s3175_s11 = smov 112  }
  0x11   : > { %v309_v9 = vld [vmem:[%s3255_s18 + $0x18] sm:$0xff]  ;;  %v314_v10 = vadd.f32 %v308_v8, %v306_v6  ;;  %s3176_s12 = smov 111   ;;  %s305_s22 = scalar_lea.vmem %s7089_s8, %s3001_s15 }
  0x12   : > { %v321_v11 = vadd.f32 %v309_v9, %v307_v7  ;;  %v3085_v14 = vpop.eup %3084 }
  0x13   : > { %v315_v12 = vrot.slane %v314_v10, 4  ;;  %v329_v16 = vmul.f32 16.0, %v3085_v14  ;;  %vm333_vm0 = vweird.f32 %v3085_v14 }
  0x14   : > { %v322_v13 = vrot.slane %v321_v11, 4 }
  0x15   : > { %408 = vperm.xlu1 %3035, %v313_v3   ;;  %394 = vperm.xlu0 %3034, %v311_v4   ;;  %v316_v15 = vadd.f32 %v315_v12, %v314_v10  ;;  %v330_v19 = vsub.f32 1.0, %v329_v16  ;;  %v3287_v3 = vld [vmem:[%s7086_s5 + $0x18] sm:$0xff]  ;;  %v3311_v16 = vld [vmem:[%s7086_s5 + $0x10] sm:$0xff] }
  0x16   : > { %v323_v17 = vadd.f32 %v322_v13, %v321_v11 }
  0x17   : > { %v317_v18 = vrot.slane %v316_v15, 2  ;;  %v331_v22 = vmul.f32 %v3085_v14, %v330_v19 }
  0x18   : > { %v324_v20 = vrot.slane %v323_v17, 2 }
  0x19   : > { %v318_v21 = vadd.f32 %v317_v18, %v316_v15  ;;  %v332_v25 = vadd.f32 %v3085_v14, %v331_v22  ;;  %v3306_v15 = vld [vmem:[%s7086_s5 + $0x20] sm:$0xff] }
  0x1a   : > { %v325_v23 = vadd.f32 %v324_v20, %v323_v17 }
  0x1b   : > { %v319_v24 = vrot.slane %v318_v21, 1  ;;  %v334_v28 = vsel %vm333_vm0, %v3085_v14, %v332_v25 }
  0x1c   : > { %v326_v26 = vrot.slane %v325_v23, 1 }
  0x1d   : > { %v320_v27 = vadd.f32 %v319_v24, %v318_v21  ;;  %3037 = vset.pattern.permute.xlu1 %v7100_v62 }
  0x1e   : > { %v327_v29 = vadd.f32 %v326_v26, %v325_v23  ;;  %600 = vperm.xlu1 %3037, %v3287_v3  }
  0x1f   : > { %v335_v30 = vmul.f32 %v334_v28, %v320_v27 }
  0x20   : > { %v336_v31 = vmul.f32 %v334_v28, %v327_v29 }
  0x21   : > { %v3261_v32 = vsub.f32 %v306_v6, %v335_v30  ;;  %v3263_v33 = vsub.f32 %v308_v8, %v335_v30  ;;  %v3299_v8 = vld [vmem:[%s7086_s5 + $0x28] sm:$0x3] }
  0x22   : > { %v3265_v34 = vsub.f32 %v307_v7, %v336_v31  ;;  %v3267_v35 = vsub.f32 %v309_v9, %v336_v31  ;;  %v3294_v7 = vld [vmem:[%s7086_s5 + $0x8] sm:$0xff] }
  0x23   : > { %v341_v36 = vmul.f32 %v3261_v32, %v3261_v32  ;;  %v343_v37 = vmul.f32 %v3263_v33, %v3263_v33  ;;  %590 = vperm.xlu2 %3036, %v3294_v7  }
  0x24   : > { %v342_v38 = vmul.f32 %v3265_v34, %v3265_v34  ;;  %v344_v39 = vmul.f32 %v3267_v35, %v3267_v35 }
  0x25   : > { %v345_v40 = vadd.f32 %v343_v37, %v341_v36  ;;  %v484_v36 = vld [vmem:[%s7084_s3 + $0x10] sm:$0xff]  ;;  %v485_v37 = vld [vmem:[%s7084_s3 + $0x18] sm:$0xff] }
  0x26   : > { %v352_v41 = vadd.f32 %v344_v39, %v342_v38  ;;  %610 = vperm.xlu1 %3037, %v3299_v8   ;;  %v7094_v38 = vmov 2   ;;  %v486_v39 = vld [vmem:[%s7084_s3 + $0x20] sm:$0xff] }
  0x27   : > { %v346_v42 = vrot.slane %v345_v40, 4 }
  0x28   : > { %v353_v43 = vrot.slane %v352_v41, 4 }
  0x29   : > { %v347_v44 = vadd.f32 %v346_v42, %v345_v40  ;;  %v7092_v40 = vmov 3   ;;  %v7090_v42 = vmov 5  }
  0x2a   : > { %v354_v45 = vadd.f32 %v353_v43, %v352_v41 }
  0x2b   : > { %v348_v46 = vrot.slane %v347_v44, 2  ;;  %605 = vperm.xlu2 %3036, %v3306_v15  }
  0x2c   : > { %v355_v47 = vrot.slane %v354_v45, 2 }
  0x2d   : > { %v349_v48 = vadd.f32 %v348_v46, %v347_v44 }
  0x2e   : > { %v356_v49 = vadd.f32 %v355_v47, %v354_v45  ;;  %3039 = vset.pattern.permute.xlu1 %v7098_v2 }
  0x2f   : > { %v350_v50 = vrot.slane %v349_v48, 1  ;;  %687 = vperm.xlu1 %3039, %v3311_v16  }
  0x30   : > { %v357_v51 = vrot.slane %v356_v49, 1 }
  0x31   : > { %v351_v52 = vadd.f32 %v350_v50, %v349_v48 }
  0x32   : > { %v358_v53 = vadd.f32 %v357_v51, %v356_v49 }
  0x33   : > { %v359_v54 = vmul.f32 %v351_v52, %v334_v28  ;;  %3038 = vset.pattern.permute.xlu2 %v7098_v2 }
  0x34   : > { %v360_v55 = vmul.f32 %v358_v53, %v334_v28  ;;  %679 = vperm.xlu2 %3038, %v3282_v1  }
  0x35   : > { %v361_v56 = vadd.f32 1e-05, %v359_v54 }
  0x36   : > { %v362_v57 = vadd.f32 1e-05, %v360_v55 }
  0x37   : > { %3086 = vrsqrt.f32 %v361_v56  ;;  %vm369_vm1 = vweird.f32 %v361_v56  ;;  %695 = vperm.xlu1 %3039, %v3306_v15  }
  0x38   : > { %3088 = vrsqrt.f32 %v362_v57  ;;  %vm379_vm3 = vweird.f32 %v362_v57 }
  0x3c   : > { %691 = vperm.xlu2 %3038, %v3287_v3  }
  0x3d   : > { %v3087_v58 = vpop.eup %3086 }
  0x3e   : > { %v3089_v59 = vpop.eup %3088  ;;  %v364_v60 = vmul.f32 %v3087_v58, %v361_v56  ;;  %vm370_vm2 = vweird.f32 %v3087_v58 }
  0x3f   : > { %v374_v61 = vmul.f32 %v3089_v59, %v362_v57  ;;  %vm380_vm4 = vweird.f32 %v3089_v59  ;;  %vm371_vm5 = vmor %vm369_vm1, %vm370_vm2 }
  0x40   : > { %v365_v63 = vmul.f32 %v3087_v58, %v364_v60  ;;  %vm381_vm6 = vmor %vm379_vm3, %vm380_vm4 }
  0x41   : > { %v375_v0 = vmul.f32 %v3089_v59, %v374_v61 }
  0x42   : > { %v366_v4 = vmul.f32 0.5, %v365_v63 }
  0x43   : > { %v376_v5 = vmul.f32 0.5, %v375_v0 }
  0x44   : > { %v367_v6 = vsub.f32 1.5, %v366_v4  ;;  %699 = vperm.xlu2 %3038, %v3299_v8  }
  0x45   : > { %v377_v9 = vsub.f32 1.5, %v376_v5 }
  0x46   : > { %v368_v10 = vmul.f32 %v3087_v58, %v367_v6 }
  0x47   : > { %v378_v11 = vmul.f32 %v3089_v59, %v377_v9 }
  0x48   : > { %v372_v14 = vsel %vm371_vm5, %v3087_v58, %v368_v10 }
  0x49   : > { %v382_v17 = vsel %vm381_vm6, %v3089_v59, %v378_v11  ;;  %v383_v18 = vmul.f32 %v372_v14, %v3261_v32  ;;  %v385_v19 = vmul.f32 %v372_v14, %v3263_v33  ;;  %v482_v32 = vld [vmem:[%s7084_s3] sm:$0xff]  ;;  %v487_v33 = vld [vmem:[%s7084_s3 + $0x28] sm:$0x3] }
  0x4a   : > { %v386_v20 = vmul.f32 %v382_v17, %v3267_v35  ;;  %v384_v21 = vmul.f32 %v382_v17, %v3265_v34  ;;  %v483_v34 = vld [vmem:[%s7084_s3 + $0x8] sm:$0xff]  ;;  %v7096_v35 = vmov 1  }
  0x4b   : > { %3040 = vset.pattern.permute.xlu1 %v7096_v35 }
  0x4c   : > { %784 = vperm.xlu1 %3040, %v3294_v7   ;;  %3041 = vset.pattern.permute.xlu2 %v7096_v35  ;;  %v1437_v35 = vld [vmem:[%s7085_s4 + $0x20] sm:$0xff] }
  0x4d   : > { %788 = vperm.xlu2 %3041, %v3311_v16  }
  0x54   : > { %792 = vperm.xlu1 %3040, %v3287_v3  }
  0x55   : > { %796 = vperm.xlu2 %3041, %v3306_v15  }
  0x5c   : > { %3042 = vset.pattern.permute.xlu1 %v7094_v38 }
  0x5d   : > { %881 = vperm.xlu1 %3042, %v3282_v1   ;;  %3043 = vset.pattern.permute.xlu2 %v7094_v38 }
  0x5e   : > { %885 = vperm.xlu2 %3043, %v3294_v7  }
  0x65   : > { %893 = vperm.xlu1 %3042, %v3287_v3  }
  0x66   : > { %897 = vperm.xlu2 %3043, %v3306_v15  }
  0x69   : > { %v3373_v41 = vpop.permute.xlu2 %585 }
  0x6d   : > { %901 = vperm.xlu1 %3042, %v3299_v8  }
  0x6e   : > { %3044 = vset.pattern.permute.xlu2 %v7092_v40 }
  0x6f   : > { %982 = vperm.xlu2 %3044, %v3282_v1  }
  0x75   : > { %3045 = vset.pattern.permute.xlu1 %v7092_v40 }
  0x76   : > { %990 = vperm.xlu1 %3045, %v3311_v16  }
  0x77   : > { %994 = vperm.xlu2 %3044, %v3287_v3  }
  0x7d   : > { %v3378_v43 = vpop.permute.xlu2 %590 }
  0x7e   : > { %998 = vperm.xlu1 %3045, %v3306_v15   ;;  %7391 = vst [vmem:[#allocation2_spill] sm:$0xff] %v3378_v43 }
  0x7f   : > { %v404_v12 = vpop.permute.xlu1 %403  ;;  %v390_v13 = vpop.permute.xlu0 %389  ;;  %1002 = vperm.xlu2 %3044, %v3299_v8  }
  0x80   : > { %v397_v23 = vmul.f32 %v390_v13, %v383_v18  ;;  %v398_v26 = vmul.f32 %v390_v13, %v384_v21 }
  0x82   : > { %v411_v30 = vadd.f32 %v404_v12, %v397_v23  ;;  %v412_v31 = vadd.f32 %v404_v12, %v398_v26  ;;  %v1433_v26 = vld [vmem:[%s7085_s4] sm:$0xff] }
  0x85   : > { %v3384_v44 = vpop.permute.xlu2 %605 }
  0x86   : > { %3046 = vset.pattern.permute.xlu1 %v7090_v42  ;;  %7392 = vst [vmem:[#allocation3_spill] sm:$0xff] %v3384_v44 }
  0x87   : > { %v395_v22 = vpop.permute.xlu0 %394  ;;  %v409_v27 = vpop.permute.xlu1 %408  ;;  %1087 = vperm.xlu1 %3046, %v3294_v7   ;;  %3047 = vset.pattern.permute.xlu2 %v7090_v42 }
  0x88   : > { %v399_v24 = vmul.f32 %v395_v22, %v385_v19  ;;  %v400_v25 = vmul.f32 %v395_v22, %v386_v20  ;;  %1091 = vperm.xlu2 %3047, %v3311_v16  }
  0x8a   : > { %v413_v28 = vadd.f32 %v409_v27, %v399_v24  ;;  %v414_v29 = vadd.f32 %v409_v27, %v400_v25 }
  0x8c   : > { %521 = vmatpush.msra.mxu0 %v413_v28  ;;  %3003 = vmatpush.msra.mxu2 %v413_v28 }
  0x8d   : > { %556 = vmatpush.msra.mxu1 %v414_v29  ;;  %3005 = vmatpush.msra.mxu3 %v414_v29 }
  0x8e   : > { %522 = vmatpush.msra.mxu0 %v411_v30  ;;  %3004 = vmatpush.msra.mxu2 %v411_v30  ;;  %v3387_v45 = vpop.permute.xlu2 %679 }
  0x8f   : > { %557 = vmatpush.msra.mxu1 %v412_v31  ;;  %3006 = vmatpush.msra.mxu3 %v412_v31  ;;  %7393 = vst [vmem:[#allocation4_spill] sm:$0xff] %v3387_v45 }
  0x90   : > { %2969 = vmatmul.msk.f32.vlgmr.msra.gmra.mxu0 %vm488_vm7, %v482_v32  ;;  %2974 = vmatmul.msk.f32.vlgmr.msra.gmra.mxu2 %vm488_vm7, %v487_v33  ;;  %v3391_v47 = vpop.permute.xlu1 %600 }
  0x91   : > { %2975 = vmatmul.msk.f32.vlgmr.msra.gmra.mxu1 %vm488_vm7, %v482_v32  ;;  %2980 = vmatmul.msk.f32.vlgmr.msra.gmra.mxu3 %vm488_vm7, %v487_v33  ;;  %7395 = vst [vmem:[#allocation6_spill] sm:$0xff] %v3391_v47 }
  0x92   : > { %1471 = vmatpush.msrb.mxu2 %v413_v28  ;;  %1506 = vmatpush.msrb.mxu3 %v414_v29 }
  0x93   : > { %1095 = vperm.xlu1 %3046, %v3287_v3   ;;  %1099 = vperm.xlu2 %3047, %v3306_v15  }
  0x94   : > { %1472 = vmatpush.msrb.mxu2 %v411_v30  ;;  %1507 = vmatpush.msrb.mxu3 %v412_v31  ;;  %v1434_v31 = vld [vmem:[%s7085_s4 + $0x8] sm:$0xff] }
  0x96   : > { %v3389_v46 = vpop.permute.xlu2 %691 }
  0x97   : > { %7394 = vst [vmem:[#allocation5_spill] sm:$0xff] %v3389_v46 }
  0x98   : > { %2970 = vmatmul.msk.f32.gmra.mxu0 %vm488_vm7, %v483_v34  ;;  %v3395_v49 = vpop.permute.xlu1 %610  ;;  %2981 = vmatmul.msk.f32.vlgmr.msrb.gmra.mxu2 %vm488_vm7, %v1433_v26 }
  0x99   : > { %2976 = vmatmul.msk.f32.gmra.mxu1 %vm488_vm7, %v483_v34  ;;  %7397 = vst [vmem:[#allocation8_spill] sm:$0xff] %v3395_v49  ;;  %2987 = vmatmul.msk.f32.vlgmr.msrb.gmra.mxu3 %vm488_vm7, %v1433_v26 }
  0x9e   : > { %v3393_v48 = vpop.permute.xlu2 %699 }
  0x9f   : > { %7396 = vst [vmem:[#allocation7_spill] sm:$0xff] %v3393_v48 }
  0xa0   : > { %2971 = vmatmul.msk.f32.gmra.mxu0 %vm488_vm7, %v484_v36  ;;  %2982 = vmatmul.msk.f32.gmra.mxu2 %vm488_vm7, %v1434_v31 }
  0xa1   : > { %2977 = vmatmul.msk.f32.gmra.mxu1 %vm488_vm7, %v484_v36  ;;  %v3409_v53 = vpop.permute.xlu1 %687  ;;  %2988 = vmatmul.msk.f32.gmra.mxu3 %vm488_vm7, %v1434_v31  ;;  %v1435_v36 = vld [vmem:[%s7085_s4 + $0x10] sm:$0xff]  ;;  %v1436_v31 = vld [vmem:[%s7085_s4 + $0x18] sm:$0xff] }
  0xa2   : > { %7400 = vst [vmem:[#allocation11_spill] sm:$0xff] %v3409_v53 }
  0xa7   : > { %v3405_v51 = vpop.permute.xlu2 %788 }
  0xa8   : > { %2972 = vmatmul.msk.f32.gmra.mxu0 %vm488_vm7, %v485_v37  ;;  %7398 = vst [vmem:[#allocation9_spill] sm:$0xff] %v3405_v51  ;;  %2983 = vmatmul.msk.f32.gmra.mxu2 %vm488_vm7, %v1435_v36 }
  0xa9   : > { %2978 = vmatmul.msk.f32.gmra.mxu1 %vm488_vm7, %v485_v37  ;;  %v3425_v55 = vpop.permute.xlu1 %695  ;;  %2989 = vmatmul.msk.f32.gmra.mxu3 %vm488_vm7, %v1435_v36 }
  0xaa   : > { %7402 = vst [vmem:[#allocation13_spill] sm:$0xff] %v3425_v55 }
  0xaf   : > { %v3417_v54 = vpop.permute.xlu2 %796 }
  0xb0   : > { %2973 = vmatmul.msk.f32.gmra.mxu0 %vm488_vm7, %v486_v39  ;;  %7401 = vst [vmem:[#allocation12_spill] sm:$0xff] %v3417_v54  ;;  %2984 = vmatmul.msk.f32.gmra.mxu2 %vm488_vm7, %v1436_v31 }
  0xb1   : > { %2979 = vmatmul.msk.f32.gmra.mxu1 %vm488_vm7, %v486_v39  ;;  %2990 = vmatmul.msk.f32.gmra.mxu3 %vm488_vm7, %v1436_v31 }
  0xb8   : > { %v3427_v56 = vpop.permute.xlu2 %885  ;;  %2985 = vmatmul.msk.f32.gmra.mxu2 %vm488_vm7, %v1437_v35 }
  0xb9   : > { %7403 = vst [vmem:[#allocation14_spill] sm:$0xff] %v3427_v56  ;;  %2991 = vmatmul.msk.f32.gmra.mxu3 %vm488_vm7, %v1437_v35 }
  0xbe   : > { %v3437_v58 = vpop.permute.xlu1 %784 }
  0xbf   : > { %7405 = vst [vmem:[#allocation16_spill] sm:$0xff] %v3437_v58 }
  0xc0   : > { %v3441_v60 = vpop.permute.xlu2 %897 }
  0xc1   : > { %7407 = vst [vmem:[#allocation18_spill] sm:$0xff] %v3441_v60 }
  0xc6   : > { %v3449_v61 = vpop.permute.xlu1 %792 }
  0xc7   : > { %7408 = vst [vmem:[#allocation19_spill] sm:$0xff] %v3449_v61  ;;  %v1438_v61 = vld [vmem:[%s7085_s4 + $0x28] sm:$0x3] }
  0xc8   : > { %2986 = vmatmul.msk.f32.gmra.mxu2 %vm488_vm7, %v1438_v61  ;;  %2992 = vmatmul.msk.f32.gmra.mxu3 %vm488_vm7, %v1438_v61 }
  0xc9   : > { %v3457_v63 = vpop.permute.xlu2 %982 }
  0xca   : > { %7409 = vst [vmem:[#allocation20_spill] sm:$0xff] %v3457_v63 }
  0xcf   : > { %v3461_v4 = vpop.permute.xlu1 %881 }
  0xd0   : > { %7411 = vst [vmem:[#allocation22_spill] sm:$0xff] %v3461_v4 }
  0xd1   : > { %v3469_v5 = vpop.permute.xlu2 %994 }
  0xd2   : > { %7412 = vst [vmem:[#allocation23_spill] sm:$0xff] %v3469_v5 }
  0xd7   : > { %v3479_v9 = vpop.permute.xlu1 %893 }
  0xd8   : > { %7414 = vst [vmem:[#allocation25_spill] sm:$0xff] %v3479_v9 }
  0xd9   : > { %v3481_v10 = vpop.permute.xlu2 %1002 }
  0xda   : > { %7415 = vst [vmem:[#allocation26_spill] sm:$0xff] %v3481_v10 }
  0xdf   : > { %v3489_v11 = vpop.permute.xlu1 %901 }
  0xe0   : > { %7416 = vst [vmem:[#allocation27_spill] sm:$0xff] %v3489_v11  ;;  %v3941_v11 = vld [vmem:[%s7087_s6 + $0x28] sm:$0x3] }
  0xe2   : > { %v3491_v12 = vpop.permute.xlu2 %1091 }
  0xe3   : > { %7417 = vst [vmem:[#allocation28_spill] sm:$0xff] %v3491_v12 }
  0xe8   : > { %v3499_v13 = vpop.permute.xlu1 %990 }
  0xe9   : > { %7418 = vst [vmem:[#allocation29_spill] sm:$0xff] %v3499_v13 }
  0xed   : > { %v3509_v17 = vpop.permute.xlu2 %1099 }
  0xee   : > { %7420 = vst [vmem:[#allocation31_spill] sm:$0xff] %v3509_v17 }
  0xf0   : > { %v3511_v18 = vpop.permute.xlu1 %998 }
  0xf1   : > { %7421 = vst [vmem:[#allocation32_spill] sm:$0xff] %v3511_v18  ;;  %v7109_v18 = vmov 6  }
  0xf2   : > { %3049 = vset.pattern.permute.xlu2 %v7109_v18  ;;  %3048 = vset.pattern.permute.xlu1 %v7109_v18 }
  0xf9   : > { %v3523_v21 = vpop.permute.xlu1 %1087 }
  0xfa   : > { %7423 = vst [vmem:[#allocation34_spill] sm:$0xff] %v3523_v21 }
 0x105   : > { %v3541_v24 = vpop.permute.xlu1 %1095 }
 0x106   : > { %7425 = vst [vmem:[#allocation36_spill] sm:$0xff] %v3541_v24 }
 0x10d   : > { %v3397_v50 = vpop.f32.mrf.mxu0 }
 0x10e   : > { %827 = vrot.lane.b32.xlu1 %v3397_v50, %s3168_s25  ;;  %726 = vrot.lane.b32.xlu0 %v3397_v50, %s3169_s26  ;;  %v3407_v52 = vpop.f32.mrf.mxu1 }
 0x10f   : > { %625 = vrot.lane.b32.xlu2 %v3397_v50, %s3170_s29  ;;  %7399 = vst [vmem:[#allocation10_spill] sm:$0xff] %v3407_v52 }
 0x113   : > { %v3429_v57 = vpop.f32.mrf.mxu2 }
 0x114   : > { %7404 = vst [vmem:[#allocation15_spill] sm:$0xff] %v3429_v57  ;;  %v3439_v59 = vpop.f32.mrf.mxu3 }
 0x115   : > { %7406 = vst [vmem:[#allocation17_spill] sm:$0xff] %v3439_v59  ;;  %v3459_v0 = vpop.f32.mrf.mxu0 }
 0x116   : > { %839 = vrot.lane.b32.xlu1 %v3407_v52, %s3168_s25  ;;  %738 = vrot.lane.b32.xlu0 %v3407_v52, %s3169_s26  ;;  %7410 = vst [vmem:[#allocation21_spill] sm:$0xff] %v3459_v0  ;;  %v3471_v6 = vpop.f32.mrf.mxu1 }
 0x117   : > { %637 = vrot.lane.b32.xlu2 %v3407_v52, %s3170_s29  ;;  %7413 = vst [vmem:[#allocation24_spill] sm:$0xff] %v3471_v6 }
 0x11d   : > { %v3501_v14 = vpop.f32.mrf.mxu0 }
 0x11e   : > { %1130 = vrot.lane.b32.xlu1 %v3397_v50, %s3171_s30  ;;  %1029 = vrot.lane.b32.xlu0 %v3397_v50, %s3172_s9  ;;  %7419 = vst [vmem:[#allocation30_spill] sm:$0xff] %v3501_v14  ;;  %v3513_v19 = vpop.f32.mrf.mxu1 }
 0x11f   : > { %928 = vrot.lane.b32.xlu2 %v3397_v50, %s3173_s10  ;;  %7422 = vst [vmem:[#allocation33_spill] sm:$0xff] %v3513_v19 }
 0x125   : > { %v3533_v23 = vpop.f32.mrf.mxu0 }
 0x126   : > { %635 = vrot.lane.b32.xlu1 %v3429_v57, %s3170_s29  ;;  %1041 = vrot.lane.b32.xlu0 %v3407_v52, %s3172_s9  ;;  %7424 = vst [vmem:[#allocation35_spill] sm:$0xff] %v3533_v23  ;;  %v3550_v27 = vpop.f32.mrf.mxu1 }
 0x127   : > { %940 = vrot.lane.b32.xlu2 %v3407_v52, %s3173_s10  ;;  %7427 = vst [vmem:[#allocation38_spill] sm:$0xff] %v3550_v27 }
 0x12d   : > { %v3601_v36 = vpop.f32.mrf.mxu0 }
 0x12e   : > { %647 = vrot.lane.b32.xlu1 %v3439_v59, %s3170_s29  ;;  %837 = vrot.lane.b32.xlu0 %v3429_v57, %s3168_s25  ;;  %7437 = vst [vmem:[#allocation48_spill] sm:$0xff] %v3601_v36  ;;  %v3620_v31 = vpop.f32.mrf.mxu1 }
 0x12f   : > { %736 = vrot.lane.b32.xlu2 %v3429_v57, %s3169_s26  ;;  %7441 = vst [vmem:[#allocation52_spill] sm:$0xff] %v3620_v31 }
 0x136   : > { %938 = vrot.lane.b32.xlu1 %v3429_v57, %s3173_s10  ;;  %849 = vrot.lane.b32.xlu0 %v3439_v59, %s3168_s25 }
 0x137   : > { %748 = vrot.lane.b32.xlu2 %v3439_v59, %s3169_s26 }
 0x13e   : > { %950 = vrot.lane.b32.xlu1 %v3439_v59, %s3173_s10  ;;  %627 = vrot.lane.b32.xlu0 %v3459_v0, %s3170_s29 }
 0x13f   : > { %1039 = vrot.lane.b32.xlu2 %v3429_v57, %s3172_s9 }
 0x146   : > { %728 = vrot.lane.b32.xlu1 %v3459_v0, %s3169_s26  ;;  %639 = vrot.lane.b32.xlu0 %v3471_v6, %s3170_s29 }
 0x147   : > { %1051 = vrot.lane.b32.xlu2 %v3439_v59, %s3172_s9 }
 0x14e   : > { %740 = vrot.lane.b32.xlu1 %v3471_v6, %s3169_s26  ;;  %930 = vrot.lane.b32.xlu0 %v3459_v0, %s3173_s10 }
 0x14f   : > { %829 = vrot.lane.b32.xlu2 %v3459_v0, %s3168_s25 }
 0x156   : > { %1031 = vrot.lane.b32.xlu1 %v3459_v0, %s3172_s9  ;;  %942 = vrot.lane.b32.xlu0 %v3471_v6, %s3173_s10 }
 0x157   : > { %841 = vrot.lane.b32.xlu2 %v3471_v6, %s3168_s25 }
 0x15e   : > { %1043 = vrot.lane.b32.xlu1 %v3471_v6, %s3172_s9  ;;  %831 = vrot.lane.b32.xlu0 %v3501_v14, %s3168_s25 }
 0x15f   : > { %1132 = vrot.lane.b32.xlu2 %v3459_v0, %s3171_s30 }
 0x166   : > { %843 = vrot.lane.b32.xlu0 %v3513_v19, %s3168_s25  ;;  %629 = vrot.lane.b32.xlu1 %v3501_v14, %s3170_s29 }
 0x167   : > { %730 = vrot.lane.b32.xlu2 %v3501_v14, %s3169_s26 }
 0x169   : > { %v3521_v20 = vpop.permute.xlu2 %625 }
 0x16e   : > { %1134 = vrot.lane.b32.xlu0 %v3501_v14, %s3171_s30  ;;  %641 = vrot.lane.b32.xlu1 %v3513_v19, %s3170_s29 }
 0x16f   : > { %742 = vrot.lane.b32.xlu2 %v3513_v19, %s3169_s26 }
 0x171   : > { %v3531_v22 = vpop.permute.xlu2 %637 }
 0x176   : > { %932 = vrot.lane.b32.xlu1 %v3501_v14, %s3173_s10  ;;  %732 = vrot.lane.b32.xlu0 %v3533_v23, %s3169_s26 }
 0x177   : > { %1033 = vrot.lane.b32.xlu2 %v3501_v14, %s3172_s9 }
 0x179   : > { %v3543_v25 = vpop.permute.xlu2 %928 }
 0x17a   : > { %7426 = vst [vmem:[#allocation37_spill] sm:$0xff] %v3543_v25 }
 0x17e   : > { %944 = vrot.lane.b32.xlu1 %v3513_v19, %s3173_s10  ;;  %744 = vrot.lane.b32.xlu0 %v3550_v27, %s3169_s26 }
 0x17f   : > { %1045 = vrot.lane.b32.xlu2 %v3513_v19, %s3172_s9 }
 0x180   : > { %v3558_v28 = vpop.permute.xlu1 %827  ;;  %v3560_v29 = vpop.permute.xlu0 %726 }
 0x181   : > { %7428 = vst [vmem:[#allocation39_spill] sm:$0xff] %v3558_v28  ;;  %v3562_v30 = vpop.permute.xlu2 %940 }
 0x182   : > { %7429 = vst [vmem:[#allocation40_spill] sm:$0xff] %v3560_v29 }
 0x183   : > { %7430 = vst [vmem:[#allocation41_spill] sm:$0xff] %v3562_v30 }
 0x186   : > { %833 = vrot.lane.b32.xlu1 %v3533_v23, %s3168_s25  ;;  %1035 = vrot.lane.b32.xlu0 %v3533_v23, %s3172_s9 }
 0x187   : > { %631 = vrot.lane.b32.xlu2 %v3533_v23, %s3170_s29 }
 0x188   : > { %v3575_v32 = vpop.permute.xlu1 %839  ;;  %v3577_v33 = vpop.permute.xlu0 %738 }
 0x189   : > { %7431 = vst [vmem:[#allocation42_spill] sm:$0xff] %v3575_v32  ;;  %v3579_v34 = vpop.permute.xlu2 %736 }
 0x18a   : > { %7432 = vst [vmem:[#allocation43_spill] sm:$0xff] %v3577_v33 }
 0x18b   : > { %7433 = vst [vmem:[#allocation44_spill] sm:$0xff] %v3579_v34 }
 0x18e   : > { %845 = vrot.lane.b32.xlu1 %v3550_v27, %s3168_s25  ;;  %1047 = vrot.lane.b32.xlu0 %v3550_v27, %s3172_s9 }
 0x18f   : > { %643 = vrot.lane.b32.xlu2 %v3550_v27, %s3170_s29 }
 0x190   : > { %v3592_v37 = vpop.permute.xlu1 %1130  ;;  %v3594_v39 = vpop.permute.xlu0 %1029 }
 0x191   : > { %7434 = vst [vmem:[#allocation45_spill] sm:$0xff] %v3592_v37  ;;  %v3596_v26 = vpop.permute.xlu2 %748 }
 0x192   : > { %7435 = vst [vmem:[#allocation46_spill] sm:$0xff] %v3594_v39 }
 0x193   : > { %7436 = vst [vmem:[#allocation47_spill] sm:$0xff] %v3596_v26 }
 0x196   : > { %734 = vrot.lane.b32.xlu1 %v3601_v36, %s3169_s26  ;;  %633 = vrot.lane.b32.xlu0 %v3601_v36, %s3170_s29 }
 0x197   : > { %934 = vrot.lane.b32.xlu2 %v3533_v23, %s3173_s10 }
 0x198   : > { %v3611_v42 = vpop.permute.xlu1 %635  ;;  %v3613_v40 = vpop.permute.xlu0 %1041 }
 0x199   : > { %7438 = vst [vmem:[#allocation49_spill] sm:$0xff] %v3611_v42  ;;  %v3615_v38 = vpop.permute.xlu2 %1039 }
 0x19a   : > { %7439 = vst [vmem:[#allocation50_spill] sm:$0xff] %v3613_v40 }
 0x19b   : > { %7440 = vst [vmem:[#allocation51_spill] sm:$0xff] %v3615_v38 }
 0x19e   : > { %746 = vrot.lane.b32.xlu1 %v3620_v31, %s3169_s26  ;;  %645 = vrot.lane.b32.xlu0 %v3620_v31, %s3170_s29 }
 0x19f   : > { %946 = vrot.lane.b32.xlu2 %v3550_v27, %s3173_s10 }
 0x1a0   : > { %v3630_v2 = vpop.permute.xlu1 %647  ;;  %v3632_v62 = vpop.permute.xlu0 %837 }
 0x1a1   : > { %7442 = vst [vmem:[#allocation53_spill] sm:$0xff] %v3630_v2  ;;  %v3634_v37 = vpop.permute.xlu2 %1051 }
 0x1a2   : > { %7443 = vst [vmem:[#allocation54_spill] sm:$0xff] %v3632_v62 }
 0x1a3   : > { %7444 = vst [vmem:[#allocation55_spill] sm:$0xff] %v3634_v37 }
 0x1a6   : > { %1037 = vrot.lane.b32.xlu1 %v3601_v36, %s3172_s9  ;;  %936 = vrot.lane.b32.xlu0 %v3601_v36, %s3173_s10 }
 0x1a7   : > { %835 = vrot.lane.b32.xlu2 %v3601_v36, %s3168_s25 }
 0x1a8   : > { %v3642_v35 = vpop.permute.xlu1 %938  ;;  %v3644_v24 = vpop.permute.xlu0 %849 }
 0x1a9   : > { %7445 = vst [vmem:[#allocation56_spill] sm:$0xff] %v3642_v35  ;;  %v3646_v17 = vpop.permute.xlu2 %829 }
 0x1aa   : > { %7446 = vst [vmem:[#allocation57_spill] sm:$0xff] %v3644_v24 }
 0x1ab   : > { %7447 = vst [vmem:[#allocation58_spill] sm:$0xff] %v3646_v17 }
 0x1ae   : > { %1049 = vrot.lane.b32.xlu1 %v3620_v31, %s3172_s9  ;;  %948 = vrot.lane.b32.xlu0 %v3620_v31, %s3173_s10 }
 0x1af   : > { %847 = vrot.lane.b32.xlu2 %v3620_v31, %s3168_s25 }
 0x1b0   : > { %v3656_v60 = vpop.permute.xlu1 %950  ;;  %v3658_v54 = vpop.permute.xlu0 %627 }
 0x1b1   : > { %7448 = vst [vmem:[#allocation59_spill] sm:$0xff] %v3656_v60  ;;  %v3660_v9 = vpop.permute.xlu2 %841 }
 0x1b2   : > { %7449 = vst [vmem:[#allocation60_spill] sm:$0xff] %v3658_v54 }
 0x1b3   : > { %7450 = vst [vmem:[#allocation61_spill] sm:$0xff] %v3660_v9 }
 0x1b6   : > { %1136 = vrot.lane.b32.xlu1 %v3533_v23, %s3171_s30  ;;  %1140 = vrot.lane.b32.xlu0 %v3429_v57, %s3171_s30 }
 0x1b7   : > { %1138 = vrot.lane.b32.xlu2 %v3601_v36, %s3171_s30 }
 0x1b8   : > { %v3668_v18 = vpop.permute.xlu1 %728  ;;  %v3670_v55 = vpop.permute.xlu0 %639 }
 0x1b9   : > { %7451 = vst [vmem:[#allocation62_spill] sm:$0xff] %v3668_v18  ;;  %v3672_v5 = vpop.permute.xlu2 %1132 }
 0x1ba   : > { %7452 = vst [vmem:[#allocation63_spill] sm:$0xff] %v3670_v55  ;;  %v7502_v55 = vmov 0  }
 0x1bb   : > { %7453 = vst [vmem:[#allocation64_spill] sm:$0xff] %v3672_v5 }
 0x1be   : > { %1142 = vrot.lane.b32.xlu1 %v3407_v52, %s3171_s30  ;;  %1146 = vrot.lane.b32.xlu0 %v3513_v19, %s3171_s30 }
 0x1bf   : > { %1144 = vrot.lane.b32.xlu2 %v3471_v6, %s3171_s30 }
 0x1c0   : > { %v3680_v13 = vpop.permute.xlu1 %740  ;;  %v3682_v53 = vpop.permute.xlu0 %930 }
 0x1c1   : > { %7454 = vst [vmem:[#allocation65_spill] sm:$0xff] %v3680_v13  ;;  %v3684_v12 = vpop.permute.xlu2 %730 }
 0x1c2   : > { %7455 = vst [vmem:[#allocation66_spill] sm:$0xff] %v3682_v53 }
 0x1c3   : > { %7456 = vst [vmem:[#allocation67_spill] sm:$0xff] %v3684_v12 }
 0x1c6   : > { %1148 = vrot.lane.b32.xlu1 %v3550_v27, %s3171_s30  ;;  %1152 = vrot.lane.b32.xlu0 %v3439_v59, %s3171_s30 }
 0x1c7   : > { %1150 = vrot.lane.b32.xlu2 %v3620_v31, %s3171_s30 }
 0x1c8   : > { %v3697_v5 = vpop.permute.xlu1 %1031  ;;  %v3699_v46 = vpop.permute.xlu0 %942 }
 0x1c9   : > { %7457 = vst [vmem:[#allocation68_spill] sm:$0xff] %v3697_v5  ;;  %v3701_v21 = vpop.permute.xlu2 %742  ;;  %v7134_v5 = vmov 7  }
 0x1ca   : > { %7458 = vst [vmem:[#allocation69_spill] sm:$0xff] %v3699_v46 }
 0x1cb   : > { %7459 = vst [vmem:[#allocation70_spill] sm:$0xff] %v3701_v21 }
 0x1ce   : > { %1184 = vperm.xlu1 %3048, %v3282_v1   ;;  %1233 = vrot.lane.b32.xlu0 %v3459_v0, %s3175_s11 }
 0x1cf   : > { %1188 = vperm.xlu2 %3049, %v3294_v7  }
 0x1d0   : > { %v3707_v61 = vpop.permute.xlu1 %1043  ;;  %v3709_v51 = vpop.permute.xlu0 %831 }
 0x1d1   : > { %7460 = vst [vmem:[#allocation71_spill] sm:$0xff] %v3707_v61  ;;  %v3711_v58 = vpop.permute.xlu2 %1033  ;;  %v3803_v61 = vpop.f32.mrf.mxu2 }
 0x1d2   : > { %7461 = vst [vmem:[#allocation72_spill] sm:$0xff] %v3709_v51 }
 0x1d3   : > { %7462 = vst [vmem:[#allocation73_spill] sm:$0xff] %v3711_v58 }
 0x1d4   : > { %7487 = vst [vmem:[#allocation98_spill] sm:$0xff] %v3803_v61 }
 0x1d6   : > { %1196 = vperm.xlu1 %3048, %v3287_v3   ;;  %1245 = vrot.lane.b32.xlu0 %v3471_v6, %s3175_s11 }
 0x1d7   : > { %1200 = vperm.xlu2 %3049, %v3306_v15  }
 0x1d8   : > { %v3717_v56 = vpop.permute.xlu0 %843  ;;  %v3719_v46 = vpop.permute.xlu1 %629 }
 0x1d9   : > { %7463 = vst [vmem:[#allocation74_spill] sm:$0xff] %v3717_v56  ;;  %v3721_v53 = vpop.permute.xlu2 %1045 }
 0x1da   : > { %7464 = vst [vmem:[#allocation75_spill] sm:$0xff] %v3719_v46 }
 0x1db   : > { %7465 = vst [vmem:[#allocation76_spill] sm:$0xff] %v3721_v53  ;;  %v7137_v53 = vmov 8  }
 0x1dc   : > { %3052 = vset.pattern.permute.xlu0 %v7137_v53 }
 0x1de   : > { %1204 = vperm.xlu1 %3048, %v3299_v8   ;;  %1332 = vrot.lane.b32.xlu0 %v3397_v50, %s3176_s12 }
 0x1df   : > { %1231 = vrot.lane.b32.xlu2 %v3397_v50, %s3175_s11 }
 0x1e0   : > { %v3728_v58 = vpop.permute.xlu0 %1134  ;;  %v3730_v51 = vpop.permute.xlu1 %641  ;;  %3050 = vset.pattern.permute.xlu2 %v7134_v5 }
 0x1e1   : > { %7466 = vst [vmem:[#allocation77_spill] sm:$0xff] %v3728_v58  ;;  %v3733_v56 = vpop.permute.xlu2 %631 }
 0x1e2   : > { %7467 = vst [vmem:[#allocation78_spill] sm:$0xff] %v3730_v51 }
 0x1e3   : > { %7468 = vst [vmem:[#allocation79_spill] sm:$0xff] %v3733_v56 }
 0x1e6   : > { %1235 = vrot.lane.b32.xlu1 %v3501_v14, %s3175_s11  ;;  %1338 = vrot.lane.b32.xlu0 %v3533_v23, %s3176_s12 }
 0x1e7   : > { %1237 = vrot.lane.b32.xlu2 %v3533_v23, %s3175_s11  ;;  %3051 = vset.pattern.permute.xlu1 %v7134_v5 }
 0x1e8   : > { %v3742_v46 = vpop.permute.xlu1 %932  ;;  %v3744_v58 = vpop.permute.xlu0 %732 }
 0x1e9   : > { %7469 = vst [vmem:[#allocation80_spill] sm:$0xff] %v3742_v46  ;;  %v3746_v51 = vpop.permute.xlu2 %643 }
 0x1ea   : > { %7470 = vst [vmem:[#allocation81_spill] sm:$0xff] %v3744_v58 }
 0x1eb   : > { %7471 = vst [vmem:[#allocation82_spill] sm:$0xff] %v3746_v51 }
 0x1ee   : > { %1241 = vrot.lane.b32.xlu1 %v3429_v57, %s3175_s11  ;;  %1239 = vrot.lane.b32.xlu0 %v3601_v36, %s3175_s11 }
 0x1ef   : > { %1243 = vrot.lane.b32.xlu2 %v3407_v52, %s3175_s11 }
 0x1f0   : > { %v3755_v56 = vpop.permute.xlu1 %944  ;;  %v3757_v5 = vpop.permute.xlu0 %744 }
 0x1f1   : > { %7472 = vst [vmem:[#allocation83_spill] sm:$0xff] %v3755_v56  ;;  %v3759_v46 = vpop.permute.xlu2 %934 }
 0x1f2   : > { %7473 = vst [vmem:[#allocation84_spill] sm:$0xff] %v3757_v5 }
 0x1f3   : > { %7474 = vst [vmem:[#allocation85_spill] sm:$0xff] %v3759_v46 }
 0x1f6   : > { %1247 = vrot.lane.b32.xlu1 %v3513_v19, %s3175_s11  ;;  %1251 = vrot.lane.b32.xlu0 %v3620_v31, %s3175_s11 }
 0x1f7   : > { %1249 = vrot.lane.b32.xlu2 %v3550_v27, %s3175_s11 }
 0x1f8   : > { %v3767_v53 = vpop.permute.xlu1 %833  ;;  %v3769_v58 = vpop.permute.xlu0 %1035 }
 0x1f9   : > { %7475 = vst [vmem:[#allocation86_spill] sm:$0xff] %v3767_v53  ;;  %v3771_v51 = vpop.permute.xlu2 %946 }
 0x1fa   : > { %7476 = vst [vmem:[#allocation87_spill] sm:$0xff] %v3769_v58 }
 0x1fb   : > { %7477 = vst [vmem:[#allocation88_spill] sm:$0xff] %v3771_v51 }
 0x1fe   : > { %1253 = vrot.lane.b32.xlu1 %v3439_v59, %s3175_s11  ;;  %1344 = vrot.lane.b32.xlu0 %v3407_v52, %s3176_s12 }
 0x1ff   : > { %1285 = vperm.xlu2 %3050, %v3282_v1  }
 0x200   : > { %v3778_v46 = vpop.permute.xlu1 %845  ;;  %v3780_v56 = vpop.permute.xlu0 %1047 }
 0x201   : > { %7478 = vst [vmem:[#allocation89_spill] sm:$0xff] %v3778_v46  ;;  %v3782_v5 = vpop.permute.xlu2 %835 }
 0x202   : > { %7479 = vst [vmem:[#allocation90_spill] sm:$0xff] %v3780_v56 }
 0x203   : > { %7480 = vst [vmem:[#allocation91_spill] sm:$0xff] %v3782_v5 }
 0x206   : > { %1293 = vperm.xlu1 %3051, %v3311_v16   ;;  %1350 = vrot.lane.b32.xlu0 %v3550_v27, %s3176_s12 }
 0x207   : > { %1297 = vperm.xlu2 %3050, %v3287_v3  }
 0x208   : > { %v3788_v58 = vpop.permute.xlu1 %734  ;;  %v3790_v53 = vpop.permute.xlu0 %633 }
 0x209   : > { %7481 = vst [vmem:[#allocation92_spill] sm:$0xff] %v3788_v58  ;;  %v3792_v51 = vpop.permute.xlu2 %847 }
 0x20a   : > { %7482 = vst [vmem:[#allocation93_spill] sm:$0xff] %v3790_v53 }
 0x20b   : > { %7483 = vst [vmem:[#allocation94_spill] sm:$0xff] %v3792_v51  ;;  %v7488_v51 = vmov 8  }
 0x20e   : > { %1301 = vperm.xlu1 %3051, %v3306_v15   ;;  %1386 = vperm.xlu0 %3052, %v3282_v1  }
 0x20f   : > { %1305 = vperm.xlu2 %3050, %v3299_v8  }
 0x210   : > { %v3797_v5 = vpop.permute.xlu1 %746  ;;  %v3799_v56 = vpop.permute.xlu0 %645 }
 0x211   : > { %7484 = vst [vmem:[#allocation95_spill] sm:$0xff] %v3797_v5  ;;  %v3801_v46 = vpop.permute.xlu2 %1138 }
 0x212   : > { %7485 = vst [vmem:[#allocation96_spill] sm:$0xff] %v3799_v56 }
 0x213   : > { %7486 = vst [vmem:[#allocation97_spill] sm:$0xff] %v3801_v46  ;;  %v7492_v46 = vmov 4  }
 0x216   : > { %1334 = vrot.lane.b32.xlu1 %v3459_v0, %s3176_s12  ;;  %1406 = vperm.xlu0 %3052, %v3299_v8  }
 0x217   : > { %1336 = vrot.lane.b32.xlu2 %v3501_v14, %s3176_s12  ;;  %3053 = vset.pattern.permute.xlu1 %v7488_v51  ;;  %v3824_v14 = vpop.f32.mrf.mxu2 }
 0x218   : > { %v3811_v58 = vpop.permute.xlu1 %1037  ;;  %v3813_v53 = vpop.permute.xlu0 %936  ;;  %3054 = vset.pattern.permute.xlu2 %v7488_v51  ;;  %7493 = vst [vmem:[#allocation102_spill] sm:$0xff] %v3824_v14 }
 0x219   : > { %7489 = vst [vmem:[#allocation99_spill] sm:$0xff] %v3811_v58  ;;  %v3816_v5 = vpop.permute.xlu2 %1144  ;;  %v3837_v51 = vpop.f32.mrf.mxu3 }
 0x21a   : > { %7490 = vst [vmem:[#allocation100_spill] sm:$0xff] %v3813_v53 }
 0x21b   : > { %7491 = vst [vmem:[#allocation101_spill] sm:$0xff] %v3816_v5  ;;  %v3835_v5 = vld [vmem:[%s7087_s6 + $0x10] sm:$0xff] }
 0x21c   : > { %7497 = vst [vmem:[#allocation106_spill] sm:$0xff] %v3837_v51 }
 0x21e   : > { %1340 = vrot.lane.b32.xlu1 %v3601_v36, %s3176_s12  ;;  %3055 = vset.pattern.permute.xlu0 %v7492_v46 }
 0x21f   : > { %1342 = vrot.lane.b32.xlu2 %v3429_v57, %s3176_s12  ;;  %595 = vperm.xlu0 %3055, %v3311_v16   ;;  %v3850_v54 = vpop.f32.mrf.mxu2 }
 0x220   : > { %v3826_v56 = vpop.permute.xlu1 %1049  ;;  %v3828_v58 = vpop.permute.xlu0 %948  ;;  %7501 = vst [vmem:[#allocation110_spill] sm:$0xff] %v3850_v54 }
 0x221   : > { %7494 = vst [vmem:[#allocation103_spill] sm:$0xff] %v3826_v56  ;;  %v3830_v53 = vpop.permute.xlu2 %1150  ;;  %v3857_v12 = vpop.f32.mrf.mxu3 }
 0x222   : > { %7495 = vst [vmem:[#allocation104_spill] sm:$0xff] %v3828_v58 }
 0x223   : > { %7496 = vst [vmem:[#allocation105_spill] sm:$0xff] %v3830_v53 }
 0x224   : > { %7503 = vst [vmem:[#allocation111_spill] sm:$0xff] %v3857_v12 }
 0x226   : > { %1346 = vrot.lane.b32.xlu1 %v3471_v6, %s3176_s12 }
 0x227   : > { %1348 = vrot.lane.b32.xlu2 %v3513_v19, %s3176_s12  ;;  %1545 = vperm.xlu0 %3055, %v3835_v5  }
 0x228   : > { %v3844_v56 = vpop.permute.xlu1 %1136  ;;  %v3846_v58 = vpop.permute.xlu0 %1140 }
 0x229   : > { %7498 = vst [vmem:[#allocation107_spill] sm:$0xff] %v3844_v56  ;;  %v3848_v53 = vpop.permute.xlu2 %1188  ;;  %v3878_v18 = vpop.f32.mrf.mxu3 }
 0x22a   : > { %7499 = vst [vmem:[#allocation108_spill] sm:$0xff] %v3846_v58 }
 0x22b   : > { %7500 = vst [vmem:[#allocation109_spill] sm:$0xff] %v3848_v53  ;;  %v3866_v53 = vpop.f32.mrf.mxu2 }
 0x22c   : > { %7507 = vst [vmem:[#allocation115_spill] sm:$0xff] %v3866_v53 }
 0x22d   : > { %7511 = vst [vmem:[#allocation119_spill] sm:$0xff] %v3878_v18 }
 0x22e   : > { %1352 = vrot.lane.b32.xlu1 %v3620_v31, %s3176_s12 }
 0x22f   : > { %1354 = vrot.lane.b32.xlu2 %v3439_v59, %s3176_s12  ;;  %3058 = vset.pattern.permute.xlu0 %v7502_v55 }
 0x230   : > { %v3859_v19 = vpop.permute.xlu1 %1142  ;;  %683 = vperm.xlu0 %3058, %v3294_v7   ;;  %v3862_v56 = vpop.permute.xlu0 %1146 }
 0x231   : > { %7504 = vst [vmem:[#allocation112_spill] sm:$0xff] %v3859_v19  ;;  %v3864_v58 = vpop.permute.xlu2 %1200 }
 0x232   : > { %7505 = vst [vmem:[#allocation113_spill] sm:$0xff] %v3862_v56 }
 0x233   : > { %7506 = vst [vmem:[#allocation114_spill] sm:$0xff] %v3864_v58  ;;  %v3880_v56 = vpop.f32.mrf.mxu2 }
 0x236   : > { %1390 = vperm.xlu1 %3053, %v3294_v7  }
 0x237   : > { %1394 = vperm.xlu2 %3054, %v3311_v16  }
 0x238   : > { %v3870_v21 = vpop.permute.xlu1 %1148  ;;  %1577 = vrot.lane.b32.xlu0 %v3824_v14, %s3170_s29  ;;  %v3874_v13 = vpop.permute.xlu0 %1152 }
 0x239   : > { %7508 = vst [vmem:[#allocation116_spill] sm:$0xff] %v3870_v21  ;;  %v3876_v19 = vpop.permute.xlu2 %1231 }
 0x23a   : > { %7509 = vst [vmem:[#allocation117_spill] sm:$0xff] %v3874_v13  ;;  %v3892_v13 = vpop.f32.mrf.mxu3 }
 0x23b   : > { %7510 = vst [vmem:[#allocation118_spill] sm:$0xff] %v3876_v19  ;;  %v3897_v19 = vld [vmem:[%s7087_s6] sm:$0xff] }
 0x23c   : > { %7515 = vst [vmem:[#allocation123_spill] sm:$0xff] %v3892_v13 }
 0x23e   : > { %1398 = vperm.xlu1 %3053, %v3287_v3   ;;  %v3902_v3 = vld [vmem:[%s7087_s6 + $0x8] sm:$0xff] }
 0x23f   : > { %1402 = vperm.xlu2 %3054, %v3306_v15   ;;  %7516 = vst [vmem:[#allocation124_spill] sm:$0xff] %v3902_v3 }
 0x240   : > { %v3884_v7 = vpop.permute.xlu1 %1184  ;;  %1583 = vrot.lane.b32.xlu0 %v3880_v56, %s3170_s29  ;;  %v3888_v21 = vpop.permute.xlu0 %1233 }
 0x241   : > { %7512 = vst [vmem:[#allocation120_spill] sm:$0xff] %v3884_v7  ;;  %v3890_v58 = vpop.permute.xlu2 %1237 }
 0x242   : > { %7513 = vst [vmem:[#allocation121_spill] sm:$0xff] %v3888_v21  ;;  %v3919_v21 = vld [vmem:[%s7087_s6 + $0x18] sm:$0xff]  ;;  %v3921_v10 = vpop.f32.mrf.mxu3 }
 0x243   : > { %7514 = vst [vmem:[#allocation122_spill] sm:$0xff] %v3890_v58 }
 0x246   : > { %3056 = vset.pattern.permute.xlu1 %v7492_v46 }
 0x247   : > { %3057 = vset.pattern.permute.xlu2 %v7492_v46  ;;  %1535 = vperm.xlu1 %3056, %v3897_v19   ;;  %v3926_v46 = vld [vmem:[%s7087_s6 + $0x20] sm:$0xff] }
 0x248   : > { %1540 = vperm.xlu2 %3057, %v3902_v3   ;;  %v3908_v15 = vpop.permute.xlu1 %1196  ;;  %1589 = vrot.lane.b32.xlu0 %v3857_v12, %s3170_s29  ;;  %v3912_v58 = vpop.permute.xlu0 %1245 }
 0x249   : > { %7517 = vst [vmem:[#allocation125_spill] sm:$0xff] %v3908_v15  ;;  %v3914_v7 = vpop.permute.xlu2 %1243 }
 0x24a   : > { %7518 = vst [vmem:[#allocation126_spill] sm:$0xff] %v3912_v58 }
 0x24b   : > { %7519 = vst [vmem:[#allocation127_spill] sm:$0xff] %v3914_v7 }
 0x24f   : > { %1550 = vperm.xlu1 %3056, %v3919_v21  }
 0x250   : > { %1555 = vperm.xlu2 %3057, %v3926_v46   ;;  %v3930_v15 = vpop.permute.xlu1 %1204  ;;  %1595 = vrot.lane.b32.xlu0 %v3921_v10, %s3170_s29  ;;  %v3934_v7 = vpop.permute.xlu0 %1332 }
 0x251   : > { %7520 = vst [vmem:[#allocation128_spill] sm:$0xff] %v3930_v15  ;;  %v3936_v58 = vpop.permute.xlu2 %1249 }
 0x252   : > { %7521 = vst [vmem:[#allocation129_spill] sm:$0xff] %v3934_v7 }
 0x253   : > { %7522 = vst [vmem:[#allocation130_spill] sm:$0xff] %v3936_v58  ;;  %v7527_v58 = vmov 1  }
 0x257   : > { %1560 = vperm.xlu1 %3056, %v3941_v11  }
 0x258   : > { %1575 = vrot.lane.b32.xlu2 %v3803_v61, %s3170_s29  ;;  %v3946_v9 = vpop.permute.xlu1 %1235  ;;  %1628 = vperm.xlu0 %3058, %v3902_v3   ;;  %v3949_v15 = vpop.permute.xlu0 %1338 }
 0x259   : > { %7523 = vst [vmem:[#allocation131_spill] sm:$0xff] %v3946_v9  ;;  %v3951_v17 = vpop.permute.xlu2 %1285  ;;  %3059 = vset.pattern.permute.xlu2 %v7502_v55 }
 0x25a   : > { %7524 = vst [vmem:[#allocation132_spill] sm:$0xff] %v3949_v15 }
 0x25b   : > { %7525 = vst [vmem:[#allocation133_spill] sm:$0xff] %v3951_v17  ;;  %v3967_v17 = vpop.f32.mrf.mxu2 }
 0x25f   : > { %1579 = vrot.lane.b32.xlu1 %v3850_v54, %s3170_s29 }
 0x260   : > { %1581 = vrot.lane.b32.xlu2 %v3866_v53, %s3170_s29  ;;  %v3958_v7 = vpop.permute.xlu1 %1241  ;;  %3060 = vset.pattern.permute.xlu0 %v7527_v58  ;;  %v3961_v38 = vpop.permute.xlu0 %1239 }
 0x261   : > { %7526 = vst [vmem:[#allocation134_spill] sm:$0xff] %v3958_v7  ;;  %v3963_v9 = vpop.permute.xlu2 %1297  ;;  %780 = vperm.xlu0 %3060, %v3282_v1   ;;  %3061 = vset.pattern.permute.xlu1 %v7502_v55 }
 0x262   : > { %7528 = vst [vmem:[#allocation135_spill] sm:$0xff] %v3961_v38 }
 0x263   : > { %7529 = vst [vmem:[#allocation136_spill] sm:$0xff] %v3963_v9 }
 0x267   : > { %1585 = vrot.lane.b32.xlu1 %v3967_v17, %s3170_s29 }
 0x268   : > { %1587 = vrot.lane.b32.xlu2 %v3837_v51, %s3170_s29  ;;  %v3973_v15 = vpop.permute.xlu1 %1247  ;;  %v3975_v7 = vpop.permute.xlu0 %1251 }
 0x269   : > { %7530 = vst [vmem:[#allocation137_spill] sm:$0xff] %v3973_v15  ;;  %v3977_v37 = vpop.permute.xlu2 %1305  ;;  %800 = vperm.xlu0 %3060, %v3299_v8   ;;  %v3992_v15 = vpop.f32.mrf.mxu3 }
 0x26a   : > { %7531 = vst [vmem:[#allocation138_spill] sm:$0xff] %v3975_v7  ;;  %v415_v7 = vlaneseq }
 0x26b   : > { %7532 = vst [vmem:[#allocation139_spill] sm:$0xff] %v3977_v37 }
 0x26c   : > { %v4077_v35 = vand.u32 127, %v415_v7 }
 0x26e   : > { %v4087_v62 = vshra.s32 %v4077_v35, 4  ;;  %v7240_v39 = vand.u32 15, %v4077_v35  ;;  %vm7281_vm10 = vcmp.lt.s32.totalorder %v4077_v35, 17  ;;  %vm7280_vm3 = vcmp.lt.s32.totalorder %v4077_v35, 16 }
 0x26f   : > { %1591 = vrot.lane.b32.xlu1 %v3878_v18, %s3170_s29  ;;  %vm7300_vm4 = vcmp.lt.s32.totalorder %v4077_v35, 15 }
 0x270   : > { %1593 = vrot.lane.b32.xlu2 %v3892_v13, %s3170_s29  ;;  %v3984_v1 = vpop.permute.xlu1 %1253  ;;  %v3986_v55 = vpop.permute.xlu0 %1344  ;;  %7555 = vst [vmem:[#allocation161_spill] sm:$0xff] %v4087_v62  ;;  %v422_v34 = vadd.s32 4294967295, %v4087_v62  ;;  %v4105_v4 = vadd.s32 4294967295, %v7240_v39 }
 0x271   : > { %7533 = vst [vmem:[#allocation140_spill] sm:$0xff] %v3984_v1  ;;  %v3988_v9 = vpop.permute.xlu2 %1336  ;;  %1671 = vrot.lane.b32.xlu0 %v3803_v61, %s3169_s26 }
 0x272   : > { %7534 = vst [vmem:[#allocation141_spill] sm:$0xff] %v3986_v55  ;;  %vm424_vm8 = vcmp.ge.s32.totalorder %v422_v34, 0  ;;  %vm426_vm9 = vcmp.lt.s32.totalorder %v422_v34, 16  ;;  %vm7291_vm14 = vcmp.ge.s32.totalorder %v4105_v4, 0 }
 0x273   : > { %7535 = vst [vmem:[#allocation142_spill] sm:$0xff] %v3988_v9  ;;  %vm4125_vm13 = vmand %vm424_vm8, %vm426_vm9 }
 0x274   : > { %7557 = vst [vmem:[#allocation163_spill] sm:$0xff] %v4105_v4  ;;  %vm4145_vm1 = vmand %vm4125_vm13, %vm7291_vm14 }
 0x277   : > { %1597 = vrot.lane.b32.xlu1 %v3992_v15, %s3170_s29 }
 0x278   : > { %1624 = vperm.xlu2 %3059, %v3897_v19   ;;  %v3997_v8 = vpop.permute.xlu1 %1293  ;;  %v3999_v37 = vpop.permute.xlu0 %1350 }
 0x279   : > { %7536 = vst [vmem:[#allocation143_spill] sm:$0xff] %v3997_v8  ;;  %v4001_v38 = vpop.permute.xlu2 %1342  ;;  %1677 = vrot.lane.b32.xlu0 %v3866_v53, %s3169_s26 }
 0x27a   : > { %7537 = vst [vmem:[#allocation144_spill] sm:$0xff] %v3999_v37 }
 0x27b   : > { %7538 = vst [vmem:[#allocation145_spill] sm:$0xff] %v4001_v38 }
 0x27f   : > { %1632 = vperm.xlu1 %3061, %v3835_v5  }
 0x280   : > { %1636 = vperm.xlu2 %3059, %v3919_v21   ;;  %v4007_v9 = vpop.permute.xlu1 %1301  ;;  %v4009_v55 = vpop.permute.xlu0 %1386 }
 0x281   : > { %7539 = vst [vmem:[#allocation146_spill] sm:$0xff] %v4007_v9  ;;  %v4011_v1 = vpop.permute.xlu2 %1348  ;;  %1683 = vrot.lane.b32.xlu0 %v3837_v51, %s3169_s26 }
 0x282   : > { %7540 = vst [vmem:[#allocation147_spill] sm:$0xff] %v4009_v55 }
 0x283   : > { %7541 = vst [vmem:[#allocation148_spill] sm:$0xff] %v4011_v1 }
 0x287   : > { %1640 = vperm.xlu1 %3061, %v3926_v46  }
 0x288   : > { %1644 = vperm.xlu2 %3059, %v3941_v11   ;;  %v4017_v8 = vpop.permute.xlu1 %1334  ;;  %v4019_v38 = vpop.permute.xlu0 %1406 }
 0x289   : > { %7542 = vst [vmem:[#allocation149_spill] sm:$0xff] %v4017_v8  ;;  %v4021_v37 = vpop.permute.xlu2 %1354  ;;  %1689 = vrot.lane.b32.xlu0 %v3892_v13, %s3169_s26 }
 0x28a   : > { %7543 = vst [vmem:[#allocation150_spill] sm:$0xff] %v4019_v38 }
 0x28b   : > { %7544 = vst [vmem:[#allocation151_spill] sm:$0xff] %v4021_v37 }
 0x28f   : > { %1673 = vrot.lane.b32.xlu1 %v3824_v14, %s3169_s26 }
 0x290   : > { %1675 = vrot.lane.b32.xlu2 %v3850_v54, %s3169_s26  ;;  %v4029_v55 = vpop.permute.xlu1 %1340  ;;  %3062 = vset.pattern.permute.xlu1 %v7527_v58 }
 0x291   : > { %7545 = vst [vmem:[#allocation152_spill] sm:$0xff] %v4029_v55  ;;  %v4032_v1 = vpop.permute.xlu2 %1394  ;;  %1720 = vperm.xlu0 %3060, %v3897_v19   ;;  %v4035_v8 = vpop.permute.xlu0 %595  ;;  %3063 = vset.pattern.permute.xlu2 %v7527_v58 }
 0x292   : > { %7546 = vst [vmem:[#allocation153_spill] sm:$0xff] %v4032_v1  ;;  %v7551_v1 = vmov 2  }
 0x293   : > { %7547 = vst [vmem:[#allocation154_spill] sm:$0xff] %v4035_v8 }
 0x297   : > { %1679 = vrot.lane.b32.xlu1 %v3880_v56, %s3169_s26 }
 0x298   : > { %1681 = vrot.lane.b32.xlu2 %v3967_v17, %s3169_s26  ;;  %v4042_v38 = vpop.permute.xlu1 %1346 }
 0x299   : > { %7548 = vst [vmem:[#allocation155_spill] sm:$0xff] %v4042_v38  ;;  %v4044_v37 = vpop.permute.xlu2 %1402  ;;  %1740 = vperm.xlu0 %3060, %v3941_v11   ;;  %v4047_v9 = vpop.permute.xlu0 %1545 }
 0x29a   : > { %7549 = vst [vmem:[#allocation156_spill] sm:$0xff] %v4044_v37 }
 0x29f   : > { %1685 = vrot.lane.b32.xlu1 %v3857_v12, %s3169_s26 }
 0x2a0   : > { %1687 = vrot.lane.b32.xlu2 %v3878_v18, %s3169_s26  ;;  %v4053_v58 = vpop.permute.xlu1 %1352 }
 0x2a1   : > { %7550 = vst [vmem:[#allocation157_spill] sm:$0xff] %v4053_v58  ;;  %3064 = vset.pattern.permute.xlu0 %v7551_v1 }
 0x2a2   : > { %v4056_v8 = vpop.permute.xlu2 %1540  ;;  %889 = vperm.xlu0 %3064, %v3311_v16   ;;  %v4059_v38 = vpop.permute.xlu0 %683 }
 0x2a3   : > { %7552 = vst [vmem:[#allocation158_spill] sm:$0xff] %v4059_v38 }
 0x2a7   : > { %1691 = vrot.lane.b32.xlu1 %v3921_v10, %s3169_s26 }
 0x2a8   : > { %1693 = vrot.lane.b32.xlu2 %v3992_v15, %s3169_s26  ;;  %v4065_v37 = vpop.permute.xlu1 %1390 }
 0x2a9   : > { %7553 = vst [vmem:[#allocation159_spill] sm:$0xff] %v4065_v37  ;;  %v4080_v37 = vadd.s32 128, %v4077_v35 }
 0x2aa   : > { %v4067_v55 = vpop.permute.xlu2 %1555  ;;  %1771 = vrot.lane.b32.xlu0 %v3850_v54, %s3168_s25  ;;  %v1578_v58 = vpop.permute.xlu0 %1577 }
 0x2ab   : > { %v4092_v7 = vshra.s32 %v4080_v37, 4  ;;  %v7241_v40 = vand.u32 15, %v4080_v37 }
 0x2ad   : > { %7556 = vst [vmem:[#allocation162_spill] sm:$0xff] %v4092_v7  ;;  %v423_v26 = vadd.s32 4294967295, %v4092_v7  ;;  %v4112_v42 = vadd.s32 4294967295, %v7241_v40 }
 0x2af   : > { %1724 = vperm.xlu1 %3062, %v3902_v3   ;;  %7558 = vst [vmem:[#allocation164_spill] sm:$0xff] %v4112_v42  ;;  %vm425_vm11 = vcmp.ge.s32.totalorder %v423_v26, 0  ;;  %vm427_vm12 = vcmp.lt.s32.totalorder %v423_v26, 16  ;;  %vm7290_vm0 = vcmp.ge.s32.totalorder %v4112_v42, 0 }
 0x2b0   : > { %1728 = vperm.xlu2 %3063, %v3835_v5   ;;  %v4073_v16 = vpop.permute.xlu1 %1398  ;;  %vm4130_vm15 = vmand %vm425_vm11, %vm427_vm12 }
 0x2b1   : > { %7554 = vst [vmem:[#allocation160_spill] sm:$0xff] %v4073_v16  ;;  %vm4155_vm2 = vmand %vm4130_vm15, %vm7290_vm0 }
 0x2b2   : > { %v1576_v38 = vpop.permute.xlu2 %1575  ;;  %1777 = vrot.lane.b32.xlu0 %v3967_v17, %s3168_s25  ;;  %v1584_v48 = vpop.permute.xlu0 %1583 }
 0x2b7   : > { %1732 = vperm.xlu1 %3062, %v3919_v21  }
 0x2b8   : > { %1736 = vperm.xlu2 %3063, %v3926_v46  }
 0x2b9   : > { %v4084_v60 = vpop.permute.xlu1 %1535 }
 0x2ba   : > { %v1582_v16 = vpop.permute.xlu2 %1581  ;;  %1783 = vrot.lane.b32.xlu0 %v3878_v18, %s3168_s25  ;;  %v1590_v24 = vpop.permute.xlu0 %1589 }
 0x2bb   : > { %v1600_v26 = vsel %vm7281_vm10, %v1578_v58, %v1590_v24  ;;  %v1606_v33 = vsel %vm7281_vm10, %v1590_v24, %v1578_v58  ;;  %v7566_v24 = vmov 0 }
 0x2bc   : > { %v7567_v24 = vsel %vm4155_vm2, 4294967295, %v7566_v24  ;;  %v1613_v28 = vsel %vm4145_vm1, %v1606_v33, 0.0  ;;  %v1614_v32 = vsel %vm4155_vm2, %v1600_v26, 0.0 }
 0x2bd   : > { %7568 = vst [vmem:[#allocation166_spill] sm:$0xff] %v7567_v24 }
 0x2bf   : > { %1767 = vrot.lane.b32.xlu1 %v3803_v61, %s3168_s25 }
 0x2c0   : > { %1769 = vrot.lane.b32.xlu2 %v3824_v14, %s3168_s25  ;;  %3065 = vset.pattern.permute.xlu1 %v7551_v1 }
 0x2c1   : > { %v4107_v63 = vpop.permute.xlu1 %1550  ;;  %3066 = vset.pattern.permute.xlu2 %v7551_v1 }
 0x2c2   : > { %v1588_v2 = vpop.permute.xlu2 %1587  ;;  %1789 = vrot.lane.b32.xlu0 %v3992_v15, %s3168_s25  ;;  %v1596_v29 = vpop.permute.xlu0 %1595 }
 0x2c3   : > { %v4119_v39 = vsel %vm7281_vm10, %v1584_v48, %v1596_v29  ;;  %v4123_v34 = vsel %vm7281_vm10, %v1596_v29, %v1584_v48  ;;  %v7563_v48 = vmov 0  ;;  %v1599_v25 = vsel %vm7281_vm10, %v1576_v38, %v1588_v2 }
 0x2c4   : > { %v7564_v48 = vsel %vm4145_vm1, 4294967295, %v7563_v48  ;;  %v1605_v30 = vsel %vm7281_vm10, %v1588_v2, %v1576_v38  ;;  %v3138_v2 = vld [vmem:[%s7086_s5 + $0x8] sm:$0xff] }
 0x2c5   : > { %7565 = vst [vmem:[#allocation165_spill] sm:$0xff] %v7564_v48  ;;  %v1611_v26 = vsel %vm4145_vm1, %v1605_v30, 0.0  ;;  %v3139_v48 = vld [vmem:[%s7086_s5] sm:$0xff] }
 0x2c7   : > { %1773 = vrot.lane.b32.xlu1 %v3866_v53, %s3168_s25 }
 0x2c8   : > { %1775 = vrot.lane.b32.xlu2 %v3880_v56, %s3168_s25 }
 0x2c9   : > { %v4159_v29 = vpop.permute.xlu1 %1560 }
 0x2ca   : > { %v1594_v58 = vpop.permute.xlu2 %1593  ;;  %1824 = vperm.xlu0 %3064, %v3835_v5   ;;  %v1629_v36 = vpop.permute.xlu0 %1628 }
 0x2cb   : > { %v4166_v44 = vmul.f32 %v1629_v36, %v1613_v28  ;;  %v4168_v31 = vmul.f32 %v1629_v36, %v1614_v32  ;;  %v1612_v28 = vsel %vm4155_vm2, %v1599_v25, 0.0  ;;  %v7569_v36 = vmov 3  }
 0x2cc   : > { %v1602_v30 = vsel %vm7281_vm10, %v1582_v16, %v1594_v58  ;;  %v1608_v25 = vsel %vm7281_vm10, %v1594_v58, %v1582_v16 }
 0x2cf   : > { %1779 = vrot.lane.b32.xlu1 %v3837_v51, %s3168_s25 }
 0x2d0   : > { %1781 = vrot.lane.b32.xlu2 %v3857_v12, %s3168_s25 }
 0x2d1   : > { %v1580_v33 = vpop.permute.xlu1 %1579 }
 0x2d2   : > { %v1625_v32 = vpop.permute.xlu2 %1624  ;;  %3067 = vset.pattern.permute.xlu0 %v7569_v36 }
 0x2d3   : > { %v4183_v42 = vmul.f32 %v1625_v32, %v1611_v26  ;;  %v4185_v23 = vmul.f32 %v1625_v32, %v1612_v28  ;;  %986 = vperm.xlu0 %3067, %v3138_v2   ;;  %v4190_v38 = vpop.permute.xlu0 %780  ;;  %v1617_v28 = vsel %vm4145_vm1, %v1608_v25, 0.0  ;;  %v1618_v32 = vsel %vm4155_vm2, %v1602_v30, 0.0 }
 0x2d4   : > { %7570 = vst [vmem:[#allocation167_spill] sm:$0xff] %v4190_v38 }
 0x2d7   : > { %1785 = vrot.lane.b32.xlu1 %v3892_v13, %s3168_s25 }
 0x2d8   : > { %1787 = vrot.lane.b32.xlu2 %v3921_v10, %s3168_s25 }
 0x2d9   : > { %v1586_v26 = vpop.permute.xlu1 %1585 }
 0x2da   : > { %v1637_v2 = vpop.permute.xlu2 %1636 }
 0x2db   : > { %v4204_v38 = vmul.f32 %v1637_v2, %v1617_v28  ;;  %v4206_v47 = vmul.f32 %v1637_v2, %v1618_v32  ;;  %1865 = vrot.lane.b32.xlu0 %v3824_v14, %s3173_s10  ;;  %v4210_v16 = vpop.permute.xlu0 %800 }
 0x2dc   : > { %7571 = vst [vmem:[#allocation168_spill] sm:$0xff] %v4210_v16 }
 0x2df   : > { %1816 = vperm.xlu1 %3065, %v3897_v19  }
 0x2e0   : > { %1820 = vperm.xlu2 %3066, %v3902_v3  }
 0x2e1   : > { %v1592_v58 = vpop.permute.xlu1 %1591 }
 0x2e2   : > { %v1645_v27 = vpop.permute.xlu2 %1644  ;;  %v1601_v0 = vsel %vm7281_vm10, %v1580_v33, %v1592_v58 }
 0x2e3   : > { %1871 = vrot.lane.b32.xlu0 %v3880_v56, %s3173_s10  ;;  %v1672_v30 = vpop.permute.xlu0 %1671 }
 0x2e7   : > { %1828 = vperm.xlu1 %3065, %v3919_v21  }
 0x2e8   : > { %1832 = vperm.xlu2 %3066, %v3926_v46  }
 0x2e9   : > { %v1598_v25 = vpop.permute.xlu1 %1597 }
 0x2ea   : > { %v1676_v28 = vpop.permute.xlu2 %1675  ;;  %v1604_v32 = vsel %vm7281_vm10, %v1586_v26, %v1598_v25  ;;  %v1610_v2 = vsel %vm7281_vm10, %v1598_v25, %v1586_v26  ;;  %v1607_v26 = vsel %vm7281_vm10, %v1592_v58, %v1580_v33 }
 0x2eb   : > { %v1621_v16 = vsel %vm4145_vm1, %v1610_v2, 0.0  ;;  %v1622_v4 = vsel %vm4155_vm2, %v1604_v32, 0.0  ;;  %1877 = vrot.lane.b32.xlu0 %v3857_v12, %s3173_s10  ;;  %v1678_v59 = vpop.permute.xlu0 %1677  ;;  %v1615_v25 = vsel %vm4145_vm1, %v1607_v26, 0.0 }
 0x2ec   : > { %v4228_v6 = vmul.f32 %v1645_v27, %v1621_v16  ;;  %v4230_v43 = vmul.f32 %v1645_v27, %v1622_v4  ;;  %v1616_v16 = vsel %vm4155_vm2, %v1601_v0, 0.0 }
 0x2ef   : > { %1836 = vperm.xlu1 %3065, %v3941_v11  }
 0x2f0   : > { %1863 = vrot.lane.b32.xlu2 %v3803_v61, %s3173_s10 }
 0x2f1   : > { %v1633_v32 = vpop.permute.xlu1 %1632  ;;  %3068 = vset.pattern.permute.xlu2 %v7569_v36 }
 0x2f2   : > { %v1682_v4 = vpop.permute.xlu2 %1681  ;;  %v1651_v27 = vmul.f32 %v1633_v32, %v1615_v25  ;;  %v1652_v2 = vmul.f32 %v1633_v32, %v1616_v16  ;;  %v1619_v25 = vsel %vm4145_vm1, %v4123_v34, 0.0  ;;  %v1620_v16 = vsel %vm4155_vm2, %v4119_v39, 0.0 }
 0x2f3   : > { %1883 = vrot.lane.b32.xlu0 %v3921_v10, %s3173_s10  ;;  %v1684_v33 = vpop.permute.xlu0 %1683 }
 0x2f4   : > { %v1695_v58 = vsel %vm7280_vm3, %v1672_v30, %v1684_v33  ;;  %v1701_v26 = vsel %vm7280_vm3, %v1684_v33, %v1672_v30 }
 0x2f5   : > { %v1708_v24 = vsel %vm4130_vm15, %v1695_v58, 0.0  ;;  %v1567_v58 = vmul.f32 %v4047_v9, %v3850_v54 }
 0x2f7   : > { %1867 = vrot.lane.b32.xlu1 %v3850_v54, %s3173_s10 }
 0x2f8   : > { %1869 = vrot.lane.b32.xlu2 %v3866_v53, %s3173_s10  ;;  %3070 = vset.pattern.permute.xlu1 %v7569_v36 }
 0x2f9   : > { %v1641_v0 = vpop.permute.xlu1 %1640 }
 0x2fa   : > { %v1688_v32 = vpop.permute.xlu2 %1687  ;;  %v4262_v45 = vmul.f32 %v1641_v0, %v1619_v25  ;;  %v4264_v30 = vmul.f32 %v1641_v0, %v1620_v16  ;;  %v1564_v25 = vmul.f32 %v4084_v60, %v3837_v51 }
 0x2fb   : > { %v1697_v33 = vsel %vm7280_vm3, %v1676_v28, %v1688_v32  ;;  %v1703_v36 = vsel %vm7280_vm3, %v1688_v32, %v1676_v28  ;;  %1916 = vperm.xlu0 %3067, %v3902_v3   ;;  %v1690_v49 = vpop.permute.xlu0 %1689  ;;  %v1563_v28 = vmul.f32 %v4084_v60, %v3803_v61  ;;  %v1707_v3 = vsel %vm4125_vm13, %v1701_v26, 0.0 }
 0x2fc   : > { %v4273_v34 = vsel %vm7280_vm3, %v1678_v59, %v1690_v49  ;;  %v4277_v39 = vsel %vm7280_vm3, %v1690_v49, %v1678_v59  ;;  %v7572_v59 = vmov 5   ;;  %v1660_v60 = vadd.f32 %v4185_v23, %v1564_v25 }
 0x2fd   : > { %v1659_v7 = vadd.f32 %v4183_v42, %v1563_v28  ;;  %v1568_v42 = vmul.f32 %v4047_v9, %v3878_v18  ;;  %v1663_v23 = vadd.f32 %v1651_v27, %v1567_v58 }
 0x2ff   : > { %1873 = vrot.lane.b32.xlu1 %v3967_v17, %s3173_s10 }
 0x300   : > { %1875 = vrot.lane.b32.xlu2 %v3837_v51, %s3173_s10 }
 0x301   : > { %v1674_v0 = vpop.permute.xlu1 %1673 }
 0x302   : > { %v1694_v16 = vpop.permute.xlu2 %1693 }
 0x303   : > { %v1700_v32 = vsel %vm7280_vm3, %v1682_v4, %v1694_v16  ;;  %v1706_v49 = vsel %vm7280_vm3, %v1694_v16, %v1682_v4  ;;  %3069 = vset.pattern.permute.xlu0 %v7572_v59  ;;  %v1721_v57 = vpop.permute.xlu0 %1720 }
 0x304   : > { %v1743_v52 = vmul.f32 %v1721_v57, %v1707_v3  ;;  %v1744_v62 = vmul.f32 %v1721_v57, %v1708_v24  ;;  %1083 = vperm.xlu0 %3069, %v3139_v48   ;;  %v1573_v57 = vmul.f32 %v4159_v29, %v3967_v17  ;;  %v1664_v3 = vadd.f32 %v1652_v2, %v1568_v42 }
 0x305   : > { %v1712_v48 = vsel %vm4130_vm15, %v1697_v33, 0.0  ;;  %v1717_v28 = vsel %vm4125_vm13, %v1706_v49, 0.0  ;;  %v1718_v25 = vsel %vm4130_vm15, %v1700_v32, 0.0  ;;  %v3140_v33 = vld [vmem:[%s7086_s5 + $0x28] sm:$0x3] }
 0x306   : > { %v4301_v4 = vadd.f32 %v1743_v52, %v1659_v7  ;;  %v4303_v16 = vadd.f32 %v1744_v62, %v1660_v60  ;;  %v1574_v52 = vmul.f32 %v4159_v29, %v3992_v15  ;;  %v1711_v7 = vsel %vm4125_vm13, %v1703_v36, 0.0 }
 0x307   : > { %1879 = vrot.lane.b32.xlu1 %v3878_v18, %s3173_s10  ;;  %v1669_v29 = vadd.f32 %v4228_v6, %v1573_v57 }
 0x308   : > { %1881 = vrot.lane.b32.xlu2 %v3892_v13, %s3173_s10  ;;  %v1670_v27 = vadd.f32 %v4230_v43, %v1574_v52 }
 0x309   : > { %v1680_v62 = vpop.permute.xlu1 %1679 }
 0x30a   : > { %v1729_v24 = vpop.permute.xlu2 %1728 }
 0x30b   : > { %v1747_v9 = vmul.f32 %v1729_v24, %v1711_v7  ;;  %v1748_v26 = vmul.f32 %v1729_v24, %v1712_v48  ;;  %v1741_v60 = vpop.permute.xlu0 %1740  ;;  %v1572_v48 = vmul.f32 %v4067_v55, %v3921_v10 }
 0x30c   : > { %v1753_v2 = vmul.f32 %v1741_v60, %v1717_v28  ;;  %v1754_v58 = vmul.f32 %v1741_v60, %v1718_v25  ;;  %1103 = vperm.xlu0 %3069, %v3140_v33  }
 0x30d   : > { %v4330_v36 = vadd.f32 %v1747_v9, %v1663_v23  ;;  %v4332_v42 = vadd.f32 %v1748_v26, %v1664_v3  ;;  %v1571_v3 = vmul.f32 %v4067_v55, %v3880_v56  ;;  %v1668_v60 = vadd.f32 %v4264_v30, %v1572_v48 }
 0x30e   : > { %v4334_v49 = vadd.f32 %v1753_v2, %v1669_v29  ;;  %v4336_v7 = vadd.f32 %v1754_v58, %v1670_v27 }
 0x30f   : > { %1885 = vrot.lane.b32.xlu1 %v3992_v15, %s3173_s10  ;;  %v1667_v25 = vadd.f32 %v4262_v45, %v1571_v3  ;;  %v1566_v45 = vmul.f32 %v4056_v8, %v3857_v12 }
 0x310   : > { %1912 = vperm.xlu2 %3068, %v3897_v19  }
 0x311   : > { %v1686_v43 = vpop.permute.xlu1 %1685 }
 0x312   : > { %v1737_v6 = vpop.permute.xlu2 %1736  ;;  %v1696_v32 = vsel %vm7280_vm3, %v1674_v0, %v1686_v43  ;;  %v1702_v57 = vsel %vm7280_vm3, %v1686_v43, %v1674_v0 }
 0x313   : > { %v1709_v30 = vsel %vm4125_vm13, %v1702_v57, 0.0  ;;  %v1710_v33 = vsel %vm4130_vm15, %v1696_v32, 0.0  ;;  %v1569_v32 = vmul.f32 %v4107_v63, %v3866_v53  ;;  %v1713_v57 = vsel %vm4125_vm13, %v4277_v39, 0.0 }
 0x314   : > { %1959 = vrot.lane.b32.xlu0 %v3803_v61, %s3172_s9  ;;  %v4347_v52 = vpop.permute.xlu0 %889 }
 0x315   : > { %7573 = vst [vmem:[#allocation169_spill] sm:$0xff] %v4347_v52  ;;  %v7599_v52 = vld [vmem:[#allocation2_spill] sm:$0xff] }
 0x317   : > { %1920 = vperm.xlu1 %3070, %v3835_v5  }
 0x318   : > { %1924 = vperm.xlu2 %3068, %v3919_v21  }
 0x319   : > { %v1692_v23 = vpop.permute.xlu1 %1691 }
 0x31a   : > { %v1770_v24 = vpop.permute.xlu2 %1769  ;;  %v1699_v0 = vsel %vm7280_vm3, %v1680_v62, %v1692_v23  ;;  %v1705_v9 = vsel %vm7280_vm3, %v1692_v23, %v1680_v62  ;;  %v1565_v62 = vmul.f32 %v4056_v8, %v3824_v14  ;;  %v1662_v23 = vadd.f32 %v4168_v31, %v1566_v45 }
 0x31b   : > { %v1715_v26 = vsel %vm4125_vm13, %v1705_v9, 0.0  ;;  %v1716_v28 = vsel %vm4130_vm15, %v1699_v0, 0.0  ;;  %vm952_vm3 = vcmp.lt.s32.totalorder %v4077_v35, 1 }
 0x31c   : > { %v1751_v29 = vmul.f32 %v1737_v6, %v1715_v26  ;;  %v1752_v27 = vmul.f32 %v1737_v6, %v1716_v28  ;;  %1965 = vrot.lane.b32.xlu0 %v3866_v53, %s3172_s9  ;;  %v1772_v55 = vpop.permute.xlu0 %1771  ;;  %v1661_v6 = vadd.f32 %v4166_v44, %v1565_v62  ;;  %v1570_v44 = vmul.f32 %v4107_v63, %v3892_v13 }
 0x31d   : > { %v1714_v28 = vsel %vm4130_vm15, %v4273_v34, 0.0  ;;  %v1665_v63 = vadd.f32 %v4204_v38, %v1569_v32 }
 0x31e   : > { %v4367_v2 = vadd.f32 %v1751_v29, %v1667_v25  ;;  %v4369_v58 = vadd.f32 %v1752_v27, %v1668_v60  ;;  %v1666_v25 = vadd.f32 %v4206_v47, %v1570_v44  ;;  %v656_v44 = vsel %vm7281_vm10, %v3531_v22, %v3521_v20 }
 0x31f   : > { %1928 = vperm.xlu1 %3070, %v3926_v46  }
 0x320   : > { %1932 = vperm.xlu2 %3068, %v3941_v11  }
 0x321   : > { %v1725_v43 = vpop.permute.xlu1 %1724 }
 0x322   : > { %v1776_v3 = vpop.permute.xlu2 %1775  ;;  %v1745_v48 = vmul.f32 %v1725_v43, %v1709_v30  ;;  %v1746_v0 = vmul.f32 %v1725_v43, %v1710_v33  ;;  %v7576_v43 = vand.u32 15, %v4080_v37 }
 0x324   : > { %v4383_v9 = vadd.f32 %v1745_v48, %v1661_v6  ;;  %v4385_v26 = vadd.f32 %v1746_v0, %v1662_v23  ;;  %1971 = vrot.lane.b32.xlu0 %v3837_v51, %s3172_s9  ;;  %v1778_v8 = vpop.permute.xlu0 %1777  ;;  %v4434_v6 = vadd.s32 1, %v7576_v43  ;;  %v7589_v43 = vld [vmem:[#allocation8_spill] sm:$0xff] }
 0x326   : > { %7577 = vst [vmem:[#allocation171_spill] sm:$0xff] %v4434_v6  ;;  %vm7279_vm6 = vcmp.lt.s32.totalorder %v4434_v6, 16 }
 0x327   : > { %1961 = vrot.lane.b32.xlu1 %v3824_v14, %s3172_s9  ;;  %vm4481_vm11 = vmand %vm4130_vm15, %vm7279_vm6 }
 0x328   : > { %1963 = vrot.lane.b32.xlu2 %v3850_v54, %s3172_s9  ;;  %3071 = vset.pattern.permute.xlu1 %v7572_v59 }
 0x329   : > { %v1733_v31 = vpop.permute.xlu1 %1732  ;;  %3072 = vset.pattern.permute.xlu2 %v7572_v59  ;;  %v7574_v59 = vand.u32 15, %v4077_v35 }
 0x32a   : > { %v1782_v60 = vpop.permute.xlu2 %1781  ;;  %v1749_v29 = vmul.f32 %v1733_v31, %v1713_v57  ;;  %v1750_v27 = vmul.f32 %v1733_v31, %v1714_v28  ;;  %v666_v31 = vsel %vm4145_vm1, %v656_v44, 0.0  ;;  %v7582_v57 = vld [vmem:[#allocation161_spill] sm:$0xff]  ;;  %v7583_v28 = vmov 0 }
 0x32b   : > { %v1792_v62 = vsel %vm7300_vm4, %v1770_v24, %v1782_v60  ;;  %v1798_v45 = vsel %vm7300_vm4, %v1782_v60, %v1770_v24  ;;  %v4428_v24 = vadd.s32 1, %v7574_v59  ;;  %vm430_vm8 = vcmp.ge.s32.totalorder %v7582_v57, 0  ;;  %v7587_v60 = vld [vmem:[#allocation162_spill] sm:$0xff] }
 0x32c   : > { %v4412_v39 = vadd.f32 %v1749_v29, %v1665_v63  ;;  %v4414_v30 = vadd.f32 %v1750_v27, %v1666_v25  ;;  %1977 = vrot.lane.b32.xlu0 %v3892_v13, %s3172_s9  ;;  %v1784_v34 = vpop.permute.xlu0 %1783  ;;  %vm432_vm9 = vcmp.lt.s32.totalorder %v7582_v57, 16  ;;  %v7584_v28 = vsel %vm4481_vm11, 4294967295, %v7583_v28  ;;  %v7586_v63 = vld [vmem:[#allocation10_spill] sm:$0xff] }
 0x32d   : > { %v1793_v47 = vsel %vm7300_vm4, %v1772_v55, %v1784_v34  ;;  %v1799_v38 = vsel %vm7300_vm4, %v1784_v34, %v1772_v55  ;;  %7575 = vst [vmem:[#allocation170_spill] sm:$0xff] %v4428_v24  ;;  %vm7276_vm5 = vcmp.lt.s32.totalorder %v4428_v24, 16  ;;  %vm431_vm12 = vcmp.ge.s32.totalorder %v7587_v60, 0  ;;  %vm4508_vm6 = vmand %vm430_vm8, %vm432_vm9 }
 0x32e   : > { %vm4465_vm7 = vmand %vm4125_vm13, %vm7276_vm5  ;;  %7585 = vst [vmem:[#allocation161_spill] sm:$0xff] %v7584_v28  ;;  %vm433_vm5 = vcmp.lt.s32.totalorder %v7587_v60, 16  ;;  %v1806_v27 = vsel %vm4481_vm11, %v1792_v62, 0.0  ;;  %v650_v59 = vsel %vm7281_vm10, %v3521_v20, %v3531_v22  ;;  %v1808_v22 = vsel %vm4481_vm11, %v1793_v47, 0.0  ;;  %v7603_v60 = vld [vmem:[#allocation17_spill] sm:$0xff] }
 0x32f   : > { %1967 = vrot.lane.b32.xlu1 %v3880_v56, %s3172_s9  ;;  %v1805_v29 = vsel %vm4465_vm7, %v1798_v45, 0.0  ;;  %v1807_v20 = vsel %vm4465_vm7, %v1799_v38, 0.0  ;;  %vm4522_vm10 = vmand %vm431_vm12, %vm433_vm5  ;;  %v667_v47 = vsel %vm4155_vm2, %v650_v59, 0.0  ;;  %v7608_v59 = vld [vmem:[#allocation38_spill] sm:$0xff]  ;;  %vm7629_vm9 = vcmp.lt.s32.totalorder %v4077_v35, 16 }
 0x330   : > { %1969 = vrot.lane.b32.xlu2 %v3967_v17, %s3172_s9  ;;  %vm4550_vm5 = vmand %vm4508_vm6, %vm7291_vm14 }
 0x331   : > { %v4430_v33 = vpop.permute.xlu1 %1767  ;;  %vm4574_vm8 = vmand %vm4522_vm10, %vm7290_vm0  ;;  %vm7634_vm0 = vcmp.lt.s32.totalorder %v4077_v35, 17 }
 0x332   : > { %v1788_v23 = vpop.permute.xlu2 %1787  ;;  %vm7630_vm12 = vmmov %vm7629_vm9 }
 0x333   : > { %v4438_v55 = vsel %vm7300_vm4, %v1776_v3, %v1788_v23  ;;  %v4442_v48 = vsel %vm7300_vm4, %v1788_v23, %v1776_v3  ;;  %v613_v3 = vmul.f32 %v3373_v41, %v3397_v50  ;;  %v4487_v50 = vmul.f32 %v3373_v41, %v7586_v63  ;;  %v7588_v41 = vld [vmem:[#allocation15_spill] sm:$0xff]  ;;  %v7590_v63 = vld [vmem:[#allocation4_spill] sm:$0xff]  ;;  %vm7635_vm14 = vmmov %vm7634_vm0 }
 0x334   : > { %2008 = vperm.xlu0 %3069, %v3897_v19   ;;  %v1790_v0 = vpop.permute.xlu0 %1789  ;;  %v7578_v19 = vmov 0  ;;  %v4503_v23 = vmul.f32 %v7589_v43, %v7588_v41  ;;  %v702_v51 = vmul.f32 %v7590_v63, %v666_v31  ;;  %v7598_v41 = vld [vmem:[#allocation21_spill] sm:$0xff] }
 0x335   : > { %v4448_v32 = vsel %vm7300_vm4, %v1778_v8, %v1790_v0  ;;  %v4452_v37 = vsel %vm7300_vm4, %v1790_v0, %v1778_v8  ;;  %v7579_v19 = vsel %vm4465_vm7, 4294967295, %v7578_v19 }
 0x336   : > { %7580 = vst [vmem:[#allocation172_spill] sm:$0xff] %v7579_v19 }
 0x337   : > { %1973 = vrot.lane.b32.xlu1 %v3857_v12, %s3172_s9  ;;  %v4536_v12 = vmul.f32 %v7599_v52, %v7598_v41  ;;  %v7617_v41 = vld [vmem:[#allocation41_spill] sm:$0xff] }
 0x338   : > { %1975 = vrot.lane.b32.xlu2 %v3878_v18, %s3172_s9  ;;  %v7601_v18 = vld [vmem:[#allocation24_spill] sm:$0xff] }
 0x339   : > { %v4489_v25 = vpop.permute.xlu1 %1773  ;;  %7600 = vst [vmem:[#allocation8_spill] sm:$0xff] %v4536_v12  ;;  %v4540_v13 = vmul.f32 %v7599_v52, %v7601_v18  ;;  %v703_v12 = vmul.f32 %v7590_v63, %v667_v47  ;;  %v1812_v63 = vsel %vm4481_vm11, %v4438_v55, 0.0 }
 0x33a   : > { %v1821_v34 = vpop.permute.xlu2 %1820 }
 0x33b   : > { %v1841_v0 = vmul.f32 %v1821_v34, %v1805_v29  ;;  %v1842_v44 = vmul.f32 %v1821_v34, %v1806_v27  ;;  %7602 = vst [vmem:[#allocation4_spill] sm:$0xff] %v4540_v13 }
 0x33c   : > { %2028 = vperm.xlu0 %3069, %v3941_v11   ;;  %v1825_v62 = vpop.permute.xlu0 %1824 }
 0x33d   : > { %v4527_v29 = vadd.f32 %v1841_v0, %v4383_v9  ;;  %v4530_v11 = vadd.f32 %v1842_v44, %v4385_v26  ;;  %v1843_v27 = vmul.f32 %v1825_v62, %v1807_v20  ;;  %v1844_v38 = vmul.f32 %v1825_v62, %v1808_v22  ;;  %v7609_v44 = vld [vmem:[#allocation6_spill] sm:$0xff]  ;;  %v7610_v22 = vld [vmem:[#allocation35_spill] sm:$0xff] }
 0x33e   : > { %v4544_v9 = vmul.f32 %v7589_v43, %v7603_v60  ;;  %v7605_v26 = vmov 0  ;;  %v4556_v20 = vmul.f32 %v7609_v44, %v7608_v59  ;;  %v4560_v18 = vmul.f32 %v7609_v44, %v7610_v22  ;;  %v7618_v59 = vld [vmem:[#allocation37_spill] sm:$0xff]  ;;  %v7622_v22 = vld [vmem:[#allocation48_spill] sm:$0xff] }
 0x33f   : > { %7595 = vst [vmem:[#allocation10_spill] sm:$0xff] %v4527_v29  ;;  %v7606_v26 = vsel %vm4550_vm5, 4294967295, %v7605_v26  ;;  %v4563_v52 = vadd.f32 %v1843_v27, %v4330_v36  ;;  %v4566_v60 = vadd.f32 %v1844_v38, %v4332_v42  ;;  %1979 = vrot.lane.b32.xlu1 %v3921_v10, %s3172_s9  ;;  %v7614_v62 = vmov 0  ;;  %v7619_v27 = vld [vmem:[#allocation52_spill] sm:$0xff]  ;;  %v7620_v38 = vld [vmem:[#allocation3_spill] sm:$0xff] }
 0x340   : > { %7596 = vst [vmem:[#allocation15_spill] sm:$0xff] %v4530_v11  ;;  %v7615_v62 = vsel %vm4574_vm8, 4294967295, %v7614_v62  ;;  %v953_v36 = vsel %vm952_vm3, %v7618_v59, %v7617_v41  ;;  %v959_v42 = vsel %vm952_vm3, %v7617_v41, %v7618_v59  ;;  %v4588_v44 = vmul.f32 %v7620_v38, %v7619_v27  ;;  %1981 = vrot.lane.b32.xlu2 %v3992_v15, %s3172_s9  ;;  %v7639_v11 = vld [vmem:[#allocation20_spill] sm:$0xff] }
 0x341   : > { %7607 = vst [vmem:[#allocation21_spill] sm:$0xff] %v7606_v26  ;;  %v4592_v13 = vmul.f32 %v7620_v38, %v7622_v22  ;;  %v4605_v59 = vadd.f32 %v702_v51, %v613_v3  ;;  %v1780_v27 = vpop.permute.xlu1 %1779  ;;  %v1811_v38 = vsel %vm4465_vm7, %v4442_v48, 0.0  ;;  %v969_v3 = vsel %vm4550_vm5, %v959_v42, 0.0 }
 0x342   : > { %7611 = vst [vmem:[#allocation2_spill] sm:$0xff] %v4563_v52  ;;  %v7625_v52 = vld [vmem:[#allocation39_spill] sm:$0xff]  ;;  %v1833_v47 = vpop.permute.xlu2 %1832  ;;  %v4616_v22 = vsel %vm7300_vm4, %v4430_v33, %v1780_v27  ;;  %v4621_v51 = vsel %vm7300_vm4, %v1780_v27, %v4430_v33  ;;  %v970_v48 = vsel %vm4574_vm8, %v953_v36, 0.0  ;;  %v7631_v36 = vmov 6   ;;  %v7632_v27 = vld [vmem:[#allocation53_spill] sm:$0xff] }
 0x343   : > { %7612 = vst [vmem:[#allocation24_spill] sm:$0xff] %v4566_v60  ;;  %v7624_v60 = vld [vmem:[#allocation42_spill] sm:$0xff]  ;;  %v4664_v29 = vmul.f32 %v7639_v11, %v969_v3  ;;  %v7644_v3 = vld [vmem:[#allocation124_spill] sm:$0xff] }
 0x344   : > { %7616 = vst [vmem:[#allocation17_spill] sm:$0xff] %v7615_v62  ;;  %v852_v43 = vsel %vm7300_vm4, %v7625_v52, %v7624_v60  ;;  %v858_v41 = vsel %vm7300_vm4, %v7624_v60, %v7625_v52  ;;  %v1847_v52 = vmul.f32 %v1833_v47, %v1811_v38  ;;  %v1848_v60 = vmul.f32 %v1833_v47, %v1812_v63  ;;  %v7633_v38 = vld [vmem:[#allocation49_spill] sm:$0xff]  ;;  %v7906_v62 = vld [vmem:[#allocation128_spill] sm:$0xff] }
 0x345   : > { %7621 = vst [vmem:[#allocation38_spill] sm:$0xff] %v4588_v44  ;;  %v868_v55 = vsel %vm4465_vm7, %v858_v41, 0.0  ;;  %v869_v0 = vsel %vm4481_vm11, %v852_v43, 0.0  ;;  %v7627_v44 = vld [vmem:[#allocation43_spill] sm:$0xff]  ;;  %3073 = vset.pattern.permute.xlu0 %v7631_v36  ;;  %v655_v41 = vsel %vm7634_vm0, %v7633_v38, %v7632_v27  ;;  %v661_v43 = vsel %vm7635_vm14, %v7632_v27, %v7633_v38  ;;  %v7646_v38 = vld [vmem:[#allocation44_spill] sm:$0xff]  ;;  %vm7647_vm0 = vmmov %vm7629_vm9 }
 0x346   : > { %7623 = vst [vmem:[#allocation6_spill] sm:$0xff] %v4592_v13  ;;  %v7628_v13 = vld [vmem:[#allocation40_spill] sm:$0xff]  ;;  %v4653_v63 = vadd.f32 %v1847_v52, %v4367_v2  ;;  %v4656_v47 = vadd.f32 %v1848_v60, %v4369_v58  ;;  %vm7323_vm14 = vcmp.lt.s32.totalorder %v4077_v35, 127  ;;  %v4671_v2 = vadd.f32 %v703_v12, %v4487_v50  ;;  %v7642_v58 = vld [vmem:[#allocation22_spill] sm:$0xff]  ;;  %v7656_v27 = vld [vmem:[#allocation59_spill] sm:$0xff] }
 0x347   : > { %7626 = vst [vmem:[#allocation35_spill] sm:$0xff] %v4605_v59  ;;  %v4635_v33 = vsel %vm7629_vm9, %v7628_v13, %v7627_v44  ;;  %v4641_v42 = vsel %vm7630_vm12, %v7627_v44, %v7628_v13  ;;  %v3141_v13 = vld [vmem:[%s7086_s5 + $0x10] sm:$0xff]  ;;  %v4661_v44 = vpop.permute.xlu0 %986  ;;  %v4667_v59 = vmul.f32 %v7639_v11, %v970_v48  ;;  %v4674_v52 = vmul.f32 %v7642_v58, %v868_v55  ;;  %v7645_v48 = vld [vmem:[#allocation47_spill] sm:$0xff]  ;;  %vm7649_vm9 = vmmov %vm7647_vm0 }
 0x348   : > { %7636 = vst [vmem:[#allocation41_spill] sm:$0xff] %v4653_v63  ;;  %1192 = vperm.xlu0 %3073, %v3141_v13   ;;  %v4677_v60 = vmul.f32 %v7642_v58, %v869_v0  ;;  %2012 = vperm.xlu1 %3071, %v7644_v3   ;;  %v4690_v12 = vsel %vm7647_vm0, %v7646_v38, %v7645_v48  ;;  %v676_v0 = vsel %vm4145_vm1, %v661_v43, 0.0  ;;  %v677_v55 = vsel %vm4155_vm2, %v655_v41, 0.0  ;;  %v7651_v13 = vld [vmem:[#allocation50_spill] sm:$0xff] }
 0x349   : > { %7637 = vst [vmem:[#allocation37_spill] sm:$0xff] %v4656_v47  ;;  %v4696_v50 = vsel %vm7649_vm9, %v7645_v48, %v7646_v38  ;;  %2016 = vperm.xlu2 %3072, %v3835_v5   ;;  %v7652_v58 = vld [vmem:[#allocation46_spill] sm:$0xff]  ;;  %v7654_v38 = vld [vmem:[#allocation57_spill] sm:$0xff]  ;;  %v1786_v41 = vpop.permute.xlu1 %1785  ;;  %vm7658_vm12 = vcmp.lt.s32.totalorder %v4428_v24, 16  ;;  %v7662_v24 = vld [vmem:[#allocation55_spill] sm:$0xff] }
 0x34a   : > { %7638 = vst [vmem:[#allocation52_spill] sm:$0xff] %v4661_v44  ;;  %v4707_v3 = vsel %vm7323_vm14, %v7652_v58, %v7651_v13  ;;  %v4713_v48 = vsel %vm7323_vm14, %v7651_v13, %v7652_v58  ;;  %v7655_v11 = vld [vmem:[#allocation54_spill] sm:$0xff]  ;;  %v7657_v44 = vld [vmem:[#allocation56_spill] sm:$0xff]  ;;  %vm4735_vm0 = vmand %vm4508_vm6, %vm7658_vm12  ;;  %v4749_v63 = vsel %vm7300_vm4, %v1786_v41, %v4489_v25  ;;  %vm7666_vm6 = vcmp.lt.s32.totalorder %v4434_v6, 16 }
 0x34b   : > { %7640 = vst [vmem:[#allocation3_spill] sm:$0xff] %v4664_v29  ;;  %v857_v43 = vsel %vm7300_vm4, %v7655_v11, %v7654_v38  ;;  %v863_v5 = vsel %vm7300_vm4, %v7654_v38, %v7655_v11  ;;  %v958_v47 = vsel %vm952_vm3, %v7657_v44, %v7656_v27  ;;  %v964_v13 = vsel %vm952_vm3, %v7656_v27, %v7657_v44  ;;  %v4739_v11 = vpop.permute.xlu2 %1863  ;;  %v7661_v44 = vld [vmem:[#allocation7_spill] sm:$0xff]  ;;  %vm4769_vm9 = vmand %vm4522_vm10, %vm7666_vm6  ;;  %v7670_v6 = vld [vmem:[#allocation61_spill] sm:$0xff] }
 0x34c   : > { %7641 = vst [vmem:[#allocation48_spill] sm:$0xff] %v4667_v59  ;;  %v4744_v38 = vsel %vm7300_vm4, %v4489_v25, %v1786_v41  ;;  %v712_v27 = vmul.f32 %v7661_v44, %v676_v0  ;;  %v713_v45 = vmul.f32 %v7661_v44, %v677_v55  ;;  %v7663_v59 = vld [vmem:[#allocation51_spill] sm:$0xff]  ;;  %v878_v0 = vsel %vm4465_vm7, %v863_v5, 0.0  ;;  %v7669_v44 = vld [vmem:[#allocation58_spill] sm:$0xff] }
 0x34d   : > { %7643 = vst [vmem:[#allocation42_spill] sm:$0xff] %v4677_v60  ;;  %v4757_v29 = vsel %vm7323_vm14, %v7663_v59, %v7662_v24  ;;  %v4763_v60 = vsel %vm7323_vm14, %v7662_v24, %v7663_v59  ;;  %v879_v55 = vsel %vm4481_vm11, %v857_v43, 0.0  ;;  %v979_v31 = vsel %vm4550_vm5, %v964_v13, 0.0 }
 0x34e   : > { %7648 = vst [vmem:[#allocation39_spill] sm:$0xff] %v4690_v12  ;;  %v980_v59 = vsel %vm4574_vm8, %v958_v47, 0.0  ;;  %v859_v5 = vsel %vm7300_vm4, %v7670_v6, %v7669_v44  ;;  %v853_v13 = vsel %vm7300_vm4, %v7669_v44, %v7670_v6  ;;  %v7671_v12 = vld [vmem:[#allocation27_spill] sm:$0xff]  ;;  %v4818_v6 = vadd.f32 %v712_v27, %v4503_v23  ;;  %v7674_v47 = vld [vmem:[#allocation26_spill] sm:$0xff] }
 0x34f   : > { %7650 = vst [vmem:[#allocation43_spill] sm:$0xff] %v4696_v50  ;;  %v4793_v43 = vpop.permute.xlu0 %1865  ;;  %v4812_v50 = vmul.f32 %v7671_v12, %v878_v0  ;;  %v4815_v24 = vmul.f32 %v7671_v12, %v879_v55  ;;  %v4821_v44 = vadd.f32 %v713_v45, %v4544_v9  ;;  %v4825_v41 = vmul.f32 %v7674_v47, %v979_v31  ;;  %v7678_v12 = vld [vmem:[#allocation65_spill] sm:$0xff]  ;;  %v7681_v31 = vld [vmem:[#allocation70_spill] sm:$0xff] }
 0x350   : > { %7653 = vst [vmem:[#allocation40_spill] sm:$0xff] %v4713_v48  ;;  %2059 = vrot.lane.b32.xlu0 %v3850_v54, %s3171_s30  ;;  %2020 = vperm.xlu1 %3071, %v3919_v21   ;;  %v870_v0 = vsel %vm4465_vm7, %v859_v5, 0.0  ;;  %v7677_v54 = vld [vmem:[#allocation62_spill] sm:$0xff]  ;;  %vm7679_vm10 = vcmp.lt.s32.totalorder %v4077_v35, 16  ;;  %v871_v9 = vsel %vm4481_vm11, %v853_v13, 0.0  ;;  %v1803_v27 = vsel %vm4465_vm7, %v4621_v51, 0.0 }
 0x351   : > { %7664 = vst [vmem:[#allocation53_spill] sm:$0xff] %v4757_v29  ;;  %v4828_v29 = vmul.f32 %v7674_v47, %v980_v59  ;;  %v758_v23 = vsel %vm7679_vm10, %v7678_v12, %v7677_v54  ;;  %2024 = vperm.xlu2 %3072, %v3926_v46   ;;  %vm7680_vm12 = vmmov %vm7679_vm10  ;;  %v1804_v45 = vsel %vm4481_vm11, %v4616_v22, 0.0  ;;  %v1817_v55 = vpop.permute.xlu1 %1816  ;;  %v7682_v59 = vld [vmem:[#allocation67_spill] sm:$0xff] }
 0x352   : > { %7665 = vst [vmem:[#allocation49_spill] sm:$0xff] %v4763_v60  ;;  %v752_v21 = vsel %vm7680_vm12, %v7677_v54, %v7678_v12  ;;  %vm7683_vm6 = vmmov %vm7679_vm10  ;;  %v1839_v13 = vmul.f32 %v1817_v55, %v1803_v27  ;;  %v1840_v47 = vmul.f32 %v1817_v55, %v1804_v45  ;;  %v7685_v51 = vld [vmem:[#allocation63_spill] sm:$0xff]  ;;  %v7686_v12 = vld [vmem:[#allocation60_spill] sm:$0xff]  ;;  %vm7687_vm12 = vcmp.lt.s32.totalorder %v4077_v35, 17 }
 0x353   : > { %7672 = vst [vmem:[#allocation20_spill] sm:$0xff] %v4812_v50  ;;  %v753_v46 = vsel %vm7683_vm6, %v7682_v59, %v7681_v31  ;;  %vm7684_vm10 = vmmov %vm7683_vm6  ;;  %v4857_v54 = vpop.permute.xlu2 %1869  ;;  %v4863_v22 = vsel %vm7687_vm12, %v7686_v12, %v7685_v51  ;;  %v770_v45 = vsel %vm4130_vm15, %v752_v21, 0.0  ;;  %v7693_v55 = vld [vmem:[#allocation66_spill] sm:$0xff] }
 0x354   : > { %7673 = vst [vmem:[#allocation22_spill] sm:$0xff] %v4815_v24  ;;  %v759_v5 = vsel %vm7684_vm10, %v7681_v31, %v7682_v59  ;;  %vm7689_vm4 = vmmov %vm7687_vm12  ;;  %v7691_v31 = vld [vmem:[#allocation71_spill] sm:$0xff]  ;;  %v7692_v59 = vld [vmem:[#allocation68_spill] sm:$0xff]  ;;  %v772_v50 = vsel %vm4130_vm15, %v753_v46, 0.0 }
 0x355   : > { %7675 = vst [vmem:[#allocation124_spill] sm:$0xff] %v4825_v41  ;;  %v4869_v60 = vsel %vm7689_vm4, %v7685_v51, %v7686_v12  ;;  %v1055_v27 = vsel %vm7323_vm14, %v7692_v59, %v7691_v31  ;;  %v7694_v41 = vld [vmem:[#allocation69_spill] sm:$0xff]  ;;  %v4886_v51 = vadd.f32 %v1839_v13, %v4301_v4  ;;  %v4889_v12 = vadd.f32 %v1840_v47, %v4303_v16  ;;  %v7697_v13 = vld [vmem:[#allocation14_spill] sm:$0xff]  ;;  %vm7715_vm6 = vmmov %vm7687_vm12 }
 0x356   : > { %7676 = vst [vmem:[#allocation47_spill] sm:$0xff] %v4828_v29  ;;  %v769_v29 = vsel %vm4125_vm13, %v758_v23, 0.0  ;;  %v4883_v24 = vsel %vm952_vm3, %v7694_v41, %v7693_v55  ;;  %v4895_v23 = vsel %vm952_vm3, %v7693_v55, %v7694_v41  ;;  %v771_v21 = vsel %vm4125_vm13, %v759_v5, 0.0  ;;  %v7700_v55 = vld [vmem:[#allocation16_spill] sm:$0xff]  ;;  %vm7716_vm10 = vmmov %vm7715_vm6 }
 0x357   : > { %7688 = vst [vmem:[#allocation44_spill] sm:$0xff] %v4863_v22  ;;  %v1061_v4 = vsel %vm7323_vm14, %v7691_v31, %v7692_v59  ;;  %v4907_v16 = vpop.permute.xlu0 %1871  ;;  %v4910_v47 = vmul.f32 %v7697_v13, %v870_v0  ;;  %v4913_v41 = vmul.f32 %v7697_v13, %v871_v9  ;;  %v1072_v5 = vsel %vm4735_vm0, %v1055_v27, 0.0  ;;  %v7703_v27 = vld [vmem:[#allocation9_spill] sm:$0xff]  ;;  %v7707_v0 = vld [vmem:[#allocation34_spill] sm:$0xff] }
 0x358   : > { %7690 = vst [vmem:[#allocation50_spill] sm:$0xff] %v4869_v60  ;;  %2065 = vrot.lane.b32.xlu0 %v3967_v17, %s3171_s30  ;;  %v4921_v31 = vmul.f32 %v7700_v55, %v769_v29  ;;  %v4924_v59 = vmul.f32 %v7700_v55, %v770_v45  ;;  %2055 = vrot.lane.b32.xlu1 %v3803_v61, %s3171_s30  ;;  %v1073_v45 = vsel %vm4769_vm9, %v1061_v4, 0.0  ;;  %v7706_v9 = vmov 8   ;;  %v7734_v61 = vld [vmem:[#allocation85_spill] sm:$0xff] }
 0x359   : > { %7695 = vst [vmem:[#allocation46_spill] sm:$0xff] %v4883_v24  ;;  %v4935_v13 = vmul.f32 %v7703_v27, %v771_v21  ;;  %v4938_v29 = vmul.f32 %v7703_v27, %v772_v50  ;;  %2057 = vrot.lane.b32.xlu2 %v3824_v14, %s3171_s30  ;;  %3076 = vset.pattern.permute.xlu1 %v7706_v9  ;;  %v7709_v21 = vld [vmem:[#allocation72_spill] sm:$0xff]  ;;  %v7710_v24 = vld [vmem:[#allocation74_spill] sm:$0xff]  ;;  %vm7711_vm4 = vcmp.lt.s32.totalorder %v4077_v35, 15  ;;  %v1809_v4 = vsel %vm4465_vm7, %v4749_v63, 0.0  ;;  %v1829_v55 = vpop.permute.xlu1 %1828  ;;  %v7733_v9 = vld [vmem:[#allocation83_spill] sm:$0xff] }
 0x35a   : > { %7696 = vst [vmem:[#allocation57_spill] sm:$0xff] %v4895_v23  ;;  %v4949_v46 = vmul.f32 %v7707_v0, %v1072_v5  ;;  %v4955_v50 = vsel %vm7711_vm4, %v7710_v24, %v7709_v21  ;;  %v1810_v27 = vsel %vm4481_vm11, %v4744_v38, 0.0  ;;  %3074 = vset.pattern.permute.xlu2 %v7631_v36  ;;  %v7713_v23 = vld [vmem:[#allocation82_spill] sm:$0xff]  ;;  %v7714_v5 = vld [vmem:[#allocation79_spill] sm:$0xff]  ;;  %vm7718_vm12 = vmmov %vm7711_vm4 }
 0x35b   : > { %7698 = vst [vmem:[#allocation54_spill] sm:$0xff] %v4910_v47  ;;  %v1876_v47 = vpop.permute.xlu2 %1875  ;;  %v1846_v63 = vmul.f32 %v1829_v55, %v1810_v27  ;;  %v4979_v38 = vsel %vm7718_vm12, %v7709_v21, %v7710_v24  ;;  %v7722_v27 = vld [vmem:[#allocation75_spill] sm:$0xff]  ;;  %vm7724_vm4 = vmmov %vm7715_vm6 }
 0x35c   : > { %7699 = vst [vmem:[#allocation59_spill] sm:$0xff] %v4913_v41  ;;  %v659_v41 = vsel %vm7716_vm10, %v7713_v23, %v7714_v5  ;;  %v4984_v22 = vsel %vm952_vm3, %v4739_v11, %v1876_v47  ;;  %vm7730_vm12 = vmmov %vm7724_vm4 }
 0x35d   : > { %7701 = vst [vmem:[#allocation56_spill] sm:$0xff] %v4921_v31  ;;  %v4973_v31 = vmul.f32 %v7707_v0, %v1073_v45  ;;  %v5003_v21 = vadd.f32 %v1846_v63, %v4414_v30  ;;  %v7727_v63 = vld [vmem:[#allocation81_spill] sm:$0xff] }
 0x35e   : > { %7702 = vst [vmem:[#allocation7_spill] sm:$0xff] %v4924_v59  ;;  %v1845_v59 = vmul.f32 %v1829_v55, %v1809_v4  ;;  %v7720_v55 = vld [vmem:[#allocation76_spill] sm:$0xff]  ;;  %v7721_v4 = vld [vmem:[#allocation73_spill] sm:$0xff] }
 0x35f   : > { %7704 = vst [vmem:[#allocation55_spill] sm:$0xff] %v4935_v13  ;;  %v1056_v0 = vsel %vm7323_vm14, %v7721_v4, %v7720_v55  ;;  %v1062_v24 = vsel %vm7323_vm14, %v7720_v55, %v7721_v4  ;;  %v1878_v30 = vpop.permute.xlu0 %1877 }
 0x360   : > { %7705 = vst [vmem:[#allocation51_spill] sm:$0xff] %v4938_v29  ;;  %v5000_v45 = vadd.f32 %v1845_v59, %v4412_v39  ;;  %v5019_v39 = vld [vmem:[%s7087_s6 + $0x28] sm:$0x3]  ;;  %v7726_v59 = vld [vmem:[#allocation84_spill] sm:$0xff]  ;;  %v5033_v4 = vsel %vm952_vm3, %v4793_v43, %v1878_v30  ;;  %v5038_v55 = vsel %vm952_vm3, %v1878_v30, %v4793_v43  ;;  %v1074_v60 = vsel %vm4735_vm0, %v1056_v0, 0.0  ;;  %2061 = vrot.lane.b32.xlu1 %v3866_v53, %s3171_s30  ;;  %v7731_v30 = vld [vmem:[#allocation5_spill] sm:$0xff] }
 0x361   : > { %7708 = vst [vmem:[#allocation58_spill] sm:$0xff] %v4949_v46  ;;  %v653_v46 = vsel %vm7715_vm6, %v7714_v5, %v7713_v23  ;;  %v4989_v23 = vsel %vm952_vm3, %v1876_v47, %v4739_v11  ;;  %v7723_v5 = vld [vmem:[#allocation78_spill] sm:$0xff]  ;;  %v672_v47 = vsel %vm4145_vm1, %v659_v41, 0.0  ;;  %2124 = vperm.xlu0 %3073, %v5019_v39   ;;  %vm7728_vm6 = vcmp.lt.s32.totalorder %v4077_v35, 16  ;;  %2063 = vrot.lane.b32.xlu2 %v3880_v56, %s3171_s30 }
 0x362   : > { %7712 = vst [vmem:[#allocation61_spill] sm:$0xff] %v4955_v50  ;;  %v658_v11 = vsel %vm7724_vm4, %v7723_v5, %v7722_v27  ;;  %v754_v41 = vsel %vm7728_vm6, %v7727_v63, %v7726_v59  ;;  %vm7729_vm10 = vmmov %vm7728_vm6  ;;  %v1075_v29 = vsel %vm4769_vm9, %v1062_v24, 0.0  ;;  %v708_v0 = vmul.f32 %v7731_v30, %v672_v47  ;;  %v7732_v24 = vld [vmem:[#allocation80_spill] sm:$0xff] }
 0x363   : > { %7717 = vst [vmem:[#allocation27_spill] sm:$0xff] %v4973_v31  ;;  %v673_v31 = vsel %vm4155_vm2, %v653_v46, 0.0  ;;  %v760_v46 = vsel %vm7729_vm10, %v7726_v59, %v7727_v63  ;;  %v652_v59 = vsel %vm7730_vm12, %v7722_v27, %v7723_v5  ;;  %v670_v43 = vsel %vm4145_vm1, %v658_v11, 0.0  ;;  %v1837_v63 = vpop.permute.xlu1 %1836 }
 0x364   : > { %7719 = vst [vmem:[#allocation26_spill] sm:$0xff] %v4979_v38  ;;  %v709_v13 = vmul.f32 %v7731_v30, %v673_v31  ;;  %v961_v50 = vsel %vm952_vm3, %v7733_v9, %v7732_v24  ;;  %v773_v27 = vsel %vm4125_vm13, %v760_v46, 0.0  ;;  %v774_v5 = vsel %vm4130_vm15, %v754_v41, 0.0  ;;  %v1882_v30 = vpop.permute.xlu2 %1881 }
 0x365   : > { %7725 = vst [vmem:[#allocation62_spill] sm:$0xff] %v5019_v39  ;;  %v1813_v11 = vsel %vm4465_vm7, %v4452_v37, 0.0  ;;  %v1814_v31 = vsel %vm4481_vm11, %v4448_v32, 0.0  ;;  %v671_v47 = vsel %vm4155_vm2, %v652_v59, 0.0  ;;  %v955_v46 = vsel %vm952_vm3, %v7732_v24, %v7733_v9  ;;  %v7735_v37 = vld [vmem:[#allocation88_spill] sm:$0xff]  ;;  %v7736_v59 = vld [vmem:[#allocation19_spill] sm:$0xff] }
 0x366   : > { %v1849_v38 = vmul.f32 %v1837_v63, %v1813_v11  ;;  %v1850_v41 = vmul.f32 %v1837_v63, %v1814_v31  ;;  %v973_v14 = vsel %vm4550_vm5, %v961_v50, 0.0  ;;  %v962_v53 = vsel %vm952_vm3, %v7735_v37, %v7734_v61  ;;  %v7737_v31 = vld [vmem:[#allocation28_spill] sm:$0xff] }
 0x367   : > { %v5088_v32 = vsel %vm952_vm3, %v4857_v54, %v1882_v30  ;;  %v5093_v9 = vsel %vm952_vm3, %v1882_v30, %v4857_v54  ;;  %v809_v63 = vmul.f32 %v7736_v59, %v773_v27  ;;  %v810_v24 = vmul.f32 %v7736_v59, %v774_v5  ;;  %v1884_v27 = vpop.permute.xlu0 %1883  ;;  %v7747_v30 = vld [vmem:[#allocation93_spill] sm:$0xff] }
 0x368   : > { %v5098_v50 = vadd.f32 %v1849_v38, %v4334_v49  ;;  %v5101_v11 = vadd.f32 %v1850_v41, %v4336_v7  ;;  %v5104_v36 = vmul.f32 %v7737_v31, %v1074_v60  ;;  %v720_v39 = vadd.f32 %v708_v0, %v4560_v18  ;;  %2077 = vrot.lane.b32.xlu1 %v3992_v15, %s3171_s30  ;;  %v7748_v41 = vld [vmem:[#allocation96_spill] sm:$0xff] }
 0x369   : > { %v721_v48 = vadd.f32 %v709_v13, %v4556_v20  ;;  %v974_v54 = vsel %vm4574_vm8, %v955_v46, 0.0  ;;  %2159 = vrot.lane.b32.xlu0 %v3880_v56, %s3175_s11  ;;  %v956_v49 = vsel %vm952_vm3, %v7734_v61, %v7735_v37  ;;  %v975_v7 = vsel %vm4550_vm5, %v962_v53, 0.0  ;;  %v7740_v13 = vld [vmem:[#allocation11_spill] sm:$0xff]  ;;  %v7743_v53 = vld [vmem:[#allocation29_spill] sm:$0xff]  ;;  %2075 = vrot.lane.b32.xlu2 %v3921_v10, %s3171_s30  ;;  %v7749_v37 = vld [vmem:[#allocation162_spill] sm:$0xff] }
 0x36a   : > { %7738 = vst [vmem:[#allocation65_spill] sm:$0xff] %v5104_v36  ;;  %v5121_v18 = vsel %vm952_vm3, %v4907_v16, %v1884_v27  ;;  %v5126_v20 = vsel %vm952_vm3, %v1884_v27, %v4907_v16  ;;  %v5129_v60 = vmul.f32 %v7737_v31, %v1075_v29  ;;  %v5132_v38 = vmul.f32 %v7740_v13, %v670_v43  ;;  %v7746_v43 = vld [vmem:[#allocation23_spill] sm:$0xff] }
 0x36b   : > { %v5135_v61 = vmul.f32 %v7740_v13, %v671_v47  ;;  %v5138_v0 = vmul.f32 %v7743_v53, %v973_v14  ;;  %v5143_v5 = vmul.f32 %v7743_v53, %v974_v54  ;;  %v5145_v16 = vadd.f32 %v809_v63, %v720_v39  ;;  %v5166_v59 = vpop.permute.xlu1 %1867  ;;  %v7751_v63 = vld [vmem:[#allocation167_spill] sm:$0xff]  ;;  %v7753_v13 = vld [vmem:[#allocation89_spill] sm:$0xff]  ;;  %v7754_v53 = vld [vmem:[#allocation86_spill] sm:$0xff] }
 0x36c   : > { %7739 = vst [vmem:[#allocation70_spill] sm:$0xff] %v5129_v60  ;;  %v5147_v46 = vadd.f32 %v810_v24, %v721_v48  ;;  %v5150_v29 = vadd.s32 1, %v7582_v57  ;;  %v976_v14 = vsel %vm4574_vm8, %v956_v49, 0.0  ;;  %v5157_v47 = vmul.f32 %v7746_v43, %v975_v7  ;;  %v1913_v7 = vpop.permute.xlu2 %1912  ;;  %v7759_v60 = vld [vmem:[#allocation92_spill] sm:$0xff] }
 0x36d   : > { %7741 = vst [vmem:[#allocation67_spill] sm:$0xff] %v5132_v38  ;;  %v660_v39 = vsel %vm7724_vm4, %v7748_v41, %v7747_v30  ;;  %v5164_v48 = vadd.s32 1, %v7749_v37  ;;  %v7750_v57 = vsel %vm4125_vm13, %v4641_v42, 0.0  ;;  %v7752_v31 = vsel %vm4130_vm15, %v4635_v33, 0.0 }
 0x36e   : > { %7742 = vst [vmem:[#allocation63_spill] sm:$0xff] %v5135_v61  ;;  %v803_v24 = vmul.f32 %v7751_v63, %v7750_v57  ;;  %v804_v54 = vmul.f32 %v7751_v63, %v7752_v31  ;;  %v1899_v27 = vsel %vm4550_vm5, %v4989_v23, 0.0  ;;  %v1900_v49 = vsel %vm4574_vm8, %v4984_v22, 0.0  ;;  %v7757_v63 = vld [vmem:[#allocation90_spill] sm:$0xff]  ;;  %v7758_v23 = vld [vmem:[#allocation87_spill] sm:$0xff] }
 0x36f   : > { %7744 = vst [vmem:[#allocation60_spill] sm:$0xff] %v5138_v0  ;;  %vm7755_vm6 = vcmp.lt.s32.totalorder %v4077_v35, 15  ;;  %v1935_v37 = vmul.f32 %v1913_v7, %v1899_v27  ;;  %v1936_v57 = vmul.f32 %v1913_v7, %v1900_v49  ;;  %v5198_v31 = vsel %vm7323_vm14, %v7758_v23, %v7757_v63  ;;  %v7776_v0 = vld [vmem:[#allocation43_spill] sm:$0xff] }
 0x370   : > { %7745 = vst [vmem:[#allocation71_spill] sm:$0xff] %v5143_v5  ;;  %v5188_v42 = vsel %vm7755_vm6, %v7754_v53, %v7753_v13  ;;  %vm7756_vm10 = vmmov %vm7755_vm6  ;;  %v5204_v22 = vsel %vm7323_vm14, %v7757_v63, %v7758_v23  ;;  %v7760_v5 = vld [vmem:[#allocation95_spill] sm:$0xff]  ;;  %vm7761_vm12 = vcmp.lt.s32.totalorder %v4077_v35, 16  ;;  %v674_v27 = vsel %vm4145_vm1, %v660_v39, 0.0  ;;  %v1917_v63 = vpop.permute.xlu0 %1916  ;;  %2161 = vrot.lane.b32.xlu1 %v3967_v17, %s3175_s11 }
 0x371   : > { %v861_v33 = vsel %vm7756_vm10, %v7753_v13, %v7754_v53  ;;  %v761_v36 = vsel %vm7761_vm12, %v7760_v5, %v7759_v60  ;;  %v5213_v49 = vadd.f32 %v1935_v37, %v4886_v51  ;;  %v5216_v7 = vadd.f32 %v1936_v57, %v4889_v12  ;;  %2257 = vrot.lane.b32.xlu0 %v3967_v17, %s3176_s12  ;;  %v7763_v23 = vld [vmem:[#allocation35_spill] sm:$0xff]  ;;  %vm7771_vm4 = vmmov %vm7755_vm6 }
 0x372   : > { %v1901_v13 = vsel %vm4550_vm5, %v5038_v55, 0.0  ;;  %v1902_v53 = vsel %vm4574_vm8, %v5033_v4, 0.0  ;;  %v815_v39 = vadd.f32 %v803_v24, %v7763_v23  ;;  %v816_v51 = vadd.f32 %v804_v54, %v4671_v2  ;;  %v7765_v24 = vld [vmem:[#allocation10_spill] sm:$0xff]  ;;  %2173 = vrot.lane.b32.xlu2 %v3992_v15, %s3175_s11  ;;  %v7773_v23 = vld [vmem:[#allocation100_spill] sm:$0xff] }
 0x373   : > { %7762 = vst [vmem:[#allocation68_spill] sm:$0xff] %v5216_v7  ;;  %v1937_v37 = vmul.f32 %v1917_v63, %v1901_v13  ;;  %v1938_v8 = vmul.f32 %v1917_v63, %v1902_v53  ;;  %v5229_v12 = vmul.f32 %v7746_v43, %v976_v14  ;;  %v874_v57 = vsel %vm4465_vm7, %v861_v33, 0.0  ;;  %v7764_v14 = vld [vmem:[#allocation13_spill] sm:$0xff]  ;;  %v7767_v33 = vld [vmem:[#allocation15_spill] sm:$0xff]  ;;  %v7770_v53 = vld [vmem:[#allocation94_spill] sm:$0xff] }
 0x374   : > { %v875_v55 = vsel %vm4481_vm11, %v5188_v42, 0.0  ;;  %v710_v43 = vmul.f32 %v7764_v14, %v674_v27  ;;  %v7769_v42 = vld [vmem:[#allocation91_spill] sm:$0xff]  ;;  %v775_v63 = vsel %vm4125_vm13, %v761_v36, 0.0  ;;  %vm7772_vm6 = vcmp.lt.s32.totalorder %v4077_v35, 17  ;;  %v7775_v2 = vld [vmem:[#allocation42_spill] sm:$0xff] }
 0x375   : > { %v5246_v54 = vadd.f32 %v1937_v37, %v7765_v24  ;;  %v5249_v13 = vadd.f32 %v1938_v8, %v7767_v33  ;;  %v862_v17 = vsel %vm7771_vm4, %v7770_v53, %v7769_v42  ;;  %v654_v27 = vsel %vm7772_vm6, %v7747_v30, %v7748_v41  ;;  %v7774_v37 = vld [vmem:[#allocation104_spill] sm:$0xff]  ;;  %v5269_v24 = vpop.permute.xlu1 %1873  ;;  %v1925_v41 = vpop.permute.xlu2 %1924 }
 0x376   : > { %v963_v8 = vsel %vm952_vm3, %v7774_v37, %v7773_v23  ;;  %vm438_vm10 = vcmp.ge.s32.totalorder %v5150_v29, 0  ;;  %vm440_vm12 = vcmp.lt.s32.totalorder %v5150_v29, 16  ;;  %v916_v33 = vadd.f32 %v4674_v52, %v815_v39  ;;  %v7779_v52 = vld [vmem:[#allocation39_spill] sm:$0xff]  ;;  %v5398_v29 = vld [vmem:[%s7087_s6 + $0x10] sm:$0xff] }
 0x377   : > { %7766 = vst [vmem:[#allocation66_spill] sm:$0xff] %v5246_v54  ;;  %v917_v36 = vadd.f32 %v7775_v2, %v816_v51  ;;  %v1905_v4 = vsel %vm4550_vm5, %v5093_v9, 0.0  ;;  %v1906_v30 = vsel %vm4574_vm8, %v5088_v32, 0.0  ;;  %v7778_v54 = vld [vmem:[#allocation168_spill] sm:$0xff]  ;;  %v7780_v39 = vsel %vm4130_vm15, %v7779_v52, 0.0  ;;  %v7781_v9 = vld [vmem:[#allocation25_spill] sm:$0xff] }
 0x378   : > { %7768 = vst [vmem:[#allocation69_spill] sm:$0xff] %v5249_v13  ;;  %v7777_v13 = vsel %vm4125_vm13, %v7776_v0, 0.0  ;;  %v814_v51 = vmul.f32 %v7778_v54, %v7780_v39  ;;  %v1941_v2 = vmul.f32 %v1925_v41, %v1905_v4  ;;  %v1942_v38 = vmul.f32 %v1925_v41, %v1906_v30  ;;  %v7782_v0 = vld [vmem:[#allocation6_spill] sm:$0xff]  ;;  %v7789_v30 = vld [vmem:[#allocation48_spill] sm:$0xff]  ;;  %v1084_v41 = vpop.permute.xlu0 %1083 }
 0x379   : > { %v813_v61 = vmul.f32 %v7778_v54, %v7777_v13  ;;  %v910_v7 = vmul.f32 %v7781_v9, %v874_v57  ;;  %v856_v32 = vsel %vm7771_vm4, %v7769_v42, %v7770_v53  ;;  %v876_v1 = vsel %vm4465_vm7, %v862_v17, 0.0  ;;  %v7787_v53 = vld [vmem:[#allocation12_spill] sm:$0xff] }
 0x37a   : > { %v722_v13 = vadd.f32 %v710_v43, %v7782_v0  ;;  %vm7327_vm13 = vcmp.lt.s32.totalorder %v4077_v35, 113  ;;  %vm7783_vm6 = vcmp.lt.s32.totalorder %v4077_v35, 16  ;;  %v675_v57 = vsel %vm4155_vm2, %v654_v27, 0.0  ;;  %v5313_v43 = vld [vmem:[%s7087_s6 + $0x18] sm:$0xff] }
 0x37b   : > { %v755_v4 = vsel %vm7783_vm6, %v7759_v60, %v7760_v5  ;;  %v5305_v54 = vadd.f32 %v1941_v2, %v5000_v45  ;;  %v5308_v42 = vadd.f32 %v1942_v38, %v5003_v21  ;;  %7786 = vst [vmem:[#allocation9_spill] sm:$0xff] %v5313_v43  ;;  %2116 = vperm.xlu0 %3073, %v5313_v43   ;;  %v977_v60 = vsel %vm4550_vm5, %v963_v8, 0.0  ;;  %v7788_v5 = vld [vmem:[#allocation3_spill] sm:$0xff] }
 0x37c   : > { %v811_v17 = vmul.f32 %v7787_v53, %v775_v63  ;;  %v1017_v27 = vadd.f32 %v7788_v5, %v916_v33  ;;  %v1018_v45 = vadd.f32 %v7789_v30, %v917_v36  ;;  %v825_v21 = vadd.f32 %v813_v61, %v4818_v6  ;;  %v7791_v63 = vld [vmem:[#allocation40_spill] sm:$0xff]  ;;  %v7793_v8 = vld [vmem:[#allocation123_spill] sm:$0xff]  ;;  %v7794_v36 = vld [vmem:[#allocation18_spill] sm:$0xff] }
 0x37d   : > { %7784 = vst [vmem:[#allocation14_spill] sm:$0xff] %v5305_v54  ;;  %v826_v38 = vadd.f32 %v814_v51, %v4821_v44  ;;  %v7790_v52 = vsel %vm4735_vm0, %v4707_v3, 0.0  ;;  %v7792_v2 = vsel %vm4769_vm9, %v7791_v63, 0.0  ;;  %2073 = vrot.lane.b32.xlu1 %v7793_v8, %s3171_s30  ;;  %v5334_v33 = vmul.f32 %v7781_v9, %v875_v55  ;;  %v5342_v3 = vld [vmem:[%s7087_s6 + $0x20] sm:$0xff]  ;;  %v1880_v9 = vpop.permute.xlu1 %1879 }
 0x37e   : > { %7785 = vst [vmem:[#allocation16_spill] sm:$0xff] %v5308_v42  ;;  %v1106_v39 = vmul.f32 %v1084_v41, %v7790_v52  ;;  %v1107_v0 = vmul.f32 %v1084_v41, %v7792_v2  ;;  %v877_v6 = vsel %vm4481_vm11, %v856_v32, 0.0  ;;  %v711_v44 = vmul.f32 %v7764_v14, %v675_v57  ;;  %2120 = vperm.xlu2 %3074, %v5342_v3   ;;  %v7797_v32 = vld [vmem:[#allocation103_spill] sm:$0xff]  ;;  %v7800_v41 = vld [vmem:[#allocation20_spill] sm:$0xff]  ;;  %v7801_v52 = vld [vmem:[#allocation22_spill] sm:$0xff] }
 0x37f   : > { %v823_v61 = vadd.f32 %v811_v17, %v722_v13  ;;  %v912_v51 = vmul.f32 %v7794_v36, %v876_v1  ;;  %v776_v5 = vsel %vm4130_vm15, %v755_v4, 0.0  ;;  %v7798_v13 = vld [vmem:[#allocation99_spill] sm:$0xff]  ;;  %v7799_v17 = vld [vmem:[#allocation32_spill] sm:$0xff]  ;;  %v1933_v1 = vpop.permute.xlu2 %1932  ;;  %v5362_v40 = vsel %vm952_vm3, %v5166_v59, %v1880_v9  ;;  %vm5383_vm15 = vmand %vm438_vm10, %vm440_vm12 }
 0x380   : > { %v5350_v55 = vadd.f32 %v1106_v39, %v1017_v27  ;;  %v5352_v14 = vadd.f32 %v1107_v0, %v1018_v45  ;;  %v1058_v57 = vsel %vm7323_vm14, %v7798_v13, %v7797_v32  ;;  %v1013_v30 = vmul.f32 %v7799_v17, %v977_v60  ;;  %v7802_v0 = vld [vmem:[#allocation38_spill] sm:$0xff]  ;;  %v7820_v42 = vld [vmem:[#allocation49_spill] sm:$0xff] }
 0x381   : > { %v5367_v4 = vsel %vm952_vm3, %v1880_v9, %v5166_v59  ;;  %v922_v27 = vadd.f32 %v910_v7, %v5145_v16  ;;  %v957_v45 = vsel %vm952_vm3, %v7773_v23, %v7774_v37  ;;  %v926_v60 = vadd.f32 %v7800_v41, %v825_v21  ;;  %v7806_v59 = vld [vmem:[#allocation105_spill] sm:$0xff]  ;;  %v7812_v9 = vld [vmem:[#allocation163_spill] sm:$0xff] }
 0x382   : > { %7795 = vst [vmem:[#allocation34_spill] sm:$0xff] %v5350_v55  ;;  %v927_v39 = vadd.f32 %v7801_v52, %v826_v38  ;;  %v913_v63 = vmul.f32 %v7794_v36, %v877_v6  ;;  %v812_v2 = vmul.f32 %v7787_v53, %v776_v5  ;;  %v924_v55 = vadd.f32 %v912_v51, %v823_v61  ;;  %v7807_v7 = vld [vmem:[#allocation97_spill] sm:$0xff]  ;;  %v7808_v38 = vld [vmem:[#allocation138_spill] sm:$0xff]  ;;  %v7809_v6 = vld [vmem:[#allocation135_spill] sm:$0xff]  ;;  %v1104_v5 = vpop.permute.xlu0 %1103 }
 0x383   : > { %7796 = vst [vmem:[#allocation72_spill] sm:$0xff] %v5352_v14  ;;  %v723_v14 = vadd.f32 %v711_v44, %v7802_v0  ;;  %v7803_v16 = vmov 0  ;;  %v1159_v23 = vsel %vm7327_vm13, %v7807_v7, %v7806_v59  ;;  %v1078_v37 = vsel %vm4735_vm0, %v1058_v57, 0.0  ;;  %2112 = vperm.xlu0 %3073, %v5398_v29   ;;  %v7810_v61 = vld [vmem:[#allocation157_spill] sm:$0xff]  ;;  %v7811_v36 = vld [vmem:[#allocation152_spill] sm:$0xff] }
 0x384   : > { %v7804_v16 = vsel %vm5383_vm15, 4294967295, %v7803_v16  ;;  %vm7324_vm4 = vcmp.lt.s32.totalorder %v4077_v35, 112  ;;  %vm7321_vm6 = vcmp.lt.s32.totalorder %v4077_v35, 111  ;;  %v978_v53 = vsel %vm4574_vm8, %v957_v45, 0.0  ;;  %v7817_v45 = vld [vmem:[#allocation47_spill] sm:$0xff]  ;;  %v7818_v52 = vld [vmem:[#allocation53_spill] sm:$0xff] }
 0x385   : > { %7805 = vst [vmem:[#allocation74_spill] sm:$0xff] %v7804_v16  ;;  %v1025_v21 = vadd.f32 %v1013_v30, %v924_v55  ;;  %v1260_v44 = vsel %vm7324_vm4, %v7809_v6, %v7808_v38  ;;  %v1361_v51 = vsel %vm7321_vm6, %v7811_v36, %v7810_v61  ;;  %vm7813_vm10 = vcmp.ge.s32.totalorder %v7812_v9, 0  ;;  %v7816_v55 = vld [vmem:[#allocation124_spill] sm:$0xff]  ;;  %2171 = vrot.lane.b32.xlu1 %v3921_v10, %s3175_s11 }
 0x386   : > { %vm5415_vm12 = vmand %vm5383_vm15, %vm7813_vm10  ;;  %v1027_v30 = vadd.f32 %v7816_v55, %v926_v60  ;;  %v1028_v41 = vadd.f32 %v7817_v45, %v927_v39  ;;  %v7819_v0 = vsel %vm4735_vm0, %v7818_v52, 0.0  ;;  %v7821_v54 = vsel %vm4769_vm9, %v7820_v42, 0.0  ;;  %v7822_v39 = vld [vmem:[#allocation31_spill] sm:$0xff]  ;;  %v7824_v42 = vld [vmem:[#allocation114_spill] sm:$0xff] }
 0x387   : > { %v1116_v34 = vmul.f32 %v1104_v5, %v7819_v0  ;;  %v1117_v9 = vmul.f32 %v1104_v5, %v7821_v54  ;;  %v824_v28 = vadd.f32 %v812_v2, %v723_v14  ;;  %v1064_v60 = vsel %vm7323_vm14, %v7797_v32, %v7798_v13  ;;  %v7825_v5 = vld [vmem:[#allocation170_spill] sm:$0xff] }
 0x388   : > { %v1114_v55 = vmul.f32 %v7822_v39, %v1078_v37  ;;  %v1179_v45 = vsel %vm5415_vm12, %v1159_v23, 0.0  ;;  %v7823_v52 = vmov 7   ;;  %v1014_v0 = vmul.f32 %v7799_v17, %v978_v53  ;;  %v7829_v2 = vld [vmem:[#allocation62_spill] sm:$0xff]  ;;  %v1886_v23 = vpop.permute.xlu1 %1885  ;;  %v5458_v53 = vpop.permute.xlu2 %1963 }
 0x389   : > { %3075 = vset.pattern.permute.xlu2 %v7823_v52  ;;  %v1215_v54 = vmul.f32 %v7824_v42, %v1179_v45  ;;  %vm7826_vm10 = vcmp.lt.s32.totalorder %v7825_v5, 16  ;;  %v5449_v32 = vadd.f32 %v1116_v34, %v1027_v30  ;;  %v5451_v13 = vadd.f32 %v1117_v9, %v1028_v41  ;;  %v7830_v41 = vld [vmem:[#allocation146_spill] sm:$0xff] }
 0x38a   : > { %vm5445_vm6 = vmand %vm5383_vm15, %vm7826_vm10  ;;  %2220 = vperm.xlu2 %3075, %v7829_v2   ;;  %v1280_v17 = vsel %vm5383_vm15, %v1260_v44, 0.0  ;;  %v1892_v45 = vsel %vm952_vm3, %v5269_v24, %v1886_v23  ;;  %v1898_v34 = vsel %vm952_vm3, %v1886_v23, %v5269_v24  ;;  %v1126_v30 = vadd.f32 %v1114_v55, %v1025_v21 }
 0x38b   : > { %v1381_v37 = vsel %vm5445_vm6, %v1361_v51, 0.0  ;;  %v1316_v9 = vmul.f32 %v7830_v41, %v1280_v17  ;;  %v1909_v5 = vsel %vm4550_vm5, %v1898_v34, 0.0  ;;  %v1910_v44 = vsel %vm4574_vm8, %v1892_v45, 0.0  ;;  %2265 = vrot.lane.b32.xlu0 %v7793_v8, %s3176_s12  ;;  %v5496_v45 = vpop.permute.xlu0 %1959 }
 0x38c   : > { %v923_v51 = vadd.f32 %v5334_v33, %v5147_v46  ;;  %v925_v19 = vadd.f32 %v913_v63, %v824_v28  ;;  %vm7831_vm10 = vcmp.lt.s32.totalorder %v5164_v48, 16  ;;  %vm7832_vm14 = vcmp.ge.s32.totalorder %v5164_v48, 0  ;;  %v7836_v28 = vld [vmem:[#allocation156_spill] sm:$0xff] }
 0x38d   : > { %vm5477_vm4 = vmand %vm7832_vm14, %vm7831_vm10  ;;  %v7833_v43 = vmov 0  ;;  %v1945_v24 = vmul.f32 %v1933_v1, %v1909_v5  ;;  %v1946_v21 = vmul.f32 %v1933_v1, %v1910_v44  ;;  %v1165_v55 = vsel %vm7327_vm13, %v7806_v59, %v7807_v7  ;;  %v7838_v63 = vld [vmem:[#allocation36_spill] sm:$0xff]  ;;  %2269 = vrot.lane.b32.xlu1 %v3992_v15, %s3176_s12 }
 0x38e   : > { %v7834_v43 = vsel %vm5477_vm4, 4294967295, %v7833_v43  ;;  %v1079_v23 = vsel %vm4769_vm9, %v1064_v60, 0.0  ;;  %v1227_v46 = vadd.f32 %v1215_v54, %v1126_v30  ;;  %v1417_v33 = vmul.f32 %v7836_v28, %v1381_v37  ;;  %v7839_v54 = vld [vmem:[#allocation164_spill] sm:$0xff]  ;;  %v7848_v30 = vld [vmem:[#allocation171_spill] sm:$0xff] }
 0x38f   : > { %7835 = vst [vmem:[#allocation82_spill] sm:$0xff] %v7834_v43  ;;  %v7837_v48 = vsel %vm4735_vm0, %v5198_v31, 0.0  ;;  %v1023_v17 = vadd.f32 %v5157_v47, %v922_v27  ;;  %v5499_v59 = vadd.f32 %v1945_v24, %v5098_v50  ;;  %v5502_v7 = vadd.f32 %v1946_v21, %v5101_v11  ;;  %v7846_v11 = vld [vmem:[#allocation64_spill] sm:$0xff] }
 0x390   : > { %v1112_v1 = vmul.f32 %v7838_v63, %v7837_v48  ;;  %v1026_v60 = vadd.f32 %v1014_v0, %v925_v19  ;;  %vm7840_vm3 = vcmp.ge.s32.totalorder %v7839_v54, 0  ;;  %vm7843_vm10 = vcmp.lt.s32.totalorder %v4077_v35, 112  ;;  %v7845_v19 = vld [vmem:[#allocation101_spill] sm:$0xff]  ;;  %v5553_v44 = vpop.permute.xlu2 %1969  ;;  %v7856_v48 = vld [vmem:[#allocation112_spill] sm:$0xff] }
 0x391   : > { %vm5508_vm14 = vmand %vm5477_vm4, %vm7840_vm3  ;;  %v1266_v47 = vsel %vm7843_vm10, %v7808_v38, %v7809_v6  ;;  %v1328_v31 = vadd.f32 %v1316_v9, %v1227_v46  ;;  %vm7844_vm13 = vcmp.lt.s32.totalorder %v4077_v35, 111  ;;  %vm7847_vm3 = vcmp.lt.s32.totalorder %v4077_v35, 113  ;;  %v7857_v54 = vld [vmem:[#allocation45_spill] sm:$0xff] }
 0x392   : > { %v1367_v50 = vsel %vm7844_vm13, %v7810_v61, %v7811_v36  ;;  %v1156_v27 = vsel %vm7847_vm3, %v7846_v11, %v7845_v19  ;;  %v1115_v0 = vmul.f32 %v7822_v39, %v1079_v23  ;;  %v1180_v34 = vsel %vm5508_vm14, %v1165_v55, 0.0  ;;  %v7852_v61 = vld [vmem:[#allocation119_spill] sm:$0xff]  ;;  %v1921_v39 = vpop.permute.xlu1 %1920  ;;  %vm7871_vm2 = vmmov %vm7847_vm3 }
 0x393   : > { %v1024_v38 = vadd.f32 %v5229_v12, %v923_v51  ;;  %v1216_v6 = vmul.f32 %v7824_v42, %v1180_v34  ;;  %vm7849_vm10 = vcmp.lt.s32.totalorder %v7848_v30, 16  ;;  %2071 = vrot.lane.b32.xlu2 %v7852_v61, %s3171_s30  ;;  %v1903_v36 = vsel %vm4550_vm5, %v5367_v4, 0.0 }
 0x394   : > { %vm5535_vm13 = vmand %vm5477_vm4, %vm7849_vm10  ;;  %v1904_v12 = vsel %vm4574_vm8, %v5362_v40, 0.0  ;;  %v5547_v42 = vadd.f32 %v1417_v33, %v1328_v31  ;;  %v1281_v9 = vsel %vm5477_vm4, %v1266_v47, 0.0  ;;  %v1939_v51 = vmul.f32 %v1921_v39, %v1903_v36  ;;  %v7859_v31 = vld [vmem:[#allocation2_spill] sm:$0xff] }
 0x395   : > { %v1382_v5 = vsel %vm5535_vm13, %v1367_v50, 0.0  ;;  %v1940_v24 = vmul.f32 %v1921_v39, %v1904_v12  ;;  %v7854_v21 = vmov 6   ;;  %v7855_v4 = vsel %vm4769_vm9, %v5204_v22, 0.0  ;;  %vm7858_vm10 = vmmov %vm7847_vm3  ;;  %v5597_v12 = vpop.permute.xlu0 %1965  ;;  %v7865_v39 = vld [vmem:[#allocation113_spill] sm:$0xff] }
 0x396   : > { %7853 = vst [vmem:[#allocation79_spill] sm:$0xff] %v5547_v42  ;;  %3080 = vset.pattern.permute.xlu2 %v7854_v21  ;;  %v1113_v40 = vmul.f32 %v7838_v63, %v7855_v4  ;;  %v1162_v55 = vsel %vm7847_vm3, %v7845_v19, %v7846_v11  ;;  %v1127_v23 = vadd.f32 %v1115_v0, %v1026_v60  ;;  %v1173_v33 = vsel %vm5415_vm12, %v1156_v27, 0.0  ;;  %v7860_v63 = vld [vmem:[#allocation24_spill] sm:$0xff]  ;;  %v5586_v19 = vld [vmem:[%s7087_s6 + $0x8] sm:$0xff]  ;;  %v7862_v0 = vld [vmem:[#allocation109_spill] sm:$0xff] }
 0x397   : > { %v1317_v46 = vmul.f32 %v7830_v41, %v1281_v9  ;;  %v1155_v47 = vsel %vm7858_vm10, %v7857_v54, %v7856_v48  ;;  %v5573_v22 = vadd.f32 %v1939_v51, %v7859_v31  ;;  %v5576_v50 = vadd.f32 %v1940_v24, %v7860_v63  ;;  %2108 = vperm.xlu0 %3073, %v5586_v19   ;;  %v7866_v9 = vld [vmem:[#allocation77_spill] sm:$0xff]  ;;  %vm7867_vm10 = vmmov %vm7847_vm3  ;;  %v7876_v31 = vld [vmem:[#allocation108_spill] sm:$0xff] }
 0x398   : > { %v1228_v34 = vadd.f32 %v1216_v6, %v1127_v23  ;;  %v1161_v41 = vsel %vm7847_vm3, %v7856_v48, %v7857_v54  ;;  %v1418_v60 = vmul.f32 %v7836_v28, %v1382_v5  ;;  %v5590_v11 = vmul.f32 0.70710677, %v5547_v42 }
 0x399   : > { %v1174_v27 = vsel %vm5508_vm14, %v1162_v55, 0.0  ;;  %v5595_v6 = vmul.f32 %v7862_v0, %v1173_v33  ;;  %v1124_v30 = vadd.f32 %v1112_v1, %v1023_v17  ;;  %v1125_v36 = vadd.f32 %v1113_v40, %v1024_v38  ;;  %v7868_v1 = vld [vmem:[#allocation115_spill] sm:$0xff]  ;;  %v7869_v17 = vld [vmem:[#allocation116_spill] sm:$0xff] }
 0x39a   : > { %7861 = vst [vmem:[#allocation76_spill] sm:$0xff] %v5590_v11  ;;  %v5600_v28 = vmul.f32 %v7862_v0, %v1174_v27  ;;  %v5606_v5 = vsel %vm7867_vm10, %v7866_v9, %v7865_v39  ;;  %v5612_v51 = vsel %vm7847_vm3, %v7865_v39, %v7866_v9  ;;  %v1329_v24 = vadd.f32 %v1317_v46, %v1228_v34  ;;  %v7870_v38 = vld [vmem:[#allocation107_spill] sm:$0xff]  ;;  %vm7872_vm10 = vmmov %vm7871_vm2  ;;  %v1929_v23 = vpop.permute.xlu1 %1928 }
 0x39b   : > { %7863 = vst [vmem:[#allocation73_spill] sm:$0xff] %v5595_v6  ;;  %2157 = vrot.lane.b32.xlu1 %v7868_v1, %s3175_s11  ;;  %v1158_v21 = vsel %vm7871_vm2, %v7870_v38, %v7869_v17  ;;  %v1164_v4 = vsel %vm7872_vm10, %v7869_v17, %v7870_v38  ;;  %v1171_v40 = vsel %vm5415_vm12, %v1155_v47, 0.0  ;;  %v1172_v55 = vsel %vm5508_vm14, %v1161_v41, 0.0  ;;  %2169 = vrot.lane.b32.xlu2 %v7793_v8, %s3175_s11  ;;  %v7875_v47 = vld [vmem:[#allocation117_spill] sm:$0xff]  ;;  %v1976_v8 = vpop.permute.xlu2 %1975  ;;  %vm7877_vm3 = vmmov %vm7871_vm2 }
 0x39c   : > { %7864 = vst [vmem:[#allocation75_spill] sm:$0xff] %v5600_v28  ;;  %v1907_v46 = vsel %vm4550_vm5, %v5126_v20, 0.0  ;;  %v1908_v33 = vsel %vm4574_vm8, %v5121_v18, 0.0  ;;  %v5637_v48 = vand.u32 2147483647, %v5590_v11  ;;  %v5639_v54 = vadd.f32 %v1418_v60, %v1329_v24  ;;  %v7880_v24 = vld [vmem:[#allocation41_spill] sm:$0xff] }
 0x39d   : > { %v1160_v63 = vsel %vm7871_vm2, %v7876_v31, %v7875_v47  ;;  %v1943_v34 = vmul.f32 %v1929_v23, %v1907_v46  ;;  %v1944_v41 = vmul.f32 %v1929_v23, %v1908_v33  ;;  %v1166_v18 = vsel %vm7877_vm3, %v7875_v47, %v7876_v31  ;;  %v7881_v38 = vld [vmem:[#allocation37_spill] sm:$0xff]  ;;  %v7882_v46 = vld [vmem:[#allocation126_spill] sm:$0xff]  ;;  %v7887_v31 = vld [vmem:[#allocation120_spill] sm:$0xff]  ;;  %v1972_v0 = vpop.permute.xlu0 %1971 }
 0x39e   : > { %7873 = vst [vmem:[#allocation78_spill] sm:$0xff] %v5637_v48  ;;  %vm7878_vm10 = vcmp.lt.s32.totalorder %v4077_v35, 127  ;;  %v1177_v39 = vsel %vm5415_vm12, %v1158_v21, 0.0  ;;  %v1178_v9 = vsel %vm5508_vm14, %v1164_v4, 0.0  ;;  %v7883_v33 = vld [vmem:[#allocation121_spill] sm:$0xff]  ;;  %vm7884_vm3 = vcmp.lt.s32.totalorder %v4077_v35, 112 }
 0x39f   : > { %7874 = vst [vmem:[#allocation84_spill] sm:$0xff] %v5639_v54  ;;  %v5655_v60 = vsel %vm7878_vm10, %v5458_v53, %v1976_v8  ;;  %vm7879_vm2 = vmmov %vm7878_vm10  ;;  %v5670_v17 = vadd.f32 %v1943_v34, %v7880_v24  ;;  %v5673_v23 = vadd.f32 %v1944_v41, %v7881_v38  ;;  %v1181_v47 = vsel %vm5415_vm12, %v1160_v63, 0.0  ;;  %3079 = vset.pattern.permute.xlu0 %v7823_v52  ;;  %v7889_v34 = vld [vmem:[#allocation125_spill] sm:$0xff]  ;;  %v3147_v63 = vld [vmem:[%s7086_s5 + $0x8] sm:$0xff] }
 0x3a0   : > { %v5660_v27 = vsel %vm7879_vm2, %v1976_v8, %v5458_v53  ;;  %v5679_v53 = vsel %vm7884_vm3, %v7883_v33, %v7882_v46  ;;  %v2411_v21 = vmul.f32 0.3275911, %v5637_v48  ;;  %v5686_v4 = vmul.f32 0.70710677, %v5639_v54  ;;  %1289 = vperm.xlu0 %3079, %v3147_v63   ;;  %vm7891_vm10 = vmmov %vm7884_vm3  ;;  %v7902_v63 = vld [vmem:[#allocation140_spill] sm:$0xff]  ;;  %v7903_v54 = vld [vmem:[#allocation134_spill] sm:$0xff] }
 0x3a1   : > { %7885 = vst [vmem:[#allocation81_spill] sm:$0xff] %v5679_v53  ;;  %v5689_v8 = vmul.f32 %v7887_v31, %v1171_v40  ;;  %v1213_v41 = vmul.f32 %v7889_v34, %v1177_v39  ;;  %v1214_v24 = vmul.f32 %v7889_v34, %v1178_v9  ;;  %v1182_v38 = vsel %vm5508_vm14, %v1166_v18, 0.0  ;;  %vm7893_vm3 = vmmov %vm7879_vm2  ;;  %v7895_v9 = vld [vmem:[#allocation118_spill] sm:$0xff] }
 0x3a2   : > { %7886 = vst [vmem:[#allocation5_spill] sm:$0xff] %v5686_v4  ;;  %v5699_v20 = vmul.f32 %v7887_v31, %v1172_v55  ;;  %v5705_v40 = vsel %vm7891_vm10, %v7882_v46, %v7883_v33  ;;  %v5710_v39 = vsel %vm7879_vm2, %v5496_v45, %v1972_v0  ;;  %v5715_v18 = vsel %vm7893_vm3, %v1972_v0, %v5496_v45  ;;  %v7894_v55 = vld [vmem:[#allocation127_spill] sm:$0xff]  ;;  %vm7896_vm8 = vmmov %vm7891_vm10  ;;  %v7898_v33 = vld [vmem:[#allocation130_spill] sm:$0xff] }
 0x3a3   : > { %7888 = vst [vmem:[#allocation80_spill] sm:$0xff] %v5689_v8  ;;  %2255 = vrot.lane.b32.xlu1 %v3880_v56, %s3176_s12  ;;  %v5723_v31 = vsel %vm7896_vm8, %v7895_v9, %v7894_v55  ;;  %vm7897_vm10 = vmmov %vm7896_vm8  ;;  %v7899_v34 = vld [vmem:[#allocation122_spill] sm:$0xff]  ;;  %2267 = vrot.lane.b32.xlu2 %v3921_v10, %s3176_s12  ;;  %v5750_v28 = vadd.f32 1.0, %v2411_v21  ;;  %v5753_v6 = vand.u32 2147483647, %v5686_v4  ;;  %v1225_v56 = vadd.f32 %v1213_v41, %v1124_v30 }
 0x3a4   : > { %7890 = vst [vmem:[#allocation83_spill] sm:$0xff] %v5699_v20  ;;  %v5729_v46 = vsel %vm7897_vm10, %v7894_v55, %v7895_v9  ;;  %vm7900_vm2 = vmmov %vm7896_vm8  ;;  %v5748_v9 = vpop.permute.xlu1 %1961  ;;  %v1226_v53 = vadd.f32 %v1214_v24, %v1125_v36  ;;  %v1217_v26 = vmul.f32 %v7906_v62, %v1181_v47  ;;  %vm7909_vm10 = vcmp.lt.s32.totalorder %v4077_v35, 111  ;;  %v1982_v20 = vpop.permute.xlu2 %1981  ;;  %v7912_v47 = vld [vmem:[#allocation136_spill] sm:$0xff] }
 0x3a5   : > { %7892 = vst [vmem:[#allocation85_spill] sm:$0xff] %v5705_v40  ;;  %v1259_v45 = vsel %vm7900_vm2, %v7899_v34, %v7898_v33  ;;  %vm7901_vm8 = vmmov %vm7900_vm2  ;;  %v1218_v42 = vmul.f32 %v7906_v62, %v1182_v38  ;;  %3090 = vrcp.f32 %v5750_v28  ;;  %v7954_v40 = vld [vmem:[#allocation67_spill] sm:$0xff] }
 0x3a6   : > { %v1265_v0 = vsel %vm7901_vm8, %v7898_v33, %v7899_v34  ;;  %vm7904_vm3 = vmmov %vm7900_vm2  ;;  %7905 = vst [vmem:[#allocation88_spill] sm:$0xff] %v5753_v6  ;;  %v7907_v33 = vld [vmem:[#allocation144_spill] sm:$0xff]  ;;  %v1278_v10 = vsel %vm5383_vm15, %v1259_v45, 0.0  ;;  %vm7910_vm2 = vcmp.lt.s32.totalorder %v4077_v35, 127 }
 0x3a7   : > { %v1261_v55 = vsel %vm7904_vm3, %v7903_v54, %v7902_v63  ;;  %v7908_v34 = vld [vmem:[#allocation132_spill] sm:$0xff]  ;;  %v5766_v21 = vsel %vm7910_vm2, %v5553_v44, %v1982_v20  ;;  %vm7911_vm8 = vmmov %vm7910_vm2  ;;  %v1279_v36 = vsel %vm5477_vm4, %v1265_v0, 0.0  ;;  %v1314_v41 = vmul.f32 %v7912_v47, %v1278_v10  ;;  %v7913_v0 = vld [vmem:[#allocation151_spill] sm:$0xff] }
 0x3a8   : > { %v1360_v11 = vsel %vm7909_vm10, %v7908_v34, %v7907_v33  ;;  %v5771_v30 = vsel %vm7911_vm8, %v1982_v20, %v5553_v44  ;;  %v1267_v62 = vsel %vm7904_vm3, %v7902_v63, %v7903_v54  ;;  %v1282_v24 = vsel %vm5383_vm15, %v1261_v55, 0.0  ;;  %v7914_v10 = vld [vmem:[#allocation145_spill] sm:$0xff]  ;;  %vm7915_vm2 = vmmov %vm7909_vm10  ;;  %v7917_v55 = vld [vmem:[#allocation160_spill] sm:$0xff]  ;;  %2216 = vperm.xlu0 %3079, %v5342_v3  }
 0x3a9   : > { %v1366_v38 = vsel %vm7909_vm10, %v7907_v33, %v7908_v34  ;;  %v1379_v44 = vsel %vm5445_vm6, %v1360_v11, 0.0  ;;  %v2412_v20 = vmul.f32 0.3275911, %v5753_v6  ;;  %v1315_v45 = vmul.f32 %v7912_v47, %v1279_v36  ;;  %vm7916_vm8 = vmmov %vm7915_vm2  ;;  %v1978_v11 = vpop.permute.xlu0 %1977 }
 0x3aa   : > { %v1362_v54 = vsel %vm7915_vm2, %v7914_v10, %v7913_v0  ;;  %v1368_v63 = vsel %vm7916_vm8, %v7913_v0, %v7914_v10  ;;  %v1415_v33 = vmul.f32 %v7917_v55, %v1379_v44  ;;  %v1283_v34 = vsel %vm5477_vm4, %v1267_v62, 0.0  ;;  %v7920_v0 = vld [vmem:[#allocation139_spill] sm:$0xff] }
 0x3ab   : > { %v1229_v36 = vadd.f32 %v1217_v26, %v5449_v32  ;;  %vm7918_vm3 = vcmp.lt.s32.totalorder %v4077_v35, 127  ;;  %2316 = vperm.xlu1 %3076, %v7829_v2   ;;  %v1326_v44 = vadd.f32 %v1314_v41, %v1225_v56  ;;  %v1318_v10 = vmul.f32 %v7920_v0, %v1282_v24 }
 0x3ac   : > { %v5807_v47 = vsel %vm7918_vm3, %v5597_v12, %v1978_v11  ;;  %vm7919_vm10 = vmmov %vm7918_vm3  ;;  %v1380_v62 = vsel %vm5535_vm13, %v1366_v38, 0.0  ;;  %v1230_v26 = vadd.f32 %v1218_v42, %v5451_v13  ;;  %v1383_v32 = vsel %vm5445_vm6, %v1362_v54, 0.0  ;;  %v5826_v2 = vpop.permute.xlu1 %1967  ;;  %v2017_v38 = vpop.permute.xlu2 %2016 }
 0x3ad   : > { %v5812_v4 = vsel %vm7919_vm10, %v1978_v11, %v5597_v12  ;;  %v1384_v6 = vsel %vm5535_vm13, %v1368_v63, 0.0  ;;  %v1416_v8 = vmul.f32 %v7917_v55, %v1380_v62  ;;  %v7921_v12 = vld [vmem:[#allocation111_spill] sm:$0xff]  ;;  %v5828_v56 = vadd.f32 1.0, %v2412_v20  ;;  %v5839_v54 = vpop.eup %3090 }
 0x3ae   : > { %2069 = vrot.lane.b32.xlu2 %v7921_v12, %s3171_s30  ;;  %v1319_v41 = vmul.f32 %v7920_v0, %v1283_v34  ;;  %v5831_v24 = vadd.f32 %v1415_v33, %v1326_v44  ;;  %v1999_v13 = vsel %vm4735_vm0, %v5655_v60, 0.0  ;;  %v2000_v42 = vsel %vm4769_vm9, %v5660_v27, 0.0  ;;  %v7923_v34 = vld [vmem:[#allocation150_spill] sm:$0xff] }
 0x3af   : > { %v1327_v63 = vadd.f32 %v1315_v45, %v1226_v53  ;;  %v1330_v55 = vadd.f32 %v1318_v10, %v1229_v36  ;;  %v2035_v11 = vmul.f32 %v2017_v38, %v1999_v13  ;;  %v2036_v20 = vmul.f32 %v2017_v38, %v2000_v42  ;;  %v7935_v13 = vld [vmem:[#allocation129_spill] sm:$0xff] }
 0x3b0   : > { %7922 = vst [vmem:[#allocation19_spill] sm:$0xff] %v5831_v24  ;;  %v1272_v33 = vsel %vm5383_vm15, %v5723_v31, 0.0  ;;  %v1419_v44 = vmul.f32 %v7923_v34, %v1383_v32  ;;  %v1420_v0 = vmul.f32 %v7923_v34, %v1384_v6  ;;  %v1331_v60 = vadd.f32 %v1319_v41, %v1230_v26  ;;  %2208 = vperm.xlu0 %3079, %v5398_v29   ;;  %v7929_v26 = vld [vmem:[#allocation110_spill] sm:$0xff]  ;;  %v7931_v32 = vld [vmem:[#allocation131_spill] sm:$0xff] }
 0x3b1   : > { %v5846_v62 = vadd.f32 %v1416_v8, %v1327_v63  ;;  %v5849_v27 = vadd.f32 %v2035_v11, %v5573_v22  ;;  %v5852_v48 = vadd.f32 %v2036_v20, %v5576_v50  ;;  %3092 = vrcp.f32 %v5828_v56  ;;  %v2009_v22 = vpop.permute.xlu0 %2008  ;;  %v7941_v20 = vld [vmem:[#allocation68_spill] sm:$0xff] }
 0x3b2   : > { %v5856_v53 = vmul.f32 0.70710677, %v5831_v24  ;;  %v1995_v6 = vsel %vm4735_vm0, %v5710_v39, 0.0  ;;  %v1996_v8 = vsel %vm4769_vm9, %v5715_v18, 0.0  ;;  %v2548_v50 = vmul.f32 %v5839_v54, %v5750_v28  ;;  %v7930_v39 = vld [vmem:[#allocation137_spill] sm:$0xff] }
 0x3b3   : > { %7924 = vst [vmem:[#allocation28_spill] sm:$0xff] %v5846_v62  ;;  %v1273_v31 = vsel %vm5477_vm4, %v5729_v46, 0.0  ;;  %v5870_v45 = vadd.f32 %v1419_v44, %v1330_v55  ;;  %v2031_v36 = vmul.f32 %v2009_v22, %v1995_v6  ;;  %v2032_v10 = vmul.f32 %v2009_v22, %v1996_v8  ;;  %2155 = vrot.lane.b32.xlu1 %v7929_v26, %s3175_s11  ;;  %v7934_v46 = vld [vmem:[#allocation141_spill] sm:$0xff] }
 0x3b4   : > { %7925 = vst [vmem:[#allocation11_spill] sm:$0xff] %v5849_v27  ;;  %vm7932_vm2 = vcmp.lt.s32.totalorder %v4077_v35, 112  ;;  %vm7936_vm3 = vcmp.lt.s32.totalorder %v4077_v35, 111  ;;  %v5892_v38 = vadd.f32 %v1420_v0, %v1331_v60  ;;  %3077 = vset.pattern.permute.xlu1 %v7823_v52  ;;  %v5902_v55 = vmul.f32 0.70710677, %v5846_v62  ;;  %v1974_v44 = vpop.permute.xlu1 %1973  ;;  %v2025_v60 = vpop.permute.xlu2 %2024 }
 0x3b5   : > { %7926 = vst [vmem:[#allocation29_spill] sm:$0xff] %v5852_v48  ;;  %v5878_v18 = vsel %vm7932_vm2, %v7931_v32, %v7930_v39  ;;  %vm7933_vm8 = vmmov %vm7932_vm2  ;;  %v5890_v42 = vsel %vm7936_vm3, %v7935_v13, %v7934_v46  ;;  %v5905_v11 = vadd.f32 %v2031_v36, %v5213_v49  ;;  %v5908_v34 = vadd.f32 %v2032_v10, %v7941_v20  ;;  %v7945_v36 = vld [vmem:[#allocation133_spill] sm:$0xff] }
 0x3b6   : > { %7927 = vst [vmem:[#allocation23_spill] sm:$0xff] %v5856_v53  ;;  %v5884_v41 = vsel %vm7933_vm8, %v7930_v39, %v7931_v32  ;;  %vm7938_vm10 = vmmov %vm7936_vm3  ;;  %2167 = vrot.lane.b32.xlu2 %v7852_v61, %s3175_s11  ;;  %v5913_v0 = vand.u32 2147483647, %v5856_v53  ;;  %vm7943_vm2 = vcmp.lt.s32.totalorder %v4077_v35, 127  ;;  %v2549_v8 = vsub.f32 1.0, %v2548_v50 }
 0x3b7   : > { %7928 = vst [vmem:[#allocation93_spill] sm:$0xff] %v5870_v45  ;;  %v5899_v63 = vsel %vm7938_vm10, %v7934_v46, %v7935_v13  ;;  %v5918_v6 = vsel %vm7943_vm2, %v5748_v9, %v1974_v44  ;;  %vm7944_vm8 = vmmov %vm7943_vm2  ;;  %v5925_v22 = vpop.eup %3092  ;;  %v5928_v10 = vmul.f32 %v7945_v36, %v1272_v33  ;;  %v5931_v39 = vmul.f32 %v7945_v36, %v1273_v31  ;;  %v7947_v33 = vld [vmem:[#allocation30_spill] sm:$0xff]  ;;  %v7950_v46 = vld [vmem:[#allocation33_spill] sm:$0xff] }
 0x3b8   : > { %7937 = vst [vmem:[#allocation96_spill] sm:$0xff] %v5892_v38  ;;  %v5923_v49 = vsel %vm7944_vm8, %v1974_v44, %v5748_v9  ;;  %v5934_v32 = vmul.f32 0.70710677, %v5870_v45  ;;  %v1276_v9 = vsel %vm5383_vm15, %v5878_v18, 0.0  ;;  %v7948_v13 = vld [vmem:[#allocation154_spill] sm:$0xff]  ;;  %v2005_v24 = vsel %vm4735_vm0, %v5766_v21, 0.0  ;;  %vm7959_vm8 = vmmov %vm7943_vm2 }
 0x3b9   : > { %7939 = vst [vmem:[#allocation162_spill] sm:$0xff] %v5902_v55  ;;  %v617_v20 = vmul.f32 %v7948_v13, %v7947_v33  ;;  %v5948_v31 = vmul.f32 0.70710677, %v5892_v38  ;;  %v618_v18 = vmul.f32 %v7948_v13, %v7950_v46  ;;  %v5959_v62 = vand.u32 2147483647, %v5902_v55  ;;  %v7951_v33 = vld [vmem:[#allocation98_spill] sm:$0xff]  ;;  %v2029_v36 = vpop.permute.xlu0 %2028 }
 0x3ba   : > { %7940 = vst [vmem:[#allocation167_spill] sm:$0xff] %v5905_v11  ;;  %v2409_v50 = vmul.f32 0.3275911, %v5913_v0  ;;  %2151 = vrot.lane.b32.xlu0 %v7951_v33, %s3175_s11  ;;  %v2006_v44 = vsel %vm4769_vm9, %v5771_v30, 0.0  ;;  %v5972_v46 = vand.u32 2147483647, %v5934_v32  ;;  %v2041_v13 = vmul.f32 %v2029_v36, %v2005_v24 }
 0x3bb   : > { %7942 = vst [vmem:[#allocation89_spill] sm:$0xff] %v5908_v34  ;;  %v2550_v34 = vmul.f32 %v5839_v54, %v2549_v8  ;;  %v2042_v11 = vmul.f32 %v2029_v36, %v2006_v44  ;;  %v7953_v55 = vld [vmem:[#allocation9_spill] sm:$0xff]  ;;  %v2563_v53 = vmul.f32 %v5925_v22, %v5828_v56  ;;  %v718_v16 = vadd.f32 %v7954_v40, %v617_v20  ;;  %v7974_v33 = vld [vmem:[#allocation55_spill] sm:$0xff] }
 0x3bc   : > { %7946 = vst [vmem:[#allocation86_spill] sm:$0xff] %v5934_v32  ;;  %2212 = vperm.xlu1 %3077, %v7953_v55   ;;  %v5979_v21 = vand.u32 2147483647, %v5948_v31  ;;  %vm2552_vm3 = vweird.f32 %v5750_v28  ;;  %v2558_v30 = vand.u32 2147483648, %v5750_v28  ;;  %v2410_v8 = vmul.f32 0.3275911, %v5959_v62  ;;  %v1980_v44 = vpop.permute.xlu1 %1979  ;;  %v5995_v20 = vpop.permute.xlu2 %2057 }
 0x3bd   : > { %7949 = vst [vmem:[#allocation90_spill] sm:$0xff] %v5948_v31  ;;  %v5985_v38 = vadd.f32 %v2041_v13, %v5499_v59  ;;  %v5988_v24 = vadd.f32 %v2042_v11, %v5502_v7  ;;  %vm2553_vm10 = vweird.f32 %v5839_v54  ;;  %v5993_v40 = vadd.f32 1.0, %v2409_v50  ;;  %v7960_v32 = vld [vmem:[#allocation143_spill] sm:$0xff] }
 0x3be   : > { %7952 = vst [vmem:[#allocation87_spill] sm:$0xff] %v5972_v46  ;;  %2253 = vrot.lane.b32.xlu2 %v7868_v1, %s3176_s12  ;;  %v1987_v36 = vsel %vm7943_vm2, %v5826_v2, %v1980_v44  ;;  %v1993_v59 = vsel %vm7959_vm8, %v1980_v44, %v5826_v2  ;;  %v2551_v7 = vadd.f32 %v5839_v54, %v2550_v34  ;;  %v2413_v11 = vmul.f32 0.3275911, %v5972_v46  ;;  %v7961_v2 = vld [vmem:[#allocation148_spill] sm:$0xff]  ;;  %v7962_v34 = vld [vmem:[#allocation142_spill] sm:$0xff]  ;;  %vm6030_vm15 = vmor %vm2552_vm3, %vm2553_vm10 }
 0x3bf   : > { %7955 = vst [vmem:[#allocation92_spill] sm:$0xff] %v5979_v21  ;;  %v2003_v1 = vsel %vm4735_vm0, %v1987_v36, 0.0  ;;  %v2004_v50 = vsel %vm4769_vm9, %v1993_v59, 0.0  ;;  %v2564_v13 = vsub.f32 1.0, %v2563_v53  ;;  %v2556_v31 = vand.u32 2147483647, %v5750_v28 }
 0x3c0   : > { %7956 = vst [vmem:[#allocation95_spill] sm:$0xff] %v5985_v38  ;;  %v2039_v38 = vmul.f32 %v2025_v60, %v2003_v1  ;;  %v2040_v45 = vmul.f32 %v2025_v60, %v2004_v50  ;;  %vm7963_vm2 = vcmp.lt.s32.totalorder %v4077_v35, 111  ;;  %v6024_v53 = vadd.f32 1.0, %v2410_v8  ;;  %v7969_v50 = vld [vmem:[#allocation61_spill] sm:$0xff] }
 0x3c1   : > { %7957 = vst [vmem:[#allocation35_spill] sm:$0xff] %v5988_v24  ;;  %v2414_v24 = vmul.f32 0.3275911, %v5979_v21  ;;  %v1359_v44 = vsel %vm7963_vm2, %v7962_v34, %v7961_v2  ;;  %vm7964_vm8 = vmmov %vm7963_vm2  ;;  %3094 = vrcp.f32 %v5993_v40  ;;  %v2555_v8 = vsel %vm6030_vm15, %v5839_v54, %v2551_v7  ;;  %v6054_v46 = vpop.permute.xlu0 %1192  ;;  %v7975_v7 = vld [vmem:[#allocation106_spill] sm:$0xff] }
 0x3c2   : > { %7958 = vst [vmem:[#allocation13_spill] sm:$0xff] %v5995_v20  ;;  %v6012_v20 = vmul.f32 %v7960_v32, %v1276_v9  ;;  %v6022_v36 = vsel %vm7964_vm8, %v7961_v2, %v7962_v34  ;;  %v7967_v9 = vld [vmem:[#allocation102_spill] sm:$0xff]  ;;  %v6038_v59 = vadd.f32 %v2039_v38, %v5670_v17  ;;  %v6041_v1 = vadd.f32 %v2040_v45, %v5673_v23  ;;  %v7971_v34 = vld [vmem:[#allocation169_spill] sm:$0xff]  ;;  %v7973_v45 = vld [vmem:[#allocation63_spill] sm:$0xff] }
 0x3c3   : > { %2249 = vrot.lane.b32.xlu0 %v7967_v9, %s3176_s12  ;;  %v7970_v2 = vsel %vm4465_vm7, %v7969_v50, 0.0  ;;  %v6051_v27 = vadd.f32 1.0, %v2413_v11  ;;  %v7972_v21 = vmov 8   ;;  %v2559_v17 = vor.u32 1.1754944e-38, %v2558_v30  ;;  %v8145_v37 = vld [vmem:[#allocation89_spill] sm:$0xff] }
 0x3c4   : > { %v908_v48 = vmul.f32 %v7971_v34, %v7970_v2  ;;  %3078 = vset.pattern.permute.xlu1 %v7972_v21  ;;  %v2565_v23 = vmul.f32 %v5925_v22, %v2564_v13  ;;  %v719_v38 = vadd.f32 %v7973_v45, %v618_v18  ;;  %v819_v60 = vadd.f32 %v7974_v33, %v718_v16  ;;  %v2013_v11 = vpop.permute.xlu1 %2012  ;;  %v2064_v33 = vpop.permute.xlu2 %2063  ;;  %v7978_v2 = vld [vmem:[#allocation69_spill] sm:$0xff] }
 0x3c5   : > { %v6059_v54 = vadd.f32 1.0, %v2414_v24  ;;  %2312 = vperm.xlu1 %3078, %v5342_v3   ;;  %vm2557_vm7 = vcmp.eq.f32.partialorder %v2556_v31, 8.507059e+37  ;;  %3096 = vrcp.f32 %v6024_v53  ;;  %v1997_v30 = vsel %vm4735_vm0, %v5918_v6, 0.0 }
 0x3c6   : > { %2067 = vrot.lane.b32.xlu2 %v7975_v7, %s3171_s30  ;;  %v1998_v18 = vsel %vm4769_vm9, %v5923_v49, 0.0  ;;  %v6071_v16 = vsel %vm2557_vm7, %v2559_v17, %v2555_v8  ;;  %v2033_v24 = vmul.f32 %v2013_v11, %v1997_v30  ;;  %v2571_v31 = vand.u32 2147483647, %v5828_v56  ;;  %v7976_v49 = vld [vmem:[#allocation66_spill] sm:$0xff]  ;;  %v7982_v30 = vld [vmem:[#allocation147_spill] sm:$0xff] }
 0x3c7   : > { %v2034_v3 = vmul.f32 %v2013_v11, %v1998_v18  ;;  %v2573_v13 = vand.u32 2147483648, %v5828_v56  ;;  %v920_v28 = vadd.f32 %v908_v48, %v819_v60  ;;  %3098 = vrcp.f32 %v6051_v27  ;;  %v6078_v6 = vpop.eup %3094 }
 0x3c8   : > { %v2566_v50 = vadd.f32 %v5925_v22, %v2565_v23  ;;  %vm2568_vm15 = vweird.f32 %v5925_v22  ;;  %3100 = vrcp.f32 %v6059_v54  ;;  %v6082_v8 = vadd.f32 %v2033_v24, %v7976_v49  ;;  %v7984_v24 = vld [vmem:[#allocation26_spill] sm:$0xff] }
 0x3c9   : > { %v6085_v17 = vadd.f32 %v2034_v3, %v7978_v2  ;;  %v2615_v45 = vmul.f32 1.0614054, %v6071_v16  ;;  %v7980_v48 = vsel %vm5477_vm4, %v5884_v41, 0.0  ;;  %v7981_v60 = vsel %vm5445_vm6, %v5890_v42, 0.0  ;;  %v6138_v11 = vpop.permute.xlu0 %2059 }
 0x3ca   : > { %7977 = vst [vmem:[#allocation10_spill] sm:$0xff] %v6082_v8  ;;  %v6093_v23 = vmul.f32 %v7960_v32, %v7980_v48  ;;  %v6100_v18 = vmul.f32 %v7982_v30, %v7981_v60  ;;  %v7985_v3 = vsel %vm4481_vm11, %v7984_v24, 0.0  ;;  %vm2567_vm3 = vweird.f32 %v5828_v56  ;;  %v7990_v48 = vld [vmem:[#allocation51_spill] sm:$0xff]  ;;  %v7991_v60 = vld [vmem:[#allocation60_spill] sm:$0xff]  ;;  %v7995_v56 = vld [vmem:[#allocation65_spill] sm:$0xff] }
 0x3cb   : > { %7979 = vst [vmem:[#allocation15_spill] sm:$0xff] %v6085_v17  ;;  %v909_v49 = vmul.f32 %v7971_v34, %v7985_v3  ;;  %v7986_v41 = vsel %vm5535_vm13, %v5899_v63, 0.0  ;;  %v1377_v42 = vsel %vm5445_vm6, %v1359_v44, 0.0  ;;  %v1378_v2 = vsel %vm5535_vm13, %v6022_v36, 0.0  ;;  %v6123_v34 = vld [vmem:[%s7087_s6] sm:$0xff]  ;;  %vm6128_vm11 = vmor %vm2567_vm3, %vm2568_vm15  ;;  %v6132_v63 = vpop.eup %3096  ;;  %v7993_v3 = vld [vmem:[#allocation153_spill] sm:$0xff] }
 0x3cc   : > { %v6113_v32 = vmul.f32 %v7982_v30, %v7986_v41  ;;  %2200 = vperm.xlu0 %3079, %v6123_v34   ;;  %v2518_v44 = vmul.f32 %v6078_v6, %v5993_v40  ;;  %v820_v36 = vadd.f32 %v7990_v48, %v719_v38  ;;  %v1021_v30 = vadd.f32 %v7991_v60, %v920_v28  ;;  %v7999_v60 = vld [vmem:[#allocation50_spill] sm:$0xff] }
 0x3cd   : > { %7992 = vst [vmem:[#allocation94_spill] sm:$0xff] %v6138_v11  ;;  %v2570_v24 = vsel %vm6128_vm11, %v5925_v22, %v2566_v50  ;;  %v6144_v41 = vmul.f32 %v7993_v3, %v1377_v42  ;;  %2153 = vrot.lane.b32.xlu1 %v7967_v9, %s3175_s11  ;;  %v2627_v43 = vadd.f32 -1.4531521, %v2615_v45  ;;  %vm2572_vm10 = vcmp.eq.f32.partialorder %v2571_v31, 8.507059e+37  ;;  %v6148_v8 = vpop.eup %3098  ;;  %v2021_v22 = vpop.permute.xlu1 %2020  ;;  %v8007_v11 = vld [vmem:[#allocation149_spill] sm:$0xff] }
 0x3ce   : > { %7987 = vst [vmem:[#allocation91_spill] sm:$0xff] %v6113_v32  ;;  %v2574_v17 = vor.u32 1.1754944e-38, %v2573_v13  ;;  %v921_v38 = vadd.f32 %v909_v49, %v820_v36  ;;  %v7994_v28 = vsel %vm5415_vm12, %v5606_v5, 0.0  ;;  %2165 = vrot.lane.b32.xlu2 %v7921_v12, %s3175_s11  ;;  %v2001_v9 = vsel %vm4735_vm0, %v5807_v47, 0.0  ;;  %v6163_v13 = vpop.eup %3100  ;;  %v2076_v5 = vpop.permute.xlu2 %2075  ;;  %v8001_v32 = vld [vmem:[#allocation158_spill] sm:$0xff] }
 0x3cf   : > { %v1211_v48 = vmul.f32 %v6054_v46, %v7994_v28  ;;  %v2002_v31 = vsel %vm4769_vm9, %v5812_v4, 0.0  ;;  %v2533_v50 = vmul.f32 %v6132_v63, %v6024_v53  ;;  %v2037_v45 = vmul.f32 %v2021_v22, %v2001_v9  ;;  %vm8008_vm9 = vmmov %vm7964_vm8 }
 0x3d0   : > { %v2038_v49 = vmul.f32 %v2021_v22, %v2002_v31  ;;  %v6167_v42 = vsel %vm2572_vm10, %v2574_v17, %v2570_v24  ;;  %v1122_v36 = vadd.f32 %v7995_v56, %v1021_v30  ;;  %vm7996_vm2 = vcmp.lt.s32.totalorder %v4077_v35, 113  ;;  %v8002_v22 = vld [vmem:[#allocation14_spill] sm:$0xff]  ;;  %v8004_v24 = vld [vmem:[#allocation16_spill] sm:$0xff]  ;;  %v8006_v56 = vld [vmem:[#allocation155_spill] sm:$0xff] }
 0x3d1   : > { %v6172_v58 = vsel %vm7996_vm2, %v2064_v33, %v2076_v5  ;;  %vm7997_vm0 = vmmov %vm7996_vm2  ;;  %v2519_v4 = vsub.f32 1.0, %v2518_v44  ;;  %v8000_v28 = vsel %vm4145_vm1, %v7999_v60, 0.0  ;;  %v6184_v17 = vadd.f32 %v2037_v45, %v8002_v22  ;;  %v8009_v44 = vld [vmem:[#allocation71_spill] sm:$0xff] }
 0x3d2   : > { %v6176_v25 = vsel %vm7997_vm0, %v2076_v5, %v2064_v33  ;;  %v704_v9 = vmul.f32 %v8001_v32, %v8000_v28  ;;  %v6187_v30 = vadd.f32 %v2038_v49, %v8004_v24  ;;  %v2578_v31 = vmul.f32 %v6148_v8, %v6051_v27  ;;  %v8010_v49 = vld [vmem:[#allocation166_spill] sm:$0xff]  ;;  %v8012_v28 = vld [vmem:[#allocation44_spill] sm:$0xff] }
 0x3d3   : > { %8003 = vst [vmem:[#allocation100_spill] sm:$0xff] %v6184_v17  ;;  %v6195_v33 = vsel %vm8008_vm9, %v8007_v11, %v8006_v56  ;;  %v1022_v5 = vadd.f32 %v8009_v44, %v921_v38  ;;  %v1223_v47 = vadd.f32 %v1211_v48, %v1122_v36  ;;  %v2593_v60 = vmul.f32 %v6163_v13, %v6059_v54  ;;  %v6222_v48 = vpop.permute.xlu0 %2065  ;;  %v8016_v36 = vld [vmem:[#allocation8_spill] sm:$0xff] }
 0x3d4   : > { %8005 = vst [vmem:[#allocation104_spill] sm:$0xff] %v6187_v30  ;;  %v6201_v45 = vmul.f32 %v7993_v3, %v1378_v2  ;;  %vm8011_vm1 = vnez %v8010_v49  ;;  %3083 = vset.pattern.permute.xlu0 %v7972_v21  ;;  %v2639_v30 = vmul.f32 %v2627_v43, %v6071_v16  ;;  %v2616_v17 = vmul.f32 1.0614054, %v6167_v42  ;;  %v8018_v49 = vld [vmem:[#allocation70_spill] sm:$0xff] }
 0x3d5   : > { %v8013_v22 = vsel %vm8011_vm1, %v8012_v28, 0.0  ;;  %v6215_v38 = vsel %vm7964_vm8, %v8006_v56, %v8007_v11  ;;  %v8014_v2 = vsel %vm5508_vm14, %v5612_v51, 0.0  ;;  %8015 = vst [vmem:[#allocation42_spill] sm:$0xff] %v6222_v48  ;;  %2300 = vperm.xlu0 %3083, %v5586_v19   ;;  %v2520_v43 = vmul.f32 %v6078_v6, %v2519_v4  ;;  %2251 = vrot.lane.b32.xlu1 %v7929_v26, %s3176_s12  ;;  %v8017_v56 = vld [vmem:[#allocation78_spill] sm:$0xff] }
 0x3d6   : > { %v705_v24 = vmul.f32 %v8001_v32, %v8013_v22  ;;  %v1212_v3 = vmul.f32 %v6054_v46, %v8014_v2  ;;  %v2534_v32 = vsub.f32 1.0, %v2533_v50  ;;  %v6227_v44 = vadd.f32 %v704_v9, %v8016_v36  ;;  %2263 = vrot.lane.b32.xlu2 %v7852_v61, %s3176_s12  ;;  %v6239_v50 = vpop.permute.xlu1 %2055  ;;  %v8020_v2 = vld [vmem:[#allocation4_spill] sm:$0xff]  ;;  %v6245_v11 = vpop.permute.xlu2 %2173 }
 0x3d7   : > { %v2579_v51 = vsub.f32 1.0, %v2578_v31  ;;  %v2723_v46 = vsub.f32 0.0, %v8017_v56  ;;  %v1123_v28 = vadd.f32 %v8018_v49, %v1022_v5  ;;  %v1324_v22 = vadd.f32 %v6012_v20, %v1223_v47  ;;  %8019 = vst [vmem:[#allocation43_spill] sm:$0xff] %v6239_v50  ;;  %v8027_v49 = vld [vmem:[#allocation80_spill] sm:$0xff] }
 0x3d8   : > { %v2594_v4 = vsub.f32 1.0, %v2593_v60  ;;  %v2526_v9 = vand.u32 2147483647, %v5993_v40  ;;  %v6243_v36 = vadd.f32 %v705_v24, %v8020_v2  ;;  %v2651_v26 = vadd.f32 1.4214138, %v2639_v30 }
 0x3d9   : > { %v2628_v31 = vadd.f32 -1.4531521, %v2616_v17  ;;  %v2528_v48 = vand.u32 2147483648, %v5993_v40  ;;  %v1224_v5 = vadd.f32 %v1212_v3, %v1123_v28  ;;  %v2521_v20 = vadd.f32 %v6078_v6, %v2520_v43 }
 0x3da   : > { %vm2523_vm7 = vweird.f32 %v6078_v6  ;;  %v2535_v61 = vmul.f32 %v6132_v63, %v2534_v32  ;;  %v2580_v47 = vmul.f32 %v6148_v8, %v2579_v51  ;;  %v6253_v60 = vmul.f32 %v2723_v46, %v8017_v56  ;;  %v8026_v46 = vld [vmem:[#allocation34_spill] sm:$0xff] }
 0x3db   : > { %vm2522_vm15 = vweird.f32 %v5993_v40  ;;  %v2541_v24 = vand.u32 2147483647, %v6024_v53  ;;  %v2595_v17 = vmul.f32 %v6163_v13, %v2594_v4  ;;  %vm6258_vm3 = vcmp.eq.f32.partialorder %v2526_v9, 8.507059e+37  ;;  %v6277_v9 = vpop.permute.xlu0 %2124  ;;  %v8043_v40 = vld [vmem:[#allocation7_spill] sm:$0xff] }
 0x3dc   : > { %vm2537_vm11 = vweird.f32 %v6024_v53  ;;  %v2543_v3 = vand.u32 2147483648, %v6024_v53  ;;  %v6265_v43 = vadd.f32 %v6144_v41, %v1324_v22  ;;  %v2663_v32 = vmul.f32 %v2651_v26, %v6071_v16  ;;  %vm6269_vm10 = vmor %vm2522_vm15, %vm2523_vm7 }
 0x3dd   : > { %v2640_v51 = vmul.f32 %v2628_v31, %v6167_v42  ;;  %v2529_v56 = vor.u32 1.1754944e-38, %v2528_v48  ;;  %vm2538_vm2 = vweird.f32 %v6132_v63  ;;  %v1219_v28 = vadd.f32 %v8027_v49, %v8026_v46  ;;  %2308 = vperm.xlu1 %3078, %v7953_v55  }
 0x3de   : > { %8023 = vst [vmem:[#allocation168_spill] sm:$0xff] %v6265_v43  ;;  %v1325_v4 = vadd.f32 %v6093_v23, %v1224_v5  ;;  %v2525_v41 = vsel %vm6269_vm10, %v6078_v6, %v2521_v20  ;;  %v2536_v22 = vadd.f32 %v6132_v63, %v2535_v61  ;;  %v2581_v2 = vadd.f32 %v6148_v8, %v2580_v47  ;;  %v6289_v23 = vpop.permute.xlu1 %2061  ;;  %v2121_v20 = vpop.permute.xlu2 %2120 }
 0x3df   : > { %vm2582_vm0 = vweird.f32 %v6051_v27  ;;  %vm2583_vm9 = vweird.f32 %v6148_v8  ;;  %v2588_v48 = vand.u32 2147483648, %v6051_v27  ;;  %2104 = vperm.xlu2 %3080, %v6123_v34   ;;  %v2586_v26 = vand.u32 2147483647, %v6051_v27 }
 0x3e0   : > { %v2596_v6 = vadd.f32 %v6163_v13, %v2595_v17  ;;  %vm2598_vm1 = vweird.f32 %v6163_v13  ;;  %v6295_v55 = vmul.f32 0.70710677, %v6265_v43  ;;  %v2099_v31 = vsel %vm5415_vm12, %v6172_v58, 0.0  ;;  %vm6309_vm7 = vmor %vm2582_vm0, %vm2583_vm9 }
 0x3e1   : > { %v2100_v5 = vsel %vm5508_vm14, %v6176_v25, 0.0  ;;  %vm2597_vm8 = vweird.f32 %v6059_v54  ;;  %v2603_v61 = vand.u32 2147483648, %v6059_v54  ;;  %v2135_v47 = vmul.f32 %v2121_v20, %v2099_v31  ;;  %vm6347_vm0 = vmor %vm2537_vm11, %vm2538_vm2 }
 0x3e2   : > { %8028 = vst [vmem:[#allocation39_spill] sm:$0xff] %v6295_v55  ;;  %v2136_v17 = vmul.f32 %v2121_v20, %v2100_v5  ;;  %v2601_v58 = vand.u32 2147483647, %v6059_v54  ;;  %v6315_v46 = vadd.f32 %v6201_v45, %v1325_v4  ;;  %v1320_v25 = vadd.f32 %v5928_v10, %v1219_v28  ;;  %vm6323_vm15 = vmor %vm2597_vm8, %vm2598_vm1 }
 0x3e3   : > { %v2585_v49 = vsel %vm6309_vm7, %v6148_v8, %v2581_v2  ;;  %v2589_v31 = vor.u32 1.1754944e-38, %v2588_v48  ;;  %v2652_v5 = vadd.f32 1.4214138, %v2640_v51  ;;  %v6328_v20 = vadd.f32 %v2135_v47, %v6038_v59  ;;  %v6351_v51 = vpop.permute.xlu0 %2159 }
 0x3e4   : > { %8031 = vst [vmem:[#allocation25_spill] sm:$0xff] %v6315_v46  ;;  %v6331_v54 = vadd.f32 %v2136_v17, %v6041_v1  ;;  %v2600_v10 = vsel %vm6323_vm15, %v6163_v13, %v2596_v6  ;;  %v6337_v8 = vand.u32 2147483647, %v6295_v55  ;;  %vm2587_vm10 = vcmp.eq.f32.partialorder %v2586_v26, 8.507059e+37  ;;  %v8040_v26 = vld [vmem:[#allocation79_spill] sm:$0xff]  ;;  %v8066_v55 = vld [vmem:[#allocation100_spill] sm:$0xff] }
 0x3e5   : > { %8034 = vst [vmem:[#allocation6_spill] sm:$0xff] %v6328_v20  ;;  %v2604_v45 = vor.u32 1.1754944e-38, %v2603_v61  ;;  %v6341_v28 = vsel %vm6258_vm3, %v2529_v56, %v2525_v41  ;;  %v2544_v1 = vor.u32 1.1754944e-38, %v2543_v3  ;;  %v6353_v13 = vsel %vm2587_vm10, %v2589_v31, %v2585_v49  ;;  %2163 = vrot.lane.b32.xlu1 %v7975_v7, %s3175_s11  ;;  %v8041_v61 = vld [vmem:[#allocation88_spill] sm:$0xff] }
 0x3e6   : > { %8035 = vst [vmem:[#allocation12_spill] sm:$0xff] %v6331_v54  ;;  %vm2602_vm9 = vcmp.eq.f32.partialorder %v2601_v58, 8.507059e+37  ;;  %v2540_v30 = vsel %vm6347_vm0, %v6132_v63, %v2536_v22  ;;  %v6359_v56 = vmul.f32 0.70710677, %v6315_v46  ;;  %v2675_v41 = vadd.f32 -0.28449672, %v2663_v32  ;;  %v6373_v63 = vpop.permute.xlu1 %2077 }
 0x3e7   : > { %v6363_v4 = vsel %vm2602_vm9, %v2604_v45, %v2600_v10  ;;  %v2664_v3 = vmul.f32 %v2652_v5, %v6167_v42  ;;  %v6367_v2 = vadd.f32 %v6100_v18, %v1320_v25  ;;  %v1376_v48 = vsel %vm5535_vm13, %v6215_v38, 0.0  ;;  %3081 = vset.pattern.permute.xlu2 %v7823_v52  ;;  %v8042_v52 = vld [vmem:[#allocation56_spill] sm:$0xff]  ;;  %v8058_v46 = vld [vmem:[#allocation59_spill] sm:$0xff] }
 0x3e8   : > { %8038 = vst [vmem:[#allocation3_spill] sm:$0xff] %v6359_v56  ;;  %v2613_v22 = vmul.f32 1.0614054, %v6341_v28  ;;  %vm2542_vm3 = vcmp.eq.f32.partialorder %v2541_v24, 8.507059e+37  ;;  %v2407_v32 = vmul.f32 0.3275911, %v6337_v8  ;;  %2204 = vperm.xlu2 %3081, %v5586_v19   ;;  %v817_v17 = vadd.f32 %v8042_v52, %v6227_v44  ;;  %v6391_v24 = vpop.permute.xlu2 %2220 }
 0x3e9   : > { %8039 = vst [vmem:[#allocation48_spill] sm:$0xff] %v6367_v2  ;;  %v2617_v18 = vmul.f32 1.0614054, %v6353_v13  ;;  %v6382_v6 = vmul.f32 0.5, %v8040_v26  ;;  %v2724_v38 = vsub.f32 0.0, %v8041_v61  ;;  %v6385_v47 = vsel %vm2542_vm3, %v2544_v1, %v2540_v30  ;;  %v8045_v5 = vld [vmem:[#allocation72_spill] sm:$0xff] }
 0x3ea   : > { %v818_v53 = vadd.f32 %v8043_v40, %v6243_v36  ;;  %v2618_v58 = vmul.f32 1.0614054, %v6363_v4  ;;  %v6395_v19 = vand.u32 2147483647, %v6359_v56  ;;  %v2687_v25 = vmul.f32 %v2675_v41, %v6071_v16  ;;  %v8046_v44 = vld [vmem:[#allocation83_spill] sm:$0xff] }
 0x3eb   : > { %v2755_v49 = vmul.f32 1.442695, %v6253_v60  ;;  %v2676_v31 = vadd.f32 -0.28449672, %v2664_v3  ;;  %v6400_v27 = vmul.f32 0.70710677, %v6367_v2  ;;  %v1220_v10 = vadd.f32 %v8046_v44, %v8045_v5  ;;  %v6420_v40 = vpop.permute.xlu0 %2257 }
 0x3ec   : > { %v2625_v45 = vadd.f32 -1.4531521, %v2613_v22  ;;  %v2614_v36 = vmul.f32 1.0614054, %v6385_v47  ;;  %v6405_v59 = vadd.f32 1.0, %v2407_v32  ;;  %v8047_v1 = vsel %vm5445_vm6, %v6195_v33, 0.0 }
 0x3ed   : > { %8044 = vst [vmem:[#allocation40_spill] sm:$0xff] %v6400_v27  ;;  %v8048_v30 = vld [vmem:[#allocation159_spill] sm:$0xff]  ;;  %v2629_v3 = vadd.f32 -1.4531521, %v2617_v18  ;;  %v2736_v26 = vmul.f32 %v2724_v38, %v8041_v61  ;;  %v2721_v52 = vsub.f32 0.0, %v5913_v0  ;;  %v2722_v22 = vsub.f32 0.0, %v5959_v62  ;;  %2261 = vrot.lane.b32.xlu1 %v7921_v12, %s3176_s12 }
 0x3ee   : > { %v6412_v41 = vmul.f32 %v8048_v30, %v8047_v1  ;;  %v6415_v60 = vmul.f32 %v8048_v30, %v1376_v48  ;;  %v2630_v32 = vadd.f32 -1.4531521, %v2618_v58  ;;  %v2408_v5 = vmul.f32 0.3275911, %v6395_v19  ;;  %v6430_v38 = vpop.permute.xlu1 %2161  ;;  %v8050_v58 = vld [vmem:[#allocation76_spill] sm:$0xff]  ;;  %v8052_v30 = vld [vmem:[#allocation94_spill] sm:$0xff] }
 0x3ef   : > { %v2699_v33 = vadd.f32 0.2548296, %v2687_v25  ;;  %3102 = vpow2.f32 %v2755_v49  ;;  %v2688_v48 = vmul.f32 %v2676_v31, %v6167_v42  ;;  %v6427_v18 = vand.u32 2147483647, %v6400_v27  ;;  %v8051_v25 = vld [vmem:[#allocation5_spill] sm:$0xff]  ;;  %v8057_v2 = vld [vmem:[#allocation54_spill] sm:$0xff] }
 0x3f0   : > { %v1321_v61 = vadd.f32 %v5931_v39, %v1220_v10  ;;  %v2637_v44 = vmul.f32 %v2625_v45, %v6341_v28  ;;  %v2626_v1 = vadd.f32 -1.4531521, %v2614_v36  ;;  %3104 = vrcp.f32 %v6405_v59  ;;  %3082 = vset.pattern.permute.xlu2 %v7972_v21  ;;  %v2072_v10 = vpop.permute.xlu2 %2071 }
 0x3f1   : > { %8049 = vst [vmem:[#allocation123_spill] sm:$0xff] %v6427_v18  ;;  %v2641_v12 = vmul.f32 %v2629_v3, %v6353_v13  ;;  %vm2375_vm11 = vcmp.ge.f32.partialorder %v8050_v58, 0.0  ;;  %vm2376_vm2 = vcmp.ge.f32.partialorder %v8051_v25, 0.0  ;;  %v2757_v49 = vmul.f32 1.442695, %v2736_v26  ;;  %2304 = vperm.xlu2 %3082, %v5398_v29  }
 0x3f2   : > { %v2733_v31 = vmul.f32 %v2721_v52, %v5913_v0  ;;  %v2734_v39 = vmul.f32 %v2722_v22, %v5959_v62  ;;  %v2642_v45 = vmul.f32 %v2630_v32, %v6363_v4  ;;  %v6442_v36 = vadd.f32 1.0, %v2408_v5  ;;  %v8055_v22 = vld [vmem:[#allocation91_spill] sm:$0xff] }
 0x3f3   : > { %vm8053_vm1 = vcmp.lt.s32.totalorder %v4077_v35, 113  ;;  %v2711_v26 = vmul.f32 %v2699_v33, %v6071_v16  ;;  %v2403_v0 = vmul.f32 0.3275911, %v6427_v18  ;;  %v2700_v62 = vadd.f32 0.2548296, %v2688_v48  ;;  %v2117_v16 = vpop.permute.xlu0 %2116 }
 0x3f4   : > { %v2081_v21 = vsel %vm8053_vm1, %v8052_v30, %v2072_v10  ;;  %vm8054_vm8 = vmmov %vm8053_vm1  ;;  %v2649_v52 = vadd.f32 1.4214138, %v2637_v44  ;;  %v2638_v29 = vmul.f32 %v2626_v1, %v6385_v47  ;;  %v6454_v32 = vadd.f32 %v8055_v22, %v1321_v61 }
 0x3f5   : > { %v2087_v3 = vsel %vm8054_vm8, %v2072_v10, %v8052_v30  ;;  %v3103_v5 = vpop.eup %3102  ;;  %v6457_v27 = vadd.f32 %v8057_v2, %v817_v17  ;;  %v6460_v43 = vadd.f32 %v8058_v46, %v818_v53  ;;  %v2653_v56 = vadd.f32 1.4214138, %v2641_v12  ;;  %v8059_v53 = vld [vmem:[#allocation98_spill] sm:$0xff]  ;;  %vm8061_vm7 = vmmov %vm8053_vm1 }
 0x3f6   : > { %8056 = vst [vmem:[#allocation18_spill] sm:$0xff] %v6454_v32  ;;  %3106 = vpow2.f32 %v2757_v49  ;;  %v6462_v10 = vpop.eup %3104  ;;  %v2654_v33 = vadd.f32 1.4214138, %v2642_v45  ;;  %v7374_v48 = vmov -1.0   ;;  %v2751_v46 = vmul.f32 1.442695, %v2733_v31  ;;  %2247 = vrot.lane.b32.xlu1 %v8059_v53, %s3176_s12  ;;  %v2074_v12 = vpop.permute.xlu1 %2073  ;;  %vm8062_vm15 = vmmov %vm8053_vm1 }
 0x3f7   : > { %v6467_v44 = vsel %vm2375_vm11, 1.0, %v7374_v48  ;;  %v6472_v2 = vsel %vm2376_vm2, 1.0, %v7374_v48  ;;  %3108 = vrcp.f32 %v6442_v36  ;;  %v2753_v17 = vmul.f32 1.442695, %v2734_v39  ;;  %vm8085_vm11 = vmmov %vm8053_vm1 }
 0x3f8   : > { %v6477_v61 = vmul.f32 %v3103_v5, %v2711_v26  ;;  %v6479_v1 = vadd.f32 1.0, %v2403_v0  ;;  %v2712_v58 = vmul.f32 %v2700_v62, %v6167_v42  ;;  %v2661_v49 = vmul.f32 %v2649_v52, %v6341_v28  ;;  %v8063_v42 = vld [vmem:[#allocation87_spill] sm:$0xff]  ;;  %vm8086_vm2 = vmmov %vm8053_vm1 }
 0x3f9   : > { %v2650_v45 = vadd.f32 1.4214138, %v2638_v29  ;;  %v6484_v25 = vmul.f32 0.70710677, %v6454_v32  ;;  %v2082_v31 = vsel %vm8061_vm7, %v6289_v23, %v2074_v12  ;;  %v2088_v39 = vsel %vm8062_vm15, %v2074_v12, %v6289_v23  ;;  %2259 = vrot.lane.b32.xlu2 %v7975_v7, %s3176_s12  ;;  %v6502_v29 = vpop.permute.xlu2 %2169 }
 0x3fa   : > { %v2665_v30 = vmul.f32 %v2653_v56, %v6353_v13  ;;  %v2488_v26 = vmul.f32 %v6462_v10, %v6405_v59  ;;  %v2725_v0 = vsub.f32 0.0, %v8063_v42  ;;  %v2097_v62 = vsel %vm5415_vm12, %v2082_v31, 0.0  ;;  %v8064_v56 = vld [vmem:[#allocation92_spill] sm:$0xff] }
 0x3fb   : > { %8060 = vst [vmem:[#allocation103_spill] sm:$0xff] %v6484_v25  ;;  %v2098_v52 = vsel %vm5508_vm14, %v2088_v39, 0.0  ;;  %v2666_v23 = vmul.f32 %v2654_v33, %v6363_v4  ;;  %v2726_v5 = vsub.f32 0.0, %v8064_v56  ;;  %v2133_v53 = vmul.f32 %v2117_v16, %v2097_v62  ;;  %v8067_v33 = vld [vmem:[#allocation104_spill] sm:$0xff] }
 0x3fc   : > { %v3107_v22 = vpop.eup %3106  ;;  %v2134_v12 = vmul.f32 %v2117_v16, %v2098_v52  ;;  %3110 = vrcp.f32 %v6479_v1  ;;  %v2673_v32 = vadd.f32 -0.28449672, %v2661_v49  ;;  %v2662_v39 = vmul.f32 %v2650_v45, %v6385_v47  ;;  %v2113_v49 = vpop.permute.xlu0 %2112 }
 0x3fd   : > { %v6507_v48 = vpop.eup %3108  ;;  %v2772_v31 = vmul.f32 %v3107_v22, %v2712_v58  ;;  %v6511_v18 = vand.u32 2147483647, %v6484_v25  ;;  %v2677_v7 = vadd.f32 -0.28449672, %v2665_v30  ;;  %v6514_v54 = vadd.f32 %v2133_v53, %v8066_v55 }
 0x3fe   : > { %v6517_v20 = vadd.f32 %v2134_v12, %v8067_v33  ;;  %v2489_v62 = vsub.f32 1.0, %v2488_v26  ;;  %v2737_v16 = vmul.f32 %v2725_v0, %v8063_v42  ;;  %v2095_v52 = vsel %vm5415_vm12, %v2081_v21, 0.0  ;;  %2296 = vperm.xlu1 %3078, %v6123_v34   ;;  %v8069_v42 = vld [vmem:[#allocation46_spill] sm:$0xff]  ;;  %v8071_v21 = vld [vmem:[#allocation52_spill] sm:$0xff]  ;;  %v6533_v12 = vpop.permute.xlu1 %2171  ;;  %v8074_v34 = vld [vmem:[#allocation29_spill] sm:$0xff] }
 0x3ff   : > { %8065 = vst [vmem:[#allocation99_spill] sm:$0xff] %v6511_v18  ;;  %v2096_v58 = vsel %vm5508_vm14, %v2087_v3, 0.0  ;;  %v2678_v45 = vadd.f32 -0.28449672, %v2666_v23  ;;  %v2738_v22 = vmul.f32 %v2726_v5, %v8064_v56  ;;  %v2131_v30 = vmul.f32 %v2113_v49, %v2095_v52  ;;  %v8072_v5 = vld [vmem:[#allocation11_spill] sm:$0xff] }
 0x400   : > { %v2132_v25 = vmul.f32 %v2113_v49, %v2096_v58  ;;  %v2503_v55 = vmul.f32 %v6507_v48, %v6442_v36  ;;  %3112 = vpow2.f32 %v2751_v46  ;;  %v8070_v0 = vsel %vm4550_vm5, %v8069_v42, 0.0 }
 0x401   : > { %v1007_v53 = vmul.f32 %v8071_v21, %v8070_v0  ;;  %v2674_v3 = vadd.f32 -0.28449672, %v2662_v39  ;;  %v2404_v23 = vmul.f32 0.3275911, %v6511_v18  ;;  %v6539_v33 = vadd.f32 %v2131_v30, %v8072_v5  ;;  %v6546_v49 = vpop.permute.xlu2 %2267 }
 0x402   : > { %v6536_v56 = vpop.eup %3110  ;;  %v6542_v52 = vadd.f32 %v2132_v25, %v8074_v34  ;;  %v2689_v46 = vmul.f32 %v2677_v7, %v6353_v13  ;;  %v2490_v58 = vmul.f32 %v6462_v10, %v2489_v62  ;;  %3114 = vpow2.f32 %v2753_v17  ;;  %v8078_v25 = vld [vmem:[#allocation57_spill] sm:$0xff] }
 0x403   : > { %8073 = vst [vmem:[#allocation32_spill] sm:$0xff] %v6539_v33  ;;  %v2759_v26 = vmul.f32 1.442695, %v2737_v16  ;;  %v2690_v39 = vmul.f32 %v2678_v45, %v6363_v4  ;;  %v2783_v42 = vsub.f32 1.0, %v6477_v61  ;;  %v2761_v0 = vmul.f32 1.442695, %v2738_v22 }
 0x404   : > { %8075 = vst [vmem:[#allocation20_spill] sm:$0xff] %v6542_v52  ;;  %v2784_v18 = vsub.f32 1.0, %v2772_v31  ;;  %v2685_v30 = vmul.f32 %v2673_v32, %v6341_v28  ;;  %v2504_v5 = vsub.f32 1.0, %v2503_v55  ;;  %v8076_v33 = vld [vmem:[#allocation17_spill] sm:$0xff]  ;;  %v1019_v17 = vadd.f32 %v1007_v53, %v6457_v27  ;;  %v6566_v22 = vpop.permute.xlu0 %2265  ;;  %v8098_v52 = vld [vmem:[#allocation75_spill] sm:$0xff] }
 0x405   : > { %vm8077_vm5 = vnez %v8076_v33  ;;  %v2686_v62 = vmul.f32 %v2674_v3, %v6385_v47  ;;  %v2428_v16 = vmul.f32 %v6536_v56, %v6479_v1  ;;  %v2701_v45 = vadd.f32 0.2548296, %v2689_v46  ;;  %8080 = vst [vmem:[#allocation22_spill] sm:$0xff] %v6566_v22  ;;  %v8081_v46 = vld [vmem:[#allocation58_spill] sm:$0xff] }
 0x406   : > { %v8079_v34 = vsel %vm8077_vm5, %v8078_v25, 0.0  ;;  %v2491_v61 = vadd.f32 %v6462_v10, %v2490_v58  ;;  %vm2493_vm10 = vweird.f32 %v6462_v10  ;;  %v6562_v32 = vadd.f32 1.0, %v2404_v23  ;;  %v6564_v31 = vpop.eup %3112 }
 0x407   : > { %v1008_v7 = vmul.f32 %v8071_v21, %v8079_v34  ;;  %3116 = vpow2.f32 %v2759_v26  ;;  %v2702_v55 = vadd.f32 0.2548296, %v2690_v39  ;;  %v2496_v27 = vand.u32 2147483647, %v6405_v59  ;;  %v6579_v26 = vpop.permute.xlu1 %2269 }
 0x408   : > { %v2498_v21 = vand.u32 2147483648, %v6405_v59  ;;  %3118 = vpow2.f32 %v2761_v0  ;;  %v6571_v53 = vmul.f32 %v2783_v42, %v6467_v44  ;;  %vm2492_vm0 = vweird.f32 %v6405_v59  ;;  %v6575_v23 = vpop.eup %3114 }
 0x409   : > { %v2505_v3 = vmul.f32 %v6507_v48, %v2504_v5  ;;  %v1020_v33 = vadd.f32 %v1008_v7, %v6460_v43  ;;  %v1120_v58 = vadd.f32 %v8081_v46, %v1019_v17  ;;  %v6582_v39 = vmul.f32 %v2784_v18, %v6472_v2  ;;  %vm6588_vm9 = vmor %vm2492_vm0, %vm2493_vm10  ;;  %v2070_v0 = vpop.permute.xlu2 %2069  ;;  %v8084_v5 = vld [vmem:[#allocation13_spill] sm:$0xff] }
 0x40a   : > { %v6584_v25 = vadd.f32 0.2548296, %v2685_v30  ;;  %v6592_v59 = vadd.f32 0.2548296, %v2686_v62  ;;  %v2495_v43 = vsel %vm6588_vm9, %v6462_v10, %v2491_v61  ;;  %v2429_v42 = vsub.f32 1.0, %v2428_v16  ;;  %v8087_v62 = vld [vmem:[#allocation27_spill] sm:$0xff] }
 0x40b   : > { %3120 = vrcp.f32 %v6562_v32  ;;  %v2713_v18 = vmul.f32 %v2701_v45, %v6353_v13  ;;  %v2714_v2 = vmul.f32 %v2702_v55, %v6363_v4  ;;  %vm2497_vm3 = vcmp.eq.f32.partialorder %v2496_v27, 8.507059e+37  ;;  %v8088_v13 = vld [vmem:[#allocation73_spill] sm:$0xff]  ;;  %v8089_v27 = vld [vmem:[#allocation86_spill] sm:$0xff] }
 0x40c   : > { %v2499_v30 = vor.u32 1.1754944e-38, %v2498_v21  ;;  %v2080_v34 = vsel %vm8085_vm11, %v8084_v5, %v2070_v0  ;;  %v2086_v7 = vsel %vm8086_vm2, %v2070_v0, %v8084_v5  ;;  %v2506_v10 = vadd.f32 %v6507_v48, %v2505_v3  ;;  %vm8104_vm11 = vmmov %vm8086_vm2 }
 0x40d   : > { %vm2508_vm1 = vweird.f32 %v6507_v48  ;;  %v3117_v17 = vpop.eup %3116  ;;  %v1121_v16 = vadd.f32 %v8087_v62, %v1020_v33  ;;  %v6610_v45 = vadd.f32 %v8088_v13, %v1120_v58  ;;  %v2513_v61 = vand.u32 2147483648, %v6442_v36  ;;  %v2109_v58 = vpop.permute.xlu0 %2108  ;;  %v8093_v13 = vld [vmem:[#allocation10_spill] sm:$0xff] }
 0x40e   : > { %v6612_v4 = vsel %vm2497_vm3, %v2499_v30, %v2495_v43  ;;  %v3119_v55 = vpop.eup %3118  ;;  %vm2377_vm8 = vcmp.ge.f32.partialorder %v8089_v27, 0.0  ;;  %vm2507_vm7 = vweird.f32 %v6442_v36  ;;  %v2511_v21 = vand.u32 2147483647, %v6442_v36  ;;  %vm8103_vm3 = vmmov %vm8086_vm2 }
 0x40f   : > { %v2430_v3 = vmul.f32 %v6536_v56, %v2429_v42  ;;  %v2093_v46 = vsel %vm5415_vm12, %v2080_v34, 0.0  ;;  %v2094_v33 = vsel %vm5508_vm14, %v2086_v7, 0.0  ;;  %v2773_v44 = vmul.f32 %v3117_v17, %v2713_v18  ;;  %vm6625_vm15 = vmor %vm2507_vm7, %vm2508_vm1  ;;  %v6635_v7 = vpop.permute.xlu1 %2157  ;;  %v8092_v18 = vld [vmem:[#allocation90_spill] sm:$0xff] }
 0x410   : > { %v2774_v43 = vmul.f32 %v3119_v55, %v2714_v2  ;;  %v2129_v36 = vmul.f32 %v2109_v58, %v2093_v46  ;;  %v2130_v5 = vmul.f32 %v2109_v58, %v2094_v33  ;;  %v2611_v42 = vmul.f32 1.0614054, %v6612_v4  ;;  %v8095_v46 = vld [vmem:[#allocation15_spill] sm:$0xff] }
 0x411   : > { %v6629_v30 = vpop.eup %3120  ;;  %v2510_v34 = vsel %vm6625_vm15, %v6507_v48, %v2506_v10  ;;  %vm2378_vm5 = vcmp.ge.f32.partialorder %v8092_v18, 0.0  ;;  %v2514_v2 = vor.u32 1.1754944e-38, %v2513_v61  ;;  %v2436_v17 = vand.u32 2147483647, %v6479_v1  ;;  %v6647_v58 = vpop.permute.xlu2 %2167 }
 0x412   : > { %v2438_v62 = vand.u32 2147483648, %v6479_v1  ;;  %v6641_v55 = vadd.f32 %v2129_v36, %v8093_v13  ;;  %v6644_v33 = vadd.f32 %v2130_v5, %v8095_v46  ;;  %vm2512_vm10 = vcmp.eq.f32.partialorder %v2511_v21, 8.507059e+37  ;;  %8097 = vst [vmem:[#allocation97_spill] sm:$0xff] %v6647_v58  ;;  %v8099_v36 = vld [vmem:[#allocation93_spill] sm:$0xff] }
 0x413   : > { %vm2433_vm0 = vweird.f32 %v6536_v56  ;;  %v2785_v48 = vsub.f32 1.0, %v2773_v44  ;;  %v6649_v10 = vsel %vm2512_vm10, %v2514_v2, %v2510_v34  ;;  %v2431_v61 = vadd.f32 %v6536_v56, %v2430_v3 }
 0x414   : > { %8094 = vst [vmem:[#allocation38_spill] sm:$0xff] %v6641_v55  ;;  %v2443_v0 = vmul.f32 %v6629_v30, %v6562_v32  ;;  %v1222_v22 = vadd.f32 %v8098_v52, %v1121_v16  ;;  %v6656_v13 = vmul.f32 0.5, %v8099_v36  ;;  %v2786_v5 = vsub.f32 1.0, %v2774_v43  ;;  %v8101_v55 = vld [vmem:[#allocation96_spill] sm:$0xff]  ;;  %v8102_v52 = vld [vmem:[#allocation42_spill] sm:$0xff] }
 0x415   : > { %8096 = vst [vmem:[#allocation105_spill] sm:$0xff] %v6644_v33  ;;  %v2623_v46 = vadd.f32 -1.4531521, %v2611_v42  ;;  %v8100_v21 = vmov -1.0   ;;  %v6662_v44 = vmul.f32 0.5, %v8101_v55  ;;  %vm2432_vm9 = vweird.f32 %v6479_v1  ;;  %v1290_v36 = vpop.permute.xlu0 %1289 }
 0x416   : > { %v2389_v33 = vsel %vm2377_vm8, 1.0, %v8100_v21  ;;  %v2390_v3 = vsel %vm2378_vm5, 1.0, %v8100_v21  ;;  %v2084_v16 = vsel %vm8103_vm3, %v8102_v52, %v6373_v63  ;;  %v2090_v27 = vsel %vm8104_vm11, %v6373_v63, %v8102_v52  ;;  %vm6679_vm2 = vmor %vm2432_vm9, %vm2433_vm0  ;;  %v8116_v21 = vld [vmem:[#allocation85_spill] sm:$0xff] }
 0x417   : > { %v2612_v43 = vmul.f32 1.0614054, %v6649_v10  ;;  %vm6683_vm1 = vcmp.eq.f32.partialorder %v2436_v17, 8.507059e+37  ;;  %v2797_v34 = vmul.f32 %v2785_v48, %v2389_v33  ;;  %v2435_v18 = vsel %vm6679_vm2, %v6536_v56, %v2431_v61  ;;  %v8113_v61 = vld [vmem:[#allocation81_spill] sm:$0xff] }
 0x418   : > { %v2439_v2 = vor.u32 1.1754944e-38, %v2438_v62  ;;  %v2444_v55 = vsub.f32 1.0, %v2443_v0  ;;  %vm8109_vm8 = vcmp.lt.s32.totalorder %v4077_v35, 112  ;;  %v2798_v52 = vmul.f32 %v2786_v5, %v2390_v3  ;;  %v8111_v62 = vld [vmem:[#allocation74_spill] sm:$0xff] }
 0x419   : > { %v2180_v63 = vsel %vm8109_vm8, %v6430_v38, %v6245_v11  ;;  %vm8110_vm7 = vmmov %vm8109_vm8  ;;  %v2635_v33 = vmul.f32 %v2623_v46, %v6612_v4  ;;  %v2101_v48 = vsel %vm5415_vm12, %v2084_v16, 0.0  ;;  %v2102_v56 = vsel %vm5508_vm14, %v2090_v27, 0.0 }
 0x41a   : > { %v2186_v17 = vsel %vm8110_vm7, %v6245_v11, %v6430_v38  ;;  %vm8112_vm15 = vnez %v8111_v62  ;;  %v8117_v50 = vsel %vm5477_vm4, %v8116_v21, 0.0  ;;  %v6711_v38 = vpop.permute.xlu1 %2255  ;;  %v2624_v5 = vadd.f32 -1.4531521, %v2612_v43 }
 0x41b   : > { %v8114_v0 = vsel %vm8112_vm15, %v8113_v61, 0.0  ;;  %v1311_v11 = vmul.f32 %v1290_v36, %v8117_v50  ;;  %v6715_v46 = vsel %vm6683_vm1, %v2439_v2, %v2435_v18  ;;  %v2197_v27 = vsel %vm8112_vm15, %v2180_v63, 0.0  ;;  %vm8131_vm1 = vmmov %vm8110_vm7 }
 0x41c   : > { %v1310_v42 = vmul.f32 %v1290_v36, %v8114_v0  ;;  %v2198_v61 = vsel %vm5477_vm4, %v2186_v17, 0.0  ;;  %v6724_v36 = vpop.permute.xlu2 %2253  ;;  %v2137_v43 = vmul.f32 %v6277_v9, %v2101_v48  ;;  %v2138_v1 = vmul.f32 %v6277_v9, %v2102_v56  ;;  %v8125_v48 = vld [vmem:[#allocation35_spill] sm:$0xff]  ;;  %vm8132_vm8 = vmmov %vm8131_vm1 }
 0x41d   : > { %v1323_v50 = vadd.f32 %v1311_v11, %v1222_v22  ;;  %v2647_v18 = vadd.f32 1.4214138, %v2635_v33  ;;  %v2445_v2 = vmul.f32 %v6629_v30, %v2444_v55  ;;  %vm2448_vm5 = vweird.f32 %v6629_v30  ;;  %vm8133_vm7 = vmmov %vm8131_vm1 }
 0x41e   : > { %v1322_v21 = vadd.f32 %v1310_v42, %v6610_v45  ;;  %v2809_v17 = vadd.f32 1.0, %v2797_v34  ;;  %v2810_v45 = vadd.f32 1.0, %v2798_v52  ;;  %v2233_v22 = vmul.f32 %v6391_v24, %v2197_v27  ;;  %v8124_v52 = vld [vmem:[#allocation95_spill] sm:$0xff] }
 0x41f   : > { %v6734_v63 = vadd.f32 %v6415_v60, %v1323_v50  ;;  %v2234_v42 = vmul.f32 %v6391_v24, %v2198_v61  ;;  %vm8120_vm10 = vcmp.lt.s32.totalorder %v4077_v35, 111  ;;  %vm2447_vm9 = vweird.f32 %v6562_v32 }
 0x420   : > { %v6731_v0 = vadd.f32 %v6412_v41, %v1322_v21  ;;  %v2276_v9 = vsel %vm8120_vm10, %v6420_v40, %v6579_v26  ;;  %vm8121_vm0 = vmmov %vm8120_vm10  ;;  %v2719_v24 = vsub.f32 0.0, %v6337_v8  ;;  %v2636_v55 = vmul.f32 %v2624_v5, %v6649_v10 }
 0x421   : > { %8119 = vst [vmem:[#allocation135_spill] sm:$0xff] %v6734_v63  ;;  %v2282_v41 = vsel %vm8121_vm0, %v6579_v26, %v6420_v40  ;;  %v6751_v34 = vmul.f32 0.70710677, %v6734_v63  ;;  %v2149_v33 = vadd.f32 %v2137_v43, %v8124_v52  ;;  %v2150_v56 = vadd.f32 %v2138_v1, %v8125_v48  ;;  %vm6790_vm11 = vmor %vm2447_vm9, %vm2448_vm5 }
 0x422   : > { %8118 = vst [vmem:[#allocation138_spill] sm:$0xff] %v6731_v0  ;;  %v6748_v60 = vmul.f32 0.70710677, %v6731_v0  ;;  %v2659_v11 = vmul.f32 %v2647_v18, %v6612_v4  ;;  %v2720_v40 = vsub.f32 0.0, %v6395_v19  ;;  %v2317_v61 = vpop.permute.xlu1 %2316  ;;  %v2293_v21 = vsel %vm5445_vm6, %v2276_v9, 0.0  ;;  %vm8134_vm5 = vmmov %vm8131_vm1 }
 0x423   : > { %8123 = vst [vmem:[#allocation152_spill] sm:$0xff] %v6751_v34  ;;  %v6763_v27 = vand.u32 2147483647, %v6751_v34  ;;  %v2294_v5 = vsel %vm5535_vm13, %v2282_v41, 0.0  ;;  %v2245_v50 = vadd.f32 %v2233_v22, %v2149_v33  ;;  %v2246_v43 = vadd.f32 %v2234_v42, %v2150_v56  ;;  %vm8135_vm10 = vmmov %vm8121_vm0 }
 0x424   : > { %8122 = vst [vmem:[#allocation157_spill] sm:$0xff] %v6748_v60  ;;  %v6760_v26 = vand.u32 2147483647, %v6748_v60  ;;  %v2329_v1 = vmul.f32 %v2317_v61, %v2293_v21  ;;  %v2330_v52 = vmul.f32 %v2317_v61, %v2294_v5  ;;  %v6771_v3 = vpop.permute.xlu2 %2067  ;;  %v2648_v16 = vadd.f32 1.4214138, %v2636_v55  ;;  %vm8136_vm9 = vmmov %vm8135_vm10 }
 0x425   : > { %v2406_v48 = vmul.f32 0.3275911, %v6763_v27  ;;  %v2446_v63 = vadd.f32 %v6629_v30, %v2445_v2  ;;  %v2821_v9 = vmul.f32 %v2809_v17, %v6656_v13  ;;  %v2822_v60 = vmul.f32 %v2810_v45, %v6662_v44  ;;  %v2217_v17 = vpop.permute.xlu0 %2216 }
 0x426   : > { %v2405_v18 = vmul.f32 0.3275911, %v6760_v26  ;;  %v2341_v0 = vadd.f32 %v2329_v1, %v2245_v50  ;;  %v2342_v34 = vadd.f32 %v2330_v52, %v2246_v43  ;;  %vm2844_vm3 = vcmask 1041408  }
 0x427   : > { %v6778_v22 = vadd.f32 1.0, %v2406_v48  ;;  %v2731_v42 = vmul.f32 %v2719_v24, %v6337_v8  ;;  %v2671_v61 = vadd.f32 -0.28449672, %v2659_v11  ;;  %v2732_v55 = vmul.f32 %v2720_v40, %v6395_v19 }
 0x428   : > { %v6776_v41 = vadd.f32 1.0, %v2405_v18  ;;  %v2833_v33 = vmul.f32 %v2821_v9, %v2341_v0  ;;  %v2834_v56 = vmul.f32 %v2822_v60, %v2342_v34  ;;  %v2807_v2 = vadd.f32 1.0, %v6571_v53 }
 0x429   : > { %v2808_v13 = vadd.f32 1.0, %v6582_v39  ;;  %v2660_v44 = vmul.f32 %v2648_v16, %v6649_v10  ;;  %v2709_v8 = vmul.f32 %v6584_v25, %v6341_v28  ;;  %v2710_v19 = vmul.f32 %v6592_v59, %v6385_v47  ;;  %v8128_v16 = vld [vmem:[#allocation84_spill] sm:$0xff] }
 0x42a   : > { %3122 = vrcp.f32 %v6776_v41  ;;  %2993 = vmatpush.msk.msrb.mxu0 %vm2844_vm3, %v2833_v33  ;;  %2996 = vmatpush.msk.msrb.mxu1 %vm2844_vm3, %v2834_v56  ;;  %v2450_v53 = vsel %vm6790_vm11, %v6629_v30, %v2446_v63  ;;  %v6802_v39 = vpop.permute.xlu1 %2155  ;;  %v2352_v0 = vmul.f32 0.5, %v8128_v16  ;;  %v2747_v45 = vmul.f32 1.442695, %v2731_v42 }
 0x42b   : > { %3124 = vrcp.f32 %v6778_v22  ;;  %v2607_v60 = vmul.f32 1.0614054, %v6715_v46  ;;  %v8129_v34 = vand.u32 2147483648, %v6562_v32  ;;  %v2683_v11 = vmul.f32 %v2671_v61, %v6612_v4 }
 0x42c   : > { %v2749_v28 = vmul.f32 1.442695, %v2732_v55  ;;  %v8130_v25 = vand.u32 2147483647, %v6562_v32  ;;  %v6811_v47 = vpop.permute.xlu2 %2165  ;;  %v6814_v59 = vmul.f32 %v2807_v2, %v6382_v6  ;;  %v6816_v30 = vmul.f32 %v2808_v13, %v2352_v0 }
 0x42d   : > { %v2454_v24 = vor.u32 1.1754944e-38, %v8129_v34  ;;  %v2672_v63 = vadd.f32 -0.28449672, %v2660_v44  ;;  %v2179_v21 = vsel %vm8131_vm1, %v6351_v51, %v6533_v12  ;;  %v2185_v32 = vsel %vm8132_vm8, %v6533_v12, %v6351_v51 }
 0x42e   : > { %vm2452_vm2 = vcmp.eq.f32.partialorder %v8130_v25, 8.507059e+37  ;;  %v6829_v5 = vmul.f32 %v6564_v31, %v2709_v8  ;;  %v6832_v6 = vmul.f32 %v6575_v23, %v2710_v19  ;;  %v2178_v43 = vsel %vm8133_vm7, %v6635_v7, %v6502_v29 }
 0x42f   : > { %v6818_v40 = vsel %vm2452_vm2, %v2454_v24, %v2450_v53  ;;  %v2184_v1 = vsel %vm8134_vm5, %v6502_v29, %v6635_v7  ;;  %3126 = vpow2.f32 %v2747_v45  ;;  %v6842_v52 = vadd.f32 -1.4531521, %v2607_v60 }
 0x430   : > { %v3123_v50 = vpop.eup %3122  ;;  %v2695_v31 = vadd.f32 0.2548296, %v2683_v11  ;;  %3128 = vpow2.f32 %v2749_v28  ;;  %v6846_v23 = vmul.f32 1.0614054, %v6818_v40  ;;  %v2195_v48 = vsel %vm8112_vm15, %v2179_v21, 0.0  ;;  %v8137_v21 = vld [vmem:[#allocation23_spill] sm:$0xff] }
 0x431   : > { %v3125_v51 = vpop.eup %3124  ;;  %v2458_v12 = vmul.f32 %v3123_v50, %v6776_v41  ;;  %v2196_v9 = vsel %vm5477_vm4, %v2185_v32, 0.0  ;;  %v2684_v29 = vmul.f32 %v2672_v63, %v6649_v10  ;;  %v2275_v7 = vsel %vm8135_vm10, %v6711_v38, %v6546_v49 }
 0x432   : > { %v2473_v18 = vmul.f32 %v3125_v51, %v6778_v22  ;;  %v2193_v42 = vsel %vm8112_vm15, %v2178_v43, 0.0  ;;  %v2194_v33 = vsel %vm5477_vm4, %v2184_v1, 0.0  ;;  %v2213_v61 = vpop.permute.xlu1 %2212  ;;  %v2466_v55 = vand.u32 2147483647, %v6776_v41  ;;  %v8138_v43 = vld [vmem:[#allocation162_spill] sm:$0xff] }
 0x433   : > { %v2459_v56 = vsub.f32 1.0, %v2458_v12  ;;  %v2468_v2 = vand.u32 2147483648, %v6776_v41  ;;  %v2483_v44 = vand.u32 2147483648, %v6778_v22  ;;  %v2229_v8 = vmul.f32 %v2213_v61, %v2193_v42 }
 0x434   : > { %v2474_v13 = vsub.f32 1.0, %v2473_v18  ;;  %v2230_v19 = vmul.f32 %v2213_v61, %v2194_v33  ;;  %vm2463_vm0 = vweird.f32 %v3123_v50  ;;  %v2281_v0 = vsel %vm8136_vm9, %v6546_v49, %v6711_v38  ;;  %v6869_v45 = vpop.permute.xlu2 %2263  ;;  %v8142_v61 = vld [vmem:[#allocation6_spill] sm:$0xff] }
 0x435   : > { %v2460_v53 = vmul.f32 %v3123_v50, %v2459_v56  ;;  %v3127_v16 = vpop.eup %3126  ;;  %vm2478_vm3 = vweird.f32 %v3125_v51  ;;  %v2481_v34 = vand.u32 2147483647, %v6778_v22  ;;  %v6873_v11 = vadd.f32 %v2229_v8, %v6514_v54  ;;  %v8139_v54 = vld [vmem:[#allocation43_spill] sm:$0xff] }
 0x436   : > { %v2475_v60 = vmul.f32 %v3125_v51, %v2474_v13  ;;  %v3129_v24 = vpop.eup %3128  ;;  %v6876_v28 = vadd.f32 %v2230_v19, %v6517_v20  ;;  %vm2462_vm11 = vweird.f32 %v6776_v41  ;;  %v2231_v63 = vmul.f32 %v2217_v17, %v2195_v48 }
 0x437   : > { %v2461_v25 = vadd.f32 %v3123_v50, %v2460_v53  ;;  %vm2373_vm2 = vcmp.ge.f32.partialorder %v8137_v21, 0.0  ;;  %vm2464_vm1 = vmor %vm2462_vm11, %vm2463_vm0  ;;  %v2469_v49 = vor.u32 1.1754944e-38, %v2468_v2  ;;  %vm2477_vm8 = vweird.f32 %v6778_v22  ;;  %v8143_v2 = vld [vmem:[#allocation12_spill] sm:$0xff] }
 0x438   : > { %v2476_v38 = vadd.f32 %v3125_v51, %v2475_v60  ;;  %v2232_v32 = vmul.f32 %v2217_v17, %v2196_v9  ;;  %vm2374_vm7 = vcmp.ge.f32.partialorder %v8138_v43, 0.0  ;;  %vm2467_vm5 = vcmp.eq.f32.partialorder %v2466_v55, 8.507059e+37  ;;  %vm2479_vm10 = vmor %vm2477_vm8, %vm2478_vm3 }
 0x439   : > { %v2465_v1 = vsel %vm2464_vm1, %v3123_v50, %v2461_v25  ;;  %v2484_v20 = vor.u32 1.1754944e-38, %v2483_v44  ;;  %vm8140_vm9 = vcmp.lt.s32.totalorder %v4077_v35, 113  ;;  %vm2482_vm0 = vcmp.eq.f32.partialorder %v2481_v34, 8.507059e+37 }
 0x43a   : > { %v2079_v41 = vsel %vm8140_vm9, %v8139_v54, %v6771_v3  ;;  %v6887_v12 = vsel %vm2467_vm5, %v2469_v49, %v2465_v1  ;;  %v2480_v18 = vsel %vm2479_vm10, %v3125_v51, %v2476_v38  ;;  %vm8141_vm11 = vmmov %vm8140_vm9  ;;  %v2696_v48 = vadd.f32 0.2548296, %v2684_v29  ;;  %v2313_v29 = vpop.permute.xlu1 %2312  ;;  %v8144_v38 = vld [vmem:[#allocation167_spill] sm:$0xff] }
 0x43b   : > { %v2085_v22 = vsel %vm8141_vm11, %v6771_v3, %v8139_v54  ;;  %v2609_v50 = vmul.f32 1.0614054, %v6887_v12  ;;  %v6894_v9 = vsel %vm2482_vm0, %v2484_v20, %v2480_v18  ;;  %v2291_v42 = vsel %vm5445_vm6, %v2275_v7, 0.0 }
 0x43c   : > { %v2292_v33 = vsel %vm5535_vm13, %v2281_v0, 0.0  ;;  %v2707_v56 = vmul.f32 %v2695_v31, %v6612_v4  ;;  %v2610_v51 = vmul.f32 1.0614054, %v6894_v9  ;;  %v2243_v55 = vadd.f32 %v2231_v63, %v8142_v61  ;;  %v2105_v17 = vpop.permute.xlu2 %2104  ;;  %v2209_v0 = vpop.permute.xlu0 %2208  ;;  %v8148_v61 = vld [vmem:[#allocation123_spill] sm:$0xff] }
 0x43d   : > { %v2244_v13 = vadd.f32 %v2232_v32, %v8143_v2  ;;  %v2091_v3 = vsel %vm5415_vm12, %v2079_v41, 0.0  ;;  %v2621_v44 = vadd.f32 -1.4531521, %v2609_v50  ;;  %v2092_v7 = vsel %vm5508_vm14, %v2085_v22, 0.0  ;;  %v8147_v50 = vld [vmem:[#allocation39_spill] sm:$0xff] }
 0x43e   : > { %v2327_v8 = vmul.f32 %v2313_v29, %v2291_v42  ;;  %v2328_v19 = vmul.f32 %v2313_v29, %v2292_v33  ;;  %v2622_v53 = vadd.f32 -1.4531521, %v2610_v51  ;;  %v2127_v4 = vmul.f32 %v2105_v17, %v2091_v3  ;;  %v8149_v2 = vld [vmem:[#allocation3_spill] sm:$0xff]  ;;  %v8150_v3 = vld [vmem:[#allocation97_spill] sm:$0xff] }
 0x43f   : > { %v2128_v31 = vmul.f32 %v2105_v17, %v2092_v7  ;;  %v2708_v60 = vmul.f32 %v2696_v48, %v6649_v10  ;;  %v2633_v34 = vmul.f32 %v2621_v44, %v6887_v12  ;;  %v2767_v57 = vmul.f32 %v3127_v16, %v2707_v56 }
 0x440   : > { %v2339_v25 = vadd.f32 %v2327_v8, %v2243_v55  ;;  %v2340_v63 = vadd.f32 %v2328_v19, %v2244_v13  ;;  %v2634_v49 = vmul.f32 %v2622_v53, %v6894_v9  ;;  %v6912_v32 = vadd.f32 %v2127_v4, %v8144_v38 }
 0x441   : > { %v6915_v1 = vadd.f32 %v2128_v31, %v8145_v37  ;;  %v2781_v20 = vsub.f32 1.0, %v6829_v5  ;;  %v2782_v54 = vsub.f32 1.0, %v6832_v6  ;;  %v2645_v18 = vadd.f32 1.4214138, %v2633_v34  ;;  %v8153_v31 = vld [vmem:[#allocation19_spill] sm:$0xff] }
 0x442   : > { %v2831_v41 = vmul.f32 %v6814_v59, %v2339_v25  ;;  %v2832_v10 = vmul.f32 %v6816_v30, %v2340_v63  ;;  %v2646_v22 = vadd.f32 1.4214138, %v2634_v49  ;;  %v8146_v48 = vmov -1.0   ;;  %v6932_v56 = vpop.permute.xlu1 %2153 }
 0x443   : > { %v2385_v16 = vsel %vm2373_vm2, 1.0, %v8146_v48  ;;  %vm2371_vm12 = vcmp.ge.f32.partialorder %v8147_v50, 0.0  ;;  %v2768_v42 = vmul.f32 %v3129_v24, %v2708_v60  ;;  %v2386_v5 = vsel %vm2374_vm7, 1.0, %v8146_v48 }
 0x444   : > { %2862 = vmatpush.msrb.mxu0 %v2831_v41  ;;  %2885 = vmatpush.msrb.mxu1 %v2832_v10  ;;  %v2779_v6 = vsub.f32 1.0, %v2767_v57  ;;  %v2631_v59 = vmul.f32 %v6842_v52, %v6715_v46  ;;  %v2620_v30 = vadd.f32 -1.4531521, %v6846_v23  ;;  %v2717_v33 = vsub.f32 0.0, %v6760_v26  ;;  %v6948_v44 = vpop.permute.xlu2 %2204  ;;  %v6952_v4 = vpop.permute.xlu0 %2151 }
 0x445   : > { %v2793_v21 = vmul.f32 %v2781_v20, %v2385_v16  ;;  %v2794_v51 = vmul.f32 %v2782_v54, %v2386_v5  ;;  %v2715_v24 = vsub.f32 0.0, %v8148_v61  ;;  %v2383_v55 = vsel %vm2371_vm12, 1.0, %v8146_v48 }
 0x446   : > { %vm2372_vm14 = vcmp.ge.f32.partialorder %v8149_v2, 0.0  ;;  %v2657_v43 = vmul.f32 %v2645_v18, %v6887_v12  ;;  %v2658_v13 = vmul.f32 %v2646_v22, %v6894_v9  ;;  %v2718_v52 = vsub.f32 0.0, %v6763_v27  ;;  %v8154_v18 = vld [vmem:[#allocation99_spill] sm:$0xff] }
 0x447   : > { %vm8151_vm3 = vcmp.lt.s32.totalorder %v4077_v35, 112  ;;  %v2780_v17 = vsub.f32 1.0, %v2768_v42  ;;  %v2791_v7 = vmul.f32 %v2779_v6, %v2383_v55  ;;  %v2643_v8 = vadd.f32 1.4214138, %v2631_v59  ;;  %v8155_v6 = vld [vmem:[#allocation168_spill] sm:$0xff]  ;;  %v8158_v55 = vld [vmem:[#allocation22_spill] sm:$0xff] }
 0x448   : > { %v2177_v23 = vsel %vm8151_vm3, %v6802_v39, %v8150_v3  ;;  %vm8152_vm2 = vmmov %vm8151_vm3  ;;  %v2632_v19 = vmul.f32 %v2620_v30, %v6818_v40  ;;  %v2729_v53 = vmul.f32 %v2717_v33, %v6760_v26  ;;  %v2349_v60 = vmul.f32 0.5, %v8153_v31 }
 0x449   : > { %v2183_v29 = vsel %vm8152_vm2, %v8150_v3, %v6802_v39  ;;  %v2805_v34 = vadd.f32 1.0, %v2793_v21  ;;  %v2384_v25 = vsel %vm2372_vm14, 1.0, %v8146_v48  ;;  %v2191_v63 = vsel %vm8112_vm15, %v2177_v23, 0.0  ;;  %vm8167_vm0 = vmmov %vm8152_vm2 }
 0x44a   : > { %v2192_v39 = vsel %vm5477_vm4, %v2183_v29, 0.0  ;;  %v2669_v57 = vadd.f32 -0.28449672, %v2657_v43  ;;  %v2670_v49 = vadd.f32 -0.28449672, %v2658_v13  ;;  %v2730_v38 = vmul.f32 %v2718_v52, %v6763_v27  ;;  %v2252_v5 = vpop.permute.xlu1 %2251  ;;  %vm8168_vm11 = vmmov %vm8167_vm0 }
 0x44b   : > { %v2806_v37 = vadd.f32 1.0, %v2794_v51  ;;  %v2792_v20 = vmul.f32 %v2780_v17, %v2384_v25  ;;  %v2727_v26 = vmul.f32 %v2715_v24, %v8148_v61  ;;  %v2803_v54 = vadd.f32 1.0, %v2791_v7  ;;  %v8161_v17 = vld [vmem:[#allocation32_spill] sm:$0xff] }
 0x44c   : > { %v2655_v41 = vmul.f32 %v2643_v8, %v6715_v46  ;;  %v2644_v10 = vadd.f32 1.4214138, %v2632_v19  ;;  %v2716_v22 = vsub.f32 0.0, %v8154_v18  ;;  %v2743_v16 = vmul.f32 1.442695, %v2729_v53  ;;  %v2305_v43 = vpop.permute.xlu2 %2304  ;;  %v8162_v8 = vld [vmem:[#allocation20_spill] sm:$0xff] }
 0x44d   : > { %v2227_v50 = vmul.f32 %v2209_v0, %v2191_v63  ;;  %v2228_v42 = vmul.f32 %v2209_v0, %v2192_v39  ;;  %v2347_v59 = vmul.f32 0.5, %v8155_v6  ;;  %vm8156_vm1 = vcmp.lt.s32.totalorder %v4077_v35, 111  ;;  %v6989_v63 = vpop.permute.xlu0 %2249 }
 0x44e   : > { %v2273_v27 = vsel %vm8156_vm1, %v2252_v5, %v6869_v45  ;;  %vm8157_vm8 = vmmov %vm8156_vm1  ;;  %v2681_v33 = vmul.f32 %v2669_v57, %v6887_v12  ;;  %v2682_v21 = vmul.f32 %v2670_v49, %v6894_v9  ;;  %v2745_v51 = vmul.f32 1.442695, %v2730_v38  ;;  %v8164_v38 = vld [vmem:[#allocation28_spill] sm:$0xff] }
 0x44f   : > { %v2279_v30 = vsel %vm8157_vm8, %v6869_v45, %v2252_v5  ;;  %v2287_v61 = vsel %vm5445_vm6, %v2273_v27, 0.0  ;;  %v2804_v24 = vadd.f32 1.0, %v2792_v20  ;;  %vm8159_vm7 = vmmov %vm8156_vm1  ;;  %v2815_v13 = vmul.f32 %v2803_v54, %v2347_v59  ;;  %v8160_v45 = vld [vmem:[#allocation25_spill] sm:$0xff] }
 0x450   : > { %v2288_v0 = vsel %vm5535_vm13, %v2279_v30, 0.0  ;;  %v2274_v2 = vsel %vm8159_vm7, %v6724_v36, %v8158_v55  ;;  %v2348_v52 = vmul.f32 0.5, %v8160_v45  ;;  %v2656_v3 = vmul.f32 %v2644_v10, %v6818_v40  ;;  %vm8163_vm5 = vmmov %vm8156_vm1 }
 0x451   : > { %v2323_v23 = vmul.f32 %v2305_v43, %v2287_v61  ;;  %v2324_v29 = vmul.f32 %v2305_v43, %v2288_v0  ;;  %v2239_v7 = vadd.f32 %v2227_v50, %v8161_v17  ;;  %v2240_v19 = vadd.f32 %v2228_v42, %v8162_v8  ;;  %vm8169_vm12 = vmmov %vm8156_vm1 }
 0x452   : > { %3130 = vpow2.f32 %v2743_v16  ;;  %v2280_v53 = vsel %vm8163_vm5, %v8158_v55, %v6724_v36  ;;  %v2693_v31 = vadd.f32 0.2548296, %v2681_v33  ;;  %v2694_v25 = vadd.f32 0.2548296, %v2682_v21  ;;  %v2309_v16 = vpop.permute.xlu1 %2308  ;;  %vm8170_vm14 = vmmov %vm8156_vm1 }
 0x453   : > { %3132 = vpow2.f32 %v2745_v51  ;;  %v2335_v39 = vadd.f32 %v2323_v23, %v2239_v7  ;;  %v2336_v57 = vadd.f32 %v2324_v29, %v2240_v19  ;;  %v2816_v49 = vmul.f32 %v2804_v24, %v2348_v52  ;;  %vm8177_vm1 = vmmov %vm8167_vm0 }
 0x454   : > { %v2350_v20 = vmul.f32 0.5, %v8164_v38  ;;  %v2667_v54 = vadd.f32 -0.28449672, %v2655_v41  ;;  %v2668_v10 = vadd.f32 -0.28449672, %v2656_v3  ;;  %v2728_v50 = vmul.f32 %v2716_v22, %v8154_v18  ;;  %vm8178_vm8 = vmmov %vm8167_vm0 }
 0x455   : > { %v2289_v42 = vsel %vm5445_vm6, %v2274_v2, 0.0  ;;  %v2290_v36 = vsel %vm5535_vm13, %v2280_v53, 0.0  ;;  %v2827_v5 = vmul.f32 %v2815_v13, %v2335_v39  ;;  %v2828_v6 = vmul.f32 %v2816_v49, %v2336_v57  ;;  %vm8179_vm7 = vmmov %vm8163_vm5 }
 0x456   : > { %v2325_v59 = vmul.f32 %v2309_v16, %v2289_v42  ;;  %v2326_v27 = vmul.f32 %v2309_v16, %v2290_v36  ;;  %v2705_v30 = vmul.f32 %v2693_v31, %v6887_v12  ;;  %v2706_v33 = vmul.f32 %v2694_v25, %v6894_v9  ;;  %v8171_v42 = vld [vmem:[#allocation138_spill] sm:$0xff] }
 0x457   : > { %v2817_v21 = vmul.f32 %v2805_v34, %v2349_v60  ;;  %v2818_v41 = vmul.f32 %v2806_v37, %v2350_v20  ;;  %v2739_v51 = vmul.f32 1.442695, %v2727_v26  ;;  %v2679_v0 = vmul.f32 %v2667_v54, %v6715_v46  ;;  %v2201_v34 = vpop.permute.xlu0 %2200 }
 0x458   : > { %v3131_v61 = vpop.eup %3130  ;;  %v2337_v18 = vadd.f32 %v2325_v59, %v6873_v11  ;;  %v2338_v22 = vadd.f32 %v2326_v27, %v6876_v28  ;;  %v2680_v24 = vmul.f32 %v2668_v10, %v6818_v40  ;;  %v2741_v2 = vmul.f32 1.442695, %v2728_v50  ;;  %v8165_v11 = vld [vmem:[#allocation157_spill] sm:$0xff]  ;;  %v8166_v28 = vld [vmem:[#allocation152_spill] sm:$0xff]  ;;  %v8173_v59 = vld [vmem:[#allocation38_spill] sm:$0xff] }
 0x459   : > { %v3133_v55 = vpop.eup %3132  ;;  %v2765_v45 = vmul.f32 %v3131_v61, %v2705_v30  ;;  %v2691_v9 = vadd.f32 0.2548296, %v2679_v0  ;;  %3134 = vpow2.f32 %v2739_v51  ;;  %vm2369_vm10 = vcmp.ge.f32.partialorder %v8165_v11, 0.0  ;;  %v8174_v30 = vld [vmem:[#allocation105_spill] sm:$0xff] }
 0x45a   : > { %v2829_v43 = vmul.f32 %v2817_v21, %v2337_v18  ;;  %v2830_v13 = vmul.f32 %v2818_v41, %v2338_v22  ;;  %v2766_v12 = vmul.f32 %v3133_v55, %v2706_v33  ;;  %v2692_v60 = vadd.f32 0.2548296, %v2680_v24  ;;  %v2164_v37 = vpop.permute.xlu1 %2163  ;;  %v8175_v22 = vld [vmem:[#allocation40_spill] sm:$0xff]  ;;  %v8176_v24 = vld [vmem:[#allocation103_spill] sm:$0xff] }
 0x45b   : > { %vm2370_vm9 = vcmp.ge.f32.partialorder %v8166_v28, 0.0  ;;  %3136 = vpow2.f32 %v2741_v2  ;;  %v2176_v26 = vsel %vm8167_vm0, %v6932_v56, %v6811_v47  ;;  %v2182_v52 = vsel %vm8168_vm11, %v6811_v47, %v6932_v56 }
 0x45c   : > { %2863 = vmatpush.msrb.mxu0 %v2829_v43  ;;  %2886 = vmatpush.msrb.mxu1 %v2830_v13  ;;  %v2777_v3 = vsub.f32 1.0, %v2765_v45  ;;  %v2778_v23 = vsub.f32 1.0, %v2766_v12  ;;  %v2703_v29 = vmul.f32 %v2691_v9, %v6715_v46  ;;  %v2704_v17 = vmul.f32 %v2692_v60, %v6818_v40 }
 0x45d   : > { %v2189_v7 = vsel %vm8112_vm15, %v2176_v26, 0.0  ;;  %v2190_v8 = vsel %vm5477_vm4, %v2182_v52, 0.0  ;;  %v2381_v19 = vsel %vm2369_vm10, 1.0, %v8146_v48  ;;  %v2382_v53 = vsel %vm2370_vm9, 1.0, %v8146_v48 }
 0x45e   : > { %2864 = vmatpush.msrb.mxu0 %v2827_v5  ;;  %2887 = vmatpush.msrb.mxu1 %v2828_v6  ;;  %v2789_v47 = vmul.f32 %v2777_v3, %v2381_v19  ;;  %v2790_v56 = vmul.f32 %v2778_v23, %v2382_v53  ;;  %v2225_v39 = vmul.f32 %v6948_v44, %v2189_v7  ;;  %v2345_v36 = vmul.f32 0.5, %v8171_v42  ;;  %v8172_v5 = vld [vmem:[#allocation135_spill] sm:$0xff]  ;;  %v2260_v3 = vpop.permute.xlu2 %2259  ;;  %v8181_v53 = vld [vmem:[#allocation18_spill] sm:$0xff] }
 0x45f   : > { %v3135_v31 = vpop.eup %3134  ;;  %v2226_v46 = vmul.f32 %v6948_v44, %v2190_v8  ;;  %v2301_v40 = vpop.permute.xlu0 %2300  ;;  %v2346_v6 = vmul.f32 0.5, %v8172_v5  ;;  %vm2367_vm3 = vcmp.ge.f32.partialorder %v8175_v22, 0.0  ;;  %vm2368_vm2 = vcmp.ge.f32.partialorder %v8176_v24, 0.0  ;;  %v8180_v8 = vld [vmem:[#allocation48_spill] sm:$0xff] }
 0x460   : > { %v2763_v49 = vmul.f32 %v3135_v31, %v2703_v29  ;;  %v2801_v10 = vadd.f32 1.0, %v2789_v47  ;;  %v2802_v50 = vadd.f32 1.0, %v2790_v56  ;;  %v2237_v27 = vadd.f32 %v2225_v39, %v8173_v59 }
 0x461   : > { %v3137_v25 = vpop.eup %3136  ;;  %v2238_v33 = vadd.f32 %v2226_v46, %v8174_v30  ;;  %v2175_v2 = vsel %vm8177_vm1, %v6952_v4, %v2164_v37  ;;  %v2181_v43 = vsel %vm8178_vm8, %v2164_v37, %v6952_v4  ;;  %v2379_v11 = vsel %vm2367_vm3, 1.0, %v8146_v48 }
 0x462   : > { %v2262_v57 = vpop.permute.xlu1 %2261  ;;  %v2764_v38 = vmul.f32 %v3137_v25, %v2704_v17  ;;  %v2813_v61 = vmul.f32 %v2801_v10, %v2345_v36  ;;  %v2814_v18 = vmul.f32 %v2802_v50, %v2346_v6  ;;  %v2775_v0 = vsub.f32 1.0, %v2763_v49  ;;  %v3152_v36 = vld [vmem:[%s3255_s18 + $0x18] sm:$0xff] }
 0x463   : > { %v2272_v20 = vsel %vm8169_vm12, %v6989_v63, %v2262_v57  ;;  %v2278_v54 = vsel %vm8170_vm14, %v2262_v57, %v6989_v63  ;;  %v2187_v9 = vsel %vm8112_vm15, %v2175_v2, 0.0  ;;  %v2188_v60 = vsel %vm5477_vm4, %v2181_v43, 0.0 }
 0x464   : > { %v2285_v16 = vsel %vm5445_vm6, %v2272_v20, 0.0  ;;  %v2286_v44 = vsel %vm5535_vm13, %v2278_v54, 0.0  ;;  %v2776_v55 = vsub.f32 1.0, %v2764_v38  ;;  %v2380_v28 = vsel %vm2368_vm2, 1.0, %v8146_v48  ;;  %v3149_v38 = vld [vmem:[%s3255_s18] sm:$0xff]  ;;  %v3150_v54 = vld [vmem:[%s3255_s18 + $0x8] sm:$0xff] }
 0x465   : > { %v2321_v21 = vmul.f32 %v2301_v40, %v2285_v16  ;;  %v2322_v41 = vmul.f32 %v2301_v40, %v2286_v44  ;;  %v2787_v26 = vmul.f32 %v2775_v0, %v2379_v11  ;;  %v2223_v23 = vmul.f32 %v2201_v34, %v2187_v9  ;;  %v2835_v40 = vld [vmem:[%s7088_s7] sm:$0xff]  ;;  %v3151_v44 = vld [vmem:[%s3255_s18 + $0x10] sm:$0xff] }
 0x466   : > { %v2788_v52 = vmul.f32 %v2776_v55, %v2380_v28  ;;  %v2224_v4 = vmul.f32 %v2201_v34, %v2188_v60  ;;  %v2343_v19 = vmul.f32 0.5, %v8180_v8  ;;  %v2344_v31 = vmul.f32 0.5, %v8181_v53 }
 0x467   : > { %v2333_v51 = vadd.f32 %v2321_v21, %v2237_v27  ;;  %v2334_v63 = vadd.f32 %v2322_v41, %v2238_v33  ;;  %v2799_v62 = vadd.f32 1.0, %v2787_v26  ;;  %v2235_v34 = vadd.f32 %v2223_v23, %v6912_v32  ;;  %v2836_v32 = vld [vmem:[%s7088_s7 + $0x8] sm:$0xff] }
 0x468   : > { %v2800_v17 = vadd.f32 1.0, %v2788_v52  ;;  %v2236_v47 = vadd.f32 %v2224_v4, %v6915_v1  ;;  %vm2837_vm4 = vcmask 343040  }
 0x469   : > { %v2825_v13 = vmul.f32 %v2813_v61, %v2333_v51  ;;  %v2826_v45 = vmul.f32 %v2814_v18, %v2334_v63  ;;  %v2811_v46 = vmul.f32 %v2799_v62, %v2343_v19 }
 0x46a   : > { %v2248_v12 = vpop.permute.xlu1 %2247  ;;  %v2812_v14 = vmul.f32 %v2800_v17, %v2344_v31 }
 0x46b   : > { %2865 = vmatpush.msrb.mxu0 %v2825_v13  ;;  %2888 = vmatpush.msrb.mxu1 %v2826_v45  ;;  %v2271_v37 = vsel %vm8179_vm7, %v2248_v12, %v2260_v3  ;;  %v2277_v29 = vsel %vm8163_vm5, %v2260_v3, %v2248_v12 }
 0x46c   : > { %v2283_v58 = vsel %vm5445_vm6, %v2271_v37, 0.0  ;;  %v2284_v7 = vsel %vm5535_vm13, %v2277_v29, 0.0 }
 0x472   : > { %v2297_v48 = vpop.permute.xlu1 %2296 }
 0x473   : > { %v2319_v56 = vmul.f32 %v2297_v48, %v2283_v58  ;;  %v2320_v35 = vmul.f32 %v2297_v48, %v2284_v7 }
 0x475   : > { %v2331_v25 = vadd.f32 %v2319_v56, %v2235_v34  ;;  %v2332_v39 = vadd.f32 %v2320_v35, %v2236_v47 }
 0x477   : > { %v2823_v57 = vmul.f32 %v2811_v46, %v2331_v25  ;;  %v2824_v15 = vmul.f32 %v2812_v14, %v2332_v39 }
 0x479   : > { %2866 = vmatpush.msrb.mxu0 %v2823_v57  ;;  %2889 = vmatpush.msrb.mxu1 %v2824_v15 }
 0x47a   : > { %2994 = vmatmul.msk.f32.vlgmr.msrb.gmra.mxu0 %vm2837_vm4, %v2835_v40  ;;  %2997 = vmatmul.msk.f32.vlgmr.msrb.gmra.mxu1 %vm2837_vm4, %v2835_v40 }
 0x482   : > { %2995 = vmatmul.msk.f32.gmra.mxu0 %vm2837_vm4, %v2836_v32  ;;  %2998 = vmatmul.msk.f32.gmra.mxu1 %vm2837_vm4, %v2836_v32 }
 0x4f7   : > { %v2868_v1 = vpop.f32.mrf.mxu0  ;;  %v2891_v49 = vpop.f32.mrf.mxu1 }
 0x4f8   : > { %v2897_v20 = vadd.f32 %v3149_v38, %v2868_v1  ;;  %v2898_v10 = vadd.f32 %v3150_v54, %v2891_v49 }
 0x4fa   : > { %2901 = vst [vmem:[%s305_s22] sm:$0xff] %v2897_v20 }
 0x4fb   : > { %2902 = vst [vmem:[%s305_s22 + $0x8] sm:$0xff] %v2898_v10 }
 0x4ff   : > { %v2871_v50 = vpop.f32.mrf.mxu0  ;;  %v2894_v16 = vpop.f32.mrf.mxu1 }
 0x500   : > { %v2899_v42 = vadd.f32 %v3151_v44, %v2871_v50  ;;  %v2900_v5 = vadd.f32 %v3152_v36, %v2894_v16 }
 0x502   : > { %2903 = vst [vmem:[%s305_s22 + $0x10] sm:$0xff] %v2899_v42 }
 0x503   : > { %2904 = vst [vmem:[%s305_s22 + $0x18] sm:$0xff] %v2900_v5 }
 0x504 PF: > { %s18_s27 = sadd.s32 1, %s3159_s27  }
 0x505   : > { %p15_p4 = scmp.ge.s32.totalorder %s18_s27, 4  }
 0x507   :  { %17 = sbr.rel (!%p15_p4) target bundleno = 1 (0x1), region = 82 }

</bundles_post_ra>
